<compile_context>
chip_gen: v7x
topology: tpu7x:2x2x1
jax: 0.10.0
libtpu: 0.0.40
codegen_flags: <defaults>
</compile_context>

<pallas_src>
import functools

import jax
import jax.numpy as jnp
from jax.experimental import pallas as pl
from jax.experimental.pallas import tpu as pltpu


L_IN, C_IN = 128, 3            # backbone input (length must be 128 -> flatten == 1024)
FLAT_L, FLAT_C = 4, 256        # backbone output (length, channels) before flatten
HIDDEN = 128
TB_MAX = 16                    # batch elements per grid step (safe on v7x 64 MiB VMEM)


# ----------------------------- Pallas kernel --------------------------------

def _conv_block(h, L, w_ref, b_ref, pool):
    """Conv1d(k=3, pad=1) + bias + ReLU (+ optional MaxPool1d(2,2)).

    h:     (TB*L, Cin) f32 activation, rows ordered b*L + l (TB elements stacked).
    w_ref: (3, Cin, Cout) bf16 ref (tap-major), b_ref: (1, Cout) f32 ref.
    Boundary handling: the three conv taps are computed as three full-tile matmuls
    on the (rolled + masked) *input*; masks use a (rows,1) column so the VPU work
    stays O(rows) instead of O(rows*Cout).
    """
    TBL = h.shape[0]
    cout = w_ref.shape[2]
    lpos = jax.lax.broadcasted_iota(jnp.int32, (TBL, 1), 0) % L      # position within element
    h_prev = jnp.where(lpos == 0, 0.0, pltpu.roll(h, shift=1, axis=0))          # h[l-1]
    h_next = jnp.where(lpos == L - 1, 0.0, pltpu.roll(h, shift=TBL - 1, axis=0))  # h[l+1]
    acc = (jnp.dot(h_prev.astype(jnp.bfloat16), w_ref[0], preferred_element_type=jnp.float32)
           + jnp.dot(h.astype(jnp.bfloat16), w_ref[1], preferred_element_type=jnp.float32)
           + jnp.dot(h_next.astype(jnp.bfloat16), w_ref[2], preferred_element_type=jnp.float32)
           + b_ref[...])
    acc = jnp.maximum(acc, 0.0)
    if pool:
        # Pairs (2i, 2i+1) never cross batch elements because every L is even.
        acc = jnp.max(acc.reshape(TBL // 2, 2, cout), axis=1)        # MaxPool1d(2,2)
    return acc


def _fused_kernel(use_wmul, tb, *refs):
    """Entire model forward for TB batch elements, fully VMEM-resident."""
    if use_wmul:
        (x_ref, wmul_ref,
         w1, b1, w2, b2, w3, b3, w4, b4, w5, b5, w6, b6,
         pw1, pb1, pw2, pb2, o_ref) = refs
    else:
        (x_ref,
         w1, b1, w2, b2, w3, b3, w4, b4, w5, b5, w6, b6,
         pw1, pb1, pw2, pb2, o_ref) = refs
        wmul_ref = None

    # conv1 was pre-im2col'ed in the wrapper: single (TB*128, 9) x (9, 64) matmul.
    h = jnp.dot(x_ref[0].astype(jnp.bfloat16), w1[...],
                preferred_element_type=jnp.float32) + b1[...]
    h = jnp.maximum(h, 0.0)                          # (TB*128, 64)

    h = _conv_block(h, 128, w2, b2, pool=True)       # (TB*64, 64)
    h = _conv_block(h, 64, w3, b3, pool=True)        # (TB*32, 128)
    h = _conv_block(h, 32, w4, b4, pool=True)        # (TB*16, 256)
    h = _conv_block(h, 16, w5, b5, pool=True)        # (TB*8, 512)
    h = _conv_block(h, 8, w6, b6, pool=True)         # (TB*4, 256)

    # torch.mul(x, weight.detach()): weight rearranged to (TB*L, C) in the wrapper.
    if use_wmul:
        h = h * wmul_ref[0]

    # Predictor: Linear(1024,128) -> ReLU -> Dropout(eval id) -> Linear(128,1) -> Sigmoid.
    # torch.flatten's channel-major order is folded into pw1 (shape (L, C, 128)); the
    # four (TB,256)x(256,128) matmuls are independent and summed at the end.
    h3 = h.reshape(tb, FLAT_L, FLAT_C)
    parts = [jnp.dot(h3[:, l, :], pw1[l], preferred_element_type=jnp.float32)
             for l in range(FLAT_L)]
    hid = parts[0] + parts[1] + parts[2] + parts[3] + pb1[...]
    hid = jnp.maximum(hid, 0.0)
    # TODO(synk): nn.Dropout() is only active in training mode; eval-mode identity is used.
    y = jnp.dot(hid, pw2[...], preferred_element_type=jnp.float32) + pb2[...]
    o_ref[0] = jax.nn.sigmoid(y).astype(o_ref.dtype)


# ------------------------------ Wrapper --------------------------------------

def _resident_spec(shape):
    """Full-array block with a constant index map (stays VMEM-resident across grid)."""
    nd = len(shape)

    def index_map(i):
        return (0,) * nd

    return pl.BlockSpec(shape, index_map)


def _choose_tb(B):
    return B if B <= TB_MAX else TB_MAX


@jax.jit
def model_forward(params, x_ncl, weight=None):
    """x_ncl: (B, 3, 128) float32 (PyTorch NCL). Returns (B, 1) sigmoid scores."""
    B, C, L = x_ncl.shape
    if (C, L) != (C_IN, L_IN):
        raise ValueError(f"expected input (B, {C_IN}, {L_IN}), got {x_ncl.shape}")

    tb = _choose_tb(B)
    g = -(-B // tb)                 # number of grid steps
    bp = g * tb                     # padded batch
    pad = bp - B

    # conv1 im2col in the wrapper: (B, 128, 9) = [x[l-1], x[l], x[l+1]] channels-last.
    x_cl = jnp.transpose(x_ncl, (0, 2, 1)).astype(jnp.float32)       # (B, 128, 3)
    zrow = jnp.zeros((B, 1, C_IN), jnp.float32)
    x_prev = jnp.concatenate([zrow, x_cl[:, :-1, :]], axis=1)
    x_next = jnp.concatenate([x_cl[:, 1:, :], zrow], axis=1)
    x_im = jnp.concatenate([x_prev, x_cl, x_next], axis=-1)          # (B, 128, 9)
    if pad:
        x_im = jnp.concatenate(
            [x_im, jnp.zeros((pad, L_IN, 3 * C_IN), jnp.float32)], axis=0)
    x_blk = x_im.reshape(g, tb * L_IN, 3 * C_IN)

    use_wmul = weight is not None
    flat_args = [x_blk]
    in_specs = [pl.BlockSpec((1, tb * L_IN, 3 * C_IN), lambda i: (i, 0, 0))]

    if use_wmul:
        w = jnp.broadcast_to(jax.lax.stop_gradient(weight),
                             (B, FLAT_C * FLAT_L)).astype(jnp.float32)
        # torch flatten order is k = c*L + l -> rearrange to (L, C) to match kernel layout.
        wmul = jnp.transpose(w.reshape(B, FLAT_C, FLAT_L), (0, 2, 1))  # (B, L, C)
        if pad:
            wmul = jnp.concatenate(
                [wmul, jnp.zeros((pad, FLAT_L, FLAT_C), jnp.float32)], axis=0)
        wmul_blk = wmul.reshape(g, tb * FLAT_L, FLAT_C)
        flat_args.append(wmul_blk)
        in_specs.append(pl.BlockSpec((1, tb * FLAT_L, FLAT_C), lambda i: (i, 0, 0)))

    for wgt, bias in params["convs"]:
        flat_args += [wgt, bias]
    flat_args += [params["fc1"][0], params["fc1"][1],
                  params["fc2"][0], params["fc2"][1]]
    in_specs += [_resident_spec(a.shape)
                 for a in flat_args[(2 if use_wmul else 1):]]

    out = pl.pallas_call(
        functools.partial(_fused_kernel, use_wmul, tb),
        out_shape=jax.ShapeDtypeStruct((g, tb, 1), jnp.float32),
        grid=(g,),
        in_specs=in_specs,
        out_specs=pl.BlockSpec((1, tb, 1), lambda i: (i, 0, 0)),
        compiler_params=pltpu.CompilerParams(
            dimension_semantics=("parallel",),     # v7x: the two TCs split the grid
            vmem_limit_bytes=32 * 1024 * 1024,     # safe on v7x (64 MiB physical)
        ),
    )(*flat_args)
    return out.reshape(bp, 1)[:B]


# --------------------------- Parameter creation ------------------------------

def init_params(key):
    """Deterministic init mirroring model._initialize_weights()."""
    conv_shapes = [(64, 3), (64, 64), (128, 64), (256, 128), (512, 256), (256, 512)]  # (Cout, Cin)
    keys = jax.random.split(key, len(conv_shapes) + 2)
    convs = []
    for i, (co, ci) in enumerate(conv_shapes):
        fan_out = co * 3                                   # kaiming_normal_, mode='fan_out', relu
        std = (2.0 / fan_out) ** 0.5
        w = jax.random.normal(keys[i], (co, ci, 3), jnp.float32) * std   # PyTorch (Cout, Cin, K)
        w = jnp.transpose(w, (2, 1, 0))                    # -> (K, Cin, Cout) kernel layout
        if i == 0:
            w = w.reshape(3 * ci, co)                      # conv1 is im2col'ed: (9, 64)
        w = w.astype(jnp.bfloat16)                         # bf16 weights, f32 accumulation
        b = jnp.zeros((1, co), jnp.float32)
        convs.append((w, b))

    # Linear layers: normal(0, 0.01), bias 0.
    w1 = jax.random.normal(keys[-2], (HIDDEN, FLAT_C * FLAT_L), jnp.float32) * 0.01  # (out, in)
    # Fold torch.flatten's channel-major order (k = c*4 + l) into the weight:
    # (128, 1024) -> (1024, 128) -> (C, L, 128) -> (L, C, 128)
    pw1 = jnp.transpose(jnp.transpose(w1).reshape(FLAT_C, FLAT_L, HIDDEN), (1, 0, 2))
    pb1 = jnp.zeros((1, HIDDEN), jnp.float32)
    w2 = jax.random.normal(keys[-1], (1, HIDDEN), jnp.float32) * 0.01
    pw2 = jnp.transpose(w2)                                # (128, 1)
    pb2 = jnp.zeros((1, 1), jnp.float32)
    return {"convs": convs, "fc1": (pw1, pb1), "fc2": (pw2, pb2)}


if __name__ == "__main__":
    key = jax.random.PRNGKey(0)
    pkey, xkey, wkey = jax.random.split(key, 3)
    params = init_params(pkey)
    # Input length must be 128 so the backbone output flattens to 256*4 = 1024.
    x = jax.random.normal(xkey, (2, 3, 128), jnp.float32)

    out = model_forward(params, x)
    jax.block_until_ready(out)
    assert out.shape == (2, 1)
    assert bool(jnp.all((out >= 0.0) & (out <= 1.0)))

    # Also exercise the `weight is not None` path (torch.mul(x, weight.detach())).
    wmul = jax.random.uniform(wkey, (FLAT_C * FLAT_L,), jnp.float32)
    out_w = model_forward(params, x, wmul)
    jax.block_until_ready(out_w)
    assert out_w.shape == (2, 1)
    assert bool(jnp.all((out_w >= 0.0) & (out_w <= 1.0)))

    print("KERNEL_OK")
</pallas_src>

<mosaic_0001>
module attributes {stable_mosaic.version = 11 : i64} {
  func.func @_fused_kernel(%arg0: i32, %arg1: memref<1x256x9xf32, #tpu.memory_space<vmem>>, %arg2: memref<9x64xbf16, #tpu.memory_space<vmem>>, %arg3: memref<1x64xf32, #tpu.memory_space<vmem>>, %arg4: memref<3x64x64xbf16, #tpu.memory_space<vmem>>, %arg5: memref<1x64xf32, #tpu.memory_space<vmem>>, %arg6: memref<3x64x128xbf16, #tpu.memory_space<vmem>>, %arg7: memref<1x128xf32, #tpu.memory_space<vmem>>, %arg8: memref<3x128x256xbf16, #tpu.memory_space<vmem>>, %arg9: memref<1x256xf32, #tpu.memory_space<vmem>>, %arg10: memref<3x256x512xbf16, #tpu.memory_space<vmem>>, %arg11: memref<1x512xf32, #tpu.memory_space<vmem>>, %arg12: memref<3x512x256xbf16, #tpu.memory_space<vmem>>, %arg13: memref<1x256xf32, #tpu.memory_space<vmem>>, %arg14: memref<4x256x128xf32, #tpu.memory_space<vmem>>, %arg15: memref<1x128xf32, #tpu.memory_space<vmem>>, %arg16: memref<128x1xf32, #tpu.memory_space<vmem>>, %arg17: memref<1x1xf32, #tpu.memory_space<vmem>>, %arg18: memref<1x2x1xf32, #tpu.memory_space<vmem>>) attributes {dimension_semantics = [#tpu.dimension_semantics<parallel>], iteration_bounds = array<i64: 1>, scalar_prefetch = 0 : i64, scratch_operands = 0 : i64, tpu.core_type = #tpu.core_type<tc>, window_params = [{transform_indices = @transform_0, window_bounds = array<i64: 1, 256, 9>}, {pipeline_mode = #tpu.pipeline_mode<synchronous>, transform_indices = @transform_1, window_bounds = array<i64: 9, 64>}, {pipeline_mode = #tpu.pipeline_mode<synchronous>, transform_indices = @transform_2, window_bounds = array<i64: 1, 64>}, {pipeline_mode = #tpu.pipeline_mode<synchronous>, transform_indices = @transform_3, window_bounds = array<i64: 3, 64, 64>}, {pipeline_mode = #tpu.pipeline_mode<synchronous>, transform_indices = @transform_4, window_bounds = array<i64: 1, 64>}, {pipeline_mode = #tpu.pipeline_mode<synchronous>, transform_indices = @transform_5, window_bounds = array<i64: 3, 64, 128>}, {pipeline_mode = #tpu.pipeline_mode<synchronous>, transform_indices = @transform_6, window_bounds = array<i64: 1, 128>}, {pipeline_mode = #tpu.pipeline_mode<synchronous>, transform_indices = @transform_7, window_bounds = array<i64: 3, 128, 256>}, {pipeline_mode = #tpu.pipeline_mode<synchronous>, transform_indices = @transform_8, window_bounds = array<i64: 1, 256>}, {pipeline_mode = #tpu.pipeline_mode<synchronous>, transform_indices = @transform_9, window_bounds = array<i64: 3, 256, 512>}, {pipeline_mode = #tpu.pipeline_mode<synchronous>, transform_indices = @transform_10, window_bounds = array<i64: 1, 512>}, {pipeline_mode = #tpu.pipeline_mode<synchronous>, transform_indices = @transform_11, window_bounds = array<i64: 3, 512, 256>}, {pipeline_mode = #tpu.pipeline_mode<synchronous>, transform_indices = @transform_12, window_bounds = array<i64: 1, 256>}, {pipeline_mode = #tpu.pipeline_mode<synchronous>, transform_indices = @transform_13, window_bounds = array<i64: 4, 256, 128>}, {pipeline_mode = #tpu.pipeline_mode<synchronous>, transform_indices = @transform_14, window_bounds = array<i64: 1, 128>}, {pipeline_mode = #tpu.pipeline_mode<synchronous>, transform_indices = @transform_15, window_bounds = array<i64: 128, 1>}, {pipeline_mode = #tpu.pipeline_mode<synchronous>, transform_indices = @transform_16, window_bounds = array<i64: 1, 1>}, {transform_indices = @transform_17, window_bounds = array<i64: 1, 2, 1>}]} {
    %c0 = arith.constant 0 : index
    %c0_0 = arith.constant 0 : index
    %c0_1 = arith.constant 0 : index
    %0 = vector.load %arg1[%c0, %c0_0, %c0_1] : memref<1x256x9xf32, #tpu.memory_space<vmem>>, vector<1x256x9xf32>
    %1 = vector.shape_cast %0 : vector<1x256x9xf32> to vector<256x9xf32>
    %2 = arith.truncf %1 : vector<256x9xf32> to vector<256x9xbf16>
    %c0_2 = arith.constant 0 : index
    %c0_3 = arith.constant 0 : index
    %3 = vector.load %arg2[%c0_2, %c0_3] : memref<9x64xbf16, #tpu.memory_space<vmem>>, vector<9x64xbf16>
    %cst = arith.constant dense<0.000000e+00> : vector<256x64xf32>
    %4 = tpu.matmul %2, %3, %cst {dimension_numbers = #tpu.dot_dimension_numbers<[1], [0], [0], [1], [0, 0, 1, 1], [], []>} : vector<256x9xbf16>, vector<9x64xbf16>, vector<256x64xf32> -> vector<256x64xf32>
    %c0_4 = arith.constant 0 : index
    %c0_5 = arith.constant 0 : index
    %5 = vector.load %arg3[%c0_4, %c0_5] : memref<1x64xf32, #tpu.memory_space<vmem>>, vector<1x64xf32>
    %6 = vector.broadcast %5 : vector<1x64xf32> to vector<256x64xf32>
    %7 = arith.addf %4, %6 : vector<256x64xf32>
    %cst_6 = arith.constant 0.000000e+00 : f32
    %8 = vector.broadcast %cst_6 : f32 to vector<256x64xf32>
    %9 = arith.maximumf %7, %8 : vector<256x64xf32>
    %10 = tpu.iota {dimensions = array<i32: 0>} : vector<256x1xi32>
    %c128_i32 = arith.constant 128 : i32
    %c0_i32 = arith.constant 0 : i32
    %11 = arith.cmpi eq, %c128_i32, %c0_i32 : i32
    %c1_i32 = arith.constant 1 : i32
    %12 = arith.select %11, %c1_i32, %c128_i32 : i32
    %13 = vector.broadcast %12 : i32 to vector<256x1xi32>
    %14 = arith.remsi %10, %13 : vector<256x1xi32>
    %c0_i32_7 = arith.constant 0 : i32
    %15 = vector.broadcast %c0_i32_7 : i32 to vector<256x1xi32>
    %16 = arith.cmpi ne, %14, %15 : vector<256x1xi32>
    %c0_i32_8 = arith.constant 0 : i32
    %17 = vector.broadcast %c0_i32_8 : i32 to vector<256x1xi32>
    %18 = arith.cmpi slt, %14, %17 : vector<256x1xi32>
    %c0_i32_9 = arith.constant 0 : i32
    %19 = arith.cmpi slt, %12, %c0_i32_9 : i32
    %20 = vector.broadcast %19 : i1 to vector<256x1xi1>
    %21 = vector.broadcast %20 : vector<256x1xi1> to vector<256x1xi1>
    %22 = arith.xori %18, %21 : vector<256x1xi1>
    %23 = arith.andi %22, %16 : vector<256x1xi1>
    %24 = vector.broadcast %12 : i32 to vector<256x1xi32>
    %25 = arith.addi %14, %24 : vector<256x1xi32>
    %26 = arith.select %23, %25, %14 : vector<256x1xi1>, vector<256x1xi32>
    %c0_i32_10 = arith.constant 0 : i32
    %27 = vector.broadcast %c0_i32_10 : i32 to vector<256x1xi32>
    %28 = arith.cmpi eq, %26, %27 : vector<256x1xi32>
    %c1_i32_11 = arith.constant 1 : i32
    %29 = tpu.dynamic_rotate %9 by %c1_i32_11 dim 0 : vector<256x64xf32>, i32 -> vector<256x64xf32>
    %cst_12 = arith.constant 0.000000e+00 : f32
    %30 = vector.shape_cast %28 : vector<256x1xi1> to vector<256x1xi1>
    %31 = vector.broadcast %30 : vector<256x1xi1> to vector<256x64xi1>
    %32 = vector.broadcast %cst_12 : f32 to vector<256x64xf32>
    %33 = arith.select %31, %32, %29 : vector<256x64xi1>, vector<256x64xf32>
    %c127_i32 = arith.constant 127 : i32
    %34 = vector.broadcast %c127_i32 : i32 to vector<256x1xi32>
    %35 = arith.cmpi eq, %26, %34 : vector<256x1xi32>
    %c255_i32 = arith.constant 255 : i32
    %36 = tpu.dynamic_rotate %9 by %c255_i32 dim 0 : vector<256x64xf32>, i32 -> vector<256x64xf32>
    %cst_13 = arith.constant 0.000000e+00 : f32
    %37 = vector.shape_cast %35 : vector<256x1xi1> to vector<256x1xi1>
    %38 = vector.broadcast %37 : vector<256x1xi1> to vector<256x64xi1>
    %39 = vector.broadcast %cst_13 : f32 to vector<256x64xf32>
    %40 = arith.select %38, %39, %36 : vector<256x64xi1>, vector<256x64xf32>
    %41 = arith.truncf %33 : vector<256x64xf32> to vector<256x64xbf16>
    %c0_14 = arith.constant 0 : index
    %c0_15 = arith.constant 0 : index
    %c0_16 = arith.constant 0 : index
    %42 = vector.load %arg4[%c0_14, %c0_15, %c0_16] : memref<3x64x64xbf16, #tpu.memory_space<vmem>>, vector<1x64x64xbf16>
    %43 = vector.shape_cast %42 : vector<1x64x64xbf16> to vector<64x64xbf16>
    %cst_17 = arith.constant dense<0.000000e+00> : vector<256x64xf32>
    %44 = tpu.matmul %41, %43, %cst_17 {dimension_numbers = #tpu.dot_dimension_numbers<[1], [0], [0], [1], [0, 0, 1, 1], [], []>} : vector<256x64xbf16>, vector<64x64xbf16>, vector<256x64xf32> -> vector<256x64xf32>
    %45 = arith.truncf %9 : vector<256x64xf32> to vector<256x64xbf16>
    %c1 = arith.constant 1 : index
    %c0_18 = arith.constant 0 : index
    %c0_19 = arith.constant 0 : index
    %46 = vector.load %arg4[%c1, %c0_18, %c0_19] : memref<3x64x64xbf16, #tpu.memory_space<vmem>>, vector<1x64x64xbf16>
    %47 = vector.shape_cast %46 : vector<1x64x64xbf16> to vector<64x64xbf16>
    %cst_20 = arith.constant dense<0.000000e+00> : vector<256x64xf32>
    %48 = tpu.matmul %45, %47, %cst_20 {dimension_numbers = #tpu.dot_dimension_numbers<[1], [0], [0], [1], [0, 0, 1, 1], [], []>} : vector<256x64xbf16>, vector<64x64xbf16>, vector<256x64xf32> -> vector<256x64xf32>
    %49 = arith.addf %44, %48 : vector<256x64xf32>
    %50 = arith.truncf %40 : vector<256x64xf32> to vector<256x64xbf16>
    %c2 = arith.constant 2 : index
    %c0_21 = arith.constant 0 : index
    %c0_22 = arith.constant 0 : index
    %51 = vector.load %arg4[%c2, %c0_21, %c0_22] : memref<3x64x64xbf16, #tpu.memory_space<vmem>>, vector<1x64x64xbf16>
    %52 = vector.shape_cast %51 : vector<1x64x64xbf16> to vector<64x64xbf16>
    %cst_23 = arith.constant dense<0.000000e+00> : vector<256x64xf32>
    %53 = tpu.matmul %50, %52, %cst_23 {dimension_numbers = #tpu.dot_dimension_numbers<[1], [0], [0], [1], [0, 0, 1, 1], [], []>} : vector<256x64xbf16>, vector<64x64xbf16>, vector<256x64xf32> -> vector<256x64xf32>
    %54 = arith.addf %49, %53 : vector<256x64xf32>
    %c0_24 = arith.constant 0 : index
    %c0_25 = arith.constant 0 : index
    %55 = vector.load %arg5[%c0_24, %c0_25] : memref<1x64xf32, #tpu.memory_space<vmem>>, vector<1x64xf32>
    %56 = vector.broadcast %55 : vector<1x64xf32> to vector<256x64xf32>
    %57 = arith.addf %54, %56 : vector<256x64xf32>
    %cst_26 = arith.constant 0.000000e+00 : f32
    %58 = vector.broadcast %cst_26 : f32 to vector<256x64xf32>
    %59 = arith.maximumf %57, %58 : vector<256x64xf32>
    %60 = vector.shape_cast %59 : vector<256x64xf32> to vector<128x2x64xf32>
    %cst_27 = arith.constant dense<0xFF800000> : vector<128x64xf32>
    %61 = vector.multi_reduction <maximumf>, %60, %cst_27 [1] : vector<128x2x64xf32> to vector<128x64xf32>
    %62 = tpu.iota {dimensions = array<i32: 0>} : vector<128x1xi32>
    %c64_i32 = arith.constant 64 : i32
    %c0_i32_28 = arith.constant 0 : i32
    %63 = arith.cmpi eq, %c64_i32, %c0_i32_28 : i32
    %c1_i32_29 = arith.constant 1 : i32
    %64 = arith.select %63, %c1_i32_29, %c64_i32 : i32
    %65 = vector.broadcast %64 : i32 to vector<128x1xi32>
    %66 = arith.remsi %62, %65 : vector<128x1xi32>
    %c0_i32_30 = arith.constant 0 : i32
    %67 = vector.broadcast %c0_i32_30 : i32 to vector<128x1xi32>
    %68 = arith.cmpi ne, %66, %67 : vector<128x1xi32>
    %c0_i32_31 = arith.constant 0 : i32
    %69 = vector.broadcast %c0_i32_31 : i32 to vector<128x1xi32>
    %70 = arith.cmpi slt, %66, %69 : vector<128x1xi32>
    %c0_i32_32 = arith.constant 0 : i32
    %71 = arith.cmpi slt, %64, %c0_i32_32 : i32
    %72 = vector.broadcast %71 : i1 to vector<128x1xi1>
    %73 = vector.broadcast %72 : vector<128x1xi1> to vector<128x1xi1>
    %74 = arith.xori %70, %73 : vector<128x1xi1>
    %75 = arith.andi %74, %68 : vector<128x1xi1>
    %76 = vector.broadcast %64 : i32 to vector<128x1xi32>
    %77 = arith.addi %66, %76 : vector<128x1xi32>
    %78 = arith.select %75, %77, %66 : vector<128x1xi1>, vector<128x1xi32>
    %c0_i32_33 = arith.constant 0 : i32
    %79 = vector.broadcast %c0_i32_33 : i32 to vector<128x1xi32>
    %80 = arith.cmpi eq, %78, %79 : vector<128x1xi32>
    %c1_i32_34 = arith.constant 1 : i32
    %81 = tpu.dynamic_rotate %61 by %c1_i32_34 dim 0 : vector<128x64xf32>, i32 -> vector<128x64xf32>
    %cst_35 = arith.constant 0.000000e+00 : f32
    %82 = vector.shape_cast %80 : vector<128x1xi1> to vector<128x1xi1>
    %83 = vector.broadcast %82 : vector<128x1xi1> to vector<128x64xi1>
    %84 = vector.broadcast %cst_35 : f32 to vector<128x64xf32>
    %85 = arith.select %83, %84, %81 : vector<128x64xi1>, vector<128x64xf32>
    %c63_i32 = arith.constant 63 : i32
    %86 = vector.broadcast %c63_i32 : i32 to vector<128x1xi32>
    %87 = arith.cmpi eq, %78, %86 : vector<128x1xi32>
    %c127_i32_36 = arith.constant 127 : i32
    %88 = tpu.dynamic_rotate %61 by %c127_i32_36 dim 0 : vector<128x64xf32>, i32 -> vector<128x64xf32>
    %cst_37 = arith.constant 0.000000e+00 : f32
    %89 = vector.shape_cast %87 : vector<128x1xi1> to vector<128x1xi1>
    %90 = vector.broadcast %89 : vector<128x1xi1> to vector<128x64xi1>
    %91 = vector.broadcast %cst_37 : f32 to vector<128x64xf32>
    %92 = arith.select %90, %91, %88 : vector<128x64xi1>, vector<128x64xf32>
    %93 = arith.truncf %85 : vector<128x64xf32> to vector<128x64xbf16>
    %c0_38 = arith.constant 0 : index
    %c0_39 = arith.constant 0 : index
    %c0_40 = arith.constant 0 : index
    %94 = vector.load %arg6[%c0_38, %c0_39, %c0_40] : memref<3x64x128xbf16, #tpu.memory_space<vmem>>, vector<1x64x128xbf16>
    %95 = vector.shape_cast %94 : vector<1x64x128xbf16> to vector<64x128xbf16>
    %cst_41 = arith.constant dense<0.000000e+00> : vector<128x128xf32>
    %96 = tpu.matmul %93, %95, %cst_41 {dimension_numbers = #tpu.dot_dimension_numbers<[1], [0], [0], [1], [0, 0, 1, 1], [], []>} : vector<128x64xbf16>, vector<64x128xbf16>, vector<128x128xf32> -> vector<128x128xf32>
    %97 = arith.truncf %61 : vector<128x64xf32> to vector<128x64xbf16>
    %c1_42 = arith.constant 1 : index
    %c0_43 = arith.constant 0 : index
    %c0_44 = arith.constant 0 : index
    %98 = vector.load %arg6[%c1_42, %c0_43, %c0_44] : memref<3x64x128xbf16, #tpu.memory_space<vmem>>, vector<1x64x128xbf16>
    %99 = vector.shape_cast %98 : vector<1x64x128xbf16> to vector<64x128xbf16>
    %cst_45 = arith.constant dense<0.000000e+00> : vector<128x128xf32>
    %100 = tpu.matmul %97, %99, %cst_45 {dimension_numbers = #tpu.dot_dimension_numbers<[1], [0], [0], [1], [0, 0, 1, 1], [], []>} : vector<128x64xbf16>, vector<64x128xbf16>, vector<128x128xf32> -> vector<128x128xf32>
    %101 = arith.addf %96, %100 : vector<128x128xf32>
    %102 = arith.truncf %92 : vector<128x64xf32> to vector<128x64xbf16>
    %c2_46 = arith.constant 2 : index
    %c0_47 = arith.constant 0 : index
    %c0_48 = arith.constant 0 : index
    %103 = vector.load %arg6[%c2_46, %c0_47, %c0_48] : memref<3x64x128xbf16, #tpu.memory_space<vmem>>, vector<1x64x128xbf16>
    %104 = vector.shape_cast %103 : vector<1x64x128xbf16> to vector<64x128xbf16>
    %cst_49 = arith.constant dense<0.000000e+00> : vector<128x128xf32>
    %105 = tpu.matmul %102, %104, %cst_49 {dimension_numbers = #tpu.dot_dimension_numbers<[1], [0], [0], [1], [0, 0, 1, 1], [], []>} : vector<128x64xbf16>, vector<64x128xbf16>, vector<128x128xf32> -> vector<128x128xf32>
    %106 = arith.addf %101, %105 : vector<128x128xf32>
    %c0_50 = arith.constant 0 : index
    %c0_51 = arith.constant 0 : index
    %107 = vector.load %arg7[%c0_50, %c0_51] : memref<1x128xf32, #tpu.memory_space<vmem>>, vector<1x128xf32>
    %108 = vector.broadcast %107 : vector<1x128xf32> to vector<128x128xf32>
    %109 = arith.addf %106, %108 : vector<128x128xf32>
    %cst_52 = arith.constant 0.000000e+00 : f32
    %110 = vector.broadcast %cst_52 : f32 to vector<128x128xf32>
    %111 = arith.maximumf %109, %110 : vector<128x128xf32>
    %112 = vector.shape_cast %111 : vector<128x128xf32> to vector<64x2x128xf32>
    %cst_53 = arith.constant dense<0xFF800000> : vector<64x128xf32>
    %113 = vector.multi_reduction <maximumf>, %112, %cst_53 [1] : vector<64x2x128xf32> to vector<64x128xf32>
    %114 = tpu.iota {dimensions = array<i32: 0>} : vector<64x1xi32>
    %c32_i32 = arith.constant 32 : i32
    %c0_i32_54 = arith.constant 0 : i32
    %115 = arith.cmpi eq, %c32_i32, %c0_i32_54 : i32
    %c1_i32_55 = arith.constant 1 : i32
    %116 = arith.select %115, %c1_i32_55, %c32_i32 : i32
    %117 = vector.broadcast %116 : i32 to vector<64x1xi32>
    %118 = arith.remsi %114, %117 : vector<64x1xi32>
    %c0_i32_56 = arith.constant 0 : i32
    %119 = vector.broadcast %c0_i32_56 : i32 to vector<64x1xi32>
    %120 = arith.cmpi ne, %118, %119 : vector<64x1xi32>
    %c0_i32_57 = arith.constant 0 : i32
    %121 = vector.broadcast %c0_i32_57 : i32 to vector<64x1xi32>
    %122 = arith.cmpi slt, %118, %121 : vector<64x1xi32>
    %c0_i32_58 = arith.constant 0 : i32
    %123 = arith.cmpi slt, %116, %c0_i32_58 : i32
    %124 = vector.broadcast %123 : i1 to vector<64x1xi1>
    %125 = vector.broadcast %124 : vector<64x1xi1> to vector<64x1xi1>
    %126 = arith.xori %122, %125 : vector<64x1xi1>
    %127 = arith.andi %126, %120 : vector<64x1xi1>
    %128 = vector.broadcast %116 : i32 to vector<64x1xi32>
    %129 = arith.addi %118, %128 : vector<64x1xi32>
    %130 = arith.select %127, %129, %118 : vector<64x1xi1>, vector<64x1xi32>
    %c0_i32_59 = arith.constant 0 : i32
    %131 = vector.broadcast %c0_i32_59 : i32 to vector<64x1xi32>
    %132 = arith.cmpi eq, %130, %131 : vector<64x1xi32>
    %c1_i32_60 = arith.constant 1 : i32
    %133 = tpu.dynamic_rotate %113 by %c1_i32_60 dim 0 : vector<64x128xf32>, i32 -> vector<64x128xf32>
    %cst_61 = arith.constant 0.000000e+00 : f32
    %134 = vector.shape_cast %132 : vector<64x1xi1> to vector<64x1xi1>
    %135 = vector.broadcast %134 : vector<64x1xi1> to vector<64x128xi1>
    %136 = vector.broadcast %cst_61 : f32 to vector<64x128xf32>
    %137 = arith.select %135, %136, %133 : vector<64x128xi1>, vector<64x128xf32>
    %c31_i32 = arith.constant 31 : i32
    %138 = vector.broadcast %c31_i32 : i32 to vector<64x1xi32>
    %139 = arith.cmpi eq, %130, %138 : vector<64x1xi32>
    %c63_i32_62 = arith.constant 63 : i32
    %140 = tpu.dynamic_rotate %113 by %c63_i32_62 dim 0 : vector<64x128xf32>, i32 -> vector<64x128xf32>
    %cst_63 = arith.constant 0.000000e+00 : f32
    %141 = vector.shape_cast %139 : vector<64x1xi1> to vector<64x1xi1>
    %142 = vector.broadcast %141 : vector<64x1xi1> to vector<64x128xi1>
    %143 = vector.broadcast %cst_63 : f32 to vector<64x128xf32>
    %144 = arith.select %142, %143, %140 : vector<64x128xi1>, vector<64x128xf32>
    %145 = arith.truncf %137 : vector<64x128xf32> to vector<64x128xbf16>
    %c0_64 = arith.constant 0 : index
    %c0_65 = arith.constant 0 : index
    %c0_66 = arith.constant 0 : index
    %146 = vector.load %arg8[%c0_64, %c0_65, %c0_66] : memref<3x128x256xbf16, #tpu.memory_space<vmem>>, vector<1x128x256xbf16>
    %147 = vector.shape_cast %146 : vector<1x128x256xbf16> to vector<128x256xbf16>
    %cst_67 = arith.constant dense<0.000000e+00> : vector<64x256xf32>
    %148 = tpu.matmul %145, %147, %cst_67 {dimension_numbers = #tpu.dot_dimension_numbers<[1], [0], [0], [1], [0, 0, 1, 1], [], []>} : vector<64x128xbf16>, vector<128x256xbf16>, vector<64x256xf32> -> vector<64x256xf32>
    %149 = arith.truncf %113 : vector<64x128xf32> to vector<64x128xbf16>
    %c1_68 = arith.constant 1 : index
    %c0_69 = arith.constant 0 : index
    %c0_70 = arith.constant 0 : index
    %150 = vector.load %arg8[%c1_68, %c0_69, %c0_70] : memref<3x128x256xbf16, #tpu.memory_space<vmem>>, vector<1x128x256xbf16>
    %151 = vector.shape_cast %150 : vector<1x128x256xbf16> to vector<128x256xbf16>
    %cst_71 = arith.constant dense<0.000000e+00> : vector<64x256xf32>
    %152 = tpu.matmul %149, %151, %cst_71 {dimension_numbers = #tpu.dot_dimension_numbers<[1], [0], [0], [1], [0, 0, 1, 1], [], []>} : vector<64x128xbf16>, vector<128x256xbf16>, vector<64x256xf32> -> vector<64x256xf32>
    %153 = arith.addf %148, %152 : vector<64x256xf32>
    %154 = arith.truncf %144 : vector<64x128xf32> to vector<64x128xbf16>
    %c2_72 = arith.constant 2 : index
    %c0_73 = arith.constant 0 : index
    %c0_74 = arith.constant 0 : index
    %155 = vector.load %arg8[%c2_72, %c0_73, %c0_74] : memref<3x128x256xbf16, #tpu.memory_space<vmem>>, vector<1x128x256xbf16>
    %156 = vector.shape_cast %155 : vector<1x128x256xbf16> to vector<128x256xbf16>
    %cst_75 = arith.constant dense<0.000000e+00> : vector<64x256xf32>
    %157 = tpu.matmul %154, %156, %cst_75 {dimension_numbers = #tpu.dot_dimension_numbers<[1], [0], [0], [1], [0, 0, 1, 1], [], []>} : vector<64x128xbf16>, vector<128x256xbf16>, vector<64x256xf32> -> vector<64x256xf32>
    %158 = arith.addf %153, %157 : vector<64x256xf32>
    %c0_76 = arith.constant 0 : index
    %c0_77 = arith.constant 0 : index
    %159 = vector.load %arg9[%c0_76, %c0_77] : memref<1x256xf32, #tpu.memory_space<vmem>>, vector<1x256xf32>
    %160 = vector.broadcast %159 : vector<1x256xf32> to vector<64x256xf32>
    %161 = arith.addf %158, %160 : vector<64x256xf32>
    %cst_78 = arith.constant 0.000000e+00 : f32
    %162 = vector.broadcast %cst_78 : f32 to vector<64x256xf32>
    %163 = arith.maximumf %161, %162 : vector<64x256xf32>
    %164 = vector.shape_cast %163 : vector<64x256xf32> to vector<32x2x256xf32>
    %cst_79 = arith.constant dense<0xFF800000> : vector<32x256xf32>
    %165 = vector.multi_reduction <maximumf>, %164, %cst_79 [1] : vector<32x2x256xf32> to vector<32x256xf32>
    %166 = tpu.iota {dimensions = array<i32: 0>} : vector<32x1xi32>
    %c16_i32 = arith.constant 16 : i32
    %c0_i32_80 = arith.constant 0 : i32
    %167 = arith.cmpi eq, %c16_i32, %c0_i32_80 : i32
    %c1_i32_81 = arith.constant 1 : i32
    %168 = arith.select %167, %c1_i32_81, %c16_i32 : i32
    %169 = vector.broadcast %168 : i32 to vector<32x1xi32>
    %170 = arith.remsi %166, %169 : vector<32x1xi32>
    %c0_i32_82 = arith.constant 0 : i32
    %171 = vector.broadcast %c0_i32_82 : i32 to vector<32x1xi32>
    %172 = arith.cmpi ne, %170, %171 : vector<32x1xi32>
    %c0_i32_83 = arith.constant 0 : i32
    %173 = vector.broadcast %c0_i32_83 : i32 to vector<32x1xi32>
    %174 = arith.cmpi slt, %170, %173 : vector<32x1xi32>
    %c0_i32_84 = arith.constant 0 : i32
    %175 = arith.cmpi slt, %168, %c0_i32_84 : i32
    %176 = vector.broadcast %175 : i1 to vector<32x1xi1>
    %177 = vector.broadcast %176 : vector<32x1xi1> to vector<32x1xi1>
    %178 = arith.xori %174, %177 : vector<32x1xi1>
    %179 = arith.andi %178, %172 : vector<32x1xi1>
    %180 = vector.broadcast %168 : i32 to vector<32x1xi32>
    %181 = arith.addi %170, %180 : vector<32x1xi32>
    %182 = arith.select %179, %181, %170 : vector<32x1xi1>, vector<32x1xi32>
    %c0_i32_85 = arith.constant 0 : i32
    %183 = vector.broadcast %c0_i32_85 : i32 to vector<32x1xi32>
    %184 = arith.cmpi eq, %182, %183 : vector<32x1xi32>
    %c1_i32_86 = arith.constant 1 : i32
    %185 = tpu.dynamic_rotate %165 by %c1_i32_86 dim 0 : vector<32x256xf32>, i32 -> vector<32x256xf32>
    %cst_87 = arith.constant 0.000000e+00 : f32
    %186 = vector.shape_cast %184 : vector<32x1xi1> to vector<32x1xi1>
    %187 = vector.broadcast %186 : vector<32x1xi1> to vector<32x256xi1>
    %188 = vector.broadcast %cst_87 : f32 to vector<32x256xf32>
    %189 = arith.select %187, %188, %185 : vector<32x256xi1>, vector<32x256xf32>
    %c15_i32 = arith.constant 15 : i32
    %190 = vector.broadcast %c15_i32 : i32 to vector<32x1xi32>
    %191 = arith.cmpi eq, %182, %190 : vector<32x1xi32>
    %c31_i32_88 = arith.constant 31 : i32
    %192 = tpu.dynamic_rotate %165 by %c31_i32_88 dim 0 : vector<32x256xf32>, i32 -> vector<32x256xf32>
    %cst_89 = arith.constant 0.000000e+00 : f32
    %193 = vector.shape_cast %191 : vector<32x1xi1> to vector<32x1xi1>
    %194 = vector.broadcast %193 : vector<32x1xi1> to vector<32x256xi1>
    %195 = vector.broadcast %cst_89 : f32 to vector<32x256xf32>
    %196 = arith.select %194, %195, %192 : vector<32x256xi1>, vector<32x256xf32>
    %197 = arith.truncf %189 : vector<32x256xf32> to vector<32x256xbf16>
    %c0_90 = arith.constant 0 : index
    %c0_91 = arith.constant 0 : index
    %c0_92 = arith.constant 0 : index
    %198 = vector.load %arg10[%c0_90, %c0_91, %c0_92] : memref<3x256x512xbf16, #tpu.memory_space<vmem>>, vector<1x256x512xbf16>
    %199 = vector.shape_cast %198 : vector<1x256x512xbf16> to vector<256x512xbf16>
    %cst_93 = arith.constant dense<0.000000e+00> : vector<32x512xf32>
    %200 = tpu.matmul %197, %199, %cst_93 {dimension_numbers = #tpu.dot_dimension_numbers<[1], [0], [0], [1], [0, 0, 1, 1], [], []>} : vector<32x256xbf16>, vector<256x512xbf16>, vector<32x512xf32> -> vector<32x512xf32>
    %201 = arith.truncf %165 : vector<32x256xf32> to vector<32x256xbf16>
    %c1_94 = arith.constant 1 : index
    %c0_95 = arith.constant 0 : index
    %c0_96 = arith.constant 0 : index
    %202 = vector.load %arg10[%c1_94, %c0_95, %c0_96] : memref<3x256x512xbf16, #tpu.memory_space<vmem>>, vector<1x256x512xbf16>
    %203 = vector.shape_cast %202 : vector<1x256x512xbf16> to vector<256x512xbf16>
    %cst_97 = arith.constant dense<0.000000e+00> : vector<32x512xf32>
    %204 = tpu.matmul %201, %203, %cst_97 {dimension_numbers = #tpu.dot_dimension_numbers<[1], [0], [0], [1], [0, 0, 1, 1], [], []>} : vector<32x256xbf16>, vector<256x512xbf16>, vector<32x512xf32> -> vector<32x512xf32>
    %205 = arith.addf %200, %204 : vector<32x512xf32>
    %206 = arith.truncf %196 : vector<32x256xf32> to vector<32x256xbf16>
    %c2_98 = arith.constant 2 : index
    %c0_99 = arith.constant 0 : index
    %c0_100 = arith.constant 0 : index
    %207 = vector.load %arg10[%c2_98, %c0_99, %c0_100] : memref<3x256x512xbf16, #tpu.memory_space<vmem>>, vector<1x256x512xbf16>
    %208 = vector.shape_cast %207 : vector<1x256x512xbf16> to vector<256x512xbf16>
    %cst_101 = arith.constant dense<0.000000e+00> : vector<32x512xf32>
    %209 = tpu.matmul %206, %208, %cst_101 {dimension_numbers = #tpu.dot_dimension_numbers<[1], [0], [0], [1], [0, 0, 1, 1], [], []>} : vector<32x256xbf16>, vector<256x512xbf16>, vector<32x512xf32> -> vector<32x512xf32>
    %210 = arith.addf %205, %209 : vector<32x512xf32>
    %c0_102 = arith.constant 0 : index
    %c0_103 = arith.constant 0 : index
    %211 = vector.load %arg11[%c0_102, %c0_103] : memref<1x512xf32, #tpu.memory_space<vmem>>, vector<1x512xf32>
    %212 = vector.broadcast %211 : vector<1x512xf32> to vector<32x512xf32>
    %213 = arith.addf %210, %212 : vector<32x512xf32>
    %cst_104 = arith.constant 0.000000e+00 : f32
    %214 = vector.broadcast %cst_104 : f32 to vector<32x512xf32>
    %215 = arith.maximumf %213, %214 : vector<32x512xf32>
    %216 = vector.shape_cast %215 : vector<32x512xf32> to vector<16x2x512xf32>
    %cst_105 = arith.constant dense<0xFF800000> : vector<16x512xf32>
    %217 = vector.multi_reduction <maximumf>, %216, %cst_105 [1] : vector<16x2x512xf32> to vector<16x512xf32>
    %218 = tpu.iota {dimensions = array<i32: 0>} : vector<16x1xi32>
    %c8_i32 = arith.constant 8 : i32
    %c0_i32_106 = arith.constant 0 : i32
    %219 = arith.cmpi eq, %c8_i32, %c0_i32_106 : i32
    %c1_i32_107 = arith.constant 1 : i32
    %220 = arith.select %219, %c1_i32_107, %c8_i32 : i32
    %221 = vector.broadcast %220 : i32 to vector<16x1xi32>
    %222 = arith.remsi %218, %221 : vector<16x1xi32>
    %c0_i32_108 = arith.constant 0 : i32
    %223 = vector.broadcast %c0_i32_108 : i32 to vector<16x1xi32>
    %224 = arith.cmpi ne, %222, %223 : vector<16x1xi32>
    %c0_i32_109 = arith.constant 0 : i32
    %225 = vector.broadcast %c0_i32_109 : i32 to vector<16x1xi32>
    %226 = arith.cmpi slt, %222, %225 : vector<16x1xi32>
    %c0_i32_110 = arith.constant 0 : i32
    %227 = arith.cmpi slt, %220, %c0_i32_110 : i32
    %228 = vector.broadcast %227 : i1 to vector<16x1xi1>
    %229 = vector.broadcast %228 : vector<16x1xi1> to vector<16x1xi1>
    %230 = arith.xori %226, %229 : vector<16x1xi1>
    %231 = arith.andi %230, %224 : vector<16x1xi1>
    %232 = vector.broadcast %220 : i32 to vector<16x1xi32>
    %233 = arith.addi %222, %232 : vector<16x1xi32>
    %234 = arith.select %231, %233, %222 : vector<16x1xi1>, vector<16x1xi32>
    %c0_i32_111 = arith.constant 0 : i32
    %235 = vector.broadcast %c0_i32_111 : i32 to vector<16x1xi32>
    %236 = arith.cmpi eq, %234, %235 : vector<16x1xi32>
    %c1_i32_112 = arith.constant 1 : i32
    %237 = tpu.dynamic_rotate %217 by %c1_i32_112 dim 0 : vector<16x512xf32>, i32 -> vector<16x512xf32>
    %cst_113 = arith.constant 0.000000e+00 : f32
    %238 = vector.shape_cast %236 : vector<16x1xi1> to vector<16x1xi1>
    %239 = vector.broadcast %238 : vector<16x1xi1> to vector<16x512xi1>
    %240 = vector.broadcast %cst_113 : f32 to vector<16x512xf32>
    %241 = arith.select %239, %240, %237 : vector<16x512xi1>, vector<16x512xf32>
    %c7_i32 = arith.constant 7 : i32
    %242 = vector.broadcast %c7_i32 : i32 to vector<16x1xi32>
    %243 = arith.cmpi eq, %234, %242 : vector<16x1xi32>
    %c15_i32_114 = arith.constant 15 : i32
    %244 = tpu.dynamic_rotate %217 by %c15_i32_114 dim 0 : vector<16x512xf32>, i32 -> vector<16x512xf32>
    %cst_115 = arith.constant 0.000000e+00 : f32
    %245 = vector.shape_cast %243 : vector<16x1xi1> to vector<16x1xi1>
    %246 = vector.broadcast %245 : vector<16x1xi1> to vector<16x512xi1>
    %247 = vector.broadcast %cst_115 : f32 to vector<16x512xf32>
    %248 = arith.select %246, %247, %244 : vector<16x512xi1>, vector<16x512xf32>
    %249 = arith.truncf %241 : vector<16x512xf32> to vector<16x512xbf16>
    %c0_116 = arith.constant 0 : index
    %c0_117 = arith.constant 0 : index
    %c0_118 = arith.constant 0 : index
    %250 = vector.load %arg12[%c0_116, %c0_117, %c0_118] : memref<3x512x256xbf16, #tpu.memory_space<vmem>>, vector<1x512x256xbf16>
    %251 = vector.shape_cast %250 : vector<1x512x256xbf16> to vector<512x256xbf16>
    %cst_119 = arith.constant dense<0.000000e+00> : vector<16x256xf32>
    %252 = tpu.matmul %249, %251, %cst_119 {dimension_numbers = #tpu.dot_dimension_numbers<[1], [0], [0], [1], [0, 0, 1, 1], [], []>} : vector<16x512xbf16>, vector<512x256xbf16>, vector<16x256xf32> -> vector<16x256xf32>
    %253 = arith.truncf %217 : vector<16x512xf32> to vector<16x512xbf16>
    %c1_120 = arith.constant 1 : index
    %c0_121 = arith.constant 0 : index
    %c0_122 = arith.constant 0 : index
    %254 = vector.load %arg12[%c1_120, %c0_121, %c0_122] : memref<3x512x256xbf16, #tpu.memory_space<vmem>>, vector<1x512x256xbf16>
    %255 = vector.shape_cast %254 : vector<1x512x256xbf16> to vector<512x256xbf16>
    %cst_123 = arith.constant dense<0.000000e+00> : vector<16x256xf32>
    %256 = tpu.matmul %253, %255, %cst_123 {dimension_numbers = #tpu.dot_dimension_numbers<[1], [0], [0], [1], [0, 0, 1, 1], [], []>} : vector<16x512xbf16>, vector<512x256xbf16>, vector<16x256xf32> -> vector<16x256xf32>
    %257 = arith.addf %252, %256 : vector<16x256xf32>
    %258 = arith.truncf %248 : vector<16x512xf32> to vector<16x512xbf16>
    %c2_124 = arith.constant 2 : index
    %c0_125 = arith.constant 0 : index
    %c0_126 = arith.constant 0 : index
    %259 = vector.load %arg12[%c2_124, %c0_125, %c0_126] : memref<3x512x256xbf16, #tpu.memory_space<vmem>>, vector<1x512x256xbf16>
    %260 = vector.shape_cast %259 : vector<1x512x256xbf16> to vector<512x256xbf16>
    %cst_127 = arith.constant dense<0.000000e+00> : vector<16x256xf32>
    %261 = tpu.matmul %258, %260, %cst_127 {dimension_numbers = #tpu.dot_dimension_numbers<[1], [0], [0], [1], [0, 0, 1, 1], [], []>} : vector<16x512xbf16>, vector<512x256xbf16>, vector<16x256xf32> -> vector<16x256xf32>
    %262 = arith.addf %257, %261 : vector<16x256xf32>
    %c0_128 = arith.constant 0 : index
    %c0_129 = arith.constant 0 : index
    %263 = vector.load %arg13[%c0_128, %c0_129] : memref<1x256xf32, #tpu.memory_space<vmem>>, vector<1x256xf32>
    %264 = vector.broadcast %263 : vector<1x256xf32> to vector<16x256xf32>
    %265 = arith.addf %262, %264 : vector<16x256xf32>
    %cst_130 = arith.constant 0.000000e+00 : f32
    %266 = vector.broadcast %cst_130 : f32 to vector<16x256xf32>
    %267 = arith.maximumf %265, %266 : vector<16x256xf32>
    %268 = vector.shape_cast %267 : vector<16x256xf32> to vector<8x2x256xf32>
    %cst_131 = arith.constant dense<0xFF800000> : vector<8x256xf32>
    %269 = vector.multi_reduction <maximumf>, %268, %cst_131 [1] : vector<8x2x256xf32> to vector<8x256xf32>
    %270 = vector.shape_cast %269 : vector<8x256xf32> to vector<2x4x256xf32>
    %271 = vector.extract_strided_slice %270 {offsets = [0, 0, 0], sizes = [2, 1, 256], strides = [1, 1, 1]} : vector<2x4x256xf32> to vector<2x1x256xf32>
    %272 = vector.shape_cast %271 : vector<2x1x256xf32> to vector<2x256xf32>
    %c0_132 = arith.constant 0 : index
    %c0_133 = arith.constant 0 : index
    %c0_134 = arith.constant 0 : index
    %273 = vector.load %arg14[%c0_132, %c0_133, %c0_134] : memref<4x256x128xf32, #tpu.memory_space<vmem>>, vector<1x256x128xf32>
    %274 = vector.shape_cast %273 : vector<1x256x128xf32> to vector<256x128xf32>
    %cst_135 = arith.constant dense<0.000000e+00> : vector<2x128xf32>
    %275 = tpu.matmul %272, %274, %cst_135 {dimension_numbers = #tpu.dot_dimension_numbers<[1], [0], [0], [1], [0, 0, 1, 1], [], []>} : vector<2x256xf32>, vector<256x128xf32>, vector<2x128xf32> -> vector<2x128xf32>
    %276 = vector.extract_strided_slice %270 {offsets = [0, 1, 0], sizes = [2, 1, 256], strides = [1, 1, 1]} : vector<2x4x256xf32> to vector<2x1x256xf32>
    %277 = vector.shape_cast %276 : vector<2x1x256xf32> to vector<2x256xf32>
    %c1_136 = arith.constant 1 : index
    %c0_137 = arith.constant 0 : index
    %c0_138 = arith.constant 0 : index
    %278 = vector.load %arg14[%c1_136, %c0_137, %c0_138] : memref<4x256x128xf32, #tpu.memory_space<vmem>>, vector<1x256x128xf32>
    %279 = vector.shape_cast %278 : vector<1x256x128xf32> to vector<256x128xf32>
    %cst_139 = arith.constant dense<0.000000e+00> : vector<2x128xf32>
    %280 = tpu.matmul %277, %279, %cst_139 {dimension_numbers = #tpu.dot_dimension_numbers<[1], [0], [0], [1], [0, 0, 1, 1], [], []>} : vector<2x256xf32>, vector<256x128xf32>, vector<2x128xf32> -> vector<2x128xf32>
    %281 = vector.extract_strided_slice %270 {offsets = [0, 2, 0], sizes = [2, 1, 256], strides = [1, 1, 1]} : vector<2x4x256xf32> to vector<2x1x256xf32>
    %282 = vector.shape_cast %281 : vector<2x1x256xf32> to vector<2x256xf32>
    %c2_140 = arith.constant 2 : index
    %c0_141 = arith.constant 0 : index
    %c0_142 = arith.constant 0 : index
    %283 = vector.load %arg14[%c2_140, %c0_141, %c0_142] : memref<4x256x128xf32, #tpu.memory_space<vmem>>, vector<1x256x128xf32>
    %284 = vector.shape_cast %283 : vector<1x256x128xf32> to vector<256x128xf32>
    %cst_143 = arith.constant dense<0.000000e+00> : vector<2x128xf32>
    %285 = tpu.matmul %282, %284, %cst_143 {dimension_numbers = #tpu.dot_dimension_numbers<[1], [0], [0], [1], [0, 0, 1, 1], [], []>} : vector<2x256xf32>, vector<256x128xf32>, vector<2x128xf32> -> vector<2x128xf32>
    %286 = vector.extract_strided_slice %270 {offsets = [0, 3, 0], sizes = [2, 1, 256], strides = [1, 1, 1]} : vector<2x4x256xf32> to vector<2x1x256xf32>
    %287 = vector.shape_cast %286 : vector<2x1x256xf32> to vector<2x256xf32>
    %c3 = arith.constant 3 : index
    %c0_144 = arith.constant 0 : index
    %c0_145 = arith.constant 0 : index
    %288 = vector.load %arg14[%c3, %c0_144, %c0_145] : memref<4x256x128xf32, #tpu.memory_space<vmem>>, vector<1x256x128xf32>
    %289 = vector.shape_cast %288 : vector<1x256x128xf32> to vector<256x128xf32>
    %cst_146 = arith.constant dense<0.000000e+00> : vector<2x128xf32>
    %290 = tpu.matmul %287, %289, %cst_146 {dimension_numbers = #tpu.dot_dimension_numbers<[1], [0], [0], [1], [0, 0, 1, 1], [], []>} : vector<2x256xf32>, vector<256x128xf32>, vector<2x128xf32> -> vector<2x128xf32>
    %291 = arith.addf %275, %280 : vector<2x128xf32>
    %292 = arith.addf %291, %285 : vector<2x128xf32>
    %293 = arith.addf %292, %290 : vector<2x128xf32>
    %c0_147 = arith.constant 0 : index
    %c0_148 = arith.constant 0 : index
    %294 = vector.load %arg15[%c0_147, %c0_148] : memref<1x128xf32, #tpu.memory_space<vmem>>, vector<1x128xf32>
    %295 = vector.broadcast %294 : vector<1x128xf32> to vector<2x128xf32>
    %296 = arith.addf %293, %295 : vector<2x128xf32>
    %cst_149 = arith.constant 0.000000e+00 : f32
    %297 = vector.broadcast %cst_149 : f32 to vector<2x128xf32>
    %298 = arith.maximumf %296, %297 : vector<2x128xf32>
    %c0_150 = arith.constant 0 : index
    %c0_151 = arith.constant 0 : index
    %299 = vector.load %arg16[%c0_150, %c0_151] : memref<128x1xf32, #tpu.memory_space<vmem>>, vector<128x1xf32>
    %cst_152 = arith.constant dense<0.000000e+00> : vector<2x1xf32>
    %300 = tpu.matmul %298, %299, %cst_152 {dimension_numbers = #tpu.dot_dimension_numbers<[1], [0], [0], [1], [0, 0, 1, 1], [], []>} : vector<2x128xf32>, vector<128x1xf32>, vector<2x1xf32> -> vector<2x1xf32>
    %c0_153 = arith.constant 0 : index
    %c0_154 = arith.constant 0 : index
    %301 = vector.load %arg17[%c0_153, %c0_154] : memref<1x1xf32, #tpu.memory_space<vmem>>, vector<1x1xf32>
    %302 = vector.broadcast %301 : vector<1x1xf32> to vector<2x1xf32>
    %303 = arith.addf %300, %302 : vector<2x1xf32>
    %304 = arith.negf %303 : vector<2x1xf32>
    %305 = math.exp %304 : vector<2x1xf32>
    %cst_155 = arith.constant 1.000000e+00 : f32
    %306 = vector.broadcast %cst_155 : f32 to vector<2x1xf32>
    %307 = arith.addf %306, %305 : vector<2x1xf32>
    %308 = arith.divf %306, %307 : vector<2x1xf32>
    %c0_156 = arith.constant 0 : index
    %c0_157 = arith.constant 0 : index
    %c0_158 = arith.constant 0 : index
    %309 = vector.load %arg18[%c0_156, %c0_157, %c0_158] : memref<1x2x1xf32, #tpu.memory_space<vmem>>, vector<1x2x1xf32>
    %310 = vector.shape_cast %309 : vector<1x2x1xf32> to vector<2x1xf32>
    %311 = vector.shape_cast %308 : vector<2x1xf32> to vector<1x2x1xf32>
    tpu.vector_store %arg18[%c0_156, %c0_157, %c0_158], %311 {strides = array<i32>} : memref<1x2x1xf32, #tpu.memory_space<vmem>>, vector<1x2x1xf32>,
    return
  }
  func.func @transform_0(%arg0: i32) -> (i32, i32, i32) {
    %c0_i32 = arith.constant 0 : i32
    %c0_i32_0 = arith.constant 0 : i32
    %c0_i32_1 = arith.constant 0 : i32
    return %arg0, %c0_i32, %c0_i32_0 : i32, i32, i32
  }
  func.func @transform_1(%arg0: i32) -> (i32, i32) {
    %c0_i32 = arith.constant 0 : i32
    %c0_i32_0 = arith.constant 0 : i32
    %c0_i32_1 = arith.constant 0 : i32
    return %c0_i32, %c0_i32_0 : i32, i32
  }
  func.func @transform_2(%arg0: i32) -> (i32, i32) {
    %c0_i32 = arith.constant 0 : i32
    %c0_i32_0 = arith.constant 0 : i32
    %c0_i32_1 = arith.constant 0 : i32
    return %c0_i32, %c0_i32_0 : i32, i32
  }
  func.func @transform_3(%arg0: i32) -> (i32, i32, i32) {
    %c0_i32 = arith.constant 0 : i32
    %c0_i32_0 = arith.constant 0 : i32
    %c0_i32_1 = arith.constant 0 : i32
    %c0_i32_2 = arith.constant 0 : i32
    return %c0_i32, %c0_i32_0, %c0_i32_1 : i32, i32, i32
  }
  func.func @transform_4(%arg0: i32) -> (i32, i32) {
    %c0_i32 = arith.constant 0 : i32
    %c0_i32_0 = arith.constant 0 : i32
    %c0_i32_1 = arith.constant 0 : i32
    return %c0_i32, %c0_i32_0 : i32, i32
  }
  func.func @transform_5(%arg0: i32) -> (i32, i32, i32) {
    %c0_i32 = arith.constant 0 : i32
    %c0_i32_0 = arith.constant 0 : i32
    %c0_i32_1 = arith.constant 0 : i32
    %c0_i32_2 = arith.constant 0 : i32
    return %c0_i32, %c0_i32_0, %c0_i32_1 : i32, i32, i32
  }
  func.func @transform_6(%arg0: i32) -> (i32, i32) {
    %c0_i32 = arith.constant 0 : i32
    %c0_i32_0 = arith.constant 0 : i32
    %c0_i32_1 = arith.constant 0 : i32
    return %c0_i32, %c0_i32_0 : i32, i32
  }
  func.func @transform_7(%arg0: i32) -> (i32, i32, i32) {
    %c0_i32 = arith.constant 0 : i32
    %c0_i32_0 = arith.constant 0 : i32
    %c0_i32_1 = arith.constant 0 : i32
    %c0_i32_2 = arith.constant 0 : i32
    return %c0_i32, %c0_i32_0, %c0_i32_1 : i32, i32, i32
  }
  func.func @transform_8(%arg0: i32) -> (i32, i32) {
    %c0_i32 = arith.constant 0 : i32
    %c0_i32_0 = arith.constant 0 : i32
    %c0_i32_1 = arith.constant 0 : i32
    return %c0_i32, %c0_i32_0 : i32, i32
  }
  func.func @transform_9(%arg0: i32) -> (i32, i32, i32) {
    %c0_i32 = arith.constant 0 : i32
    %c0_i32_0 = arith.constant 0 : i32
    %c0_i32_1 = arith.constant 0 : i32
    %c0_i32_2 = arith.constant 0 : i32
    return %c0_i32, %c0_i32_0, %c0_i32_1 : i32, i32, i32
  }
  func.func @transform_10(%arg0: i32) -> (i32, i32) {
    %c0_i32 = arith.constant 0 : i32
    %c0_i32_0 = arith.constant 0 : i32
    %c0_i32_1 = arith.constant 0 : i32
    return %c0_i32, %c0_i32_0 : i32, i32
  }
  func.func @transform_11(%arg0: i32) -> (i32, i32, i32) {
    %c0_i32 = arith.constant 0 : i32
    %c0_i32_0 = arith.constant 0 : i32
    %c0_i32_1 = arith.constant 0 : i32
    %c0_i32_2 = arith.constant 0 : i32
    return %c0_i32, %c0_i32_0, %c0_i32_1 : i32, i32, i32
  }
  func.func @transform_12(%arg0: i32) -> (i32, i32) {
    %c0_i32 = arith.constant 0 : i32
    %c0_i32_0 = arith.constant 0 : i32
    %c0_i32_1 = arith.constant 0 : i32
    return %c0_i32, %c0_i32_0 : i32, i32
  }
  func.func @transform_13(%arg0: i32) -> (i32, i32, i32) {
    %c0_i32 = arith.constant 0 : i32
    %c0_i32_0 = arith.constant 0 : i32
    %c0_i32_1 = arith.constant 0 : i32
    %c0_i32_2 = arith.constant 0 : i32
    return %c0_i32, %c0_i32_0, %c0_i32_1 : i32, i32, i32
  }
  func.func @transform_14(%arg0: i32) -> (i32, i32) {
    %c0_i32 = arith.constant 0 : i32
    %c0_i32_0 = arith.constant 0 : i32
    %c0_i32_1 = arith.constant 0 : i32
    return %c0_i32, %c0_i32_0 : i32, i32
  }
  func.func @transform_15(%arg0: i32) -> (i32, i32) {
    %c0_i32 = arith.constant 0 : i32
    %c0_i32_0 = arith.constant 0 : i32
    %c0_i32_1 = arith.constant 0 : i32
    return %c0_i32, %c0_i32_0 : i32, i32
  }
  func.func @transform_16(%arg0: i32) -> (i32, i32) {
    %c0_i32 = arith.constant 0 : i32
    %c0_i32_0 = arith.constant 0 : i32
    %c0_i32_1 = arith.constant 0 : i32
    return %c0_i32, %c0_i32_0 : i32, i32
  }
  func.func @transform_17(%arg0: i32) -> (i32, i32, i32) {
    %c0_i32 = arith.constant 0 : i32
    %c0_i32_0 = arith.constant 0 : i32
    %c0_i32_1 = arith.constant 0 : i32
    return %arg0, %c0_i32, %c0_i32_0 : i32, i32, i32
  }
}

</mosaic_0001>

<bundles_post_ra>
// kernel: model_forward.1
= control target key start
LH: loop header
LB: loop body
LE: loop exit
PB: predicated region body
PF: predicated region fallthrough
CT: control target
= control target key end

     0   :  { %s21351_s0 = inlined_call_operand.vmem [shape: f32[1,256,9], index: 0, kind: input, shape index: {}]   ;;  %s21352_s1 = inlined_call_operand.vmem [shape: bf16[9,64], index: 1, kind: input, shape index: {}]   ;;  %s21353_s2 = inlined_call_operand.vmem [shape: f32[1,64], index: 2, kind: input, shape index: {}]   ;;  %s21354_s3 = inlined_call_operand.vmem [shape: bf16[3,64,64], index: 3, kind: input, shape index: {}]   ;;  %s21355_s4 = inlined_call_operand.vmem [shape: f32[1,64], index: 4, kind: input, shape index: {}]   ;;  %s21356_s5 = inlined_call_operand.hbm [shape: bf16[3,64,128], index: 5, kind: input, shape index: {}]   ;;  %s21357_s6 = inlined_call_operand.vmem [shape: f32[1,128], index: 6, kind: input, shape index: {}]   ;;  %s21358_s7 = inlined_call_operand.vmem [shape: bf16[3,128,256], index: 7, kind: input, shape index: {}]   ;;  %s21359_s8 = inlined_call_operand.vmem [shape: f32[1,256], index: 8, kind: input, shape index: {}]   ;;  %s21360_s9 = inlined_call_operand.hbm [shape: bf16[3,256,512], index: 9, kind: input, shape index: {}]   ;;  %s21361_s10 = inlined_call_operand.vmem [shape: f32[1,512], index: 10, kind: input, shape index: {}]   ;;  %s21362_s11 = inlined_call_operand.hbm [shape: bf16[3,512,256], index: 11, kind: input, shape index: {}]   ;;  %s21363_s12 = inlined_call_operand.vmem [shape: f32[1,256], index: 12, kind: input, shape index: {}]   ;;  %s21364_s13 = inlined_call_operand.hbm [shape: f32[4,256,128], index: 13, kind: input, shape index: {}]   ;;  %s21365_s14 = inlined_call_operand.vmem [shape: f32[1,128], index: 14, kind: input, shape index: {}]   ;;  %s21366_s15 = inlined_call_operand.vmem [shape: f32[128,1], index: 15, kind: input, shape index: {}]   ;;  %s21367_s16 = inlined_call_operand.<no memory space> [shape: f32[1,1], index: 16, kind: input, shape index: {}]   ;;  %s21368_s17 = inlined_call_operand.vmem [shape: f32[1,2,1], index: 17, kind: output, shape index: {}]  }
   0x1   :  { %21486 = sst [smem:[#allocation73_spill]] %s21351_s0  ;;  %v22_v0 = vstv %s21367_s16 }
   0x2   :  { %21487 = sst [smem:[#allocation74_spill]] %s21352_s1  ;;  %23 = vst [vmem:[#allocation2] sm:$0x1] %v22_v0 }
   0x3   :  { %24 = vsyncpa [#allocation4], 0 }
   0x4   :  { %25 = vsyncpa [#allocation6], 0 }
   0x5   :  { %26 = vsyncpa [#allocation9], 0  ;;  %s16376_s26 = smov [#allocation5]   ;;  %s16282_s0 = scalar_lea.hbm %s21360_s9, 24576 }
   0x6   :  { %s60_s27 = sshll.u32 %s16376_s26, 4  ;;  %p16283_p0 = scmp.ne.s32.totalorder %s21360_s9, %s16282_s0  ;;  %s61_s27 = int_to_ptr.vmem [resolvable:$true] %s60_s27 }
   0x7   :  { %p16286_p1 = scmp.lt.u32.totalorder %s16282_s0, %s21360_s9 }
   0x9   :  { %p16288_p2 = pnand %p16286_p1, %p16283_p0 }
   0xb   :  { %16291 = shalt.err (!%p16288_p2)
}
   0xc   :  { %s16292_s16 = scalar_lea.vmem %s61_s27, 24576  ;;  %p16297_p4 = scmp.lt.s32.totalorder %s61_s27, %s61_s27 }
   0xd   :  { %p16293_p3 = scmp.ne.s32.totalorder %s61_s27, %s16292_s16  ;;  %p16298_p5 = scmp.lt.s32.totalorder %s16292_s16, %s16292_s16 }
   0xf   :  { %p16299_p6 = por %p16298_p5, %p16297_p4 }
  0x11   :  { %p16300_p7 = pnand %p16299_p6, %p16293_p3 }
  0x13   :  { %16303 = shalt.err (!%p16300_p7)
}
  0x14   :  { %s16377_s20 = smov 256   ;;  %s16378_s21 = smov 16  }
  0x15   :  { %66 = dma.hbm_to_vmem [thread:$0]  %s21360_s9, 24576, %s61_s27, [#allocation6], %s16377_s20, %s16377_s20, %s16378_s21  }
  0x16   :  { %s16379_s24 = smov [#allocation3]   ;;  %s16304_s29 = scalar_lea.hbm %s21356_s5, 1536 }
  0x17   :  { %s42_s25 = sshll.u32 %s16379_s24, 4  ;;  %p16305_p8 = scmp.ne.s32.totalorder %s21356_s5, %s16304_s29  ;;  %s43_s25 = int_to_ptr.vmem [resolvable:$true] %s42_s25 }
  0x18   :  { %p16308_p9 = scmp.lt.u32.totalorder %s16304_s29, %s21356_s5 }
  0x1a   :  { %p16310_p10 = pnand %p16308_p9, %p16305_p8 }
  0x1c   :  { %16313 = shalt.err (!%p16310_p10)
}
  0x1d   :  { %s16314_s1 = scalar_lea.vmem %s43_s25, 1536  ;;  %p16319_p12 = scmp.lt.s32.totalorder %s43_s25, %s43_s25 }
  0x1e   :  { %p16315_p11 = scmp.ne.s32.totalorder %s43_s25, %s16314_s1  ;;  %p16320_p13 = scmp.lt.s32.totalorder %s16314_s1, %s16314_s1 }
  0x20   :  { %p16321_p0 = por %p16320_p13, %p16319_p12 }
  0x22   :  { %p16322_p1 = pnand %p16321_p0, %p16315_p11 }
  0x24   :  { %16325 = shalt.err (!%p16322_p1)
}
  0x25   :  { %s16380_s9 = smov 64   ;;  %s16381_s27 = smov 4  }
  0x26   :  { %48 = dma.hbm_to_vmem [thread:$0]  %s21356_s5, 1536, %s43_s25, [#allocation4], %s16380_s9, %s16380_s9, %s16381_s27  }
  0x27   :  { %s16382_s21 = smov [#allocation7]   ;;  %s16326_s26 = scalar_lea.hbm %s21362_s11, 24576 }
  0x28   :  { %s74_s22 = sshll.u32 %s16382_s21, 4  ;;  %p16327_p2 = scmp.ne.s32.totalorder %s21362_s11, %s16326_s26  ;;  %s75_s22 = int_to_ptr.vmem [resolvable:$true] %s74_s22 }
  0x29   :  { %p16330_p3 = scmp.lt.u32.totalorder %s16326_s26, %s21362_s11 }
  0x2b   :  { %p16332_p4 = pnand %p16330_p3, %p16327_p2 }
  0x2d   :  { %16335 = shalt.err (!%p16332_p4)
}
  0x2e   :  { %s16336_s18 = scalar_lea.vmem %s75_s22, 24576  ;;  %p16341_p6 = scmp.lt.s32.totalorder %s75_s22, %s75_s22 }
  0x2f   :  { %p16337_p5 = scmp.ne.s32.totalorder %s75_s22, %s16336_s18  ;;  %p16342_p7 = scmp.lt.s32.totalorder %s16336_s18, %s16336_s18 }
  0x31   :  { %p16343_p8 = por %p16342_p7, %p16341_p6 }
  0x33   :  { %p16344_p9 = pnand %p16343_p8, %p16337_p5 }
  0x35   :  { %16347 = shalt.err (!%p16344_p9)
}
  0x36   :  { %s16383_s5 = smov 128   ;;  %s16384_s25 = smov 8  }
  0x37   :  { %80 = dma.hbm_to_vmem [thread:$0]  %s21362_s11, 24576, %s75_s22, [#allocation6], %s16383_s5, %s16383_s5, %s16384_s25  }
  0x38   :  { %s16385_s9 = smov [#allocation8]   ;;  %s16348_s21 = scalar_lea.hbm %s21364_s13, 16384 }
  0x39   :  { %s88_s27 = sshll.u32 %s16385_s9, 4  ;;  %p16349_p10 = scmp.ne.s32.totalorder %s21364_s13, %s16348_s21  ;;  %s89_s27 = int_to_ptr.vmem [resolvable:$true] %s88_s27 }
  0x3a   :  { %p16352_p11 = scmp.lt.u32.totalorder %s16348_s21, %s21364_s13 }
  0x3c   :  { %p16354_p12 = pnand %p16352_p11, %p16349_p10 }
  0x3e   :  { %16357 = shalt.err (!%p16354_p12)
}
  0x3f   :  { %s16358_s29 = scalar_lea.vmem %s89_s27, 16384  ;;  %p16363_p0 = scmp.lt.s32.totalorder %s89_s27, %s89_s27 }
  0x40   :  { %p16359_p13 = scmp.ne.s32.totalorder %s89_s27, %s16358_s29  ;;  %p16364_p1 = scmp.lt.s32.totalorder %s16358_s29, %s16358_s29 }
  0x42   :  { %p16365_p2 = por %p16364_p1, %p16363_p0 }
  0x44   :  { %p16366_p3 = pnand %p16365_p2, %p16359_p13 }
  0x46   :  { %16369 = shalt.err (!%p16366_p3)
}
  0x47   :  { %94 = dma.hbm_to_vmem [thread:$0]  %s21364_s13, 16384, %s89_s27, [#allocation9], %s16383_s5, %s16383_s5, %s16384_s25  }
  0x48   :  { %16370 = dma.done.wait [#allocation4], 1536  }
  0x49   :  { %16371 = vsyncadd [#allocation4], 4294965760 }
  0x4a   :  { %16372 = dma.done.wait [#allocation6], 49152  }
  0x4b   :  { %16373 = vsyncadd [#allocation6], 4294918144 }
  0x4c   :  { %16374 = dma.done.wait [#allocation9], 16384  }
  0x4d   :  { %16375 = vsyncadd [#allocation9], 4294950912  ;;  %vm225_vm0 = vcmask 1043456   ;;  %vm226_vm1 = vcmask 1044480   ;;  %v16386_v1 = vmov 65535   ;;  %s21488_s18 = sld [smem:[#allocation74_spill]]  ;;  %v425_v59 = vlaneseq }
  0x4e   :  { %v227_v2 = vsel %vm225_vm0, 4294967295, %v16386_v1  ;;  %s21489_s9 = sld [smem:[#allocation73_spill]]  ;;  %vm176_vm2 = vcmask 72704   ;;  %v15603_v20 = vld [vmem:[%s21354_s3 + $0x20] sm:$0xff]   ;;  %v15604_v22 = vld [vmem:[%s21354_s3 + $0x28] sm:$0xff]   ;;  %v15605_v56 = vld [vmem:[%s21354_s3 + $0x30] sm:$0xff]  }
  0x4f   :  { %v228_v3 = vsel %vm226_vm1, %v227_v2, 0  ;;  %15026 = vmatprep.subr.bf16.mxu1 %v15603_v20  ;;  %v15606_v57 = vld [vmem:[%s21354_s3 + $0x38] sm:$0xff]   ;;  %v15607_v58 = vld [vmem:[%s21354_s3] sm:$0xff]   ;;  %v16670_v0 = vshrl.u32 %v425_v59, 7  ;;  %vm1301_vm5 = vcmask 523264   ;;  %vm2809_vm10 = vcmask 517120  }
  0x50   :  { %15027 = vmatpush3.bf16.msra.mxu1 %v15603_v20  ;;  %v16667_v60 = vld [vmem:[%s21353_s2] ss:$0 sm:$0xff]  ;;  %vm4042_vm11 = vcmask 1041409   ;;  %vm4044_vm12 = vcmask 1042434   ;;  %vm4046_vm13 = vcmask 1043459   ;;  %vm4048_vm14 = vcmask 1044484  }
  0x51   :  { %15028 = vmatprep.subr.bf16.mxu1 %v15604_v22  ;;  %21490 = vst [vmem:[#allocation13_spill] sm:$0xff] %v16670_v0  ;;  %vm906_vm3 = vcmp.lt.s32.totalorder %v16670_v0, 1  ;;  %vm1099_vm4 = vcmp.lt.s32.totalorder %v16670_v0, 7  ;;  %vm4050_vm15 = vcmask 1045509   ;;  %vm4052_vm0 = vcmask 1046534  }
  0x52   :  { %vm4054_vm1 = vcmask 1047559  }
  0x53   :  { %v15602_v4 = vld [vmem:[%s21488_s18] sm:$0x1f]  }
  0x54   :  { %v114_v5 = vld [vmem:[%s21489_s9] sm:$0xff]  ;;  %v115_v6 = vld [vmem:[%s21489_s9 + $0x8] sm:$0xff]  ;;  %v116_v7 = vld [vmem:[%s21489_s9 + $0x10] sm:$0xff]  ;;  %v230_v8 = vand.u32 %v15602_v4, %v228_v3  ;;  %15029 = vmatpush3.bf16.msra.mxu1 %v15604_v22 }
  0x55   :  { %v146_v9 = vpack.c.bf16 %v115_v6, %v114_v5  ;;  %v117_v10 = vld [vmem:[%s21489_s9 + $0x18] sm:$0xff]  ;;  %v118_v11 = vld [vmem:[%s21489_s9 + $0x20] sm:$0xff]  ;;  %v119_v12 = vld [vmem:[%s21489_s9 + $0x28] sm:$0xff]  ;;  %15030 = vmatprep.subr.bf16.mxu1 %v15605_v56 }
  0x56   :  { %14992 = vmatprep.subr.bf16.mxu0 %v230_v8  ;;  %v147_v13 = vpack.c.bf16 %v117_v10, %v116_v7  ;;  %v148_v14 = vpack.c.bf16 %v119_v12, %v118_v11  ;;  %v120_v15 = vld [vmem:[%s21489_s9 + $0x30] sm:$0xff]  ;;  %v121_v16 = vld [vmem:[%s21489_s9 + $0x38] sm:$0xff]  ;;  %v122_v17 = vld [vmem:[%s21489_s9 + $0x40] sm:$0xff] }
  0x57   :  { %14994 = vmatprep.mubr.msk.bf16.mxu0 %vm176_vm2, %v146_v9  ;;  %14993 = vmatpush3.bf16.msra.mxu0 %v230_v8  ;;  %v123_v18 = vld [vmem:[%s21489_s9 + $0x48] sm:$0xff]  ;;  %v149_v19 = vpack.c.bf16 %v121_v16, %v120_v15  ;;  %v124_v23 = vld [vmem:[%s21489_s9 + $0x50] sm:$0xff]  ;;  %v125_v24 = vld [vmem:[%s21489_s9 + $0x58] sm:$0xff] }
  0x58   :  { %v150_v21 = vpack.c.bf16 %v123_v18, %v122_v17  ;;  %v126_v25 = vld [vmem:[%s21489_s9 + $0x60] sm:$0xff]  ;;  %v127_v26 = vld [vmem:[%s21489_s9 + $0x68] sm:$0xff]  ;;  %v151_v27 = vpack.c.bf16 %v125_v24, %v124_v23  ;;  %v128_v29 = vld [vmem:[%s21489_s9 + $0x70] sm:$0xff]  ;;  %15031 = vmatpush3.bf16.msra.mxu1 %v15605_v56 }
  0x59   :  { %v152_v28 = vpack.c.bf16 %v127_v26, %v126_v25  ;;  %v129_v30 = vld [vmem:[%s21489_s9 + $0x78] sm:$0xff]  ;;  %v130_v31 = vld [vmem:[%s21489_s9 + $0x80] sm:$0xff]  ;;  %v131_v32 = vld [vmem:[%s21489_s9 + $0x88] sm:$0xff]  ;;  %15032 = vmatprep.subr.bf16.mxu1 %v15606_v57 }
  0x5a   :  { %14995 = vmatmul.mubr.msk.bf16.vlgmr.msra.gmra.mrb[0].mxu0 %vm176_vm2, %v147_v13  ;;  %v153_v33 = vpack.c.bf16 %v129_v30, %v128_v29  ;;  %v154_v34 = vpack.c.bf16 %v131_v32, %v130_v31  ;;  %v132_v35 = vld [vmem:[%s21489_s9 + $0x90] sm:$0xff]  ;;  %v133_v36 = vld [vmem:[%s21489_s9 + $0x98] sm:$0xff]  ;;  %v134_v37 = vld [vmem:[%s21489_s9 + $0xa0] sm:$0xff] }
  0x5b   :  { %14998 = vmatprep.mubr.msk.bf16.mxu0 %vm176_vm2, %v148_v14  ;;  %v135_v38 = vld [vmem:[%s21489_s9 + $0xa8] sm:$0xff]  ;;  %v155_v39 = vpack.c.bf16 %v133_v36, %v132_v35  ;;  %v136_v41 = vld [vmem:[%s21489_s9 + $0xb0] sm:$0xff]  ;;  %v137_v42 = vld [vmem:[%s21489_s9 + $0xb8] sm:$0xff] }
  0x5c   :  { %v156_v40 = vpack.c.bf16 %v135_v38, %v134_v37  ;;  %v138_v43 = vld [vmem:[%s21489_s9 + $0xc0] sm:$0xff]  ;;  %v139_v44 = vld [vmem:[%s21489_s9 + $0xc8] sm:$0xff]  ;;  %v157_v45 = vpack.c.bf16 %v137_v42, %v136_v41  ;;  %v140_v47 = vld [vmem:[%s21489_s9 + $0xd0] sm:$0xff]  ;;  %15033 = vmatpush3.bf16.msra.mxu1 %v15606_v57  ;;  %v16729_v41 = vadd.s32 128, %v16670_v0 }
  0x5d   :  { %v158_v46 = vpack.c.bf16 %v139_v44, %v138_v43  ;;  %v141_v48 = vld [vmem:[%s21489_s9 + $0xd8] sm:$0xff]  ;;  %v142_v49 = vld [vmem:[%s21489_s9 + $0xe0] sm:$0xff]  ;;  %v143_v50 = vld [vmem:[%s21489_s9 + $0xe8] sm:$0xff]  ;;  %15066 = vmatprep.subr.bf16.mxu1 %v15607_v58 }
  0x5e   :  { %v159_v51 = vpack.c.bf16 %v141_v48, %v140_v47  ;;  %v160_v52 = vpack.c.bf16 %v143_v50, %v142_v49  ;;  %v144_v53 = vld [vmem:[%s21489_s9 + $0xf0] sm:$0xff]  ;;  %v145_v54 = vld [vmem:[%s21489_s9 + $0xf8] sm:$0xff]  ;;  %v15608_v25 = vld [vmem:[%s21354_s3 + $0x8] sm:$0xff]  }
  0x5f   :  { %v161_v55 = vpack.c.bf16 %v145_v54, %v144_v53 }
  0x62   :  { %14999 = vmatmul.mubr.msk.bf16.gmra.mrb[4].mxu0 %vm176_vm2, %v149_v19 }
  0x63   :  { %15002 = vmatprep.mubr.msk.bf16.mxu0 %vm176_vm2, %v150_v21 }
  0x6a   :  { %15003 = vmatmul.mubr.msk.bf16.gmra.mrb[8].mxu0 %vm176_vm2, %v151_v27 }
  0x6b   :  { %15006 = vmatprep.mubr.msk.bf16.mxu0 %vm176_vm2, %v152_v28 }
  0x72   :  { %15007 = vmatmul.mubr.msk.bf16.gmra.mrb[12].mxu0 %vm176_vm2, %v153_v33 }
  0x73   :  { %15010 = vmatprep.mubr.msk.bf16.mxu0 %vm176_vm2, %v154_v34 }
  0x7a   :  { %15011 = vmatmul.mubr.msk.bf16.gmra.mrb[16].mxu0 %vm176_vm2, %v155_v39 }
  0x7b   :  { %15014 = vmatprep.mubr.msk.bf16.mxu0 %vm176_vm2, %v156_v40  ;;  %v15609_v40 = vld [vmem:[%s21354_s3 + $0x10] sm:$0xff]  }
  0x82   :  { %15015 = vmatmul.mubr.msk.bf16.gmra.mrb[20].mxu0 %vm176_vm2, %v157_v45 }
  0x83   :  { %15018 = vmatprep.mubr.msk.bf16.mxu0 %vm176_vm2, %v158_v46 }
  0x8a   :  { %15019 = vmatmul.mubr.msk.bf16.gmra.mrb[24].mxu0 %vm176_vm2, %v159_v51 }
  0x8b   :  { %15022 = vmatprep.mubr.msk.bf16.mxu0 %vm176_vm2, %v160_v52 }
  0x92   :  { %15023 = vmatmul.mubr.msk.bf16.gmra.mrb[28].mxu0 %vm176_vm2, %v161_v55 }
 0x12d   :  { %v14996_v61 = vpop.f32.mrb[0].mxu0 }
 0x12e   :  { %v275_v62 = vadd.f32 %v14996_v61, %v16667_v60  ;;  %v266_v63 = vpop.f32.mrb[1].mxu0 }
 0x12f   :  { %v267_v1 = vadd.f32 %v16667_v60, %v266_v63  ;;  %v14997_v2 = vpop.f32.mrb[2].mxu0 }
 0x130   :  { %v395_v3 = vmax.f32 %v275_v62, 0.0  ;;  %v278_v4 = vadd.f32 %v14997_v2, %v16667_v60  ;;  %v269_v5 = vpop.f32.mrb[3].mxu0 }
 0x131   :  { %v16674_v6 = vmax.f32 %v267_v1, 0.0  ;;  %v270_v7 = vadd.f32 %v16667_v60, %v269_v5 }
 0x132   :  { %v396_v8 = vmax.f32 %v278_v4, 0.0  ;;  %v876_v9 = vrot.slane %v395_v3, 7  ;;  %v1069_v11 = vrot.slane %v395_v3, 1 }
 0x133   :  { %v394_v10 = vmax.f32 %v270_v7, 0.0  ;;  %v21371_v15 = vrot.slane %v16674_v6, 7  ;;  %v21370_v20 = vrot.slane %v16674_v6, 1 }
 0x134   :  { %v877_v12 = vrot.slane %v396_v8, 7  ;;  %v1070_v13 = vrot.slane %v396_v8, 1  ;;  %v1253_v14 = vpack.c.bf16 %v396_v8, %v395_v3 }
 0x135   :  { %v875_v16 = vrot.slane %v394_v10, 7  ;;  %v1068_v17 = vrot.slane %v394_v10, 1  ;;  %v15000_v18 = vpop.f32.mrb[4].mxu0  ;;  %v1252_v19 = vpack.c.bf16 %v394_v10, %v16674_v6 }
 0x136   :  { %v16684_v21 = vsel %vm906_vm3, %v876_v9, %v877_v12  ;;  %v16688_v22 = vsel %vm1099_vm4, %v1069_v11, %v1070_v13  ;;  %v291_v23 = vadd.f32 %v15000_v18, %v16667_v60  ;;  %v282_v24 = vpop.f32.mrb[5].mxu0 }
 0x137   :  { %v16696_v26 = vsel %vm906_vm3, %v875_v16, %v876_v9  ;;  %v283_v27 = vadd.f32 %v16667_v60, %v282_v24  ;;  %v15001_v28 = vpop.f32.mrb[6].mxu0  ;;  %15034 = vmatprep.mubr.msk.bf16.mxu1 %vm1301_vm5, %v1252_v19  ;;  %v16704_v29 = vsel %vm906_vm3, %v21371_v15, %v875_v16  ;;  %v16708_v30 = vsel %vm1099_vm4, %v1068_v17, %v1069_v11  ;;  %v16786_v16 = vld [vmem:[%s21354_s3 + $0x40] sm:$0xff]  }
 0x138   :  { %v399_v32 = vmax.f32 %v291_v23, 0.0  ;;  %v294_v33 = vadd.f32 %v15001_v28, %v16667_v60  ;;  %v285_v34 = vpop.f32.mrb[7].mxu0  ;;  %15035 = vmatmul.mubr.msk.bf16.vlgmr.msra.gmra.mrb[0].mxu1 %vm1301_vm5, %v1253_v14  ;;  %v16718_v35 = vsel %vm1099_vm4, %v21370_v20, %v1068_v17  ;;  %v574_v17 = vand.u32 127, %v16729_v41 }
 0x139   :  { %v397_v36 = vmax.f32 %v283_v27, 0.0  ;;  %v286_v37 = vadd.f32 %v16667_v60, %v285_v34  ;;  %15067 = vmatpush3.bf16.msra.mxu1 %v15607_v58  ;;  %v15610_v58 = vld [vmem:[%s21354_s3 + $0x18] sm:$0xff]   ;;  %v16792_v19 = vadd.s32 120, %v16670_v0 }
 0x13a   :  { %v16723_v39 = vmax.f32 %v294_v33, 0.0  ;;  %15068 = vmatprep.subr.bf16.mxu1 %v15608_v25  ;;  %v880_v42 = vrot.slane %v399_v32, 7  ;;  %v1073_v46 = vrot.slane %v399_v32, 1  ;;  %vm16845_vm6 = vcmp.eq.s32.totalorder %v574_v17, 0 }
 0x13b   :  { %v878_v43 = vrot.slane %v397_v36, 7  ;;  %v1071_v44 = vrot.slane %v397_v36, 1  ;;  %v398_v45 = vmax.f32 %v286_v37, 0.0  ;;  %21491 = vst [vmem:[#allocation14_spill] sm:$0xff] %v16792_v19 }
 0x13c   :  { %v881_v47 = vrot.slane %v16723_v39, 7  ;;  %v1074_v48 = vrot.slane %v16723_v39, 1  ;;  %v1255_v49 = vpack.c.bf16 %v16723_v39, %v399_v32 }
 0x13d   :  { %v16736_v50 = vsel %vm1099_vm4, %v1070_v13, %v1071_v44  ;;  %v879_v51 = vrot.slane %v398_v45, 7  ;;  %v1072_v52 = vrot.slane %v398_v45, 1  ;;  %v1254_v53 = vpack.c.bf16 %v398_v45, %v397_v36  ;;  %v15004_v54 = vpop.f32.mrb[8].mxu0  ;;  %15069 = vmatpush3.bf16.msra.mxu1 %v15608_v25 }
 0x13e   :  { %v307_v56 = vadd.f32 %v15004_v54, %v16667_v60  ;;  %v298_v57 = vpop.f32.mrb[9].mxu0  ;;  %15070 = vmatprep.subr.bf16.mxu1 %v15609_v40  ;;  %v16746_v59 = vsel %vm906_vm3, %v877_v12, %v878_v43  ;;  %v16750_v61 = vsel %vm906_vm3, %v880_v42, %v881_v47  ;;  %v16779_v13 = vsel %vm1099_vm4, %v1073_v46, %v1074_v48 }
 0x13f   :  { %v299_v62 = vadd.f32 %v16667_v60, %v298_v57  ;;  %v15005_v63 = vpop.f32.mrb[10].mxu0  ;;  %15038 = vmatprep.mubr.msk.bf16.mxu1 %vm1301_vm5, %v1254_v53  ;;  %v16756_v1 = vsel %vm906_vm3, %v878_v43, %v879_v51  ;;  %v16760_v2 = vsel %vm906_vm3, %v879_v51, %v880_v42  ;;  %v16764_v3 = vsel %vm1099_vm4, %v1072_v52, %v1073_v46 }
 0x140   :  { %v403_v4 = vmax.f32 %v307_v56, 0.0  ;;  %v310_v5 = vadd.f32 %v15005_v63, %v16667_v60  ;;  %v301_v7 = vpop.f32.mrb[11].mxu0  ;;  %15039 = vmatmul.mubr.msk.bf16.gmra.mrb[4].mxu1 %vm1301_vm5, %v1255_v49  ;;  %v16775_v12 = vsel %vm1099_vm4, %v1071_v44, %v1072_v52 }
 0x141   :  { %v401_v10 = vmax.f32 %v299_v62, 0.0  ;;  %v302_v11 = vadd.f32 %v16667_v60, %v301_v7  ;;  %15071 = vmatpush3.bf16.msra.mxu1 %v15609_v40 }
 0x142   :  { %v16781_v14 = vmax.f32 %v310_v5, 0.0  ;;  %15072 = vmatprep.subr.bf16.mxu1 %v15610_v58  ;;  %v884_v23 = vrot.slane %v403_v4, 7  ;;  %v1077_v28 = vrot.slane %v403_v4, 1 }
 0x143   :  { %v882_v24 = vrot.slane %v401_v10, 7  ;;  %v1075_v25 = vrot.slane %v401_v10, 1  ;;  %v402_v27 = vmax.f32 %v302_v11, 0.0  ;;  %v567_v11 = vand.u32 127, %v16792_v19 }
 0x144   :  { %v885_v32 = vrot.slane %v16781_v14, 7  ;;  %v1078_v33 = vrot.slane %v16781_v14, 1  ;;  %v1257_v34 = vpack.c.bf16 %v16781_v14, %v403_v4 }
 0x145   :  { %v883_v36 = vrot.slane %v402_v27, 7  ;;  %v1076_v37 = vrot.slane %v402_v27, 1  ;;  %v1256_v39 = vpack.c.bf16 %v402_v27, %v401_v10  ;;  %v15008_v40 = vpop.f32.mrb[12].mxu0  ;;  %15073 = vmatpush3.bf16.msra.mxu1 %v15610_v58  ;;  %v16799_v41 = vsel %vm906_vm3, %v881_v47, %v882_v24 }
 0x146   :  { %v323_v42 = vadd.f32 %v15008_v40, %v16667_v60  ;;  %v314_v43 = vpop.f32.mrb[13].mxu0  ;;  %15106 = vmatprep.subr.bf16.mxu1 %v16786_v16  ;;  %v16805_v44 = vsel %vm906_vm3, %v884_v23, %v885_v32  ;;  %v16809_v45 = vsel %vm1099_vm4, %v1074_v48, %v1075_v25  ;;  %v16813_v46 = vsel %vm1099_vm4, %v1077_v28, %v1078_v33 }
 0x147   :  { %21492 = vst [vmem:[#allocation15_spill] sm:$0xff] %v16813_v46  ;;  %v315_v47 = vadd.f32 %v16667_v60, %v314_v43  ;;  %v15009_v49 = vpop.f32.mrb[14].mxu0  ;;  %15042 = vmatprep.mubr.msk.bf16.mxu1 %vm1301_vm5, %v1256_v39  ;;  %v16819_v51 = vsel %vm906_vm3, %v882_v24, %v883_v36  ;;  %v16823_v52 = vsel %vm906_vm3, %v883_v36, %v884_v23  ;;  %vm16893_vm7 = vcmp.eq.s32.totalorder %v567_v11, 127 }
 0x148   :  { %v407_v53 = vmax.f32 %v323_v42, 0.0  ;;  %v326_v54 = vadd.f32 %v15009_v49, %v16667_v60  ;;  %v317_v56 = vpop.f32.mrb[15].mxu0  ;;  %15043 = vmatmul.mubr.msk.bf16.gmra.mrb[8].mxu1 %vm1301_vm5, %v1257_v34  ;;  %v16836_v4 = vsel %vm1099_vm4, %v1076_v37, %v1077_v28  ;;  %v16840_v5 = vsel %vm1099_vm4, %v1075_v25, %v1076_v37 }
 0x149   :  { %v405_v62 = vmax.f32 %v315_v47, 0.0  ;;  %v318_v63 = vadd.f32 %v16667_v60, %v317_v56 }
 0x14a   :  { %v408_v7 = vmax.f32 %v326_v54, 0.0  ;;  %v888_v14 = vrot.slane %v407_v53, 7  ;;  %v1081_v28 = vrot.slane %v407_v53, 1 }
 0x14b   :  { %v886_v23 = vrot.slane %v405_v62, 7  ;;  %v1079_v24 = vrot.slane %v405_v62, 1  ;;  %v406_v27 = vmax.f32 %v318_v63, 0.0 }
 0x14c   :  { %v889_v36 = vrot.slane %v408_v7, 7  ;;  %v1082_v39 = vrot.slane %v408_v7, 1  ;;  %v1259_v40 = vpack.c.bf16 %v408_v7, %v407_v53 }
 0x14d   :  { %v887_v25 = vrot.slane %v406_v27, 7  ;;  %v1080_v37 = vrot.slane %v406_v27, 1  ;;  %v1258_v42 = vpack.c.bf16 %v406_v27, %v405_v62  ;;  %v15012_v43 = vpop.f32.mrb[16].mxu0  ;;  %v16851_v47 = vsel %vm906_vm3, %v885_v32, %v886_v23 }
 0x14e   :  { %v339_v49 = vadd.f32 %v15012_v43, %v16667_v60  ;;  %v330_v54 = vpop.f32.mrb[17].mxu0  ;;  %v16856_v17 = vsel %vm906_vm3, %v888_v14, %v889_v36  ;;  %v16860_v56 = vsel %vm1099_vm4, %v1078_v33, %v1079_v24  ;;  %v1116_v53 = vsel %vm1099_vm4, %v1081_v28, %v1082_v39 }
 0x14f   :  { %21495 = vst [vmem:[#allocation16_spill] sm:$0xff] %v16860_v56  ;;  %v331_v62 = vadd.f32 %v16667_v60, %v330_v54  ;;  %v15013_v63 = vpop.f32.mrb[18].mxu0  ;;  %15046 = vmatprep.mubr.msk.bf16.mxu1 %vm1301_vm5, %v1258_v42  ;;  %v16868_v32 = vsel %vm906_vm3, %v886_v23, %v887_v25  ;;  %v16872_v7 = vsel %vm906_vm3, %v887_v25, %v888_v14 }
 0x150   :  { %v411_v27 = vmax.f32 %v339_v49, 0.0  ;;  %v342_v43 = vadd.f32 %v15013_v63, %v16667_v60  ;;  %v333_v10 = vpop.f32.mrb[19].mxu0  ;;  %15047 = vmatmul.mubr.msk.bf16.gmra.mrb[12].mxu1 %vm1301_vm5, %v1259_v40  ;;  %v16885_v14 = vsel %vm1099_vm4, %v1080_v37, %v1081_v28  ;;  %v16889_v25 = vsel %vm1099_vm4, %v1079_v24, %v1080_v37 }
 0x151   :  { %v409_v54 = vmax.f32 %v331_v62, 0.0  ;;  %v334_v48 = vadd.f32 %v16667_v60, %v333_v10  ;;  %21496 = vst [vmem:[#allocation17_spill] sm:$0xff] %v16885_v14  ;;  %21497 = vst [vmem:[#allocation18_spill] sm:$0xff] %v16889_v25  ;;  %v16898_v62 = vadd.s32 248, %v16670_v0 }
 0x152   :  { %v412_v49 = vmax.f32 %v342_v43, 0.0  ;;  %v892_v10 = vrot.slane %v411_v27, 7  ;;  %v1085_v55 = vrot.slane %v411_v27, 1 }
 0x153   :  { %v890_v33 = vrot.slane %v409_v54, 7  ;;  %v1083_v18 = vrot.slane %v409_v54, 1  ;;  %v410_v28 = vmax.f32 %v334_v48, 0.0 }
 0x154   :  { %v893_v38 = vrot.slane %v412_v49, 7  ;;  %v1086_v23 = vrot.slane %v412_v49, 1  ;;  %v1261_v24 = vpack.c.bf16 %v412_v49, %v411_v27 }
 0x155   :  { %v891_v37 = vrot.slane %v410_v28, 7  ;;  %v1084_v43 = vrot.slane %v410_v28, 1  ;;  %v1260_v42 = vpack.c.bf16 %v410_v28, %v409_v54  ;;  %v15016_v58 = vpop.f32.mrb[20].mxu0  ;;  %v922_v11 = vsel %vm906_vm3, %v889_v36, %v890_v33 }
 0x156   :  { %v355_v40 = vadd.f32 %v15016_v58, %v16667_v60  ;;  %v346_v57 = vpop.f32.mrb[21].mxu0  ;;  %v1019_v9 = vsel %vm16845_vm6, 0.0, %v922_v11  ;;  %v16907_v48 = vsel %vm906_vm3, %v892_v10, %v893_v38  ;;  %v1115_v27 = vsel %vm1099_vm4, %v1082_v39, %v1083_v18 }
 0x157   :  { %v347_v49 = vadd.f32 %v16667_v60, %v346_v57  ;;  %v15017_v54 = vpop.f32.mrb[22].mxu0  ;;  %15050 = vmatprep.mubr.msk.bf16.mxu1 %vm1301_vm5, %v1260_v42  ;;  %v921_v36 = vsel %vm906_vm3, %v890_v33, %v891_v37  ;;  %v16917_v58 = vsel %vm906_vm3, %v891_v37, %v892_v10  ;;  %v1211_v34 = vsel %vm16893_vm7, 0.0, %v1115_v27 }
 0x158   :  { %v415_v28 = vmax.f32 %v355_v40, 0.0  ;;  %v358_v11 = vadd.f32 %v15017_v54, %v16667_v60  ;;  %v349_v8 = vpop.f32.mrb[23].mxu0  ;;  %15051 = vmatmul.mubr.msk.bf16.gmra.mrb[16].mxu1 %vm1301_vm5, %v1261_v24  ;;  %v16923_v57 = vpack.c.bf16 %v921_v36, %v1019_v9  ;;  %v16928_v31 = vpack.c.bf16 %v1211_v34, %v1116_v53 }
 0x159   :  { %v413_v42 = vmax.f32 %v347_v49, 0.0  ;;  %v350_v33 = vadd.f32 %v16667_v60, %v349_v8  ;;  %v16932_v63 = vsel %vm1099_vm4, %v1084_v43, %v1085_v55  ;;  %v16936_v24 = vsel %vm1099_vm4, %v1083_v18, %v1084_v43 }
 0x15a   :  { %21500 = vst [vmem:[#allocation19_spill] sm:$0xff] %v16928_v31  ;;  %21501 = vst [vmem:[#allocation20_spill] sm:$0xff] %v16932_v63  ;;  %v896_v40 = vrot.slane %v415_v28, 7  ;;  %v1089_v10 = vrot.slane %v415_v28, 1  ;;  %v416_v37 = vmax.f32 %v358_v11, 0.0  ;;  %v16942_v34 = vsel %vm1099_vm4, %v1085_v55, %v1086_v23 }
 0x15b   :  { %21502 = vst [vmem:[#allocation21_spill] sm:$0xff] %v16936_v24  ;;  %v894_v9 = vrot.slane %v413_v42, 7  ;;  %v1087_v27 = vrot.slane %v413_v42, 1  ;;  %v414_v54 = vmax.f32 %v350_v33, 0.0  ;;  %21503 = vst [vmem:[#allocation22_spill] sm:$0xff] %v16942_v34 }
 0x15c   :  { %v897_v8 = vrot.slane %v416_v37, 7  ;;  %v1090_v53 = vrot.slane %v416_v37, 1  ;;  %v1263_v36 = vpack.c.bf16 %v416_v37, %v415_v28 }
 0x15d   :  { %v895_v39 = vrot.slane %v414_v54, 7  ;;  %v1088_v20 = vrot.slane %v414_v54, 1  ;;  %v1262_v11 = vpack.c.bf16 %v414_v54, %v413_v42  ;;  %v15020_v15 = vpop.f32.mrb[24].mxu0  ;;  %v16946_v18 = vsel %vm906_vm3, %v893_v38, %v894_v9 }
 0x15e   :  { %v371_v43 = vadd.f32 %v15020_v15, %v16667_v60  ;;  %v362_v33 = vpop.f32.mrb[25].mxu0  ;;  %v16951_v49 = vsel %vm906_vm3, %v896_v40, %v897_v8  ;;  %v16955_v28 = vsel %vm1099_vm4, %v1086_v23, %v1087_v27  ;;  %v16959_v55 = vsel %vm1099_vm4, %v1089_v10, %v1090_v53 }
 0x15f   :  { %21504 = vst [vmem:[#allocation23_spill] sm:$0xff] %v16955_v28  ;;  %21505 = vst [vmem:[#allocation24_spill] sm:$0xff] %v16959_v55  ;;  %v363_v42 = vadd.f32 %v16667_v60, %v362_v33  ;;  %v15021_v37 = vpop.f32.mrb[26].mxu0  ;;  %15054 = vmatprep.mubr.msk.bf16.mxu1 %vm1301_vm5, %v1262_v11  ;;  %v16965_v15 = vsel %vm906_vm3, %v894_v9, %v895_v39  ;;  %v16969_v38 = vsel %vm906_vm3, %v895_v39, %v896_v40 }
 0x160   :  { %v419_v54 = vmax.f32 %v371_v43, 0.0  ;;  %v374_v19 = vadd.f32 %v15021_v37, %v16667_v60  ;;  %v365_v24 = vpop.f32.mrb[27].mxu0  ;;  %15055 = vmatmul.mubr.msk.bf16.gmra.mrb[20].mxu1 %vm1301_vm5, %v1263_v36  ;;  %v16982_v39 = vsel %vm1099_vm4, %v1088_v20, %v1089_v10  ;;  %v16986_v40 = vsel %vm1099_vm4, %v1087_v27, %v1088_v20 }
 0x161   :  { %v417_v33 = vmax.f32 %v363_v42, 0.0  ;;  %v366_v63 = vadd.f32 %v16667_v60, %v365_v24  ;;  %21506 = vst [vmem:[#allocation25_spill] sm:$0xff] %v16982_v39  ;;  %21507 = vst [vmem:[#allocation26_spill] sm:$0xff] %v16986_v40  ;;  %v462_v36 = vand.u32 127, %v16670_v0  ;;  %v679_v23 = vand.u32 127, %v16898_v62 }
 0x162   :  { %v420_v43 = vmax.f32 %v374_v19, 0.0  ;;  %v900_v9 = vrot.slane %v419_v54, 7  ;;  %v1093_v34 = vrot.slane %v419_v54, 1 }
 0x163   :  { %v898_v42 = vrot.slane %v417_v33, 7  ;;  %v1091_v11 = vrot.slane %v417_v33, 1  ;;  %v418_v24 = vmax.f32 %v366_v63, 0.0  ;;  %vm17036_vm8 = vcmp.eq.s32.totalorder %v462_v36, 0 }
 0x164   :  { %v901_v28 = vrot.slane %v420_v43, 7  ;;  %v1094_v10 = vrot.slane %v420_v43, 1  ;;  %v1265_v31 = vpack.c.bf16 %v420_v43, %v419_v54  ;;  %vm17042_vm9 = vcmp.eq.s32.totalorder %v679_v23, 127 }
 0x165   :  { %v899_v25 = vrot.slane %v418_v24, 7  ;;  %v1092_v14 = vrot.slane %v418_v24, 1  ;;  %v1264_v20 = vpack.c.bf16 %v418_v24, %v417_v33  ;;  %v15024_v27 = vpop.f32.mrb[28].mxu0  ;;  %v16994_v19 = vsel %vm906_vm3, %v897_v8, %v898_v42 }
 0x166   :  { %v387_v37 = vadd.f32 %v15024_v27, %v16667_v60  ;;  %v378_v40 = vpop.f32.mrb[29].mxu0  ;;  %v16999_v62 = vsel %vm906_vm3, %v900_v9, %v901_v28  ;;  %v17003_v63 = vsel %vm1099_vm4, %v1090_v53, %v1091_v11  ;;  %v17007_v54 = vsel %vm1099_vm4, %v1093_v34, %v1094_v10 }
 0x167   :  { %21508 = vst [vmem:[#allocation27_spill] sm:$0xff] %v17003_v63  ;;  %v379_v33 = vadd.f32 %v16667_v60, %v378_v40  ;;  %v15025_v43 = vpop.f32.mrb[30].mxu0  ;;  %15058 = vmatprep.mubr.msk.bf16.mxu1 %vm1301_vm5, %v1264_v20  ;;  %v17013_v8 = vsel %vm906_vm3, %v898_v42, %v899_v25  ;;  %v17017_v24 = vsel %vm906_vm3, %v899_v25, %v900_v9 }
 0x168   :  { %v423_v27 = vmax.f32 %v387_v37, 0.0  ;;  %v390_v39 = vadd.f32 %v15025_v43, %v16667_v60  ;;  %v381_v46 = vpop.f32.mrb[31].mxu0  ;;  %15059 = vmatmul.mubr.msk.bf16.gmra.mrb[24].mxu1 %vm1301_vm5, %v1265_v31  ;;  %v17030_v25 = vsel %vm1099_vm4, %v1092_v14, %v1093_v34  ;;  %v17034_v9 = vsel %vm1099_vm4, %v1091_v11, %v1092_v14 }
 0x169   :  { %v421_v20 = vmax.f32 %v379_v33, 0.0  ;;  %v382_v56 = vadd.f32 %v16667_v60, %v381_v46  ;;  %21509 = vst [vmem:[#allocation28_spill] sm:$0xff] %v17034_v9  ;;  %v21514_v43 = vrot.slane %v16674_v6, 7 }
 0x16a   :  { %v424_v37 = vmax.f32 %v390_v39, 0.0  ;;  %v904_v60 = vrot.slane %v423_v27, 7  ;;  %v1097_v42 = vrot.slane %v423_v27, 1 }
 0x16b   :  { %v902_v46 = vrot.slane %v421_v20, 7  ;;  %v1095_v34 = vrot.slane %v421_v20, 1  ;;  %v422_v53 = vmax.f32 %v382_v56, 0.0 }
 0x16c   :  { %v905_v40 = vrot.slane %v424_v37, 7  ;;  %v1098_v14 = vrot.slane %v424_v37, 1  ;;  %v1267_v11 = vpack.c.bf16 %v424_v37, %v423_v27 }
 0x16d   :  { %v903_v39 = vrot.slane %v422_v53, 7  ;;  %v1096_v36 = vrot.slane %v422_v53, 1  ;;  %v1266_v55 = vpack.c.bf16 %v422_v53, %v421_v20  ;;  %v910_v63 = vsel %vm906_vm3, %v901_v28, %v902_v46 }
 0x16e   :  { %v938_v23 = vsel %vm906_vm3, %v905_v40, %v21514_v43  ;;  %v907_v9 = vsel %vm906_vm3, %v904_v60, %v905_v40  ;;  %v1103_v56 = vsel %vm1099_vm4, %v1094_v10, %v1095_v34  ;;  %v1100_v27 = vsel %vm1099_vm4, %v1097_v42, %v1098_v14 }
 0x16f   :  { %15062 = vmatprep.mubr.msk.bf16.mxu1 %vm1301_vm5, %v1266_v55  ;;  %v1003_v53 = vsel %vm17036_vm8, 0.0, %v938_v23  ;;  %v909_v28 = vsel %vm906_vm3, %v902_v46, %v903_v39  ;;  %v908_v20 = vsel %vm906_vm3, %v903_v39, %v904_v60  ;;  %v1757_v37 = vpack.c.bf16 %v1103_v56, %v17007_v54 }
 0x170   :  { %15063 = vmatmul.mubr.msk.bf16.gmra.mrb[28].mxu1 %vm1301_vm5, %v1267_v11  ;;  %v1228_v10 = vpack.c.bf16 %v16704_v29, %v1003_v53  ;;  %v1242_v40 = vpack.c.bf16 %v909_v28, %v910_v63  ;;  %v1243_v43 = vpack.c.bf16 %v907_v9, %v908_v20  ;;  %v1101_v55 = vsel %vm1099_vm4, %v1096_v36, %v1097_v42  ;;  %v15612_v63 = vld [vmem:[%s21354_s3 + $0x48] sm:$0xff]   ;;  %v15613_v9 = vld [vmem:[%s21354_s3 + $0x50] sm:$0xff]  }
 0x171   :  { %v1102_v31 = vsel %vm1099_vm4, %v1095_v34, %v1096_v36  ;;  %v21515_v23 = vrot.slane %v16674_v6, 1  ;;  %v21516_v42 = vpack.c.bf16 %v16684_v21, %v16696_v26  ;;  %v21517_v6 = vpack.c.bf16 %v16756_v1, %v16746_v59  ;;  %v15614_v21 = vld [vmem:[%s21354_s3 + $0x58] sm:$0xff]   ;;  %v15615_v34 = vld [vmem:[#allocation3 + $0x20] sm:$0xff]   ;;  %v17197_v36 = vld [vmem:[%s21355_s4] ss:$0 sm:$0xff] }
 0x172   :  { %15074 = vmatprep.mubr.msk.bf16.mxu1 %vm1301_vm5, %v1228_v10  ;;  %v1758_v54 = vpack.c.bf16 %v1101_v55, %v1102_v31  ;;  %v21518_v26 = vpack.c.bf16 %v16750_v61, %v16760_v2  ;;  %v21519_v59 = vpack.c.bf16 %v16819_v51, %v16799_v41  ;;  %v21520_v1 = vpack.c.bf16 %v16805_v44, %v16823_v52 }
 0x173   :  { %v1131_v46 = vsel %vm1099_vm4, %v1098_v14, %v21515_v23  ;;  %v21522_v61 = vpack.c.bf16 %v16856_v17, %v16872_v7  ;;  %v21523_v2 = vpack.c.bf16 %v16907_v48, %v16917_v58  ;;  %v21524_v41 = vpack.c.bf16 %v16965_v15, %v16946_v18  ;;  %v21534_v48 = vld [vmem:[#allocation15_spill] sm:$0xff]  ;;  %v21537_v58 = vld [vmem:[#allocation18_spill] sm:$0xff]  ;;  %v21546_v18 = vld [vmem:[#allocation25_spill] sm:$0xff]  ;;  %15146 = vmatprep.subr.bf16.mxu0 %v15615_v34 }
 0x174   :  { %v1227_v60 = vsel %vm17042_vm9, 0.0, %v1131_v46  ;;  %v21525_v44 = vpack.c.bf16 %v16951_v49, %v16969_v38  ;;  %v21526_v51 = vpack.c.bf16 %v17013_v8, %v16994_v19  ;;  %v21527_v52 = vpack.c.bf16 %v16999_v62, %v17017_v24  ;;  %v21547_v15 = vld [vmem:[#allocation26_spill] sm:$0xff]  ;;  %v21549_v19 = vld [vmem:[#allocation27_spill] sm:$0xff]  ;;  %v21550_v62 = vld [vmem:[#allocation24_spill] sm:$0xff]  ;;  %15147 = vmatpush3.bf16.msra.mxu0 %v15615_v34 }
 0x175   :  { %v1759_v29 = vpack.c.bf16 %v1227_v60, %v1100_v27  ;;  %v21529_v17 = vpack.c.bf16 %v16736_v50, %v16688_v22  ;;  %v21531_v7 = vpack.c.bf16 %v16809_v45, %v16779_v13  ;;  %v21536_v50 = vld [vmem:[#allocation17_spill] sm:$0xff]  ;;  %v21540_v13 = vld [vmem:[#allocation20_spill] sm:$0xff]  ;;  %v21548_v38 = vpack.c.bf16 %v21546_v18, %v21547_v15 }
 0x176   :  { %v21541_v45 = vld [vmem:[#allocation21_spill] sm:$0xff]  ;;  %v21551_v8 = vpack.c.bf16 %v21549_v19, %v21550_v62  ;;  %v21552_v24 = vld [vmem:[#allocation28_spill] sm:$0xff]  ;;  %v16387_v14 = vmov 1983009808  }
 0x177   :  { %v21553_v33 = vpack.c.bf16 %v17030_v25, %v21552_v24  ;;  %v2139_v11 = vunpack.c.l.s4 %v16387_v14 }
 0x178   :  { %15075 = vmatmul.mubr.msk.bf16.vlgmr.msra.gmra.mrb[0].mxu1 %vm1301_vm5, %v21516_v42 }
 0x179   :  { %15107 = vmatpush3.bf16.msra.mxu1 %v16786_v16  ;;  %15078 = vmatprep.mubr.msk.bf16.mxu1 %vm1301_vm5, %v21517_v6  ;;  %v21521_v16 = vpack.c.bf16 %v16868_v32, %v16851_v47  ;;  %v21528_v47 = vpack.c.bf16 %v16708_v30, %v16718_v35  ;;  %v21530_v32 = vpack.c.bf16 %v16764_v3, %v16775_v12  ;;  %v21533_v35 = vld [vmem:[#allocation16_spill] sm:$0xff]  ;;  %v21539_v12 = vld [vmem:[#allocation19_spill] sm:$0xff]  ;;  %v2140_v39 = vunpack.c.0.s8 %v2139_v11 }
 0x17a   :  { %15108 = vmatprep.subr.bf16.mxu1 %v15612_v63  ;;  %v21532_v30 = vpack.c.bf16 %v16836_v4, %v16840_v5  ;;  %v21535_v22 = vpack.c.bf16 %v21533_v35, %v21534_v48  ;;  %v21538_v3 = vpack.c.bf16 %v21536_v50, %v21537_v58  ;;  %v21543_v4 = vld [vmem:[#allocation23_spill] sm:$0xff]  ;;  %v21544_v5 = vld [vmem:[#allocation22_spill] sm:$0xff] }
 0x17b   :  { %v21545_v49 = vpack.c.bf16 %v21543_v4, %v21544_v5  ;;  %v17201_v27 = vsub.s32 %v2140_v39, %v16670_v0  ;;  %v15616_v58 = vld [vmem:[#allocation3 + $0x28] sm:$0xff]  }
 0x17c   :  { %15148 = vmatprep.subr.bf16.mxu0 %v15616_v58 }
 0x17d   :  { %15109 = vmatpush3.bf16.msra.mxu1 %v15612_v63  ;;  %21554 = vst [vmem:[#allocation16_spill] sm:$0xff] %v17201_v27  ;;  %15149 = vmatpush3.bf16.msra.mxu0 %v15616_v58 }
 0x17e   :  { %15110 = vmatprep.subr.bf16.mxu1 %v15613_v9 }
 0x180   :  { %15079 = vmatmul.mubr.msk.bf16.gmra.mrb[4].mxu1 %vm1301_vm5, %v21518_v26 }
 0x181   :  { %15082 = vmatprep.mubr.msk.bf16.mxu1 %vm1301_vm5, %v21519_v59  ;;  %15111 = vmatpush3.bf16.msra.mxu1 %v15613_v9 }
 0x182   :  { %15112 = vmatprep.subr.bf16.mxu1 %v15614_v21 }
 0x185   :  { %15113 = vmatpush3.bf16.msra.mxu1 %v15614_v21 }
 0x188   :  { %15083 = vmatmul.mubr.msk.bf16.gmra.mrb[8].mxu1 %vm1301_vm5, %v21520_v1 }
 0x189   :  { %15086 = vmatprep.mubr.msk.bf16.mxu1 %vm1301_vm5, %v21521_v16 }
 0x190   :  { %15087 = vmatmul.mubr.msk.bf16.gmra.mrb[12].mxu1 %vm1301_vm5, %v21522_v61 }
 0x191   :  { %15090 = vmatprep.mubr.msk.bf16.mxu1 %vm1301_vm5, %v16923_v57  ;;  %v21542_v57 = vpack.c.bf16 %v21540_v13, %v21541_v45 }
 0x198   :  { %15091 = vmatmul.mubr.msk.bf16.gmra.mrb[16].mxu1 %vm1301_vm5, %v21523_v2 }
 0x199   :  { %15094 = vmatprep.mubr.msk.bf16.mxu1 %vm1301_vm5, %v21524_v41 }
 0x1a0   :  { %15095 = vmatmul.mubr.msk.bf16.gmra.mrb[20].mxu1 %vm1301_vm5, %v21525_v44 }
 0x1a1   :  { %15098 = vmatprep.mubr.msk.bf16.mxu1 %vm1301_vm5, %v21526_v51 }
 0x1a8   :  { %15099 = vmatmul.mubr.msk.bf16.gmra.mrb[24].mxu1 %vm1301_vm5, %v21527_v52 }
 0x1a9   :  { %15102 = vmatprep.mubr.msk.bf16.mxu1 %vm1301_vm5, %v1242_v40 }
 0x1b0   :  { %15103 = vmatmul.mubr.msk.bf16.gmra.mrb[28].mxu1 %vm1301_vm5, %v1243_v43 }
 0x1b1   :  { %15114 = vmatprep.mubr.msk.bf16.mxu1 %vm1301_vm5, %v21528_v47 }
 0x1b8   :  { %15115 = vmatmul.mubr.msk.bf16.vlgmr.msra.gmra.mrb[0].mxu1 %vm1301_vm5, %v21529_v17 }
 0x1b9   :  { %15118 = vmatprep.mubr.msk.bf16.mxu1 %vm1301_vm5, %v21530_v32 }
 0x1c0   :  { %15119 = vmatmul.mubr.msk.bf16.gmra.mrb[4].mxu1 %vm1301_vm5, %v21531_v7 }
 0x1c1   :  { %15122 = vmatprep.mubr.msk.bf16.mxu1 %vm1301_vm5, %v21532_v30 }
 0x1c8   :  { %15123 = vmatmul.mubr.msk.bf16.gmra.mrb[8].mxu1 %vm1301_vm5, %v21535_v22 }
 0x1c9   :  { %15126 = vmatprep.mubr.msk.bf16.mxu1 %vm1301_vm5, %v21538_v3 }
 0x1d0   :  { %15127 = vmatmul.mubr.msk.bf16.gmra.mrb[12].mxu1 %vm1301_vm5, %v21539_v12 }
 0x1d1   :  { %15130 = vmatprep.mubr.msk.bf16.mxu1 %vm1301_vm5, %v21542_v57 }
 0x1d8   :  { %15131 = vmatmul.mubr.msk.bf16.gmra.mrb[16].mxu1 %vm1301_vm5, %v21545_v49 }
 0x1d9   :  { %15134 = vmatprep.mubr.msk.bf16.mxu1 %vm1301_vm5, %v21548_v38 }
 0x1e0   :  { %15135 = vmatmul.mubr.msk.bf16.gmra.mrb[20].mxu1 %vm1301_vm5, %v21551_v8 }
 0x1e1   :  { %15138 = vmatprep.mubr.msk.bf16.mxu1 %vm1301_vm5, %v21553_v33 }
 0x1e8   :  { %15139 = vmatmul.mubr.msk.bf16.gmra.mrb[24].mxu1 %vm1301_vm5, %v1757_v37 }
 0x1e9   :  { %15142 = vmatprep.mubr.msk.bf16.mxu1 %vm1301_vm5, %v1758_v54 }
 0x1f0   :  { %15143 = vmatmul.mubr.msk.bf16.gmra.mrb[28].mxu1 %vm1301_vm5, %v1759_v29 }
 0x28b   :  { %v15116_v25 = vpop.f32.mrb[0].mxu1 }
 0x28c   :  { %v2043_v56 = vadd.f32 %v15116_v25, %v17197_v36  ;;  %v1875_v53 = vpop.f32.mrb[1].mxu1 }
 0x28d   :  { %v2041_v28 = vadd.f32 %v17197_v36, %v1875_v53  ;;  %v15117_v20 = vpop.f32.mrb[2].mxu1 }
 0x28e   :  { %v2075_v37 = vmax.f32 %v2043_v56, 0.0  ;;  %v2044_v10 = vadd.f32 %v15117_v20, %v17197_v36  ;;  %v1878_v40 = vpop.f32.mrb[3].mxu1 }
 0x28f   :  { %v2073_v43 = vmax.f32 %v2041_v28, 0.0  ;;  %v2042_v55 = vadd.f32 %v17197_v36, %v1878_v40 }
 0x290   :  { %v2171_v31 = vcombine.high %v2075_v37, %v2075_v37  ;;  %v2178_v23 = vrot.slane %v2075_v37, %v17201_v27  ;;  %v17207_v46 = vmax.f32 %v2044_v10, 0.0 }
 0x291   :  { %v2137_v54 = vcombine.high %v2073_v43, %v2073_v43  ;;  %v2144_v60 = vrot.slane %v2073_v43, %v17201_v27  ;;  %v17210_v29 = vmax.f32 %v2042_v55, 0.0 }
 0x292   :  { %v2185_v63 = vrot.slane %v2171_v31, %v17201_v27  ;;  %v2186_v42 = vcombine.high %v2178_v23, %v2178_v23  ;;  %v2866_v6 = vsel %vm2809_vm10, %v2178_v23, -inf  ;;  %v2188_v9 = vcombine.high %v17207_v46, %v17207_v46 }
 0x293   :  { %v2867_v21 = vrot.slane %v2866_v6, 4  ;;  %v2151_v26 = vrot.slane %v2137_v54, %v17201_v27  ;;  %v2152_v59 = vcombine.high %v2144_v60, %v2144_v60  ;;  %v2810_v1 = vsel %vm2809_vm10, %v2144_v60, -inf  ;;  %v17218_v16 = vpop.f32.mrb[4].mxu1 }
 0x294   :  { %v2187_v61 = vcombine.high %v2185_v63, %v2185_v63  ;;  %v2873_v2 = vsel %vm2809_vm10, %v2186_v42, -inf  ;;  %v2880_v41 = vsel %vm2809_vm10, %v2185_v63, -inf  ;;  %v2811_v44 = vrot.slane %v2810_v1, 4  ;;  %v17222_v51 = vpop.f32.mrb[5].mxu1 }
 0x295   :  { %v2868_v52 = vmax.f32 %v2866_v6, %v2867_v21  ;;  %v2874_v47 = vrot.slane %v2873_v2, 4  ;;  %v2881_v17 = vrot.slane %v2880_v41, 4  ;;  %v2153_v32 = vcombine.high %v2151_v26, %v2151_v26  ;;  %v17224_v7 = vpop.f32.mrb[6].mxu1 }
 0x296   :  { %v2887_v30 = vsel %vm2809_vm10, %v2187_v61, -inf  ;;  %v2812_v35 = vmax.f32 %v2810_v1, %v2811_v44  ;;  %v2817_v48 = vsel %vm2809_vm10, %v2152_v59, -inf  ;;  %v2824_v22 = vsel %vm2809_vm10, %v2151_v26, -inf  ;;  %v17229_v50 = vpop.f32.mrb[7].mxu1 }
 0x297   :  { %v2869_v3 = vrot.slane %v2868_v52, 2  ;;  %v2875_v12 = vmax.f32 %v2873_v2, %v2874_v47  ;;  %v2882_v13 = vmax.f32 %v2880_v41, %v2881_v17  ;;  %v2888_v45 = vrot.slane %v2887_v30, 4 }
 0x298   :  { %v2813_v57 = vrot.slane %v2812_v35, 2  ;;  %v2818_v4 = vrot.slane %v2817_v48, 4  ;;  %v2825_v5 = vrot.slane %v2824_v22, 4  ;;  %v2831_v49 = vsel %vm2809_vm10, %v2153_v32, -inf }
 0x299   :  { %v2870_v18 = vmax.f32 %v2868_v52, %v2869_v3  ;;  %v2876_v15 = vrot.slane %v2875_v12, 2  ;;  %v2883_v38 = vrot.slane %v2882_v13, 2  ;;  %v2889_v19 = vmax.f32 %v2887_v30, %v2888_v45 }
 0x29a   :  { %v2814_v62 = vmax.f32 %v2812_v35, %v2813_v57  ;;  %v2819_v8 = vmax.f32 %v2817_v48, %v2818_v4  ;;  %v2826_v24 = vmax.f32 %v2824_v22, %v2825_v5  ;;  %v2832_v33 = vrot.slane %v2831_v49, 4 }
 0x29b   :  { %v2871_v34 = vrot.slane %v2870_v18, 1  ;;  %v2877_v14 = vmax.f32 %v2875_v12, %v2876_v15  ;;  %v2884_v11 = vmax.f32 %v2882_v13, %v2883_v38  ;;  %v2890_v39 = vrot.slane %v2889_v19, 2  ;;  %v17232_v25 = vpop.f32.mrb[8].mxu1 }
 0x29c   :  { %v2815_v56 = vrot.slane %v2814_v62, 1  ;;  %v2820_v53 = vrot.slane %v2819_v8, 2  ;;  %v2827_v28 = vrot.slane %v2826_v24, 2  ;;  %v2833_v20 = vmax.f32 %v2831_v49, %v2832_v33  ;;  %v17234_v37 = vpop.f32.mrb[9].mxu1 }
 0x29d   :  { %v2872_v10 = vmax.f32 %v2870_v18, %v2871_v34  ;;  %v2878_v40 = vrot.slane %v2877_v14, 1  ;;  %v2885_v43 = vrot.slane %v2884_v11, 1  ;;  %v2891_v55 = vmax.f32 %v2889_v19, %v2890_v39  ;;  %v17236_v31 = vpop.f32.mrb[10].mxu1 }
 0x29e   :  { %v2816_v23 = vmax.f32 %v2814_v62, %v2815_v56  ;;  %v2821_v54 = vmax.f32 %v2819_v8, %v2820_v53  ;;  %v2828_v60 = vmax.f32 %v2826_v24, %v2827_v28  ;;  %v2834_v63 = vrot.slane %v2833_v20, 2  ;;  %v17238_v42 = vpop.f32.mrb[11].mxu1 }
 0x29f   :  { %v2879_v6 = vmax.f32 %v2877_v14, %v2878_v40  ;;  %v2886_v21 = vmax.f32 %v2884_v11, %v2885_v43  ;;  %v2892_v26 = vrot.slane %v2891_v55, 1  ;;  %v4377_v59 = vpack.c.bf16 %v2872_v10, %v2872_v10 }
 0x2a0   :  { %v2822_v1 = vrot.slane %v2821_v54, 1  ;;  %v2829_v61 = vrot.slane %v2828_v60, 1  ;;  %v2835_v2 = vmax.f32 %v2833_v20, %v2834_v63  ;;  %v4369_v41 = vpack.c.bf16 %v2816_v23, %v2816_v23 }
 0x2a1   :  { %v2893_v44 = vmax.f32 %v2891_v55, %v2892_v26  ;;  %v4056_v52 = vsel %vm4042_vm11, %v2879_v6, %v2872_v10  ;;  %v4378_v47 = vpack.c.bf16 %v2879_v6, %v2879_v6  ;;  %v4379_v17 = vpack.c.bf16 %v2886_v21, %v2886_v21 }
 0x2a2   :  { %v4057_v32 = vsel %vm4044_vm12, %v2886_v21, %v4056_v52  ;;  %v4642_v30 = vunpack.c.l.b16 %v4377_v59  ;;  %v2823_v35 = vmax.f32 %v2821_v54, %v2822_v1  ;;  %v2830_v48 = vmax.f32 %v2828_v60, %v2829_v61 }
 0x2a3   :  { %v4380_v22 = vpack.c.bf16 %v2893_v44, %v2893_v44  ;;  %v4643_v58 = vunpack.c.l.b16 %v4378_v47  ;;  %v4644_v3 = vunpack.c.l.b16 %v4379_v17  ;;  %v2836_v12 = vrot.slane %v2835_v2, 1  ;;  %v17242_v13 = vpop.f32.mrb[12].mxu1 }
 0x2a4   :  { %v4043_v45 = vsel %vm4042_vm11, %v2823_v35, %v2816_v23  ;;  %v4370_v57 = vpack.c.bf16 %v2823_v35, %v2823_v35  ;;  %v4371_v4 = vpack.c.bf16 %v2830_v48, %v2830_v48  ;;  %v4634_v5 = vunpack.c.l.b16 %v4369_v41  ;;  %v17245_v49 = vpop.f32.mrb[13].mxu1 }
 0x2a5   :  { %v17247_v18 = vunpack.c.l.b16 %v4380_v22  ;;  %v4769_v15 = vsel %vm4042_vm11, %v4643_v58, %v4642_v30  ;;  %v17250_v38 = vmax.f32 %v2835_v2, %v2836_v12  ;;  %v17253_v19 = vsel %vm4044_vm12, %v2830_v48, %v4043_v45  ;;  %v17255_v62 = vpop.f32.mrb[14].mxu1 }
 0x2a6   :  { %v17258_v8 = vsel %vm4044_vm12, %v4644_v3, %v4769_v15  ;;  %v4635_v24 = vunpack.c.l.b16 %v4370_v57  ;;  %v4636_v33 = vunpack.c.l.b16 %v4371_v4  ;;  %v2195_v34 = vrot.slane %v17207_v46, %v17201_v27  ;;  %v17288_v3 = vpop.f32.mrb[15].mxu1 }
 0x2a7   :  { %v4372_v14 = vpack.c.bf16 %v17250_v38, %v17250_v38  ;;  %v2202_v11 = vrot.slane %v2188_v9, %v17201_v27  ;;  %v4058_v39 = vsel %vm4046_vm13, %v2893_v44, %v4057_v32  ;;  %v2154_v56 = vcombine.high %v17210_v29, %v17210_v29 }
 0x2a8   :  { %v4762_v53 = vsel %vm4042_vm11, %v4635_v24, %v4634_v5  ;;  %v2203_v28 = vcombine.high %v2195_v34, %v2195_v34  ;;  %v2894_v20 = vsel %vm2809_vm10, %v2195_v34, -inf  ;;  %v2161_v10 = vrot.slane %v17210_v29, %v17201_v27 }
 0x2a9   :  { %v17275_v40 = vunpack.c.l.b16 %v4372_v14  ;;  %v17278_v43 = vsel %vm4044_vm12, %v4636_v33, %v4762_v53  ;;  %v2204_v46 = vcombine.high %v2202_v11, %v2202_v11  ;;  %v2895_v9 = vrot.slane %v2894_v20, 4 }
 0x2aa   :  { %v2901_v55 = vsel %vm2809_vm10, %v2203_v28, -inf  ;;  %v2908_v23 = vsel %vm2809_vm10, %v2202_v11, -inf  ;;  %v2168_v54 = vrot.slane %v2154_v56, %v17201_v27  ;;  %v2169_v60 = vcombine.high %v2161_v10, %v2161_v10 }
 0x2ab   :  { %v2896_v63 = vmax.f32 %v2894_v20, %v2895_v9  ;;  %v2902_v6 = vrot.slane %v2901_v55, 4  ;;  %v2909_v21 = vrot.slane %v2908_v23, 4  ;;  %v2915_v29 = vsel %vm2809_vm10, %v2204_v46, -inf }
 0x2ac   :  { %v2916_v26 = vrot.slane %v2915_v29, 4  ;;  %v2170_v59 = vcombine.high %v2168_v54, %v2168_v54  ;;  %v2838_v1 = vsel %vm2809_vm10, %v2161_v10, -inf  ;;  %v2845_v61 = vsel %vm2809_vm10, %v2169_v60, -inf }
 0x2ad   :  { %v2897_v2 = vrot.slane %v2896_v63, 2  ;;  %v2903_v41 = vmax.f32 %v2901_v55, %v2902_v6  ;;  %v2910_v44 = vmax.f32 %v2908_v23, %v2909_v21  ;;  %v2839_v52 = vrot.slane %v2838_v1, 4 }
 0x2ae   :  { %v2917_v47 = vmax.f32 %v2915_v29, %v2916_v26  ;;  %v2846_v17 = vrot.slane %v2845_v61, 4  ;;  %v2852_v32 = vsel %vm2809_vm10, %v2168_v54, -inf  ;;  %v2859_v30 = vsel %vm2809_vm10, %v2170_v59, -inf }
 0x2af   :  { %v2898_v35 = vmax.f32 %v2896_v63, %v2897_v2  ;;  %v2904_v48 = vrot.slane %v2903_v41, 2  ;;  %v2911_v22 = vrot.slane %v2910_v44, 2  ;;  %v2840_v58 = vmax.f32 %v2838_v1, %v2839_v52 }
 0x2b0   :  { %v2918_v12 = vrot.slane %v2917_v47, 2  ;;  %v2847_v45 = vmax.f32 %v2845_v61, %v2846_v17  ;;  %v2853_v57 = vrot.slane %v2852_v32, 4  ;;  %v2860_v4 = vrot.slane %v2859_v30, 4 }
 0x2b1   :  { %v2899_v5 = vrot.slane %v2898_v35, 1  ;;  %v2905_v15 = vmax.f32 %v2903_v41, %v2904_v48  ;;  %v2912_v24 = vmax.f32 %v2910_v44, %v2911_v22  ;;  %v2841_v33 = vrot.slane %v2840_v58, 2 }
 0x2b2   :  { %v2919_v34 = vmax.f32 %v2917_v47, %v2918_v12  ;;  %v2848_v14 = vrot.slane %v2847_v45, 2  ;;  %v2854_v11 = vmax.f32 %v2852_v32, %v2853_v57  ;;  %v2861_v56 = vmax.f32 %v2859_v30, %v2860_v4 }
 0x2b3   :  { %v2900_v53 = vmax.f32 %v2898_v35, %v2899_v5  ;;  %v2906_v28 = vrot.slane %v2905_v15, 1  ;;  %v2913_v20 = vrot.slane %v2912_v24, 1  ;;  %v2842_v10 = vmax.f32 %v2840_v58, %v2841_v33 }
 0x2b4   :  { %v2920_v46 = vrot.slane %v2919_v34, 1  ;;  %v2849_v9 = vmax.f32 %v2847_v45, %v2848_v14  ;;  %v2855_v55 = vrot.slane %v2854_v11, 2  ;;  %v2862_v23 = vrot.slane %v2861_v56, 2 }
 0x2b5   :  { %v2907_v54 = vmax.f32 %v2905_v15, %v2906_v28  ;;  %v17290_v60 = vmax.f32 %v2912_v24, %v2913_v20  ;;  %v4059_v63 = vsel %vm4048_vm14, %v2900_v53, %v4058_v39  ;;  %v4381_v6 = vpack.c.bf16 %v2900_v53, %v2900_v53 }
 0x2b6   :  { %v17293_v21 = vmax.f32 %v2919_v34, %v2920_v46  ;;  %v2843_v29 = vrot.slane %v2842_v10, 1  ;;  %v2850_v26 = vrot.slane %v2849_v9, 1  ;;  %v2856_v59 = vmax.f32 %v2854_v11, %v2855_v55  ;;  %v17330_v11 = vpop.f32.mrb[16].mxu1 }
 0x2b7   :  { %21555 = vst [vmem:[#allocation15_spill] sm:$0xff] %v17290_v60  ;;  %v17296_v1 = vsel %vm4050_vm15, %v2907_v54, %v4059_v63  ;;  %v4382_v61 = vpack.c.bf16 %v2907_v54, %v2907_v54  ;;  %v4383_v2 = vpack.c.bf16 %v17290_v60, %v17290_v60  ;;  %v17300_v41 = vunpack.c.l.b16 %v4381_v6 }
 0x2b8   :  { %21556 = vst [vmem:[#allocation17_spill] sm:$0xff] %v17293_v21  ;;  %21557 = vst [vmem:[#allocation18_spill] sm:$0xff] %v17296_v1  ;;  %v2844_v44 = vmax.f32 %v2842_v10, %v2843_v29  ;;  %v2851_v52 = vmax.f32 %v2849_v9, %v2850_v26  ;;  %v2857_v47 = vrot.slane %v2856_v59, 1  ;;  %v2863_v17 = vmax.f32 %v2861_v56, %v2862_v23 }
 0x2b9   :  { %v17302_v39 = vunpack.c.l.b16 %v4382_v61  ;;  %v17304_v32 = vunpack.c.l.b16 %v4383_v2  ;;  %v4047_v30 = vsel %vm4046_vm13, %v17250_v38, %v17253_v19  ;;  %v2047_v35 = vadd.f32 %v17218_v16, %v17197_v36 }
 0x2ba   :  { %v17311_v48 = vmax.f32 %v2856_v59, %v2857_v47  ;;  %v2864_v22 = vrot.slane %v2863_v17, 1  ;;  %v4049_v58 = vsel %vm4048_vm14, %v2844_v44, %v4047_v30  ;;  %v4373_v12 = vpack.c.bf16 %v2844_v44, %v2844_v44 }
 0x2bb   :  { %v17315_v45 = vsel %vm4050_vm15, %v2851_v52, %v4049_v58  ;;  %v4374_v57 = vpack.c.bf16 %v2851_v52, %v2851_v52  ;;  %v2079_v4 = vmax.f32 %v2047_v35, 0.0  ;;  %v2045_v5 = vadd.f32 %v17197_v36, %v17222_v51  ;;  %v17359_v58 = vpop.f32.mrb[17].mxu1 }
 0x2bc   :  { %21558 = vst [vmem:[#allocation19_spill] sm:$0xff] %v17311_v48  ;;  %21559 = vst [vmem:[#allocation20_spill] sm:$0xff] %v17315_v45  ;;  %v17319_v15 = vmax.f32 %v2863_v17, %v2864_v22  ;;  %v4375_v38 = vpack.c.bf16 %v17311_v48, %v17311_v48  ;;  %v17323_v16 = vunpack.c.l.b16 %v4373_v12  ;;  %v2048_v19 = vadd.f32 %v17224_v7, %v17197_v36 }
 0x2bd   :  { %v17327_v24 = vunpack.c.l.b16 %v4374_v57  ;;  %v2239_v33 = vcombine.high %v2079_v4, %v2079_v4  ;;  %v2246_v34 = vrot.slane %v2079_v4, %v17201_v27  ;;  %v2077_v14 = vmax.f32 %v2045_v5, 0.0 }
 0x2be   :  { %21560 = vst [vmem:[#allocation21_spill] sm:$0xff] %v17319_v15  ;;  %v17332_v56 = vunpack.c.l.b16 %v4375_v38  ;;  %v17334_v51 = vmax.f32 %v2048_v19, 0.0  ;;  %v17338_v53 = vadd.f32 %v17197_v36, %v17229_v50  ;;  %v17342_v28 = vadd.f32 %v17232_v25, %v17197_v36 }
 0x2bf   :  { %v2253_v7 = vrot.slane %v2239_v33, %v17201_v27  ;;  %v2254_v20 = vcombine.high %v2246_v34, %v2246_v34  ;;  %v2978_v10 = vsel %vm2809_vm10, %v2246_v34, -inf  ;;  %v2205_v46 = vcombine.high %v2077_v14, %v2077_v14 }
 0x2c0   :  { %v2979_v9 = vrot.slane %v2978_v10, 4  ;;  %v2212_v55 = vrot.slane %v2077_v14, %v17201_v27  ;;  %v17351_v50 = vrot.slane %v17334_v51, %v17201_v27 }
 0x2c1   :  { %v2255_v54 = vcombine.high %v2253_v7, %v2253_v7  ;;  %v2985_v25 = vsel %vm2809_vm10, %v2254_v20, -inf  ;;  %v2992_v63 = vsel %vm2809_vm10, %v2253_v7, -inf  ;;  %v2219_v6 = vrot.slane %v2205_v46, %v17201_v27 }
 0x2c2   :  { %v2980_v29 = vmax.f32 %v2978_v10, %v2979_v9  ;;  %v2986_v26 = vrot.slane %v2985_v25, 4  ;;  %v2993_v59 = vrot.slane %v2992_v63, 4  ;;  %v2220_v61 = vcombine.high %v2212_v55, %v2212_v55 }
 0x2c3   :  { %v2999_v2 = vsel %vm2809_vm10, %v2255_v54, -inf  ;;  %v2221_v44 = vcombine.high %v2219_v6, %v2219_v6  ;;  %v2922_v52 = vsel %vm2809_vm10, %v2212_v55, -inf  ;;  %v2936_v47 = vsel %vm2809_vm10, %v2219_v6, -inf }
 0x2c4   :  { %v2981_v17 = vrot.slane %v2980_v29, 2  ;;  %v2987_v30 = vmax.f32 %v2985_v25, %v2986_v26  ;;  %v2994_v35 = vmax.f32 %v2992_v63, %v2993_v59  ;;  %v3000_v22 = vrot.slane %v2999_v2, 4 }
 0x2c5   :  { %v2923_v12 = vrot.slane %v2922_v52, 4  ;;  %v2929_v57 = vsel %vm2809_vm10, %v2220_v61, -inf  ;;  %v2937_v4 = vrot.slane %v2936_v47, 4  ;;  %v2943_v5 = vsel %vm2809_vm10, %v2221_v44, -inf }
 0x2c6   :  { %v2982_v38 = vmax.f32 %v2980_v29, %v2981_v17  ;;  %v2988_v19 = vrot.slane %v2987_v30, 2  ;;  %v2995_v33 = vrot.slane %v2994_v35, 2  ;;  %v3001_v34 = vmax.f32 %v2999_v2, %v3000_v22 }
 0x2c7   :  { %v2924_v14 = vmax.f32 %v2922_v52, %v2923_v12  ;;  %v2930_v7 = vrot.slane %v2929_v57, 4  ;;  %v2938_v20 = vmax.f32 %v2936_v47, %v2937_v4  ;;  %v2944_v10 = vrot.slane %v2943_v5, 4 }
 0x2c8   :  { %v2983_v46 = vrot.slane %v2982_v38, 1  ;;  %v2989_v9 = vmax.f32 %v2987_v30, %v2988_v19  ;;  %v2996_v55 = vmax.f32 %v2994_v35, %v2995_v33  ;;  %v3002_v54 = vrot.slane %v3001_v34, 2 }
 0x2c9   :  { %v2925_v25 = vrot.slane %v2924_v14, 2  ;;  %v2931_v63 = vmax.f32 %v2929_v57, %v2930_v7  ;;  %v2939_v6 = vrot.slane %v2938_v20, 2  ;;  %v2945_v26 = vmax.f32 %v2943_v5, %v2944_v10  ;;  %v17364_v7 = vpop.f32.mrb[18].mxu1 }
 0x2ca   :  { %v2984_v59 = vmax.f32 %v2982_v38, %v2983_v46  ;;  %v2990_v61 = vrot.slane %v2989_v9, 1  ;;  %v2997_v23 = vrot.slane %v2996_v55, 1  ;;  %v3003_v44 = vmax.f32 %v3001_v34, %v3002_v54 }
 0x2cb   :  { %v2926_v29 = vmax.f32 %v2924_v14, %v2925_v25  ;;  %v2932_v17 = vrot.slane %v2931_v63, 2  ;;  %v2940_v60 = vmax.f32 %v2938_v20, %v2939_v6  ;;  %v2946_v2 = vrot.slane %v2945_v26, 2 }
 0x2cc   :  { %v2991_v52 = vmax.f32 %v2989_v9, %v2990_v61  ;;  %v2998_v22 = vmax.f32 %v2996_v55, %v2997_v23  ;;  %v3004_v47 = vrot.slane %v3003_v44, 1  ;;  %v4393_v12 = vpack.c.bf16 %v2984_v59, %v2984_v59 }
 0x2cd   :  { %v2927_v4 = vrot.slane %v2926_v29, 1  ;;  %v2933_v30 = vmax.f32 %v2931_v63, %v2932_v17  ;;  %v2941_v35 = vrot.slane %v2940_v60, 1  ;;  %v2947_v19 = vmax.f32 %v2945_v26, %v2946_v2 }
 0x2ce   :  { %v3005_v33 = vmax.f32 %v3003_v44, %v3004_v47  ;;  %v4070_v57 = vsel %vm4042_vm11, %v2991_v52, %v2984_v59  ;;  %v4394_v5 = vpack.c.bf16 %v2991_v52, %v2991_v52  ;;  %v4395_v38 = vpack.c.bf16 %v2998_v22, %v2998_v22 }
 0x2cf   :  { %v4071_v34 = vsel %vm4044_vm12, %v2998_v22, %v4070_v57  ;;  %v4658_v14 = vunpack.c.l.b16 %v4393_v12  ;;  %v2928_v20 = vmax.f32 %v2926_v29, %v2927_v4  ;;  %v2934_v10 = vrot.slane %v2933_v30, 1 }
 0x2d0   :  { %v4396_v46 = vpack.c.bf16 %v3005_v33, %v3005_v33  ;;  %v4659_v23 = vunpack.c.l.b16 %v4394_v5  ;;  %v4660_v9 = vunpack.c.l.b16 %v4395_v38  ;;  %v2942_v55 = vmax.f32 %v2940_v60, %v2941_v35 }
 0x2d1   :  { %v2935_v54 = vmax.f32 %v2933_v30, %v2934_v10  ;;  %v2948_v25 = vrot.slane %v2947_v19, 1  ;;  %v4385_v63 = vpack.c.bf16 %v2928_v20, %v2928_v20  ;;  %v21561_v6 = vcombine.high %v17334_v51, %v17334_v51 }
 0x2d2   :  { %v4661_v59 = vunpack.c.l.b16 %v4396_v46  ;;  %v4783_v61 = vsel %vm4042_vm11, %v4659_v23, %v4658_v14  ;;  %v4387_v44 = vpack.c.bf16 %v2942_v55, %v2942_v55  ;;  %v2271_v29 = vcombine.high %v17351_v50, %v17351_v50 }
 0x2d3   :  { %v2270_v26 = vrot.slane %v21561_v6, %v17201_v27  ;;  %v4784_v17 = vsel %vm4044_vm12, %v4660_v9, %v4783_v61  ;;  %v2949_v2 = vmax.f32 %v2947_v19, %v2948_v25  ;;  %v4063_v60 = vsel %vm4042_vm11, %v2935_v54, %v2928_v20 }
 0x2d4   :  { %v4386_v52 = vpack.c.bf16 %v2935_v54, %v2935_v54  ;;  %v4064_v22 = vsel %vm4044_vm12, %v2942_v55, %v4063_v60  ;;  %v4650_v47 = vunpack.c.l.b16 %v4385_v63  ;;  %v4652_v12 = vunpack.c.l.b16 %v4387_v44 }
 0x2d5   :  { %v2272_v4 = vcombine.high %v2270_v26, %v2270_v26  ;;  %v4388_v51 = vpack.c.bf16 %v2949_v2, %v2949_v2  ;;  %v3006_v35 = vsel %vm2809_vm10, %v17351_v50, -inf  ;;  %v3013_v57 = vsel %vm2809_vm10, %v2271_v29, -inf }
 0x2d6   :  { %v4651_v30 = vunpack.c.l.b16 %v4386_v52  ;;  %v3007_v5 = vrot.slane %v3006_v35, 4  ;;  %v3014_v38 = vrot.slane %v3013_v57, 4  ;;  %v3020_v14 = vsel %vm2809_vm10, %v2270_v26, -inf }
 0x2d7   :  { %v3027_v19 = vsel %vm2809_vm10, %v2272_v4, -inf  ;;  %v4653_v20 = vunpack.c.l.b16 %v4388_v51  ;;  %v3021_v46 = vrot.slane %v3020_v14, 4  ;;  %v4072_v25 = vsel %vm4046_vm13, %v3005_v33, %v4071_v34  ;;  %v17394_v34 = vpop.f32.mrb[19].mxu1 }
 0x2d8   :  { %v4776_v10 = vsel %vm4042_vm11, %v4651_v30, %v4650_v47  ;;  %v3028_v23 = vrot.slane %v3027_v19, 4  ;;  %v3008_v55 = vmax.f32 %v3006_v35, %v3007_v5  ;;  %v3015_v54 = vmax.f32 %v3013_v57, %v3014_v38 }
 0x2d9   :  { %v4777_v9 = vsel %vm4044_vm12, %v4652_v12, %v4776_v10  ;;  %v3022_v50 = vmax.f32 %v3020_v14, %v3021_v46  ;;  %v4785_v6 = vsel %vm4046_vm13, %v4661_v59, %v4784_v17  ;;  %v2078_v61 = vmax.f32 %v17338_v53, 0.0 }
 0x2da   :  { %v3029_v63 = vmax.f32 %v3027_v19, %v3028_v23  ;;  %v3009_v26 = vrot.slane %v3008_v55, 2  ;;  %v3016_v44 = vrot.slane %v3015_v54, 2  ;;  %v17388_v29 = vsel %vm4046_vm13, %v2949_v2, %v4064_v22 }
 0x2db   :  { %v17391_v60 = vsel %vm4046_vm13, %v4653_v20, %v4777_v9  ;;  %v3023_v52 = vrot.slane %v3022_v50, 2  ;;  %v2222_v12 = vcombine.high %v2078_v61, %v2078_v61  ;;  %v2229_v33 = vrot.slane %v2078_v61, %v17201_v27 }
 0x2dc   :  { %v3030_v47 = vrot.slane %v3029_v63, 2  ;;  %v3010_v4 = vmax.f32 %v3008_v55, %v3009_v26  ;;  %v3017_v59 = vmax.f32 %v3015_v54, %v3016_v44  ;;  %v2083_v53 = vmax.f32 %v17342_v28, 0.0 }
 0x2dd   :  { %v2049_v17 = vadd.f32 %v17197_v36, %v17234_v37  ;;  %v3024_v2 = vmax.f32 %v3022_v50, %v3023_v52  ;;  %v2236_v51 = vrot.slane %v2222_v12, %v17201_v27  ;;  %v2237_v30 = vcombine.high %v2229_v33, %v2229_v33 }
 0x2de   :  { %v3031_v22 = vmax.f32 %v3029_v63, %v3030_v47  ;;  %v3011_v35 = vrot.slane %v3010_v4, 1  ;;  %v3018_v57 = vrot.slane %v3017_v59, 1  ;;  %v2950_v5 = vsel %vm2809_vm10, %v2229_v33, -inf }
 0x2df   :  { %v2307_v38 = vcombine.high %v2083_v53, %v2083_v53  ;;  %v3025_v14 = vrot.slane %v3024_v2, 1  ;;  %v2238_v20 = vcombine.high %v2236_v51, %v2236_v51  ;;  %v2951_v10 = vrot.slane %v2950_v5, 4 }
 0x2e0   :  { %v3032_v19 = vrot.slane %v3031_v22, 1  ;;  %v3012_v46 = vmax.f32 %v3010_v4, %v3011_v35  ;;  %v3019_v23 = vmax.f32 %v3017_v59, %v3018_v57  ;;  %v2957_v28 = vsel %vm2809_vm10, %v2237_v30, -inf }
 0x2e1   :  { %v2964_v37 = vsel %vm2809_vm10, %v2236_v51, -inf  ;;  %v3026_v9 = vmax.f32 %v3024_v2, %v3025_v14  ;;  %v2952_v54 = vmax.f32 %v2950_v5, %v2951_v10  ;;  %v2958_v50 = vrot.slane %v2957_v28, 4  ;;  %v15617_v51 = vld [vmem:[#allocation3 + $0x30] sm:$0xff]   ;;  %v17452_v14 = vpop.f32.mrb[20].mxu1 }
 0x2e2   :  { %v3033_v55 = vmax.f32 %v3031_v22, %v3032_v19  ;;  %v4073_v63 = vsel %vm4048_vm14, %v3012_v46, %v4072_v25  ;;  %v4397_v61 = vpack.c.bf16 %v3012_v46, %v3012_v46  ;;  %v4398_v26 = vpack.c.bf16 %v3019_v23, %v3019_v23  ;;  %15150 = vmatprep.subr.bf16.mxu0 %v15617_v51 }
 0x2e3   :  { %v2965_v44 = vrot.slane %v2964_v37, 4  ;;  %v4074_v52 = vsel %vm4050_vm15, %v3019_v23, %v4073_v63  ;;  %v4399_v47 = vpack.c.bf16 %v3026_v9, %v3026_v9  ;;  %v2953_v33 = vrot.slane %v2952_v54, 2  ;;  %15151 = vmatpush3.bf16.msra.mxu0 %v15617_v51 }
 0x2e4   :  { %v4400_v12 = vpack.c.bf16 %v3033_v55, %v3033_v55  ;;  %v4075_v4 = vsel %vm4052_vm0, %v3026_v9, %v4074_v52  ;;  %v4662_v59 = vunpack.c.l.b16 %v4397_v61  ;;  %v4663_v30 = vunpack.c.l.b16 %v4398_v26 }
 0x2e5   :  { %v2959_v35 = vmax.f32 %v2957_v28, %v2958_v50  ;;  %v17407_v2 = vsel %vm4054_vm1, %v3033_v55, %v4075_v4  ;;  %v4664_v22 = vunpack.c.l.b16 %v4399_v47  ;;  %v2954_v25 = vmax.f32 %v2952_v54, %v2953_v33 }
 0x2e6   :  { %21562 = vst [vmem:[#allocation23_spill] sm:$0xff] %v17407_v2  ;;  %v17409_v57 = vunpack.c.l.b16 %v4400_v12  ;;  %v4786_v19 = vsel %vm4048_vm14, %v4662_v59, %v4785_v6  ;;  %v2966_v28 = vmax.f32 %v2964_v37, %v2965_v44  ;;  %v2971_v9 = vsel %vm2809_vm10, %v2238_v20, -inf }
 0x2e7   :  { %v2960_v10 = vrot.slane %v2959_v35, 2  ;;  %v4787_v46 = vsel %vm4050_vm15, %v4663_v30, %v4786_v19  ;;  %v2955_v23 = vrot.slane %v2954_v25, 1  ;;  %v2972_v54 = vrot.slane %v2971_v9, 4 }
 0x2e8   :  { %v17417_v55 = vsel %vm4052_vm0, %v4664_v22, %v4787_v46  ;;  %v2314_v63 = vrot.slane %v2083_v53, %v17201_v27  ;;  %v2967_v26 = vrot.slane %v2966_v28, 2  ;;  %v2321_v6 = vrot.slane %v2307_v38, %v17201_v27 }
 0x2e9   :  { %v2961_v50 = vmax.f32 %v2959_v35, %v2960_v10  ;;  %v2956_v61 = vmax.f32 %v2954_v25, %v2955_v23  ;;  %v2081_v52 = vmax.f32 %v2049_v17, 0.0  ;;  %v2973_v12 = vmax.f32 %v2971_v9, %v2972_v54 }
 0x2ea   :  { %v2322_v33 = vcombine.high %v2314_v63, %v2314_v63  ;;  %v3090_v37 = vsel %vm2809_vm10, %v2314_v63, -inf  ;;  %v2968_v44 = vmax.f32 %v2966_v28, %v2967_v26  ;;  %v2323_v59 = vcombine.high %v2321_v6, %v2321_v6 }
 0x2eb   :  { %v2962_v47 = vrot.slane %v2961_v50, 1  ;;  %v4066_v20 = vsel %vm4048_vm14, %v2956_v61, %v17388_v29  ;;  %v4389_v4 = vpack.c.bf16 %v2956_v61, %v2956_v61  ;;  %v2974_v35 = vrot.slane %v2973_v12, 2 }
 0x2ec   :  { %v3091_v51 = vrot.slane %v3090_v37, 4  ;;  %v3097_v53 = vsel %vm2809_vm10, %v2322_v33, -inf  ;;  %v2969_v22 = vrot.slane %v2968_v44, 1  ;;  %v3104_v17 = vsel %vm2809_vm10, %v2321_v6, -inf }
 0x2ed   :  { %v2963_v30 = vmax.f32 %v2961_v50, %v2962_v47  ;;  %v4654_v25 = vunpack.c.l.b16 %v4389_v4  ;;  %v3098_v38 = vrot.slane %v3097_v53, 4  ;;  %v2975_v19 = vmax.f32 %v2973_v12, %v2974_v35 }
 0x2ee   :  { %v3092_v23 = vmax.f32 %v3090_v37, %v3091_v51  ;;  %v2970_v28 = vmax.f32 %v2968_v44, %v2969_v22  ;;  %v3105_v50 = vrot.slane %v3104_v17, 4  ;;  %v3111_v26 = vsel %vm2809_vm10, %v2323_v59, -inf }
 0x2ef   :  { %v4067_v10 = vsel %vm4050_vm15, %v2963_v30, %v4066_v20  ;;  %v4390_v46 = vpack.c.bf16 %v2963_v30, %v2963_v30  ;;  %v4779_v29 = vsel %vm4048_vm14, %v4654_v25, %v17391_v60  ;;  %v3099_v9 = vmax.f32 %v3097_v53, %v3098_v38 }
 0x2f0   :  { %v2976_v54 = vrot.slane %v2975_v19, 1  ;;  %v3093_v61 = vrot.slane %v3092_v23, 2  ;;  %v4068_v47 = vsel %vm4052_vm0, %v2970_v28, %v4067_v10  ;;  %v4391_v33 = vpack.c.bf16 %v2970_v28, %v2970_v28 }
 0x2f1   :  { %v4655_v63 = vunpack.c.l.b16 %v4390_v46  ;;  %v3100_v6 = vrot.slane %v3099_v9, 2  ;;  %v3106_v12 = vmax.f32 %v3104_v17, %v3105_v50  ;;  %v3112_v44 = vrot.slane %v3111_v26, 4 }
 0x2f2   :  { %v2977_v4 = vmax.f32 %v2975_v19, %v2976_v54  ;;  %v3094_v37 = vmax.f32 %v3092_v23, %v3093_v61  ;;  %v4656_v30 = vunpack.c.l.b16 %v4391_v33  ;;  %v2273_v51 = vcombine.high %v2081_v52, %v2081_v52 }
 0x2f3   :  { %v4780_v20 = vsel %vm4050_vm15, %v4655_v63, %v4779_v29  ;;  %v3101_v35 = vmax.f32 %v3099_v9, %v3100_v6  ;;  %v3107_v60 = vrot.slane %v3106_v12, 2  ;;  %v3113_v59 = vmax.f32 %v3111_v26, %v3112_v44 }
 0x2f4   :  { %v17433_v53 = vsel %vm4054_vm1, %v2977_v4, %v4068_v47  ;;  %v4392_v22 = vpack.c.bf16 %v2977_v4, %v2977_v4  ;;  %v3095_v25 = vrot.slane %v3094_v37, 1  ;;  %v17437_v10 = vsel %vm4052_vm0, %v4656_v30, %v4780_v20 }
 0x2f5   :  { %21563 = vst [vmem:[#allocation22_spill] sm:$0xff] %v17433_v53  ;;  %v3102_v17 = vrot.slane %v3101_v35, 1  ;;  %v3108_v19 = vmax.f32 %v3106_v12, %v3107_v60  ;;  %v3114_v28 = vrot.slane %v3113_v59, 2  ;;  %v2280_v29 = vrot.slane %v2081_v52, %v17201_v27 }
 0x2f6   :  { %v17439_v46 = vunpack.c.l.b16 %v4392_v22  ;;  %v3096_v23 = vmax.f32 %v3094_v37, %v3095_v25  ;;  %v2287_v54 = vrot.slane %v2273_v51, %v17201_v27  ;;  %v2052_v63 = vadd.f32 %v17236_v31, %v17197_v36 }
 0x2f7   :  { %v3103_v9 = vmax.f32 %v3101_v35, %v3102_v17  ;;  %v3109_v50 = vrot.slane %v3108_v19, 1  ;;  %v3115_v61 = vmax.f32 %v3113_v59, %v3114_v28  ;;  %v2288_v47 = vcombine.high %v2280_v29, %v2280_v29 }
 0x2f8   :  { %v4409_v26 = vpack.c.bf16 %v3096_v23, %v3096_v23  ;;  %v3034_v33 = vsel %vm2809_vm10, %v2280_v29, -inf  ;;  %v2289_v20 = vcombine.high %v2287_v54, %v2287_v54  ;;  %v3048_v59 = vsel %vm2809_vm10, %v2287_v54, -inf }
 0x2f9   :  { %v3110_v6 = vmax.f32 %v3108_v19, %v3109_v50  ;;  %v4084_v12 = vsel %vm4042_vm11, %v3103_v9, %v3096_v23  ;;  %v4410_v4 = vpack.c.bf16 %v3103_v9, %v3103_v9  ;;  %v3116_v37 = vrot.slane %v3115_v61, 1 }
 0x2fa   :  { %v4674_v44 = vunpack.c.l.b16 %v4409_v26  ;;  %v3035_v52 = vrot.slane %v3034_v33, 4  ;;  %v3041_v30 = vsel %vm2809_vm10, %v2288_v47, -inf  ;;  %v3055_v17 = vsel %vm2809_vm10, %v2289_v20, -inf }
 0x2fb   :  { %v4085_v35 = vsel %vm4044_vm12, %v3110_v6, %v4084_v12  ;;  %v4411_v60 = vpack.c.bf16 %v3110_v6, %v3110_v6  ;;  %v4675_v51 = vunpack.c.l.b16 %v4410_v4  ;;  %v3042_v31 = vrot.slane %v3041_v30, 4 }
 0x2fc   :  { %v3117_v22 = vmax.f32 %v3115_v61, %v3116_v37  ;;  %v3036_v25 = vmax.f32 %v3034_v33, %v3035_v52  ;;  %v3049_v29 = vrot.slane %v3048_v59, 4  ;;  %v3056_v26 = vrot.slane %v3055_v17, 4 }
 0x2fd   :  { %v4676_v19 = vunpack.c.l.b16 %v4411_v60  ;;  %v4797_v23 = vsel %vm4042_vm11, %v4675_v51, %v4674_v44  ;;  %v3043_v28 = vmax.f32 %v3041_v30, %v3042_v31  ;;  %v2084_v47 = vmax.f32 %v2052_v63, 0.0  ;;  %v15618_v60 = vld [vmem:[#allocation3 + $0x38] sm:$0xff]  }
 0x2fe   :  { %v4412_v9 = vpack.c.bf16 %v3117_v22, %v3117_v22  ;;  %v3037_v50 = vrot.slane %v3036_v25, 2  ;;  %v3050_v33 = vmax.f32 %v3048_v59, %v3049_v29  ;;  %v17458_v54 = vsel %vm4046_vm13, %v3117_v22, %v4085_v35  ;;  %15152 = vmatprep.subr.bf16.mxu0 %v15618_v60 }
 0x2ff   :  { %v17455_v6 = vsel %vm4044_vm12, %v4676_v19, %v4797_v23  ;;  %v3044_v61 = vrot.slane %v3043_v28, 2  ;;  %v3057_v20 = vmax.f32 %v3055_v17, %v3056_v26  ;;  %v2324_v37 = vcombine.high %v2084_v47, %v2084_v47  ;;  %15153 = vmatpush3.bf16.msra.mxu0 %v15618_v60 }
 0x300   :  { %21564 = vst [vmem:[#allocation25_spill] sm:$0xff] %v17455_v6  ;;  %v17460_v12 = vunpack.c.l.b16 %v4412_v9  ;;  %v3038_v4 = vmax.f32 %v3036_v25, %v3037_v50  ;;  %v3051_v52 = vrot.slane %v3050_v33, 2  ;;  %v2331_v30 = vrot.slane %v2084_v47, %v17201_v27  ;;  %v17469_v50 = vpop.f32.mrb[21].mxu1 }
 0x301   :  { %v3045_v44 = vmax.f32 %v3043_v28, %v3044_v61  ;;  %v2050_v63 = vadd.f32 %v17197_v36, %v17238_v42  ;;  %v3058_v31 = vrot.slane %v3057_v20, 2  ;;  %v2338_v59 = vrot.slane %v2324_v37, %v17201_v27 }
 0x302   :  { %21565 = vst [vmem:[#allocation26_spill] sm:$0xff] %v17460_v12  ;;  %v3039_v51 = vrot.slane %v3038_v4, 1  ;;  %v2055_v35 = vadd.f32 %v17242_v13, %v17197_v36  ;;  %v3052_v19 = vmax.f32 %v3050_v33, %v3051_v52  ;;  %v2339_v25 = vcombine.high %v2331_v30, %v2331_v30  ;;  %v17473_v36 = vpop.f32.mrb[22].mxu1 }
 0x303   :  { %v3046_v22 = vrot.slane %v3045_v44, 1  ;;  %v3118_v17 = vsel %vm2809_vm10, %v2331_v30, -inf  ;;  %v3059_v28 = vmax.f32 %v3057_v20, %v3058_v31  ;;  %v2340_v29 = vcombine.high %v2338_v59, %v2338_v59 }
 0x304   :  { %v3040_v23 = vmax.f32 %v3038_v4, %v3039_v51  ;;  %v3119_v9 = vrot.slane %v3118_v17, 4  ;;  %v3053_v26 = vrot.slane %v3052_v19, 1  ;;  %v3125_v47 = vsel %vm2809_vm10, %v2339_v25, -inf }
 0x305   :  { %v3047_v42 = vmax.f32 %v3045_v44, %v3046_v22  ;;  %v3132_v61 = vsel %vm2809_vm10, %v2338_v59, -inf  ;;  %v3060_v13 = vrot.slane %v3059_v28, 1  ;;  %v3126_v52 = vrot.slane %v3125_v47, 4 }
 0x306   :  { %v4401_v33 = vpack.c.bf16 %v3040_v23, %v3040_v23  ;;  %v3120_v37 = vmax.f32 %v3118_v17, %v3119_v9  ;;  %v3054_v30 = vmax.f32 %v3052_v19, %v3053_v26  ;;  %v3133_v51 = vrot.slane %v3132_v61, 4 }
 0x307   :  { %v4077_v4 = vsel %vm4042_vm11, %v3047_v42, %v3040_v23  ;;  %v4402_v20 = vpack.c.bf16 %v3047_v42, %v3047_v42  ;;  %v3061_v31 = vmax.f32 %v3059_v28, %v3060_v13  ;;  %v3127_v44 = vmax.f32 %v3125_v47, %v3126_v52 }
 0x308   :  { %v4666_v38 = vunpack.c.l.b16 %v4401_v33  ;;  %v3121_v60 = vrot.slane %v3120_v37, 2  ;;  %v4078_v22 = vsel %vm4044_vm12, %v3054_v30, %v4077_v4  ;;  %v4403_v25 = vpack.c.bf16 %v3054_v30, %v3054_v30  ;;  %v17481_v33 = vpop.f32.mrb[23].mxu1 }
 0x309   :  { %v4667_v5 = vunpack.c.l.b16 %v4402_v20  ;;  %v3134_v59 = vmax.f32 %v3132_v61, %v3133_v51  ;;  %v4404_v53 = vpack.c.bf16 %v3061_v31, %v3061_v31  ;;  %v3128_v1 = vrot.slane %v3127_v44, 2 }
 0x30a   :  { %v3122_v2 = vmax.f32 %v3120_v37, %v3121_v60  ;;  %v3139_v17 = vsel %vm2809_vm10, %v2340_v29, -inf  ;;  %v4668_v9 = vunpack.c.l.b16 %v4403_v25  ;;  %v2082_v47 = vmax.f32 %v2050_v63, 0.0 }
 0x30b   :  { %v4790_v19 = vsel %vm4042_vm11, %v4667_v5, %v4666_v38  ;;  %v3135_v23 = vrot.slane %v3134_v59, 2  ;;  %v3140_v42 = vrot.slane %v3139_v17, 4  ;;  %v17479_v26 = vunpack.c.l.b16 %v4404_v53 }
 0x30c   :  { %v3123_v28 = vrot.slane %v3122_v2, 1  ;;  %v3129_v13 = vmax.f32 %v3127_v44, %v3128_v1  ;;  %v17484_v52 = vsel %vm4044_vm12, %v4668_v9, %v4790_v19  ;;  %v17487_v30 = vsel %vm4046_vm13, %v3061_v31, %v4078_v22  ;;  %v17493_v1 = vld [vmem:[%s21355_s4] ss:$0 sm:$0xff] }
 0x30d   :  { %v3136_v61 = vmax.f32 %v3134_v59, %v3135_v23  ;;  %v3141_v37 = vmax.f32 %v3139_v17, %v3140_v42  ;;  %v2290_v5 = vcombine.high %v2082_v47, %v2082_v47  ;;  %v2297_v38 = vrot.slane %v2082_v47, %v17201_v27 }
 0x30e   :  { %v3124_v29 = vmax.f32 %v3122_v2, %v3123_v28  ;;  %v3130_v4 = vrot.slane %v3129_v13, 1  ;;  %v2087_v51 = vmax.f32 %v2055_v35, 0.0  ;;  %v2053_v63 = vadd.f32 %v17493_v1, %v17245_v49 }
 0x30f   :  { %v3137_v53 = vrot.slane %v3136_v61, 1  ;;  %v3142_v20 = vrot.slane %v3141_v37, 2  ;;  %v2304_v44 = vrot.slane %v2290_v5, %v17201_v27  ;;  %v2305_v59 = vcombine.high %v2297_v38, %v2297_v38 }
 0x310   :  { %v3131_v60 = vmax.f32 %v3129_v13, %v3130_v4  ;;  %v4087_v31 = vsel %vm4048_vm14, %v3124_v29, %v17458_v54  ;;  %v4413_v2 = vpack.c.bf16 %v3124_v29, %v3124_v29  ;;  %v3062_v35 = vsel %vm2809_vm10, %v2297_v38, -inf }
 0x311   :  { %v17500_v22 = vmax.f32 %v3136_v61, %v3137_v53  ;;  %v3143_v25 = vmax.f32 %v3141_v37, %v3142_v20  ;;  %v2306_v49 = vcombine.high %v2304_v44, %v2304_v44  ;;  %v3063_v42 = vrot.slane %v3062_v35, 4 }
 0x312   :  { %v17504_v17 = vsel %vm4050_vm15, %v3131_v60, %v4087_v31  ;;  %v4414_v9 = vpack.c.bf16 %v3131_v60, %v3131_v60  ;;  %v17506_v19 = vunpack.c.l.b16 %v4413_v2  ;;  %v3069_v28 = vsel %vm2809_vm10, %v2305_v59, -inf }
 0x313   :  { %21566 = vst [vmem:[#allocation27_spill] sm:$0xff] %v17500_v22  ;;  %21567 = vst [vmem:[#allocation24_spill] sm:$0xff] %v17504_v17  ;;  %v3144_v23 = vrot.slane %v3143_v25, 1  ;;  %v4415_v54 = vpack.c.bf16 %v17500_v22, %v17500_v22  ;;  %v3070_v47 = vrot.slane %v3069_v28, 4  ;;  %v3076_v61 = vsel %vm2809_vm10, %v2304_v44, -inf }
 0x314   :  { %21568 = vst [vmem:[#allocation28_spill] sm:$0xff] %v17506_v19  ;;  %v17511_v13 = vunpack.c.l.b16 %v4414_v9  ;;  %v3083_v37 = vsel %vm2809_vm10, %v2306_v49, -inf  ;;  %v3064_v5 = vmax.f32 %v3062_v35, %v3063_v42  ;;  %v3077_v38 = vrot.slane %v3076_v61, 4 }
 0x315   :  { %v17515_v29 = vmax.f32 %v3143_v25, %v3144_v23  ;;  %v17517_v4 = vunpack.c.l.b16 %v4415_v54  ;;  %v3071_v53 = vmax.f32 %v3069_v28, %v3070_v47  ;;  %v3084_v20 = vrot.slane %v3083_v37, 4 }
 0x316   :  { %21569 = vst [vmem:[#allocation29_spill] sm:$0xff] %v17511_v13  ;;  %v2375_v60 = vcombine.high %v2087_v51, %v2087_v51  ;;  %v2382_v31 = vrot.slane %v2087_v51, %v17201_v27  ;;  %v3065_v2 = vrot.slane %v3064_v5, 2  ;;  %v3078_v59 = vmax.f32 %v3076_v61, %v3077_v38 }
 0x317   :  { %21570 = vst [vmem:[#allocation30_spill] sm:$0xff] %v17515_v29  ;;  %21571 = vst [vmem:[#allocation31_spill] sm:$0xff] %v17517_v4  ;;  %v2085_v9 = vmax.f32 %v2053_v63, 0.0  ;;  %v17522_v22 = vadd.f32 %v17493_v1, %v17255_v62  ;;  %v3072_v44 = vrot.slane %v3071_v53, 2  ;;  %v3085_v49 = vmax.f32 %v3083_v37, %v3084_v20 }
 0x318   :  { %v2389_v25 = vrot.slane %v2375_v60, %v17201_v27  ;;  %v2390_v23 = vcombine.high %v2382_v31, %v2382_v31  ;;  %v3066_v54 = vmax.f32 %v3064_v5, %v3065_v2  ;;  %v3079_v35 = vrot.slane %v3078_v59, 2 }
 0x319   :  { %v3202_v42 = vsel %vm2809_vm10, %v2382_v31, -inf  ;;  %v2341_v28 = vcombine.high %v2085_v9, %v2085_v9  ;;  %v3073_v47 = vmax.f32 %v3071_v53, %v3072_v44  ;;  %v3086_v17 = vrot.slane %v3085_v49, 2 }
 0x31a   :  { %v2391_v51 = vcombine.high %v2389_v25, %v2389_v25  ;;  %v3203_v48 = vrot.slane %v3202_v42, 4  ;;  %v3067_v61 = vrot.slane %v3066_v54, 1  ;;  %v3080_v63 = vmax.f32 %v3078_v59, %v3079_v35 }
 0x31b   :  { %v3209_v38 = vsel %vm2809_vm10, %v2390_v23, -inf  ;;  %v3216_v62 = vsel %vm2809_vm10, %v2389_v25, -inf  ;;  %v3074_v45 = vrot.slane %v3073_v47, 1  ;;  %v3087_v37 = vmax.f32 %v3085_v49, %v3086_v17 }
 0x31c   :  { %v3204_v20 = vmax.f32 %v3202_v42, %v3203_v48  ;;  %v3210_v60 = vrot.slane %v3209_v38, 4  ;;  %v3068_v0 = vmax.f32 %v3066_v54, %v3067_v61  ;;  %v3081_v5 = vrot.slane %v3080_v63, 1 }
 0x31d   :  { %v3217_v2 = vrot.slane %v3216_v62, 4  ;;  %v3223_v31 = vsel %vm2809_vm10, %v2391_v51, -inf  ;;  %v3075_v4 = vmax.f32 %v3073_v47, %v3074_v45  ;;  %v3088_v53 = vrot.slane %v3087_v37, 1 }
 0x31e   :  { %v3205_v44 = vrot.slane %v3204_v20, 2  ;;  %v3211_v13 = vmax.f32 %v3209_v38, %v3210_v60  ;;  %v17529_v19 = vmax.f32 %v3080_v63, %v3081_v5  ;;  %v4080_v59 = vsel %vm4048_vm14, %v3068_v0, %v17487_v30 }
 0x31f   :  { %v4405_v23 = vpack.c.bf16 %v3068_v0, %v3068_v0  ;;  %v3218_v25 = vmax.f32 %v3216_v62, %v3217_v2  ;;  %v17533_v35 = vmax.f32 %v3087_v37, %v3088_v53  ;;  %v17536_v48 = vsel %vm4050_vm15, %v3075_v4, %v4080_v59 }
 0x320   :  { %21572 = vst [vmem:[#allocation32_spill] sm:$0xff] %v17529_v19  ;;  %21574 = vst [vmem:[#allocation34_spill] sm:$0xff] %v17536_v48  ;;  %v4406_v17 = vpack.c.bf16 %v3075_v4, %v3075_v4  ;;  %v3206_v49 = vmax.f32 %v3204_v20, %v3205_v44  ;;  %v4407_v45 = vpack.c.bf16 %v17529_v19, %v17529_v19  ;;  %v3212_v42 = vrot.slane %v3211_v13, 2 }
 0x321   :  { %21573 = vst [vmem:[#allocation33_spill] sm:$0xff] %v17533_v35  ;;  %v17540_v54 = vunpack.c.l.b16 %v4405_v23  ;;  %v3219_v47 = vrot.slane %v3218_v25, 2  ;;  %v3224_v30 = vrot.slane %v3223_v31, 4  ;;  %v2348_v0 = vrot.slane %v2085_v9, %v17201_v27 }
 0x322   :  { %v17542_v51 = vunpack.c.l.b16 %v4406_v17  ;;  %v3207_v61 = vrot.slane %v3206_v49, 1  ;;  %v17545_v63 = vunpack.c.l.b16 %v4407_v45  ;;  %v3213_v38 = vmax.f32 %v3211_v13, %v3212_v42 }
 0x323   :  { %21575 = vst [vmem:[#allocation35_spill] sm:$0xff] %v17540_v54  ;;  %v3220_v62 = vmax.f32 %v3218_v25, %v3219_v47  ;;  %v2355_v4 = vrot.slane %v2341_v28, %v17201_v27  ;;  %v3225_v20 = vmax.f32 %v3223_v31, %v3224_v30  ;;  %v2356_v60 = vcombine.high %v2348_v0, %v2348_v0 }
 0x324   :  { %21576 = vst [vmem:[#allocation36_spill] sm:$0xff] %v17542_v51  ;;  %21577 = vst [vmem:[#allocation37_spill] sm:$0xff] %v17545_v63  ;;  %v3208_v37 = vmax.f32 %v3206_v49, %v3207_v61  ;;  %v3146_v5 = vsel %vm2809_vm10, %v2348_v0, -inf  ;;  %v3214_v2 = vrot.slane %v3213_v38, 1  ;;  %v17552_v61 = vpop.f32.mrb[24].mxu1  ;;  %v2054_v51 = vadd.f32 %v17493_v1, %v17288_v3 }
 0x325   :  { %v3221_v53 = vrot.slane %v3220_v62, 1  ;;  %v2357_v44 = vcombine.high %v2355_v4, %v2355_v4  ;;  %v3147_v59 = vrot.slane %v3146_v5, 4  ;;  %v3226_v23 = vrot.slane %v3225_v20, 2  ;;  %v17555_v12 = vpop.f32.mrb[25].mxu1 }
 0x326   :  { %v4425_v17 = vpack.c.bf16 %v3208_v37, %v3208_v37  ;;  %v3153_v19 = vsel %vm2809_vm10, %v2356_v60, -inf  ;;  %v3160_v9 = vsel %vm2809_vm10, %v2355_v4, -inf  ;;  %v3215_v45 = vmax.f32 %v3213_v38, %v3214_v2  ;;  %v17562_v54 = vpop.f32.mrb[26].mxu1 }
 0x327   :  { %v3222_v13 = vmax.f32 %v3220_v62, %v3221_v53  ;;  %v3148_v25 = vmax.f32 %v3146_v5, %v3147_v59  ;;  %v3154_v42 = vrot.slane %v3153_v19, 4  ;;  %v3227_v28 = vmax.f32 %v3225_v20, %v3226_v23 }
 0x328   :  { %v4690_v49 = vunpack.c.l.b16 %v4425_v17  ;;  %v3161_v31 = vrot.slane %v3160_v9, 4  ;;  %v3167_v47 = vsel %vm2809_vm10, %v2357_v44, -inf  ;;  %v4098_v30 = vsel %vm4042_vm11, %v3215_v45, %v3208_v37 }
 0x329   :  { %v4426_v0 = vpack.c.bf16 %v3215_v45, %v3215_v45  ;;  %v4427_v48 = vpack.c.bf16 %v3222_v13, %v3222_v13  ;;  %v3149_v63 = vrot.slane %v3148_v25, 2  ;;  %v3228_v60 = vrot.slane %v3227_v28, 1 }
 0x32a   :  { %v4099_v38 = vsel %vm4044_vm12, %v3222_v13, %v4098_v30  ;;  %v3155_v62 = vmax.f32 %v3153_v19, %v3154_v42  ;;  %v3162_v4 = vmax.f32 %v3160_v9, %v3161_v31  ;;  %v3168_v53 = vrot.slane %v3167_v47, 4 }
 0x32b   :  { %v4691_v5 = vunpack.c.l.b16 %v4426_v0  ;;  %v4692_v20 = vunpack.c.l.b16 %v4427_v48  ;;  %v3150_v2 = vmax.f32 %v3148_v25, %v3149_v63  ;;  %v3229_v59 = vmax.f32 %v3227_v28, %v3228_v60 }
 0x32c   :  { %v3156_v44 = vrot.slane %v3155_v62, 2  ;;  %v3163_v23 = vrot.slane %v3162_v4, 2  ;;  %v2088_v17 = vmax.f32 %v17522_v22, 0.0  ;;  %v3169_v6 = vmax.f32 %v3167_v47, %v3168_v53 }
 0x32d   :  { %v4811_v37 = vsel %vm4042_vm11, %v4691_v5, %v4690_v49  ;;  %v3151_v45 = vrot.slane %v3150_v2, 1  ;;  %v4428_v19 = vpack.c.bf16 %v3229_v59, %v3229_v59  ;;  %v4100_v47 = vsel %vm4046_vm13, %v3229_v59, %v4099_v38 }
 0x32e   :  { %v17565_v9 = vsel %vm4044_vm12, %v4692_v20, %v4811_v37  ;;  %v3157_v48 = vmax.f32 %v3155_v62, %v3156_v44  ;;  %v3164_v63 = vmax.f32 %v3162_v4, %v3163_v23  ;;  %v3170_v25 = vrot.slane %v3169_v6, 2 }
 0x32f   :  { %21578 = vst [vmem:[#allocation38_spill] sm:$0xff] %v17565_v9  ;;  %v3152_v13 = vmax.f32 %v3150_v2, %v3151_v45  ;;  %v2392_v42 = vcombine.high %v2088_v17, %v2088_v17  ;;  %v2399_v22 = vrot.slane %v2088_v17, %v17201_v27  ;;  %v17568_v28 = vunpack.c.l.b16 %v4428_v19 }
 0x330   :  { %v3158_v49 = vrot.slane %v3157_v48, 1  ;;  %v3165_v31 = vrot.slane %v3164_v63, 1  ;;  %v3171_v3 = vmax.f32 %v3169_v6, %v3170_v25  ;;  %v2086_v4 = vmax.f32 %v2054_v51, 0.0 }
 0x331   :  { %21579 = vst [vmem:[#allocation39_spill] sm:$0xff] %v17568_v28  ;;  %v4417_v30 = vpack.c.bf16 %v3152_v13, %v3152_v13  ;;  %v2406_v0 = vrot.slane %v2392_v42, %v17201_v27  ;;  %v2407_v60 = vcombine.high %v2399_v22, %v2399_v22  ;;  %v3230_v62 = vsel %vm2809_vm10, %v2399_v22, -inf }
 0x332   :  { %v3159_v5 = vmax.f32 %v3157_v48, %v3158_v49  ;;  %v3166_v20 = vmax.f32 %v3164_v63, %v3165_v31  ;;  %v3172_v2 = vrot.slane %v3171_v3, 1  ;;  %v3231_v23 = vrot.slane %v3230_v62, 4 }
 0x333   :  { %v4682_v53 = vunpack.c.l.b16 %v4417_v30  ;;  %v2408_v44 = vcombine.high %v2406_v0, %v2406_v0  ;;  %v3237_v38 = vsel %vm2809_vm10, %v2407_v60, -inf  ;;  %v3244_v42 = vsel %vm2809_vm10, %v2406_v0, -inf }
 0x334   :  { %v4091_v17 = vsel %vm4042_vm11, %v3159_v5, %v3152_v13  ;;  %v4418_v37 = vpack.c.bf16 %v3159_v5, %v3159_v5  ;;  %v4419_v45 = vpack.c.bf16 %v3166_v20, %v3166_v20  ;;  %v3173_v6 = vmax.f32 %v3171_v3, %v3172_v2 }
 0x335   :  { %v4092_v59 = vsel %vm4044_vm12, %v3166_v20, %v4091_v17  ;;  %v3232_v19 = vmax.f32 %v3230_v62, %v3231_v23  ;;  %v3238_v25 = vrot.slane %v3237_v38, 4  ;;  %v3251_v51 = vsel %vm2809_vm10, %v2408_v44, -inf }
 0x336   :  { %v4683_v48 = vunpack.c.l.b16 %v4418_v37  ;;  %v4684_v63 = vunpack.c.l.b16 %v4419_v45  ;;  %v4420_v22 = vpack.c.bf16 %v3173_v6, %v3173_v6  ;;  %v3245_v30 = vrot.slane %v3244_v42, 4  ;;  %v17586_v37 = vpop.f32.mrb[27].mxu1 }
 0x337   :  { %v3233_v49 = vrot.slane %v3232_v19, 2  ;;  %v3239_v31 = vmax.f32 %v3237_v38, %v3238_v25  ;;  %v3252_v5 = vrot.slane %v3251_v51, 4  ;;  %v2358_v28 = vcombine.high %v2086_v4, %v2086_v4 }
 0x338   :  { %v4804_v13 = vsel %vm4042_vm11, %v4683_v48, %v4682_v53  ;;  %v2365_v3 = vrot.slane %v2086_v4, %v17201_v27  ;;  %v17580_v60 = vunpack.c.l.b16 %v4420_v22  ;;  %v3246_v0 = vmax.f32 %v3244_v42, %v3245_v30 }
 0x339   :  { %v17583_v20 = vsel %vm4044_vm12, %v4684_v63, %v4804_v13  ;;  %v3234_v62 = vmax.f32 %v3232_v19, %v3233_v49  ;;  %v3240_v2 = vrot.slane %v3239_v31, 2  ;;  %v3253_v23 = vmax.f32 %v3251_v51, %v3252_v5 }
 0x33a   :  { %21580 = vst [vmem:[#allocation40_spill] sm:$0xff] %v17580_v60  ;;  %21581 = vst [vmem:[#allocation41_spill] sm:$0xff] %v17583_v20  ;;  %v2372_v44 = vrot.slane %v2358_v28, %v17201_v27  ;;  %v2373_v17 = vcombine.high %v2365_v3, %v2365_v3  ;;  %v3174_v38 = vsel %vm2809_vm10, %v2365_v3, -inf  ;;  %v4093_v4 = vsel %vm4046_vm13, %v3173_v6, %v4092_v59 }
 0x33b   :  { %v3235_v45 = vrot.slane %v3234_v62, 1  ;;  %v3241_v53 = vmax.f32 %v3239_v31, %v3240_v2  ;;  %v3247_v25 = vrot.slane %v3246_v0, 2  ;;  %v3254_v48 = vrot.slane %v3253_v23, 2 }
 0x33c   :  { %v2374_v22 = vcombine.high %v2372_v44, %v2372_v44  ;;  %v3175_v63 = vrot.slane %v3174_v38, 4  ;;  %v3181_v42 = vsel %vm2809_vm10, %v2373_v17, -inf  ;;  %v3188_v51 = vsel %vm2809_vm10, %v2372_v44, -inf }
 0x33d   :  { %v3236_v13 = vmax.f32 %v3234_v62, %v3235_v45  ;;  %v3242_v19 = vrot.slane %v3241_v53, 1  ;;  %v3248_v28 = vmax.f32 %v3246_v0, %v3247_v25  ;;  %v3255_v49 = vmax.f32 %v3253_v23, %v3254_v48 }
 0x33e   :  { %v3176_v30 = vmax.f32 %v3174_v38, %v3175_v63  ;;  %v3182_v5 = vrot.slane %v3181_v42, 4  ;;  %v3189_v2 = vrot.slane %v3188_v51, 4  ;;  %v3195_v48 = vsel %vm2809_vm10, %v2374_v22, -inf }
 0x33f   :  { %v3243_v9 = vmax.f32 %v3241_v53, %v3242_v19  ;;  %v4101_v31 = vsel %vm4048_vm14, %v3236_v13, %v4100_v47  ;;  %v4429_v3 = vpack.c.bf16 %v3236_v13, %v3236_v13  ;;  %v3249_v6 = vrot.slane %v3248_v28, 1 }
 0x340   :  { %v3256_v59 = vrot.slane %v3255_v49, 1  ;;  %v3177_v60 = vrot.slane %v3176_v30, 2  ;;  %v3183_v20 = vmax.f32 %v3181_v42, %v3182_v5  ;;  %v3190_v44 = vmax.f32 %v3188_v51, %v3189_v2 }
 0x341   :  { %v17594_v62 = vsel %vm4050_vm15, %v3243_v9, %v4101_v31  ;;  %v4430_v45 = vpack.c.bf16 %v3243_v9, %v3243_v9  ;;  %v17596_v17 = vunpack.c.l.b16 %v4429_v3  ;;  %v17598_v0 = vmax.f32 %v3248_v28, %v3249_v6 }
 0x342   :  { %21582 = vst [vmem:[#allocation42_spill] sm:$0xff] %v17594_v62  ;;  %v17600_v23 = vmax.f32 %v3255_v49, %v3256_v59  ;;  %v3178_v53 = vmax.f32 %v3176_v30, %v3177_v60  ;;  %v3184_v38 = vrot.slane %v3183_v20, 2  ;;  %v3191_v25 = vrot.slane %v3190_v44, 2 }
 0x343   :  { %21583 = vst [vmem:[#allocation43_spill] sm:$0xff] %v17596_v17  ;;  %21584 = vst [vmem:[#allocation44_spill] sm:$0xff] %v17598_v0  ;;  %v17602_v47 = vunpack.c.l.b16 %v4430_v45  ;;  %v2059_v63 = vadd.f32 %v17493_v1, %v17330_v11  ;;  %v4431_v9 = vpack.c.bf16 %v17598_v0, %v17598_v0  ;;  %v3196_v42 = vrot.slane %v3195_v48, 4 }
 0x344   :  { %21585 = vst [vmem:[#allocation45_spill] sm:$0xff] %v17600_v23  ;;  %v3179_v13 = vrot.slane %v3178_v53, 1  ;;  %v3185_v19 = vmax.f32 %v3183_v20, %v3184_v38  ;;  %v3192_v51 = vmax.f32 %v3190_v44, %v3191_v25  ;;  %v2057_v60 = vadd.f32 %v17493_v1, %v17359_v58 }
 0x345   :  { %21586 = vst [vmem:[#allocation46_spill] sm:$0xff] %v17602_v47  ;;  %v2091_v28 = vmax.f32 %v2059_v63, 0.0  ;;  %v2060_v49 = vadd.f32 %v17493_v1, %v17364_v7  ;;  %v17613_v30 = vunpack.c.l.b16 %v4431_v9  ;;  %v3197_v31 = vmax.f32 %v3195_v48, %v3196_v42 }
 0x346   :  { %v3180_v22 = vmax.f32 %v3178_v53, %v3179_v13  ;;  %v3186_v5 = vrot.slane %v3185_v19, 1  ;;  %v3193_v11 = vrot.slane %v3192_v51, 1  ;;  %v2089_v6 = vmax.f32 %v2057_v60, 0.0 }
 0x347   :  { %21587 = vst [vmem:[#allocation47_spill] sm:$0xff] %v17613_v30  ;;  %v2443_v3 = vcombine.high %v2091_v28, %v2091_v28  ;;  %v2450_v2 = vrot.slane %v2091_v28, %v17201_v27  ;;  %v3198_v59 = vrot.slane %v3197_v31, 2 }
 0x348   :  { %v3187_v20 = vmax.f32 %v3185_v19, %v3186_v5  ;;  %v4094_v45 = vsel %vm4048_vm14, %v3180_v22, %v4093_v4  ;;  %v4421_v44 = vpack.c.bf16 %v3180_v22, %v3180_v22  ;;  %v17617_v38 = vmax.f32 %v3192_v51, %v3193_v11 }
 0x349   :  { %v2457_v58 = vrot.slane %v2443_v3, %v17201_v27  ;;  %v2458_v7 = vcombine.high %v2450_v2, %v2450_v2  ;;  %v3314_v25 = vsel %vm2809_vm10, %v2450_v2, -inf  ;;  %v3199_v53 = vmax.f32 %v3197_v31, %v3198_v59 }
 0x34a   :  { %21588 = vst [vmem:[#allocation48_spill] sm:$0xff] %v17617_v38  ;;  %v17622_v48 = vsel %vm4050_vm15, %v3187_v20, %v4094_v45  ;;  %v4422_v63 = vpack.c.bf16 %v3187_v20, %v3187_v20  ;;  %v17624_v9 = vunpack.c.l.b16 %v4421_v44  ;;  %v4423_v13 = vpack.c.bf16 %v17617_v38, %v17617_v38 }
 0x34b   :  { %21589 = vst [vmem:[#allocation49_spill] sm:$0xff] %v17622_v48  ;;  %v2459_v19 = vcombine.high %v2457_v58, %v2457_v58  ;;  %v3315_v4 = vrot.slane %v3314_v25, 4  ;;  %v3321_v42 = vsel %vm2809_vm10, %v2458_v7, -inf  ;;  %v3200_v51 = vrot.slane %v3199_v53, 1 }
 0x34c   :  { %21590 = vst [vmem:[#allocation50_spill] sm:$0xff] %v17624_v9  ;;  %v17629_v28 = vunpack.c.l.b16 %v4422_v63  ;;  %v3322_v60 = vrot.slane %v3321_v42, 4  ;;  %v3328_v22 = vsel %vm2809_vm10, %v2457_v58, -inf  ;;  %v17632_v5 = vunpack.c.l.b16 %v4423_v13 }
 0x34d   :  { %v3316_v31 = vmax.f32 %v3314_v25, %v3315_v4  ;;  %v3329_v11 = vrot.slane %v3328_v22, 4  ;;  %v3335_v3 = vsel %vm2809_vm10, %v2459_v19, -inf  ;;  %v17635_v2 = vmax.f32 %v3199_v53, %v3200_v51 }
 0x34e   :  { %21591 = vst [vmem:[#allocation51_spill] sm:$0xff] %v17629_v28  ;;  %21592 = vst [vmem:[#allocation52_spill] sm:$0xff] %v17632_v5  ;;  %v3323_v20 = vmax.f32 %v3321_v42, %v3322_v60  ;;  %v3336_v59 = vrot.slane %v3335_v3, 4  ;;  %v2409_v45 = vcombine.high %v2089_v6, %v2089_v6  ;;  %v2416_v7 = vrot.slane %v2089_v6, %v17201_v27 }
 0x34f   :  { %21593 = vst [vmem:[#allocation53_spill] sm:$0xff] %v17635_v2  ;;  %v3317_v44 = vrot.slane %v3316_v31, 2  ;;  %v3330_v0 = vmax.f32 %v3328_v22, %v3329_v11  ;;  %v2092_v63 = vmax.f32 %v2060_v49, 0.0  ;;  %v17641_v25 = vadd.f32 %v17493_v1, %v17394_v34 }
 0x350   :  { %v3324_v62 = vrot.slane %v3323_v20, 2  ;;  %v3337_v38 = vmax.f32 %v3335_v3, %v3336_v59  ;;  %v2423_v58 = vrot.slane %v2409_v45, %v17201_v27  ;;  %v2424_v53 = vcombine.high %v2416_v7, %v2416_v7 }
 0x351   :  { %v3318_v13 = vmax.f32 %v3316_v31, %v3317_v44  ;;  %v3331_v19 = vrot.slane %v3330_v0, 2  ;;  %v3258_v4 = vsel %vm2809_vm10, %v2416_v7, -inf }
 0x352   :  { %v3325_v42 = vmax.f32 %v3323_v20, %v3324_v62  ;;  %v3338_v51 = vrot.slane %v3337_v38, 2  ;;  %v2425_v60 = vcombine.high %v2423_v58, %v2423_v58  ;;  %v3259_v22 = vrot.slane %v3258_v4, 4 }
 0x353   :  { %v3319_v11 = vrot.slane %v3318_v13, 1  ;;  %v3332_v6 = vmax.f32 %v3330_v0, %v3331_v19  ;;  %v3265_v49 = vsel %vm2809_vm10, %v2424_v53, -inf  ;;  %v3272_v3 = vsel %vm2809_vm10, %v2423_v58, -inf }
 0x354   :  { %v3326_v59 = vrot.slane %v3325_v42, 1  ;;  %v3339_v45 = vmax.f32 %v3337_v38, %v3338_v51  ;;  %v3260_v48 = vmax.f32 %v3258_v4, %v3259_v22  ;;  %v3266_v34 = vrot.slane %v3265_v49, 4 }
 0x355   :  { %v3320_v30 = vmax.f32 %v3318_v13, %v3319_v11  ;;  %v3333_v31 = vrot.slane %v3332_v6, 1  ;;  %v3273_v44 = vrot.slane %v3272_v3, 4  ;;  %v3279_v47 = vsel %vm2809_vm10, %v2425_v60, -inf }
 0x356   :  { %v3327_v7 = vmax.f32 %v3325_v42, %v3326_v59  ;;  %v3340_v62 = vrot.slane %v3339_v45, 1  ;;  %v3261_v20 = vrot.slane %v3260_v48, 2  ;;  %v3267_v17 = vmax.f32 %v3265_v49, %v3266_v34 }
 0x357   :  { %v3334_v5 = vmax.f32 %v3332_v6, %v3333_v31  ;;  %v4441_v28 = vpack.c.bf16 %v3320_v30, %v3320_v30  ;;  %v3274_v0 = vmax.f32 %v3272_v3, %v3273_v44  ;;  %v3280_v19 = vrot.slane %v3279_v47, 4 }
 0x358   :  { %v3341_v53 = vmax.f32 %v3339_v45, %v3340_v62  ;;  %v4112_v58 = vsel %vm4042_vm11, %v3327_v7, %v3320_v30  ;;  %v4442_v9 = vpack.c.bf16 %v3327_v7, %v3327_v7  ;;  %v3262_v38 = vmax.f32 %v3260_v48, %v3261_v20 }
 0x359   :  { %v4113_v4 = vsel %vm4044_vm12, %v3334_v5, %v4112_v58  ;;  %v4443_v13 = vpack.c.bf16 %v3334_v5, %v3334_v5  ;;  %v4706_v51 = vunpack.c.l.b16 %v4441_v28  ;;  %v3268_v22 = vrot.slane %v3267_v17, 2 }
 0x35a   :  { %v4444_v11 = vpack.c.bf16 %v3341_v53, %v3341_v53  ;;  %v4707_v60 = vunpack.c.l.b16 %v4442_v9  ;;  %v3263_v42 = vrot.slane %v3262_v38, 1  ;;  %v3275_v59 = vrot.slane %v3274_v0, 2  ;;  %v17656_v9 = vpop.f32.mrb[28].mxu1 }
 0x35b   :  { %v4708_v23 = vunpack.c.l.b16 %v4443_v13  ;;  %v3269_v49 = vmax.f32 %v3267_v17, %v3268_v22  ;;  %v3281_v6 = vmax.f32 %v3279_v47, %v3280_v19  ;;  %v2460_v34 = vcombine.high %v2092_v63, %v2092_v63 }
 0x35c   :  { %v17649_v3 = vunpack.c.l.b16 %v4444_v11  ;;  %v4825_v45 = vsel %vm4042_vm11, %v4707_v60, %v4706_v51  ;;  %v3264_v30 = vmax.f32 %v3262_v38, %v3263_v42  ;;  %v3276_v31 = vmax.f32 %v3274_v0, %v3275_v59 }
 0x35d   :  { %v17653_v48 = vsel %vm4044_vm12, %v4708_v23, %v4825_v45  ;;  %v3270_v5 = vrot.slane %v3269_v49, 1  ;;  %v3282_v28 = vrot.slane %v3281_v6, 2  ;;  %v2467_v44 = vrot.slane %v2092_v63, %v17201_v27 }
 0x35e   :  { %21594 = vst [vmem:[#allocation54_spill] sm:$0xff] %v17649_v3  ;;  %21595 = vst [vmem:[#allocation55_spill] sm:$0xff] %v17653_v48  ;;  %v3277_v7 = vrot.slane %v3276_v31, 1  ;;  %v4433_v62 = vpack.c.bf16 %v3264_v30, %v3264_v30  ;;  %v2474_v17 = vrot.slane %v2460_v34, %v17201_v27  ;;  %v4114_v47 = vsel %vm4046_vm13, %v3341_v53, %v4113_v4 }
 0x35f   :  { %v3271_v20 = vmax.f32 %v3269_v49, %v3270_v5  ;;  %v3283_v19 = vmax.f32 %v3281_v6, %v3282_v28  ;;  %v2475_v58 = vcombine.high %v2467_v44, %v2467_v44  ;;  %v3342_v0 = vsel %vm2809_vm10, %v2467_v44, -inf }
 0x360   :  { %v3278_v38 = vmax.f32 %v3276_v31, %v3277_v7  ;;  %v4698_v23 = vunpack.c.l.b16 %v4433_v62  ;;  %v2476_v13 = vcombine.high %v2474_v17, %v2474_v17  ;;  %v3343_v51 = vrot.slane %v3342_v0, 4  ;;  %v17666_v31 = vpop.f32.mrb[29].mxu1 }
 0x361   :  { %v3284_v22 = vrot.slane %v3283_v19, 1  ;;  %v4105_v63 = vsel %vm4042_vm11, %v3271_v20, %v3264_v30  ;;  %v4434_v11 = vpack.c.bf16 %v3271_v20, %v3271_v20  ;;  %v3349_v60 = vsel %vm2809_vm10, %v2475_v58, -inf  ;;  %v17668_v7 = vpop.f32.mrb[30].mxu1 }
 0x362   :  { %v4106_v42 = vsel %vm4044_vm12, %v3278_v38, %v4105_v63  ;;  %v4435_v59 = vpack.c.bf16 %v3278_v38, %v3278_v38  ;;  %v3344_v34 = vmax.f32 %v3342_v0, %v3343_v51  ;;  %v3350_v53 = vrot.slane %v3349_v60, 4 }
 0x363   :  { %v3285_v4 = vmax.f32 %v3283_v19, %v3284_v22  ;;  %v4699_v49 = vunpack.c.l.b16 %v4434_v11  ;;  %v3356_v6 = vsel %vm2809_vm10, %v2474_v17, -inf  ;;  %v3363_v45 = vsel %vm2809_vm10, %v2476_v13, -inf }
 0x364   :  { %v4700_v5 = vunpack.c.l.b16 %v4435_v59  ;;  %v3345_v28 = vrot.slane %v3344_v34, 2  ;;  %v3351_v44 = vmax.f32 %v3349_v60, %v3350_v53  ;;  %v3357_v30 = vrot.slane %v3356_v6, 4 }
 0x365   :  { %v4436_v62 = vpack.c.bf16 %v3285_v4, %v3285_v4  ;;  %v4818_v20 = vsel %vm4042_vm11, %v4699_v49, %v4698_v23  ;;  %v3364_v58 = vrot.slane %v3363_v45, 4  ;;  %v2090_v0 = vmax.f32 %v17641_v25, 0.0 }
 0x366   :  { %v17673_v19 = vsel %vm4044_vm12, %v4700_v5, %v4818_v20  ;;  %v3346_v17 = vmax.f32 %v3344_v34, %v3345_v28  ;;  %v3352_v38 = vrot.slane %v3351_v44, 2  ;;  %v3358_v13 = vmax.f32 %v3356_v6, %v3357_v30 }
 0x367   :  { %v17675_v51 = vunpack.c.l.b16 %v4436_v62  ;;  %v3365_v22 = vmax.f32 %v3363_v45, %v3364_v58  ;;  %v2426_v63 = vcombine.high %v2090_v0, %v2090_v0  ;;  %v2433_v11 = vrot.slane %v2090_v0, %v17201_v27 }
 0x368   :  { %v3347_v60 = vrot.slane %v3346_v17, 1  ;;  %v3353_v59 = vmax.f32 %v3351_v44, %v3352_v38  ;;  %v3359_v53 = vrot.slane %v3358_v13, 2  ;;  %v4107_v23 = vsel %vm4046_vm13, %v3285_v4, %v4106_v42 }
 0x369   :  { %21596 = vst [vmem:[#allocation56_spill] sm:$0xff] %v17675_v51  ;;  %v3366_v49 = vrot.slane %v3365_v22, 2  ;;  %v2440_v25 = vrot.slane %v2426_v63, %v17201_v27  ;;  %v2441_v3 = vcombine.high %v2433_v11, %v2433_v11  ;;  %v3286_v5 = vsel %vm2809_vm10, %v2433_v11, -inf }
 0x36a   :  { %v3348_v34 = vmax.f32 %v3346_v17, %v3347_v60  ;;  %v3354_v28 = vrot.slane %v3353_v59, 1  ;;  %v3360_v6 = vmax.f32 %v3358_v13, %v3359_v53  ;;  %v3287_v30 = vrot.slane %v3286_v5, 4 }
 0x36b   :  { %v3367_v62 = vmax.f32 %v3365_v22, %v3366_v49  ;;  %v2442_v45 = vcombine.high %v2440_v25, %v2440_v25  ;;  %v3293_v20 = vsel %vm2809_vm10, %v2441_v3, -inf  ;;  %v3300_v58 = vsel %vm2809_vm10, %v2440_v25, -inf  ;;  %v17691_v3 = vpop.f32.mrb[31].mxu1 }
 0x36c   :  { %v3355_v44 = vmax.f32 %v3353_v59, %v3354_v28  ;;  %v3361_v0 = vrot.slane %v3360_v6, 1  ;;  %v4115_v42 = vsel %vm4048_vm14, %v3348_v34, %v4114_v47  ;;  %v4445_v4 = vpack.c.bf16 %v3348_v34, %v3348_v34 }
 0x36d   :  { %v3368_v38 = vrot.slane %v3367_v62, 1  ;;  %v3288_v63 = vmax.f32 %v3286_v5, %v3287_v30  ;;  %v3294_v48 = vrot.slane %v3293_v20, 4  ;;  %v3301_v51 = vrot.slane %v3300_v58, 4 }
 0x36e   :  { %v17684_v11 = vmax.f32 %v3360_v6, %v3361_v0  ;;  %v17687_v17 = vsel %vm4050_vm15, %v3355_v44, %v4115_v42  ;;  %v4446_v13 = vpack.c.bf16 %v3355_v44, %v3355_v44  ;;  %v17689_v22 = vunpack.c.l.b16 %v4445_v4 }
 0x36f   :  { %21598 = vst [vmem:[#allocation58_spill] sm:$0xff] %v17687_v17  ;;  %v17693_v60 = vmax.f32 %v3367_v62, %v3368_v38  ;;  %v3289_v59 = vrot.slane %v3288_v63, 2  ;;  %v3295_v53 = vmax.f32 %v3293_v20, %v3294_v48  ;;  %v3302_v47 = vmax.f32 %v3300_v58, %v3301_v51 }
 0x370   :  { %21597 = vst [vmem:[#allocation57_spill] sm:$0xff] %v17684_v11  ;;  %v4447_v49 = vpack.c.bf16 %v17684_v11, %v17684_v11  ;;  %v17697_v25 = vunpack.c.l.b16 %v4446_v13  ;;  %v3307_v5 = vsel %vm2809_vm10, %v2442_v45, -inf  ;;  %v4376_v34 = vpack.c.bf16 %v17319_v15, %v17319_v15 }
 0x371   :  { %v3290_v28 = vmax.f32 %v3288_v63, %v3289_v59  ;;  %v3296_v6 = vrot.slane %v3295_v53, 2  ;;  %v3303_v30 = vrot.slane %v3302_v47, 2  ;;  %v3308_v44 = vrot.slane %v3307_v5, 4 }
 0x372   :  { %v17702_v0 = vunpack.c.l.b16 %v4447_v49  ;;  %v4384_v48 = vpack.c.bf16 %v17293_v21, %v17293_v21  ;;  %v4641_v51 = vunpack.c.l.b16 %v4376_v34  ;;  %v4764_v62 = vsel %vm4046_vm13, %v17275_v40, %v17278_v43 }
 0x373   :  { %v3291_v20 = vrot.slane %v3290_v28, 1  ;;  %v3297_v58 = vmax.f32 %v3295_v53, %v3296_v6  ;;  %v3304_v45 = vmax.f32 %v3302_v47, %v3303_v30  ;;  %v3309_v42 = vmax.f32 %v3307_v5, %v3308_v44 }
 0x374   :  { %v4649_v4 = vunpack.c.l.b16 %v4384_v48  ;;  %v4765_v38 = vsel %vm4048_vm14, %v17323_v16, %v4764_v62  ;;  %v4771_v63 = vsel %vm4046_vm13, %v17247_v18, %v17258_v8  ;;  %v2063_v13 = vadd.f32 %v17493_v1, %v17452_v14 }
 0x375   :  { %v3292_v59 = vmax.f32 %v3290_v28, %v3291_v20  ;;  %v3298_v49 = vrot.slane %v3297_v58, 1  ;;  %v3305_v34 = vrot.slane %v3304_v45, 1  ;;  %v3310_v11 = vrot.slane %v3309_v42, 2 }
 0x376   :  { %v4766_v40 = vsel %vm4050_vm15, %v17327_v24, %v4765_v38  ;;  %v4772_v43 = vsel %vm4048_vm14, %v17300_v41, %v4771_v63  ;;  %v2095_v53 = vmax.f32 %v2063_v13, 0.0  ;;  %v2061_v16 = vadd.f32 %v17493_v1, %v17469_v50 }
 0x377   :  { %v3299_v47 = vmax.f32 %v3297_v58, %v3298_v49  ;;  %v17722_v5 = vmax.f32 %v3304_v45, %v3305_v34  ;;  %v3311_v18 = vmax.f32 %v3309_v42, %v3310_v11  ;;  %v4108_v8 = vsel %vm4048_vm14, %v3292_v59, %v4107_v23 }
 0x378   :  { %v4437_v14 = vpack.c.bf16 %v3292_v59, %v3292_v59  ;;  %v4767_v28 = vsel %vm4052_vm0, %v17332_v56, %v4766_v40  ;;  %v4773_v24 = vsel %vm4050_vm15, %v17302_v39, %v4772_v43  ;;  %v2511_v6 = vcombine.high %v2095_v53, %v2095_v53 }
 0x379   :  { %21599 = vst [vmem:[#allocation59_spill] sm:$0xff] %v17722_v5  ;;  %v3312_v30 = vrot.slane %v3311_v18, 1  ;;  %v17730_v41 = vsel %vm4050_vm15, %v3299_v47, %v4108_v8  ;;  %v4438_v44 = vpack.c.bf16 %v3299_v47, %v3299_v47  ;;  %v4439_v50 = vpack.c.bf16 %v17722_v5, %v17722_v5 }
 0x37a   :  { %21600 = vst [vmem:[#allocation60_spill] sm:$0xff] %v17730_v41  ;;  %v17734_v48 = vunpack.c.l.b16 %v4437_v14  ;;  %v4768_v23 = vsel %vm4054_vm1, %v4641_v51, %v4767_v28  ;;  %v4774_v11 = vsel %vm4052_vm0, %v17304_v32, %v4773_v24  ;;  %v2518_v56 = vrot.slane %v2095_v53, %v17201_v27 }
 0x37b   :  { %v17740_v62 = vmax.f32 %v3311_v18, %v3312_v30  ;;  %v17742_v39 = vunpack.c.l.b16 %v4438_v44  ;;  %v17744_v20 = vunpack.c.l.b16 %v4439_v50  ;;  %v4775_v58 = vsel %vm4054_vm1, %v4649_v4, %v4774_v11 }
 0x37c   :  { %v4874_v45 = vpack.c.b16 %v4775_v58, %v4768_v23  ;;  %v2525_v42 = vrot.slane %v2511_v6, %v17201_v27  ;;  %v2526_v38 = vcombine.high %v2518_v56, %v2518_v56  ;;  %v3426_v63 = vsel %vm2809_vm10, %v2518_v56, -inf }
 0x37d   :  { %v3427_v51 = vrot.slane %v3426_v63, 4  ;;  %v2093_v13 = vmax.f32 %v2061_v16, 0.0  ;;  %v2064_v32 = vadd.f32 %v17493_v1, %v17473_v36  ;;  %v2062_v59 = vadd.f32 %v17493_v1, %v17481_v33 }
 0x37e   :  { %15154 = vmatprep.mubr.msk.bf16.mxu0 %vm1301_vm5, %v4874_v45  ;;  %v2527_v49 = vcombine.high %v2525_v42, %v2525_v42  ;;  %v3433_v34 = vsel %vm2809_vm10, %v2526_v38, -inf  ;;  %v3440_v4 = vsel %vm2809_vm10, %v2525_v42, -inf  ;;  %v17759_v40 = vsel %vm4054_vm1, %v17439_v46, %v17437_v10 }
 0x37f   :  { %v3428_v43 = vmax.f32 %v3426_v63, %v3427_v51  ;;  %v3434_v53 = vrot.slane %v3433_v34, 4  ;;  %v3441_v16 = vrot.slane %v3440_v4, 4  ;;  %v2477_v47 = vcombine.high %v2093_v13, %v2093_v13 }
 0x380   :  { %v3447_v36 = vsel %vm2809_vm10, %v2527_v49, -inf  ;;  %v2484_v33 = vrot.slane %v2093_v13, %v17201_v27  ;;  %v2096_v1 = vmax.f32 %v2064_v32, 0.0  ;;  %v17763_v18 = vmax.f32 %v2062_v59, 0.0 }
 0x381   :  { %v3429_v8 = vrot.slane %v3428_v43, 2  ;;  %v3435_v14 = vmax.f32 %v3433_v34, %v3434_v53  ;;  %v3442_v28 = vmax.f32 %v3440_v4, %v3441_v16  ;;  %v3448_v24 = vrot.slane %v3447_v36, 4 }
 0x382   :  { %v2491_v6 = vrot.slane %v2477_v47, %v17201_v27  ;;  %v2492_v30 = vcombine.high %v2484_v33, %v2484_v33  ;;  %v3370_v10 = vsel %vm2809_vm10, %v2484_v33, -inf  ;;  %v2528_v46 = vcombine.high %v2096_v1, %v2096_v1 }
 0x383   :  { %v3430_v44 = vmax.f32 %v3428_v43, %v3429_v8  ;;  %v3436_v50 = vrot.slane %v3435_v14, 2  ;;  %v3443_v23 = vrot.slane %v3442_v28, 2  ;;  %v3449_v11 = vmax.f32 %v3447_v36, %v3448_v24 }
 0x384   :  { %v2493_v56 = vcombine.high %v2491_v6, %v2491_v6  ;;  %v3371_v58 = vrot.slane %v3370_v10, 4  ;;  %v3377_v45 = vsel %vm2809_vm10, %v2492_v30, -inf  ;;  %v3384_v42 = vsel %vm2809_vm10, %v2491_v6, -inf }
 0x385   :  { %v3431_v38 = vrot.slane %v3430_v44, 1  ;;  %v3437_v63 = vmax.f32 %v3435_v14, %v3436_v50  ;;  %v3444_v51 = vmax.f32 %v3442_v28, %v3443_v23  ;;  %v3450_v13 = vrot.slane %v3449_v11, 2 }
 0x386   :  { %v3372_v32 = vmax.f32 %v3370_v10, %v3371_v58  ;;  %v3378_v59 = vrot.slane %v3377_v45, 4  ;;  %v3385_v49 = vrot.slane %v3384_v42, 4  ;;  %v3391_v34 = vsel %vm2809_vm10, %v2493_v56, -inf }
 0x387   :  { %v3432_v4 = vmax.f32 %v3430_v44, %v3431_v38  ;;  %v3438_v43 = vrot.slane %v3437_v63, 1  ;;  %v3445_v53 = vrot.slane %v3444_v51, 1  ;;  %v3451_v16 = vmax.f32 %v3449_v11, %v3450_v13 }
 0x388   :  { %v3373_v47 = vrot.slane %v3372_v32, 2  ;;  %v3379_v36 = vmax.f32 %v3377_v45, %v3378_v59  ;;  %v3386_v33 = vmax.f32 %v3384_v42, %v3385_v49  ;;  %v3392_v8 = vrot.slane %v3391_v34, 4 }
 0x389   :  { %v3439_v24 = vmax.f32 %v3437_v63, %v3438_v43  ;;  %v3446_v30 = vmax.f32 %v3444_v51, %v3445_v53  ;;  %v3452_v6 = vrot.slane %v3451_v16, 1  ;;  %v4457_v17 = vpack.c.bf16 %v3432_v4, %v3432_v4 }
 0x38a   :  { %v3374_v14 = vmax.f32 %v3372_v32, %v3373_v47  ;;  %v3380_v28 = vrot.slane %v3379_v36, 2  ;;  %v3387_v50 = vrot.slane %v3386_v33, 2  ;;  %v3393_v10 = vmax.f32 %v3391_v34, %v3392_v8  ;;  %v17777_v8 = vld [vmem:[#allocation3] sm:$0xff]  }
 0x38b   :  { %v3453_v23 = vmax.f32 %v3451_v16, %v3452_v6  ;;  %v4126_v58 = vsel %vm4042_vm11, %v3439_v24, %v3432_v4  ;;  %v4458_v56 = vpack.c.bf16 %v3439_v24, %v3439_v24  ;;  %v4459_v44 = vpack.c.bf16 %v3446_v30, %v3446_v30  ;;  %15170 = vmatprep.subr.bf16.mxu0 %v17777_v8 }
 0x38c   :  { %v4127_v38 = vsel %vm4044_vm12, %v3446_v30, %v4126_v58  ;;  %v4722_v11 = vunpack.c.l.b16 %v4457_v17  ;;  %v3375_v13 = vrot.slane %v3374_v14, 1  ;;  %v3381_v45 = vmax.f32 %v3379_v36, %v3380_v28 }
 0x38d   :  { %v4460_v42 = vpack.c.bf16 %v3453_v23, %v3453_v23  ;;  %v4723_v59 = vunpack.c.l.b16 %v4458_v56  ;;  %v4724_v63 = vunpack.c.l.b16 %v4459_v44  ;;  %v3388_v51 = vmax.f32 %v3386_v33, %v3387_v50 }
 0x38e   :  { %v3376_v49 = vmax.f32 %v3374_v14, %v3375_v13  ;;  %v3382_v43 = vrot.slane %v3381_v45, 1  ;;  %v3394_v32 = vrot.slane %v3393_v10, 2  ;;  %v2535_v53 = vrot.slane %v2096_v1, %v17201_v27 }
 0x38f   :  { %v17773_v34 = vunpack.c.l.b16 %v4460_v42  ;;  %v4839_v4 = vsel %vm4042_vm11, %v4723_v59, %v4722_v11  ;;  %v3389_v16 = vrot.slane %v3388_v51, 1  ;;  %v2542_v47 = vrot.slane %v2528_v46, %v17201_v27 }
 0x390   :  { %v17780_v17 = vsel %vm4044_vm12, %v4724_v63, %v4839_v4  ;;  %v3383_v36 = vmax.f32 %v3381_v45, %v3382_v43  ;;  %v3395_v24 = vmax.f32 %v3393_v10, %v3394_v32  ;;  %v4449_v33 = vpack.c.bf16 %v3376_v49, %v3376_v49 }
 0x391   :  { %v3390_v30 = vmax.f32 %v3388_v51, %v3389_v16  ;;  %v2543_v6 = vcombine.high %v2535_v53, %v2535_v53  ;;  %v2544_v14 = vcombine.high %v2542_v47, %v2542_v47  ;;  %v3454_v1 = vsel %vm2809_vm10, %v2535_v53, -inf }
 0x392   :  { %v3396_v28 = vrot.slane %v3395_v24, 1  ;;  %v4119_v50 = vsel %vm4042_vm11, %v3383_v36, %v3376_v49  ;;  %v4450_v58 = vpack.c.bf16 %v3383_v36, %v3383_v36  ;;  %v4714_v46 = vunpack.c.l.b16 %v4449_v33 }
 0x393   :  { %v4120_v56 = vsel %vm4044_vm12, %v3390_v30, %v4119_v50  ;;  %v4451_v44 = vpack.c.bf16 %v3390_v30, %v3390_v30  ;;  %v3455_v11 = vrot.slane %v3454_v1, 4  ;;  %v3461_v13 = vsel %vm2809_vm10, %v2543_v6, -inf }
 0x394   :  { %v3397_v10 = vmax.f32 %v3395_v24, %v3396_v28  ;;  %v4715_v45 = vunpack.c.l.b16 %v4450_v58  ;;  %v3462_v42 = vrot.slane %v3461_v13, 4  ;;  %v3468_v59 = vsel %vm2809_vm10, %v2542_v47, -inf }
 0x395   :  { %v4716_v63 = vunpack.c.l.b16 %v4451_v44  ;;  %v3456_v51 = vmax.f32 %v3454_v1, %v3455_v11  ;;  %v3469_v43 = vrot.slane %v3468_v59, 4  ;;  %v3475_v32 = vsel %vm2809_vm10, %v2544_v14, -inf }
 0x396   :  { %v4452_v53 = vpack.c.bf16 %v3397_v10, %v3397_v10  ;;  %v4832_v49 = vsel %vm4042_vm11, %v4715_v45, %v4714_v46  ;;  %v3463_v4 = vmax.f32 %v3461_v13, %v3462_v42  ;;  %v3476_v16 = vrot.slane %v3475_v32, 4 }
 0x397   :  { %v17791_v36 = vsel %vm4044_vm12, %v4716_v63, %v4832_v49  ;;  %v3457_v33 = vrot.slane %v3456_v51, 2  ;;  %v3470_v30 = vmax.f32 %v3468_v59, %v3469_v43  ;;  %v4128_v24 = vsel %vm4046_vm13, %v3453_v23, %v4127_v38 }
 0x398   :  { %v17794_v6 = vunpack.c.l.b16 %v4452_v53  ;;  %v3464_v47 = vrot.slane %v3463_v4, 2  ;;  %v3477_v28 = vmax.f32 %v3475_v32, %v3476_v16  ;;  %v2494_v1 = vcombine.high %v17763_v18, %v17763_v18 }
 0x399   :  { %v3458_v14 = vmax.f32 %v3456_v51, %v3457_v33  ;;  %v3471_v50 = vrot.slane %v3470_v30, 2  ;;  %v2501_v58 = vrot.slane %v17763_v18, %v17201_v27  ;;  %v17801_v46 = vsel %vm4046_vm13, %v3397_v10, %v4120_v56 }
 0x39a   :  { %v3465_v44 = vmax.f32 %v3463_v4, %v3464_v47  ;;  %v3478_v11 = vrot.slane %v3477_v28, 2  ;;  %v2508_v13 = vrot.slane %v2494_v1, %v17201_v27  ;;  %v4789_v23 = vsel %vm4054_vm1, %v17409_v57, %v17417_v55 }
 0x39b   :  { %v3459_v38 = vrot.slane %v3458_v14, 1  ;;  %v3472_v45 = vmax.f32 %v3470_v30, %v3471_v50  ;;  %v2509_v42 = vcombine.high %v2501_v58, %v2501_v58  ;;  %v3398_v59 = vsel %vm2809_vm10, %v2501_v58, -inf }
 0x39c   :  { %v3466_v63 = vrot.slane %v3465_v44, 1  ;;  %v3479_v51 = vmax.f32 %v3477_v28, %v3478_v11  ;;  %v2510_v43 = vcombine.high %v2508_v13, %v2508_v13  ;;  %v3399_v18 = vrot.slane %v3398_v59, 4 }
 0x39d   :  { %v3460_v32 = vmax.f32 %v3458_v14, %v3459_v38  ;;  %v3473_v56 = vrot.slane %v3472_v45, 1  ;;  %v3405_v10 = vsel %vm2809_vm10, %v2509_v42, -inf  ;;  %v3412_v53 = vsel %vm2809_vm10, %v2508_v13, -inf }
 0x39e   :  { %v3467_v49 = vmax.f32 %v3465_v44, %v3466_v63  ;;  %v3480_v4 = vrot.slane %v3479_v51, 1  ;;  %v3400_v16 = vmax.f32 %v3398_v59, %v3399_v18  ;;  %v3406_v33 = vrot.slane %v3405_v10, 4  ;;  %v15620_v59 = vld [vmem:[#allocation3 + $0x8] sm:$0xff]  }
 0x39f   :  { %v17810_v57 = vmax.f32 %v3472_v45, %v3473_v56  ;;  %v4129_v55 = vsel %vm4048_vm14, %v3460_v32, %v4128_v24  ;;  %v4461_v30 = vpack.c.bf16 %v3460_v32, %v3460_v32  ;;  %v3413_v47 = vrot.slane %v3412_v53, 4 }
 0x3a0   :  { %v17813_v1 = vmax.f32 %v3479_v51, %v3480_v4  ;;  %v17816_v28 = vsel %vm4050_vm15, %v3467_v49, %v4129_v55  ;;  %v4462_v14 = vpack.c.bf16 %v3467_v49, %v3467_v49  ;;  %v3401_v50 = vrot.slane %v3400_v16, 2 }
 0x3a1   :  { %21601 = vst [vmem:[#allocation61_spill] sm:$0xff] %v17810_v57  ;;  %21602 = vst [vmem:[#allocation62_spill] sm:$0xff] %v17816_v28  ;;  %v4463_v58 = vpack.c.bf16 %v17810_v57, %v17810_v57  ;;  %v17820_v44 = vunpack.c.l.b16 %v4461_v30  ;;  %v3407_v11 = vmax.f32 %v3405_v10, %v3406_v33  ;;  %v3414_v13 = vmax.f32 %v3412_v53, %v3413_v47  ;;  %v17832_v10 = vld [vmem:[%s21355_s4] ss:$0 sm:$0xff] }
 0x3a2   :  { %v17822_v38 = vunpack.c.l.b16 %v4462_v14  ;;  %v3402_v45 = vmax.f32 %v3400_v16, %v3401_v50  ;;  %v3419_v24 = vsel %vm2809_vm10, %v2510_v43, -inf  ;;  %v4875_v42 = vpack.c.b16 %v4789_v23, %v17759_v40 }
 0x3a3   :  { %v17826_v63 = vunpack.c.l.b16 %v4463_v58  ;;  %v3408_v51 = vrot.slane %v3407_v11, 2  ;;  %v3415_v18 = vrot.slane %v3414_v13, 2  ;;  %v3420_v32 = vrot.slane %v3419_v24, 4 }
 0x3a4   :  { %21603 = vst [vmem:[#allocation63_spill] sm:$0xff] %v17822_v38  ;;  %v3403_v56 = vrot.slane %v3402_v45, 1  ;;  %15155 = vmatmul.mubr.msk.bf16.vlgmr.msra.gmra.mrb[32].mxu0 %vm1301_vm5, %v4875_v42  ;;  %v2067_v53 = vadd.f32 %v17832_v10, %v17552_v61  ;;  %v2065_v40 = vadd.f32 %v17832_v10, %v17555_v12  ;;  %v2068_v23 = vadd.f32 %v17832_v10, %v17562_v54  ;;  %v15621_v61 = vld [vmem:[#allocation3 + $0x10] sm:$0xff]  }
 0x3a5   :  { %21604 = vst [vmem:[#allocation64_spill] sm:$0xff] %v17826_v63  ;;  %v3409_v43 = vmax.f32 %v3407_v11, %v3408_v51  ;;  %v3416_v49 = vmax.f32 %v3414_v13, %v3415_v18  ;;  %v3421_v4 = vmax.f32 %v3419_v24, %v3420_v32  ;;  %v2066_v16 = vadd.f32 %v17832_v10, %v17586_v37 }
 0x3a6   :  { %15171 = vmatpush3.bf16.msra.mxu0 %v17777_v8  ;;  %v3404_v33 = vmax.f32 %v3402_v45, %v3403_v56  ;;  %v2099_v55 = vmax.f32 %v2067_v53, 0.0  ;;  %v2097_v30 = vmax.f32 %v2065_v40, 0.0  ;;  %v17843_v47 = vmax.f32 %v2068_v23, 0.0  ;;  %v15622_v53 = vld [vmem:[#allocation3 + $0x18] sm:$0xff]  }
 0x3a7   :  { %15172 = vmatprep.subr.bf16.mxu0 %v15620_v59  ;;  %v3410_v14 = vrot.slane %v3409_v43, 1  ;;  %v3417_v12 = vrot.slane %v3416_v49, 1  ;;  %v3422_v50 = vrot.slane %v3421_v4, 2  ;;  %v17845_v58 = vmax.f32 %v2066_v16, 0.0 }
 0x3a8   :  { %v4122_v54 = vsel %vm4048_vm14, %v3404_v33, %v17801_v46  ;;  %v4453_v11 = vpack.c.bf16 %v3404_v33, %v3404_v33  ;;  %v2579_v13 = vcombine.high %v2099_v55, %v2099_v55  ;;  %v2586_v37 = vrot.slane %v2099_v55, %v17201_v27 }
 0x3a9   :  { %v3411_v8 = vmax.f32 %v3409_v43, %v3410_v14  ;;  %v17850_v45 = vmax.f32 %v3416_v49, %v3417_v12  ;;  %v3423_v24 = vmax.f32 %v3421_v4, %v3422_v50  ;;  %v2545_v42 = vcombine.high %v2097_v30, %v2097_v30 }
 0x3aa   :  { %15173 = vmatpush3.bf16.msra.mxu0 %v15620_v59  ;;  %v17852_v51 = vunpack.c.l.b16 %v4453_v11  ;;  %v2593_v18 = vrot.slane %v2579_v13, %v17201_v27  ;;  %v2594_v32 = vcombine.high %v2586_v37, %v2586_v37  ;;  %v3538_v56 = vsel %vm2809_vm10, %v2586_v37, -inf  ;;  %v17871_v37 = vld [vmem:[#allocation3 + $0x40] sm:$0xff]  }
 0x3ab   :  { %21605 = vst [vmem:[#allocation65_spill] sm:$0xff] %v17850_v45  ;;  %15174 = vmatprep.subr.bf16.mxu0 %v15621_v61  ;;  %v3424_v46 = vrot.slane %v3423_v24, 1  ;;  %v17857_v40 = vsel %vm4050_vm15, %v3411_v8, %v4122_v54  ;;  %v4454_v23 = vpack.c.bf16 %v3411_v8, %v3411_v8  ;;  %v4455_v43 = vpack.c.bf16 %v17850_v45, %v17850_v45 }
 0x3ac   :  { %21606 = vst [vmem:[#allocation66_spill] sm:$0xff] %v17857_v40  ;;  %v2595_v49 = vcombine.high %v2593_v18, %v2593_v18  ;;  %v3539_v4 = vrot.slane %v3538_v56, 4  ;;  %v3545_v59 = vsel %vm2809_vm10, %v2594_v32, -inf  ;;  %v3552_v16 = vsel %vm2809_vm10, %v2593_v18, -inf  ;;  %21608 = vst [vmem:[#allocation68_spill] sm:$0xff] %v17871_v37 }
 0x3ad   :  { %v17863_v33 = vmax.f32 %v3423_v24, %v3424_v46  ;;  %v17865_v55 = vunpack.c.l.b16 %v4454_v23  ;;  %v17867_v14 = vunpack.c.l.b16 %v4455_v43  ;;  %v3546_v12 = vrot.slane %v3545_v59, 4 }
 0x3ae   :  { %15175 = vmatpush3.bf16.msra.mxu0 %v15621_v61  ;;  %v3540_v50 = vmax.f32 %v3538_v56, %v3539_v4  ;;  %v3553_v54 = vrot.slane %v3552_v16, 4  ;;  %v3559_v11 = vsel %vm2809_vm10, %v2595_v49, -inf  ;;  %v2552_v13 = vrot.slane %v2097_v30, %v17201_v27 }
 0x3af   :  { %21607 = vst [vmem:[#allocation67_spill] sm:$0xff] %v17867_v14  ;;  %15176 = vmatprep.subr.bf16.mxu0 %v15622_v53  ;;  %v3547_v8 = vmax.f32 %v3545_v59, %v3546_v12  ;;  %v3560_v32 = vrot.slane %v3559_v11, 4  ;;  %v2559_v24 = vrot.slane %v2545_v42, %v17201_v27  ;;  %v2596_v18 = vcombine.high %v17843_v47, %v17843_v47 }
 0x3b0   :  { %v3541_v46 = vrot.slane %v3540_v50, 2  ;;  %v3554_v23 = vmax.f32 %v3552_v16, %v3553_v54  ;;  %v2560_v43 = vcombine.high %v2552_v13, %v2552_v13  ;;  %v3482_v61 = vsel %vm2809_vm10, %v2552_v13, -inf }
 0x3b1   :  { %v3548_v56 = vrot.slane %v3547_v8, 2  ;;  %v3561_v4 = vmax.f32 %v3559_v11, %v3560_v32  ;;  %v2561_v49 = vcombine.high %v2559_v24, %v2559_v24  ;;  %v3483_v57 = vrot.slane %v3482_v61, 4 }
 0x3b2   :  { %15177 = vmatpush3.bf16.msra.mxu0 %v15622_v53  ;;  %v3542_v30 = vmax.f32 %v3540_v50, %v3541_v46  ;;  %v3555_v28 = vrot.slane %v3554_v23, 2  ;;  %v3489_v59 = vsel %vm2809_vm10, %v2560_v43, -inf  ;;  %v3496_v12 = vsel %vm2809_vm10, %v2559_v24, -inf }
 0x3b3   :  { %15194 = vmatprep.subr.bf16.mxu0 %v17871_v37  ;;  %v3549_v42 = vmax.f32 %v3547_v8, %v3548_v56  ;;  %v3562_v45 = vrot.slane %v3561_v4, 2  ;;  %v3484_v40 = vmax.f32 %v3482_v61, %v3483_v57  ;;  %v3490_v16 = vrot.slane %v3489_v59, 4 }
 0x3b4   :  { %v3543_v54 = vrot.slane %v3542_v30, 1  ;;  %v3556_v5 = vmax.f32 %v3554_v23, %v3555_v28  ;;  %v3497_v13 = vrot.slane %v3496_v12, 4  ;;  %v3503_v11 = vsel %vm2809_vm10, %v2561_v49, -inf }
 0x3b5   :  { %v3550_v32 = vrot.slane %v3549_v42, 1  ;;  %v3563_v41 = vmax.f32 %v3561_v4, %v3562_v45  ;;  %v3485_v53 = vrot.slane %v3484_v40, 2  ;;  %v3491_v50 = vmax.f32 %v3489_v59, %v3490_v16 }
 0x3b6   :  { %v3544_v46 = vmax.f32 %v3542_v30, %v3543_v54  ;;  %v3557_v21 = vrot.slane %v3556_v5, 1  ;;  %v3498_v43 = vmax.f32 %v3496_v12, %v3497_v13  ;;  %v3504_v15 = vrot.slane %v3503_v11, 4 }
 0x3b7   :  { %v3551_v24 = vmax.f32 %v3549_v42, %v3550_v32  ;;  %v3564_v63 = vrot.slane %v3563_v41, 1  ;;  %v3486_v37 = vmax.f32 %v3484_v40, %v3485_v53  ;;  %v3492_v8 = vrot.slane %v3491_v50, 2 }
 0x3b8   :  { %v3558_v56 = vmax.f32 %v3556_v5, %v3557_v21  ;;  %v4473_v57 = vpack.c.bf16 %v3544_v46, %v3544_v46  ;;  %v3499_v61 = vrot.slane %v3498_v43, 2  ;;  %v3505_v38 = vmax.f32 %v3503_v11, %v3504_v15 }
 0x3b9   :  { %v3565_v28 = vmax.f32 %v3563_v41, %v3564_v63  ;;  %v4140_v23 = vsel %vm4042_vm11, %v3551_v24, %v3544_v46  ;;  %v4474_v49 = vpack.c.bf16 %v3551_v24, %v3551_v24  ;;  %v3487_v14 = vrot.slane %v3486_v37, 1 }
 0x3ba   :  { %v4141_v45 = vsel %vm4044_vm12, %v3558_v56, %v4140_v23  ;;  %v4475_v4 = vpack.c.bf16 %v3558_v56, %v3558_v56  ;;  %v4738_v30 = vunpack.c.l.b16 %v4473_v57  ;;  %v3493_v59 = vmax.f32 %v3491_v50, %v3492_v8 }
 0x3bb   :  { %v4476_v12 = vpack.c.bf16 %v3565_v28, %v3565_v28  ;;  %v4739_v16 = vunpack.c.l.b16 %v4474_v49  ;;  %v3488_v42 = vmax.f32 %v3486_v37, %v3487_v14  ;;  %v3500_v54 = vmax.f32 %v3498_v43, %v3499_v61 }
 0x3bc   :  { %v4740_v40 = vunpack.c.l.b16 %v4475_v4  ;;  %v3494_v13 = vrot.slane %v3493_v59, 1  ;;  %v3506_v21 = vrot.slane %v3505_v38, 2  ;;  %v2603_v15 = vrot.slane %v17843_v47, %v17201_v27 }
 0x3bd   :  { %v17885_v5 = vunpack.c.l.b16 %v4476_v12  ;;  %v4853_v41 = vsel %vm4042_vm11, %v4739_v16, %v4738_v30  ;;  %v3501_v63 = vrot.slane %v3500_v54, 1  ;;  %v4465_v11 = vpack.c.bf16 %v3488_v42, %v3488_v42 }
 0x3be   :  { %v17889_v32 = vsel %vm4044_vm12, %v4740_v40, %v4853_v41  ;;  %v3495_v53 = vmax.f32 %v3493_v59, %v3494_v13  ;;  %v3507_v50 = vmax.f32 %v3505_v38, %v3506_v21  ;;  %v2610_v14 = vrot.slane %v2596_v18, %v17201_v27 }
 0x3bf   :  { %v3502_v37 = vmax.f32 %v3500_v54, %v3501_v63  ;;  %v4730_v46 = vunpack.c.l.b16 %v4465_v11  ;;  %v2611_v43 = vcombine.high %v2603_v15, %v2603_v15  ;;  %v3566_v24 = vsel %vm2809_vm10, %v2603_v15, -inf }
 0x3c0   :  { %v3508_v8 = vrot.slane %v3507_v50, 1  ;;  %v4133_v47 = vsel %vm4042_vm11, %v3495_v53, %v3488_v42  ;;  %v4466_v56 = vpack.c.bf16 %v3495_v53, %v3495_v53  ;;  %v2612_v57 = vcombine.high %v2610_v14, %v2610_v14 }
 0x3c1   :  { %v4134_v61 = vsel %vm4044_vm12, %v3502_v37, %v4133_v47  ;;  %v4467_v23 = vpack.c.bf16 %v3502_v37, %v3502_v37  ;;  %v3567_v49 = vrot.slane %v3566_v24, 4  ;;  %v3573_v4 = vsel %vm2809_vm10, %v2611_v43, -inf }
 0x3c2   :  { %v3509_v30 = vmax.f32 %v3507_v50, %v3508_v8  ;;  %v4731_v38 = vunpack.c.l.b16 %v4466_v56  ;;  %v3574_v59 = vrot.slane %v3573_v4, 4  ;;  %v3580_v18 = vsel %vm2809_vm10, %v2610_v14, -inf }
 0x3c3   :  { %v4732_v12 = vunpack.c.l.b16 %v4467_v23  ;;  %v3568_v16 = vmax.f32 %v3566_v24, %v3567_v49  ;;  %v3581_v54 = vrot.slane %v3580_v18, 4  ;;  %v3587_v40 = vsel %vm2809_vm10, %v2612_v57, -inf }
 0x3c4   :  { %v4468_v13 = vpack.c.bf16 %v3509_v30, %v3509_v30  ;;  %v4846_v42 = vsel %vm4042_vm11, %v4731_v38, %v4730_v46  ;;  %v3575_v21 = vmax.f32 %v3573_v4, %v3574_v59  ;;  %v3588_v15 = vrot.slane %v3587_v40, 4 }
 0x3c5   :  { %v17900_v41 = vsel %vm4044_vm12, %v4732_v12, %v4846_v42  ;;  %v3569_v63 = vrot.slane %v3568_v16, 2  ;;  %v3582_v11 = vmax.f32 %v3580_v18, %v3581_v54  ;;  %v4142_v53 = vsel %vm4046_vm13, %v3565_v28, %v4141_v45 }
 0x3c6   :  { %v17903_v50 = vunpack.c.l.b16 %v4468_v13  ;;  %v3576_v14 = vrot.slane %v3575_v21, 2  ;;  %v3589_v37 = vmax.f32 %v3587_v40, %v3588_v15  ;;  %v2562_v43 = vcombine.high %v17845_v58, %v17845_v58 }
 0x3c7   :  { %v3570_v24 = vmax.f32 %v3568_v16, %v3569_v63  ;;  %v3583_v8 = vrot.slane %v3582_v11, 2  ;;  %v2569_v46 = vrot.slane %v17845_v58, %v17201_v27  ;;  %v4135_v47 = vsel %vm4046_vm13, %v3509_v30, %v4134_v61 }
 0x3c8   :  { %v3577_v56 = vmax.f32 %v3575_v21, %v3576_v14  ;;  %v3590_v57 = vrot.slane %v3589_v37, 2  ;;  %v2576_v23 = vrot.slane %v2562_v43, %v17201_v27  ;;  %v4408_v28 = vpack.c.bf16 %v17533_v35, %v17533_v35 }
 0x3c9   :  { %v3571_v45 = vrot.slane %v3570_v24, 1  ;;  %v3584_v49 = vmax.f32 %v3582_v11, %v3583_v8  ;;  %v2577_v4 = vcombine.high %v2569_v46, %v2569_v46  ;;  %v3510_v38 = vsel %vm2809_vm10, %v2569_v46, -inf }
 0x3ca   :  { %v3578_v59 = vrot.slane %v3577_v56, 1  ;;  %v3591_v18 = vmax.f32 %v3589_v37, %v3590_v57  ;;  %v2578_v12 = vcombine.high %v2576_v23, %v2576_v23  ;;  %v3511_v16 = vrot.slane %v3510_v38, 4 }
 0x3cb   :  { %v3572_v54 = vmax.f32 %v3570_v24, %v3571_v45  ;;  %v3585_v58 = vrot.slane %v3584_v49, 1  ;;  %v3517_v61 = vsel %vm2809_vm10, %v2577_v4, -inf  ;;  %v3524_v30 = vsel %vm2809_vm10, %v2576_v23, -inf }
 0x3cc   :  { %v3579_v40 = vmax.f32 %v3577_v56, %v3578_v59  ;;  %v3592_v13 = vrot.slane %v3591_v18, 1  ;;  %v3512_v42 = vmax.f32 %v3510_v38, %v3511_v16  ;;  %v3518_v21 = vrot.slane %v3517_v61, 4 }
 0x3cd   :  { %v17916_v15 = vmax.f32 %v3584_v49, %v3585_v58  ;;  %v4143_v63 = vsel %vm4048_vm14, %v3572_v54, %v4142_v53  ;;  %v4477_v11 = vpack.c.bf16 %v3572_v54, %v3572_v54  ;;  %v3525_v14 = vrot.slane %v3524_v30, 4 }
 0x3ce   :  { %v17919_v43 = vmax.f32 %v3591_v18, %v3592_v13  ;;  %v17922_v37 = vsel %vm4050_vm15, %v3579_v40, %v4143_v63  ;;  %v4478_v24 = vpack.c.bf16 %v3579_v40, %v3579_v40  ;;  %v3513_v8 = vrot.slane %v3512_v42, 2 }
 0x3cf   :  { %21609 = vst [vmem:[#allocation69_spill] sm:$0xff] %v17916_v15  ;;  %21610 = vst [vmem:[#allocation70_spill] sm:$0xff] %v17922_v37  ;;  %v4479_v46 = vpack.c.bf16 %v17916_v15, %v17916_v15  ;;  %v17926_v56 = vunpack.c.l.b16 %v4477_v11  ;;  %v3519_v57 = vmax.f32 %v3517_v61, %v3518_v21  ;;  %v3526_v23 = vmax.f32 %v3524_v30, %v3525_v14  ;;  %v21613_v21 = vld [vmem:[#allocation35_spill] sm:$0xff]  ;;  %v21614_v11 = vld [vmem:[#allocation36_spill] sm:$0xff] }
 0x3d0   :  { %v17928_v45 = vunpack.c.l.b16 %v4478_v24  ;;  %v3514_v49 = vmax.f32 %v3512_v42, %v3513_v8  ;;  %v3531_v53 = vsel %vm2809_vm10, %v2578_v12, -inf  ;;  %v4416_v4 = vpack.c.bf16 %v17515_v29, %v17515_v29  ;;  %v21615_v24 = vld [vmem:[#allocation25_spill] sm:$0xff]  ;;  %v21616_v8 = vld [vmem:[#allocation26_spill] sm:$0xff] }
 0x3d1   :  { %v17933_v38 = vunpack.c.l.b16 %v4479_v46  ;;  %v3520_v59 = vrot.slane %v3519_v57, 2  ;;  %v3527_v18 = vrot.slane %v3526_v23, 2  ;;  %v3532_v16 = vrot.slane %v3531_v53, 4 }
 0x3d2   :  { %21611 = vst [vmem:[#allocation71_spill] sm:$0xff] %v17928_v45  ;;  %v3515_v54 = vrot.slane %v3514_v49, 1  ;;  %v4673_v58 = vunpack.c.l.b16 %v4408_v28  ;;  %v4681_v40 = vunpack.c.l.b16 %v4416_v4  ;;  %v4792_v61 = vsel %vm4046_vm13, %v17479_v26, %v17484_v52  ;;  %v21617_v52 = vld [vmem:[#allocation37_spill] sm:$0xff] }
 0x3d3   :  { %21612 = vst [vmem:[#allocation72_spill] sm:$0xff] %v17933_v38  ;;  %v3521_v30 = vmax.f32 %v3519_v57, %v3520_v59  ;;  %v3528_v13 = vmax.f32 %v3526_v23, %v3527_v18  ;;  %v3533_v42 = vmax.f32 %v3531_v53, %v3532_v16  ;;  %v4793_v12 = vsel %vm4048_vm14, %v21613_v21, %v4792_v61  ;;  %v21618_v59 = vld [vmem:[#allocation28_spill] sm:$0xff]  ;;  %v21620_v21 = vld [vmem:[#allocation29_spill] sm:$0xff] }
 0x3d4   :  { %v3516_v63 = vmax.f32 %v3514_v49, %v3515_v54  ;;  %v4794_v14 = vsel %vm4050_vm15, %v21614_v11, %v4793_v12  ;;  %v4799_v46 = vsel %vm4046_vm13, %v21616_v8, %v21615_v24  ;;  %v2071_v28 = vadd.f32 %v17832_v10, %v17656_v9  ;;  %v21621_v11 = vld [vmem:[#allocation31_spill] sm:$0xff] }
 0x3d5   :  { %v3522_v4 = vrot.slane %v3521_v30, 1  ;;  %v3529_v15 = vrot.slane %v3528_v13, 1  ;;  %v3534_v26 = vrot.slane %v3533_v42, 2  ;;  %v4795_v57 = vsel %vm4052_vm0, %v21617_v52, %v4794_v14 }
 0x3d6   :  { %v4136_v23 = vsel %vm4048_vm14, %v3516_v63, %v4135_v47  ;;  %v4469_v53 = vpack.c.bf16 %v3516_v63, %v3516_v63  ;;  %v4796_v49 = vsel %vm4054_vm1, %v4673_v58, %v4795_v57  ;;  %v4800_v18 = vsel %vm4048_vm14, %v21618_v59, %v4799_v46 }
 0x3d7   :  { %v3523_v16 = vmax.f32 %v3521_v30, %v3522_v4  ;;  %v17953_v54 = vmax.f32 %v3528_v13, %v3529_v15  ;;  %v3535_v61 = vmax.f32 %v3533_v42, %v3534_v26  ;;  %v4801_v9 = vsel %vm4050_vm15, %v21620_v21, %v4800_v18 }
 0x3d8   :  { %v17957_v12 = vunpack.c.l.b16 %v4469_v53  ;;  %v4802_v14 = vsel %vm4052_vm0, %v21621_v11, %v4801_v9  ;;  %v2103_v24 = vmax.f32 %v2071_v28, 0.0  ;;  %v2069_v47 = vadd.f32 %v17832_v10, %v17666_v31 }
 0x3d9   :  { %21619 = vst [vmem:[#allocation35_spill] sm:$0xff] %v17953_v54  ;;  %v3536_v58 = vrot.slane %v3535_v61, 1  ;;  %v17964_v63 = vsel %vm4050_vm15, %v3523_v16, %v4136_v23  ;;  %v4470_v30 = vpack.c.bf16 %v3523_v16, %v3523_v16  ;;  %v4471_v15 = vpack.c.bf16 %v17953_v54, %v17953_v54 }
 0x3da   :  { %21622 = vst [vmem:[#allocation36_spill] sm:$0xff] %v17964_v63  ;;  %v4803_v13 = vsel %vm4054_vm1, %v4681_v40, %v4802_v14  ;;  %v2647_v42 = vcombine.high %v2103_v24, %v2103_v24  ;;  %v2654_v8 = vrot.slane %v2103_v24, %v17201_v27  ;;  %v2101_v46 = vmax.f32 %v2069_v47, 0.0 }
 0x3db   :  { %v17970_v4 = vmax.f32 %v3535_v61, %v3536_v58  ;;  %v17972_v28 = vunpack.c.l.b16 %v4470_v30  ;;  %v17974_v26 = vunpack.c.l.b16 %v4471_v15  ;;  %v4876_v31 = vpack.c.b16 %v4803_v13, %v4796_v49 }
 0x3dc   :  { %v2661_v52 = vrot.slane %v2647_v42, %v17201_v27  ;;  %v2662_v57 = vcombine.high %v2654_v8, %v2654_v8  ;;  %v3650_v23 = vsel %vm2809_vm10, %v2654_v8, -inf  ;;  %v2613_v53 = vcombine.high %v2101_v46, %v2101_v46 }
 0x3dd   :  { %21623 = vst [vmem:[#allocation25_spill] sm:$0xff] %v17974_v26  ;;  %15158 = vmatprep.mubr.msk.bf16.mxu0 %vm1301_vm5, %v4876_v31  ;;  %v3651_v40 = vrot.slane %v3650_v23, 4  ;;  %v2620_v59 = vrot.slane %v2101_v46, %v17201_v27  ;;  %v17982_v18 = vadd.f32 %v17832_v10, %v17668_v7  ;;  %v17986_v16 = vadd.f32 %v17832_v10, %v17691_v3 }
 0x3de   :  { %v2663_v49 = vcombine.high %v2661_v52, %v2661_v52  ;;  %v3657_v61 = vsel %vm2809_vm10, %v2662_v57, -inf  ;;  %v3664_v21 = vsel %vm2809_vm10, %v2661_v52, -inf  ;;  %v2627_v9 = vrot.slane %v2613_v53, %v17201_v27 }
 0x3df   :  { %v3652_v11 = vmax.f32 %v3650_v23, %v3651_v40  ;;  %v3658_v14 = vrot.slane %v3657_v61, 4  ;;  %v3665_v24 = vrot.slane %v3664_v21, 4  ;;  %v2628_v47 = vcombine.high %v2620_v59, %v2620_v59 }
 0x3e0   :  { %v3671_v58 = vsel %vm2809_vm10, %v2663_v49, -inf  ;;  %v2629_v30 = vcombine.high %v2627_v9, %v2627_v9  ;;  %v3594_v7 = vsel %vm2809_vm10, %v2620_v59, -inf  ;;  %v3608_v15 = vsel %vm2809_vm10, %v2627_v9, -inf }
 0x3e1   :  { %v3653_v3 = vrot.slane %v3652_v11, 2  ;;  %v3659_v10 = vmax.f32 %v3657_v61, %v3658_v14  ;;  %v3666_v13 = vmax.f32 %v3664_v21, %v3665_v24  ;;  %v3672_v42 = vrot.slane %v3671_v58, 4 }
 0x3e2   :  { %v3595_v8 = vrot.slane %v3594_v7, 4  ;;  %v3601_v46 = vsel %vm2809_vm10, %v2628_v47, -inf  ;;  %v3609_v31 = vrot.slane %v3608_v15, 4  ;;  %v3615_v52 = vsel %vm2809_vm10, %v2629_v30, -inf }
 0x3e3   :  { %v3654_v57 = vmax.f32 %v3652_v11, %v3653_v3  ;;  %v3660_v23 = vrot.slane %v3659_v10, 2  ;;  %v3667_v53 = vrot.slane %v3666_v13, 2  ;;  %v3673_v40 = vmax.f32 %v3671_v58, %v3672_v42 }
 0x3e4   :  { %v3596_v49 = vmax.f32 %v3594_v7, %v3595_v8  ;;  %v3602_v37 = vrot.slane %v3601_v46, 4  ;;  %v3610_v54 = vmax.f32 %v3608_v15, %v3609_v31  ;;  %v3616_v59 = vrot.slane %v3615_v52, 4 }
 0x3e5   :  { %v3655_v63 = vrot.slane %v3654_v57, 1  ;;  %v3661_v9 = vmax.f32 %v3659_v10, %v3660_v23  ;;  %v3668_v29 = vmax.f32 %v3666_v13, %v3667_v53  ;;  %v3674_v61 = vrot.slane %v3673_v40, 2 }
 0x3e6   :  { %v3597_v21 = vrot.slane %v3596_v49, 2  ;;  %v3603_v14 = vmax.f32 %v3601_v46, %v3602_v37  ;;  %v3611_v24 = vrot.slane %v3610_v54, 2  ;;  %v3617_v35 = vmax.f32 %v3615_v52, %v3616_v59 }
 0x3e7   :  { %v3656_v47 = vmax.f32 %v3654_v57, %v3655_v63  ;;  %v3662_v38 = vrot.slane %v3661_v9, 1  ;;  %v3669_v45 = vrot.slane %v3668_v29, 1  ;;  %v3675_v30 = vmax.f32 %v3673_v40, %v3674_v61 }
 0x3e8   :  { %v3598_v11 = vmax.f32 %v3596_v49, %v3597_v21  ;;  %v3604_v3 = vrot.slane %v3603_v14, 2  ;;  %v3612_v26 = vmax.f32 %v3610_v54, %v3611_v24  ;;  %v3618_v58 = vrot.slane %v3617_v35, 2 }
 0x3e9   :  { %v3663_v7 = vmax.f32 %v3661_v9, %v3662_v38  ;;  %v3670_v42 = vmax.f32 %v3668_v29, %v3669_v45  ;;  %v3676_v15 = vrot.slane %v3675_v30, 1  ;;  %v4489_v8 = vpack.c.bf16 %v3656_v47, %v3656_v47 }
 0x3ea   :  { %v3599_v31 = vrot.slane %v3598_v11, 1  ;;  %v3605_v10 = vmax.f32 %v3603_v14, %v3604_v3  ;;  %v3613_v13 = vrot.slane %v3612_v26, 1  ;;  %v3619_v23 = vmax.f32 %v3617_v35, %v3618_v58 }
 0x3eb   :  { %v3677_v53 = vmax.f32 %v3675_v30, %v3676_v15  ;;  %v4154_v37 = vsel %vm4042_vm11, %v3663_v7, %v3656_v47  ;;  %v4490_v46 = vpack.c.bf16 %v3663_v7, %v3663_v7  ;;  %v4491_v63 = vpack.c.bf16 %v3670_v42, %v3670_v42 }
 0x3ec   :  { %v4155_v52 = vsel %vm4044_vm12, %v3670_v42, %v4154_v37  ;;  %v4754_v57 = vunpack.c.l.b16 %v4489_v8  ;;  %v3600_v40 = vmax.f32 %v3598_v11, %v3599_v31  ;;  %v3606_v49 = vrot.slane %v3605_v10, 1  ;;  %v21625_v37 = vld [vmem:[#allocation45_spill] sm:$0xff] }
 0x3ed   :  { %v4492_v54 = vpack.c.bf16 %v3677_v53, %v3677_v53  ;;  %v4755_v59 = vunpack.c.l.b16 %v4490_v46  ;;  %v4756_v38 = vunpack.c.l.b16 %v4491_v63  ;;  %v3614_v29 = vmax.f32 %v3612_v26, %v3613_v13 }
 0x3ee   :  { %v3607_v45 = vmax.f32 %v3605_v10, %v3606_v49  ;;  %v3620_v9 = vrot.slane %v3619_v23, 1  ;;  %v4481_v61 = vpack.c.bf16 %v3600_v40, %v3600_v40  ;;  %v2104_v21 = vmax.f32 %v17982_v18, 0.0 }
 0x3ef   :  { %v17999_v35 = vunpack.c.l.b16 %v4492_v54  ;;  %v4867_v14 = vsel %vm4042_vm11, %v4755_v59, %v4754_v57  ;;  %v4483_v24 = vpack.c.bf16 %v3614_v29, %v3614_v29  ;;  %v18003_v47 = vsel %vm4046_vm13, %v3677_v53, %v4155_v52 }
 0x3f0   :  { %v18006_v30 = vsel %vm4044_vm12, %v4756_v38, %v4867_v14  ;;  %v3621_v11 = vmax.f32 %v3619_v23, %v3620_v9  ;;  %v4147_v3 = vsel %vm4042_vm11, %v3607_v45, %v3600_v40  ;;  %v4482_v26 = vpack.c.bf16 %v3607_v45, %v3607_v45 }
 0x3f1   :  { %21624 = vst [vmem:[#allocation26_spill] sm:$0xff] %v17999_v35  ;;  %v4148_v58 = vsel %vm4044_vm12, %v3614_v29, %v4147_v3  ;;  %v4746_v7 = vunpack.c.l.b16 %v4481_v61  ;;  %v4748_v42 = vunpack.c.l.b16 %v4483_v24  ;;  %v2664_v18 = vcombine.high %v2104_v21, %v2104_v21 }
 0x3f2   :  { %v4484_v15 = vpack.c.bf16 %v3621_v11, %v3621_v11  ;;  %v4747_v8 = vunpack.c.l.b16 %v4482_v26  ;;  %v2671_v31 = vrot.slane %v2104_v21, %v17201_v27  ;;  %v2102_v10 = vmax.f32 %v17986_v16, 0.0 }
 0x3f3   :  { %v2678_v13 = vrot.slane %v2664_v18, %v17201_v27  ;;  %v18014_v53 = vsel %vm4046_vm13, %v3621_v11, %v4148_v58  ;;  %v4424_v23 = vpack.c.bf16 %v17635_v2, %v17635_v2  ;;  %v4432_v46 = vpack.c.bf16 %v21625_v37, %v21625_v37 }
 0x3f4   :  { %v18020_v63 = vunpack.c.l.b16 %v4484_v15  ;;  %v4860_v52 = vsel %vm4042_vm11, %v4747_v8, %v4746_v7  ;;  %v2679_v57 = vcombine.high %v2671_v31, %v2671_v31  ;;  %v3678_v40 = vsel %vm2809_vm10, %v2671_v31, -inf }
 0x3f5   :  { %v18025_v16 = vsel %vm4044_vm12, %v4748_v42, %v4860_v52  ;;  %v2680_v49 = vcombine.high %v2678_v13, %v2678_v13  ;;  %v3679_v54 = vrot.slane %v3678_v40, 4  ;;  %v3692_v59 = vsel %vm2809_vm10, %v2678_v13, -inf }
 0x3f6   :  { %v3685_v38 = vsel %vm2809_vm10, %v2679_v57, -inf  ;;  %v3693_v29 = vrot.slane %v3692_v59, 4  ;;  %v2630_v45 = vcombine.high %v2102_v10, %v2102_v10  ;;  %v2637_v9 = vrot.slane %v2102_v10, %v17201_v27 }
 0x3f7   :  { %v3680_v61 = vmax.f32 %v3678_v40, %v3679_v54  ;;  %v3686_v21 = vrot.slane %v3685_v38, 4  ;;  %v3699_v14 = vsel %vm2809_vm10, %v2680_v49, -inf  ;;  %v18031_v24 = vunpack.c.l.b16 %v4424_v23 }
 0x3f8   :  { %v3694_v11 = vmax.f32 %v3692_v59, %v3693_v29  ;;  %v3700_v3 = vrot.slane %v3699_v14, 4  ;;  %v2644_v26 = vrot.slane %v2630_v45, %v17201_v27  ;;  %v2645_v58 = vcombine.high %v2637_v9, %v2637_v9 }
 0x3f9   :  { %v3681_v7 = vrot.slane %v3680_v61, 2  ;;  %v3687_v42 = vmax.f32 %v3685_v38, %v3686_v21  ;;  %v3622_v18 = vsel %vm2809_vm10, %v2637_v9, -inf  ;;  %v18035_v15 = vunpack.c.l.b16 %v4432_v46 }
 0x3fa   :  { %v3695_v8 = vrot.slane %v3694_v11, 2  ;;  %v3701_v31 = vmax.f32 %v3699_v14, %v3700_v3  ;;  %v2646_v10 = vcombine.high %v2644_v26, %v2644_v26  ;;  %v3623_v13 = vrot.slane %v3622_v18, 4 }
 0x3fb   :  { %v3682_v52 = vmax.f32 %v3680_v61, %v3681_v7  ;;  %v3688_v57 = vrot.slane %v3687_v42, 2  ;;  %v3629_v23 = vsel %vm2809_vm10, %v2645_v58, -inf  ;;  %v3636_v40 = vsel %vm2809_vm10, %v2644_v26, -inf }
 0x3fc   :  { %v3696_v49 = vmax.f32 %v3694_v11, %v3695_v8  ;;  %v3702_v54 = vrot.slane %v3701_v31, 2  ;;  %v3624_v59 = vmax.f32 %v3622_v18, %v3623_v13  ;;  %v3630_v29 = vrot.slane %v3629_v23, 4 }
 0x3fd   :  { %v3683_v45 = vrot.slane %v3682_v52, 1  ;;  %v3689_v38 = vmax.f32 %v3687_v42, %v3688_v57  ;;  %v3637_v21 = vrot.slane %v3636_v40, 4  ;;  %v3643_v46 = vsel %vm2809_vm10, %v2646_v10, -inf }
 0x3fe   :  { %v3697_v9 = vrot.slane %v3696_v49, 1  ;;  %v3703_v27 = vmax.f32 %v3701_v31, %v3702_v54  ;;  %v3625_v14 = vrot.slane %v3624_v59, 2  ;;  %v3631_v3 = vmax.f32 %v3629_v23, %v3630_v29 }
 0x3ff   :  { %v3684_v37 = vmax.f32 %v3682_v52, %v3683_v45  ;;  %v3690_v61 = vrot.slane %v3689_v38, 1  ;;  %v3638_v7 = vmax.f32 %v3636_v40, %v3637_v21  ;;  %v3644_v2 = vrot.slane %v3643_v46, 4  ;;  %v21627_v21 = vld [vmem:[#allocation40_spill] sm:$0xff] }
 0x400   :  { %v3698_v58 = vmax.f32 %v3696_v49, %v3697_v9  ;;  %v3704_v35 = vrot.slane %v3703_v27, 1  ;;  %v3626_v26 = vmax.f32 %v3624_v59, %v3625_v14  ;;  %v3632_v11 = vrot.slane %v3631_v3, 2 }
 0x401   :  { %v3691_v8 = vmax.f32 %v3689_v38, %v3690_v61  ;;  %v4157_v18 = vsel %vm4048_vm14, %v3684_v37, %v18003_v47  ;;  %v4493_v42 = vpack.c.bf16 %v3684_v37, %v3684_v37  ;;  %v3639_v13 = vrot.slane %v3638_v7, 2  ;;  %v21626_v38 = vld [vmem:[#allocation41_spill] sm:$0xff] }
 0x402   :  { %v18042_v57 = vmax.f32 %v3703_v27, %v3704_v35  ;;  %v4495_v10 = vpack.c.bf16 %v3698_v58, %v3698_v58  ;;  %v3627_v31 = vrot.slane %v3626_v26, 1  ;;  %v3633_v54 = vmax.f32 %v3631_v3, %v3632_v11 }
 0x403   :  { %v4158_v52 = vsel %vm4050_vm15, %v3691_v8, %v4157_v18  ;;  %v4494_v23 = vpack.c.bf16 %v3691_v8, %v3691_v8  ;;  %v18045_v40 = vunpack.c.l.b16 %v4493_v42  ;;  %v3640_v49 = vmax.f32 %v3638_v7, %v3639_v13  ;;  %v21628_v7 = vld [vmem:[#allocation50_spill] sm:$0xff]  ;;  %v21629_v8 = vld [vmem:[#allocation51_spill] sm:$0xff] }
 0x404   :  { %v18048_v59 = vsel %vm4052_vm0, %v3698_v58, %v4158_v52  ;;  %v18050_v29 = vunpack.c.l.b16 %v4495_v10  ;;  %v3628_v45 = vmax.f32 %v3626_v26, %v3627_v31  ;;  %v3634_v47 = vrot.slane %v3633_v54, 1  ;;  %v21630_v42 = vld [vmem:[#allocation38_spill] sm:$0xff] }
 0x405   :  { %v18052_v37 = vunpack.c.l.b16 %v4494_v23  ;;  %v3641_v27 = vrot.slane %v3640_v49, 1  ;;  %v3645_v35 = vmax.f32 %v3643_v46, %v3644_v2  ;;  %v4806_v9 = vsel %vm4046_vm13, %v21627_v21, %v21626_v38  ;;  %v21631_v2 = vld [vmem:[#allocation39_spill] sm:$0xff]  ;;  %v21634_v38 = vld [vmem:[#allocation46_spill] sm:$0xff] }
 0x406   :  { %v3635_v14 = vmax.f32 %v3633_v54, %v3634_v47  ;;  %v4150_v3 = vsel %vm4048_vm14, %v3628_v45, %v18014_v53  ;;  %v4485_v61 = vpack.c.bf16 %v3628_v45, %v3628_v45  ;;  %v4807_v58 = vsel %vm4048_vm14, %v21628_v7, %v4806_v9  ;;  %v21632_v53 = vld [vmem:[#allocation52_spill] sm:$0xff]  ;;  %v21633_v45 = vld [vmem:[#allocation43_spill] sm:$0xff] }
 0x407   :  { %v18061_v11 = vmax.f32 %v3640_v49, %v3641_v27  ;;  %v3646_v26 = vrot.slane %v3645_v35, 2  ;;  %v4808_v18 = vsel %vm4050_vm15, %v21629_v8, %v4807_v58  ;;  %v4813_v46 = vsel %vm4046_vm13, %v21631_v2, %v21630_v42 }
 0x408   :  { %v18069_v13 = vsel %vm4050_vm15, %v3635_v14, %v4150_v3  ;;  %v4486_v10 = vpack.c.bf16 %v3635_v14, %v3635_v14  ;;  %v18071_v31 = vunpack.c.l.b16 %v4485_v61  ;;  %v4809_v54 = vsel %vm4052_vm0, %v21632_v53, %v4808_v18  ;;  %v21635_v61 = vld [vmem:[#allocation47_spill] sm:$0xff] }
 0x409   :  { %v3647_v52 = vmax.f32 %v3645_v35, %v3646_v26  ;;  %v4487_v23 = vpack.c.bf16 %v18061_v11, %v18061_v11  ;;  %v4810_v49 = vsel %vm4054_vm1, %v18031_v24, %v4809_v54  ;;  %v4814_v47 = vsel %vm4048_vm14, %v21633_v45, %v4813_v46  ;;  %v21636_v24 = vld [vmem:[#allocation56_spill] sm:$0xff]  ;;  %v21637_v53 = vld [vmem:[#allocation55_spill] sm:$0xff]  ;;  %v21638_v54 = vld [vmem:[#allocation54_spill] sm:$0xff] }
 0x40a   :  { %v4751_v27 = vunpack.c.l.b16 %v4486_v10  ;;  %v4815_v21 = vsel %vm4050_vm15, %v21634_v38, %v4814_v47  ;;  %v4440_v9 = vpack.c.bf16 %v17740_v62, %v17740_v62  ;;  %v4448_v14 = vpack.c.bf16 %v17693_v60, %v17693_v60 }
 0x40b   :  { %v3648_v35 = vrot.slane %v3647_v52, 1  ;;  %v4752_v3 = vunpack.c.l.b16 %v4487_v23  ;;  %v4816_v7 = vsel %vm4052_vm0, %v21635_v61, %v4815_v21  ;;  %v4820_v58 = vsel %vm4046_vm13, %v21636_v24, %v17673_v19 }
 0x40c   :  { %v4817_v26 = vsel %vm4054_vm1, %v18035_v15, %v4816_v7  ;;  %v4705_v8 = vunpack.c.l.b16 %v4440_v9  ;;  %v4713_v18 = vunpack.c.l.b16 %v4448_v14  ;;  %v4821_v42 = vsel %vm4048_vm14, %v17734_v48, %v4820_v58  ;;  %v21640_v14 = vld [vmem:[#allocation63_spill] sm:$0xff]  ;;  %v21641_v7 = vld [vmem:[#allocation64_spill] sm:$0xff] }
 0x40d   :  { %v18096_v2 = vmax.f32 %v3647_v52, %v3648_v35  ;;  %v4877_v46 = vpack.c.b16 %v4817_v26, %v4810_v49  ;;  %v4822_v10 = vsel %vm4050_vm15, %v17742_v39, %v4821_v42  ;;  %v4827_v23 = vsel %vm4046_vm13, %v21638_v54, %v21637_v53  ;;  %v21643_v54 = vld [vmem:[#allocation71_spill] sm:$0xff] }
 0x40e   :  { %v4823_v19 = vsel %vm4052_vm0, %v17744_v20, %v4822_v10  ;;  %v4828_v15 = vsel %vm4048_vm14, %v17689_v22, %v4827_v23  ;;  %v4456_v45 = vpack.c.bf16 %v17863_v33, %v17863_v33  ;;  %v4464_v48 = vpack.c.bf16 %v17813_v1, %v17813_v1 }
 0x40f   :  { %15159 = vmatmul.mubr.msk.bf16.gmra.mrb[36].mxu0 %vm1301_vm5, %v4877_v46  ;;  %v4824_v39 = vsel %vm4054_vm1, %v4705_v8, %v4823_v19  ;;  %v4829_v52 = vsel %vm4050_vm15, %v17697_v25, %v4828_v15  ;;  %v4834_v20 = vsel %vm4046_vm13, %v17794_v6, %v17791_v36  ;;  %v4841_v22 = vsel %vm4046_vm13, %v17773_v34, %v17780_v17  ;;  %v21639_v17 = vld [vmem:[#allocation67_spill] sm:$0xff] }
 0x410   :  { %v4830_v49 = vsel %vm4052_vm0, %v17702_v0, %v4829_v52  ;;  %v4721_v47 = vunpack.c.l.b16 %v4456_v45  ;;  %v4729_v38 = vunpack.c.l.b16 %v4464_v48  ;;  %v4835_v21 = vsel %vm4048_vm14, %v17852_v51, %v4834_v20  ;;  %v21645_v52 = vld [vmem:[#allocation26_spill] sm:$0xff] }
 0x411   :  { %v4831_v9 = vsel %vm4054_vm1, %v4713_v18, %v4830_v49  ;;  %v4836_v25 = vsel %vm4050_vm15, %v17865_v55, %v4835_v21  ;;  %v4842_v36 = vsel %vm4048_vm14, %v17820_v44, %v4841_v22  ;;  %v4472_v6 = vpack.c.bf16 %v17970_v4, %v17970_v4  ;;  %v21646_v49 = vld [vmem:[#allocation13_spill] sm:$0xff]  ;;  %v21647_v21 = vld [vmem:[#allocation20_spill] sm:$0xff] }
 0x412   :  { %v4878_v34 = vpack.c.b16 %v4831_v9, %v4824_v39  ;;  %v4837_v0 = vsel %vm4052_vm0, %v21639_v17, %v4836_v25  ;;  %v4843_v35 = vsel %vm4050_vm15, %v21640_v14, %v4842_v36  ;;  %v4480_v51 = vpack.c.bf16 %v17919_v43, %v17919_v43  ;;  %v21648_v9 = vld [vmem:[#allocation19_spill] sm:$0xff]  ;;  %v21649_v25 = vld [vmem:[#allocation18_spill] sm:$0xff] }
 0x413   :  { %v4838_v61 = vsel %vm4054_vm1, %v4721_v47, %v4837_v0  ;;  %v4844_v55 = vsel %vm4052_vm0, %v21641_v7, %v4843_v35  ;;  %v4737_v24 = vunpack.c.l.b16 %v4472_v6  ;;  %v4848_v44 = vsel %vm4046_vm13, %v17903_v50, %v17900_v41  ;;  %v21642_v50 = vld [vmem:[#allocation25_spill] sm:$0xff]  ;;  %v21650_v36 = vld [vmem:[#allocation15_spill] sm:$0xff] }
 0x414   :  { %15162 = vmatprep.mubr.msk.bf16.mxu0 %vm1301_vm5, %v4878_v34  ;;  %v4845_v58 = vsel %vm4054_vm1, %v4729_v38, %v4844_v55  ;;  %v4745_v26 = vunpack.c.l.b16 %v4480_v51  ;;  %v4849_v8 = vsel %vm4048_vm14, %v17957_v12, %v4848_v44  ;;  %v4855_v18 = vsel %vm4046_vm13, %v17885_v5, %v17889_v32  ;;  %v21653_v6 = vld [vmem:[#allocation21_spill] sm:$0xff]  ;;  %v21655_v7 = vld [vmem:[#allocation23_spill] sm:$0xff] }
 0x415   :  { %v4879_v42 = vpack.c.b16 %v4845_v58, %v4838_v61  ;;  %v4850_v46 = vsel %vm4050_vm15, %v17972_v28, %v4849_v8  ;;  %v4856_v10 = vsel %vm4048_vm14, %v17926_v56, %v4855_v18  ;;  %v4488_v41 = vpack.c.bf16 %v18096_v2, %v18096_v2  ;;  %v21644_v56 = vld [vmem:[#allocation72_spill] sm:$0xff]  ;;  %v21654_v34 = vld [vmem:[#allocation17_spill] sm:$0xff] }
 0x416   :  { %v4851_v53 = vsel %vm4052_vm0, %v21642_v50, %v4850_v46  ;;  %v4857_v12 = vsel %vm4050_vm15, %v21643_v54, %v4856_v10  ;;  %v4496_v23 = vpack.c.bf16 %v18042_v57, %v18042_v57  ;;  %v4862_v5 = vsel %vm4046_vm13, %v18020_v63, %v18025_v16  ;;  %v21660_v8 = vld [vmem:[#allocation32_spill] sm:$0xff]  ;;  %v21662_v46 = vld [vmem:[#allocation33_spill] sm:$0xff]  ;;  %v21664_v50 = vld [vmem:[#allocation27_spill] sm:$0xff] }
 0x417   :  { %15163 = vmatmul.mubr.msk.bf16.gmra.mrb[40].mxu0 %vm1301_vm5, %v4879_v42  ;;  %v4852_v32 = vsel %vm4054_vm1, %v4737_v24, %v4851_v53  ;;  %v4858_v28 = vsel %vm4052_vm0, %v21644_v56, %v4857_v12  ;;  %v4753_v19 = vunpack.c.l.b16 %v4488_v41  ;;  %v4863_v15 = vsel %vm4048_vm14, %v18071_v31, %v4862_v5  ;;  %v21657_v24 = vld [vmem:[#allocation22_spill] sm:$0xff]  ;;  %v21663_v41 = vld [vmem:[#allocation24_spill] sm:$0xff] }
 0x418   :  { %v4859_v45 = vsel %vm4054_vm1, %v4745_v26, %v4858_v28  ;;  %v4761_v48 = vunpack.c.l.b16 %v4496_v23  ;;  %v4864_v39 = vsel %vm4050_vm15, %v4751_v27, %v4863_v15  ;;  %v4869_v63 = vsel %vm4046_vm13, %v21645_v52, %v18006_v30  ;;  %v21659_v26 = vld [vmem:[#allocation34_spill] sm:$0xff]  ;;  %v21666_v15 = vld [vmem:[#allocation49_spill] sm:$0xff] }
 0x419   :  { %v4880_v16 = vpack.c.b16 %v4859_v45, %v4852_v32  ;;  %v4865_v20 = vsel %vm4052_vm0, %v4752_v3, %v4864_v39  ;;  %v4870_v22 = vsel %vm4048_vm14, %v18045_v40, %v4869_v63  ;;  %v3710_v47 = vand.u32 63, %v21646_v49  ;;  %v21665_v23 = vld [vmem:[#allocation30_spill] sm:$0xff]  ;;  %v21667_v45 = vld [vmem:[#allocation48_spill] sm:$0xff]  ;;  %v21674_v3 = vld [vmem:[#allocation59_spill] sm:$0xff] }
 0x41a   :  { %v4866_v38 = vsel %vm4054_vm1, %v4753_v19, %v4865_v20  ;;  %v4871_v31 = vsel %vm4050_vm15, %v18052_v37, %v4870_v22  ;;  %v4053_v27 = vsel %vm4052_vm0, %v21648_v9, %v21647_v21  ;;  %v4061_v30 = vsel %vm4052_vm0, %v21650_v36, %v21649_v25  ;;  %v21670_v22 = vld [vmem:[#allocation42_spill] sm:$0xff]  ;;  %v21672_v21 = vld [vmem:[#allocation45_spill] sm:$0xff] }
 0x41b   :  { %15166 = vmatprep.mubr.msk.bf16.mxu0 %vm1301_vm5, %v4880_v16  ;;  %v4872_v40 = vsel %vm4052_vm0, %v18050_v29, %v4871_v31  ;;  %vm18193_vm2 = vcmp.eq.s32.totalorder %v3710_v47, 0  ;;  %v18199_v37 = vsel %vm4054_vm1, %v21653_v6, %v4053_v27  ;;  %v18203_v17 = vsel %vm4054_vm1, %v21654_v34, %v4061_v30  ;;  %v21669_v16 = vld [vmem:[#allocation53_spill] sm:$0xff]  ;;  %v21671_v47 = vld [vmem:[#allocation44_spill] sm:$0xff]  ;;  %v21675_v34 = vld [vmem:[#allocation58_spill] sm:$0xff] }
 0x41c   :  { %v4873_v0 = vsel %vm4054_vm1, %v4761_v48, %v4872_v40  ;;  %v18209_v14 = vsel %vm4054_vm1, %v18042_v57, %v18048_v59  ;;  %v4177_v29 = vrot.slane %v18199_v37, 7  ;;  %v4178_v35 = vrot.slane %v18203_v17, 7  ;;  %v21673_v40 = vld [vmem:[#allocation60_spill] sm:$0xff] }
 0x41d   :  { %v4881_v51 = vpack.c.b16 %v4873_v0, %v4866_v38  ;;  %v4192_v61 = vrot.slane %v18209_v14, 7  ;;  %v21656_v55 = vrot.slane %v21655_v7, 7  ;;  %v21658_v44 = vrot.slane %v21657_v24, 7  ;;  %v21676_v0 = vld [vmem:[#allocation57_spill] sm:$0xff] }
 0x41e   :  { %v4082_v18 = vsel %vm4052_vm0, %v21660_v8, %v21659_v26  ;;  %v4207_v42 = vsel %vm906_vm3, %v4177_v29, %v4178_v35  ;;  %v4089_v53 = vsel %vm4052_vm0, %v21664_v50, %v21663_v41  ;;  %v4096_v48 = vsel %vm4052_vm0, %v21667_v45, %v21666_v15  ;;  %v21680_v41 = vld [vmem:[#allocation61_spill] sm:$0xff]  ;;  %v21683_v15 = vld [vmem:[#allocation35_spill] sm:$0xff] }
 0x41f   :  { %v4205_v58 = vsel %vm906_vm3, %v21658_v44, %v21656_v55  ;;  %v21661_v57 = vmov %v21658_v44  ;;  %v18231_v10 = vsel %vm4054_vm1, %v21662_v46, %v4082_v18  ;;  %15167 = vmatmul.mubr.msk.bf16.gmra.mrb[44].mxu0 %vm1301_vm5, %v4881_v51  ;;  %v4208_v54 = vsel %vm906_vm3, %v4192_v61, %v4177_v29 }
 0x420   :  { %v4206_v59 = vsel %vm906_vm3, %v4178_v35, %v21661_v57  ;;  %v18243_v5 = vsel %vm4054_vm1, %v21665_v23, %v4089_v53  ;;  %v4181_v32 = vrot.slane %v18231_v10, 7  ;;  %v4241_v56 = vsel %vm18193_vm2, 0.0, %v4208_v54  ;;  %v21677_v57 = vld [vmem:[#allocation66_spill] sm:$0xff] }
 0x421   :  { %v4354_v12 = vpack.c.bf16 %v4205_v58, %v4206_v59  ;;  %v4182_v28 = vrot.slane %v18243_v5, 7  ;;  %v4277_v19 = vrot.slane %v18231_v10, 1  ;;  %v4353_v39 = vpack.c.bf16 %v4207_v42, %v4241_v56  ;;  %v15624_v58 = vld [vmem:[#allocation3 + $0x48] sm:$0xff]   ;;  %v21678_v59 = vld [vmem:[#allocation65_spill] sm:$0xff] }
 0x422   :  { %v21668_v52 = vmov %v21656_v55  ;;  %v18259_v20 = vsel %vm4054_vm1, %v21669_v16, %v4096_v48  ;;  %v4103_v38 = vsel %vm4052_vm0, %v21671_v47, %v21670_v22  ;;  %v434_v25 = vadd.s32 64, %v21646_v49  ;;  %v21684_v48 = vld [vmem:[#allocation70_spill] sm:$0xff] }
 0x423   :  { %v4204_v63 = vsel %vm906_vm3, %v21668_v52, %v4181_v32  ;;  %v4203_v31 = vsel %vm906_vm3, %v4181_v32, %v4182_v28  ;;  %v18268_v9 = vsel %vm4054_vm1, %v21672_v21, %v4103_v38  ;;  %v4183_v27 = vrot.slane %v18259_v20, 7  ;;  %15178 = vmatprep.mubr.msk.bf16.mxu0 %vm1301_vm5, %v4353_v39  ;;  %v21685_v39 = vld [vmem:[#allocation69_spill] sm:$0xff] }
 0x424   :  { %v4355_v36 = vpack.c.bf16 %v4203_v31, %v4204_v63  ;;  %v4184_v30 = vrot.slane %v18268_v9, 7  ;;  %v4110_v6 = vsel %vm4052_vm0, %v21674_v3, %v21673_v40  ;;  %v4117_v29 = vsel %vm4052_vm0, %v21676_v0, %v21675_v34  ;;  %v15625_v63 = vld [vmem:[#allocation3 + $0x50] sm:$0xff]  }
 0x425   :  { %v4202_v35 = vsel %vm906_vm3, %v4182_v28, %v4183_v27  ;;  %v3766_v51 = vand.u32 63, %v434_v25  ;;  %v18284_v55 = vsel %vm4054_vm1, %v17740_v62, %v4110_v6  ;;  %v18288_v44 = vsel %vm4054_vm1, %v17693_v60, %v4117_v29  ;;  %v21679_v60 = vld [vmem:[#allocation62_spill] sm:$0xff] }
 0x426   :  { %v4201_v26 = vsel %vm906_vm3, %v4183_v27, %v4184_v30  ;;  %v4185_v8 = vrot.slane %v18284_v55, 7  ;;  %v4186_v18 = vrot.slane %v18288_v44, 7  ;;  %v4124_v42 = vsel %vm4052_vm0, %v21678_v59, %v21677_v57 }
 0x427   :  { %v4356_v46 = vpack.c.bf16 %v4201_v26, %v4202_v35  ;;  %vm3906_vm6 = vcmp.eq.s32.totalorder %v3766_v51, 0  ;;  %v18299_v62 = vsel %vm4054_vm1, %v17863_v33, %v4124_v42  ;;  %v4131_v50 = vsel %vm4052_vm0, %v21680_v41, %v21679_v60  ;;  %15179 = vmatmul.mubr.msk.bf16.vlgmr.msra.gmra.mrb[32].mxu0 %vm1301_vm5, %v4354_v12  ;;  %v21681_v33 = vld [vmem:[#allocation68_spill] sm:$0xff] }
 0x428   :  { %v4199_v53 = vsel %vm906_vm3, %v4185_v8, %v4186_v18  ;;  %v4200_v54 = vsel %vm906_vm3, %v4184_v30, %v4185_v8  ;;  %v18311_v23 = vsel %vm4054_vm1, %v17813_v1, %v4131_v50  ;;  %v4187_v32 = vrot.slane %v18299_v62, 7  ;;  %15195 = vmatpush3.bf16.msra.mxu0 %v21681_v33  ;;  %15182 = vmatprep.mubr.msk.bf16.mxu0 %vm1301_vm5, %v4355_v36  ;;  %v21682_v12 = vld [vmem:[#allocation36_spill] sm:$0xff]  ;;  %v21689_v33 = vld [vmem:[#allocation14_spill] sm:$0xff] }
 0x429   :  { %v4249_v56 = vsel %vm3906_vm6, 0.0, %v4200_v54  ;;  %v4188_v28 = vrot.slane %v18311_v23, 7  ;;  %v4138_v45 = vsel %vm4052_vm0, %v21683_v15, %v21682_v12  ;;  %v4145_v52 = vsel %vm4052_vm0, %v21685_v39, %v21684_v48  ;;  %15196 = vmatprep.subr.bf16.mxu0 %v15624_v58 }
 0x42a   :  { %v4357_v1 = vpack.c.bf16 %v4199_v53, %v4249_v56  ;;  %v18325_v16 = vsel %vm906_vm3, %v4186_v18, %v4187_v32  ;;  %v18329_v22 = vsel %vm4054_vm1, %v17970_v4, %v4138_v45  ;;  %v4146_v47 = vsel %vm4054_vm1, %v17919_v43, %v4145_v52 }
 0x42b   :  { %v4197_v38 = vsel %vm906_vm3, %v4187_v32, %v4188_v28  ;;  %v4189_v31 = vrot.slane %v18329_v22, 7  ;;  %v4190_v21 = vrot.slane %v4146_v47, 7  ;;  %v4152_v27 = vsel %vm4052_vm0, %v18061_v11, %v18069_v13  ;;  %v15626_v13 = vld [vmem:[#allocation3 + $0x58] sm:$0xff]  }
 0x42c   :  { %v4358_v25 = vpack.c.bf16 %v4197_v38, %v18325_v16  ;;  %v4153_v36 = vsel %vm4054_vm1, %v18096_v2, %v4152_v27  ;;  %v4273_v4 = vrot.slane %v18199_v37, 1  ;;  %v4274_v30 = vrot.slane %v18203_v17, 1  ;;  %15197 = vmatpush3.bf16.msra.mxu0 %v15624_v58  ;;  %v15627_v16 = vld [vmem:[%s21358_s7 + $0x80] ss:$8 sps:$4 sm:$0xff]   ;;  %v15630_v38 = vld [vmem:[%s21358_s7 + $0x90] ss:$8 sps:$4 sm:$0xff]  }
 0x42d   :  { %v4195_v43 = vsel %vm906_vm3, %v4189_v31, %v4190_v21  ;;  %v4196_v40 = vsel %vm906_vm3, %v4188_v28, %v4189_v31  ;;  %v4191_v3 = vrot.slane %v4153_v36, 7  ;;  %v4275_v6 = vrot.slane %v21657_v24, 1  ;;  %15198 = vmatprep.subr.bf16.mxu0 %v15625_v63  ;;  %v15635_v31 = vld [vmem:[%s21358_s7 + $0xa4] ss:$8 sps:$4 sm:$0xff]   ;;  %v15638_v27 = vld [vmem:[%s21358_s7 + $0xb4] ss:$8 sps:$4 sm:$0xff]  }
 0x42e   :  { %v4359_v11 = vpack.c.bf16 %v4195_v43, %v4196_v40  ;;  %v4303_v2 = vsel %vm1099_vm4, %v4273_v4, %v4274_v30  ;;  %v21686_v37 = vrot.slane %v21655_v7, 1  ;;  %v4278_v34 = vrot.slane %v18243_v5, 1  ;;  %v15642_v43 = vld [vmem:[%s21358_s7 + $0xd0] ss:$8 sps:$4 sm:$0xff]   ;;  %v18461_v40 = vld [vmem:[%s21357_s6] ss:$0 sm:$0xff] }
 0x42f   :  { %v4193_v24 = vsel %vm906_vm3, %v4191_v3, %v4192_v61  ;;  %v4194_v0 = vsel %vm906_vm3, %v4190_v21, %v4191_v3  ;;  %v4302_v51 = vsel %vm1099_vm4, %v4274_v30, %v4275_v6  ;;  %15183 = vmatmul.mubr.msk.bf16.gmra.mrb[36].mxu0 %vm1301_vm5, %v4356_v46  ;;  %v4279_v8 = vrot.slane %v18259_v20, 1  ;;  %v15633_v21 = vld [vmem:[%s21358_s7 + $0xa0] ss:$8 sps:$4 sm:$0xff]   ;;  %v15644_v30 = vld [vmem:[%s21358_s7 + $0xd4] ss:$8 sps:$4 sm:$0xff]  }
 0x430   :  { %v4300_v17 = vsel %vm1099_vm4, %v21686_v37, %v4277_v19  ;;  %v21687_v29 = vmov %v21686_v37  ;;  %v4360_v58 = vpack.c.bf16 %v4193_v24, %v4194_v0  ;;  %v5172_v5 = vpack.c.bf16 %v4302_v51, %v4303_v2  ;;  %15186 = vmatprep.mubr.msk.bf16.mxu0 %vm1301_vm5, %v4357_v1  ;;  %15199 = vmatpush3.bf16.msra.mxu0 %v15625_v63 }
 0x431   :  { %v4301_v35 = vsel %vm1099_vm4, %v4275_v6, %v21687_v29  ;;  %v4299_v61 = vsel %vm1099_vm4, %v4277_v19, %v4278_v34  ;;  %v18378_v7 = vadd.s32 56, %v21646_v49  ;;  %v4280_v18 = vrot.slane %v18268_v9, 1  ;;  %15200 = vmatprep.subr.bf16.mxu0 %v15626_v13  ;;  %v21690_v29 = vld [vmem:[#allocation16_spill] sm:$0xff] }
 0x432   :  { %v5173_v26 = vpack.c.bf16 %v4300_v17, %v4301_v35  ;;  %v4281_v57 = vrot.slane %v18284_v55, 1  ;;  %v4298_v59 = vsel %vm1099_vm4, %v4278_v34, %v4279_v8  ;;  %v4282_v20 = vrot.slane %v18288_v44, 1 }
 0x433   :  { %21688 = vst [vmem:[#allocation37_spill] sm:$0xff] %v18378_v7  ;;  %v4283_v42 = vrot.slane %v18299_v62, 1  ;;  %v4284_v10 = vrot.slane %v18311_v23, 1  ;;  %v5174_v46 = vpack.c.bf16 %v4298_v59, %v4299_v61  ;;  %v3759_v19 = vand.u32 63, %v18378_v7 }
 0x434   :  { %v4296_v60 = vsel %vm1099_vm4, %v4280_v18, %v4281_v57  ;;  %v4297_v9 = vsel %vm1099_vm4, %v4279_v8, %v4280_v18  ;;  %v4295_v41 = vsel %vm1099_vm4, %v4281_v57, %v4282_v20  ;;  %v4285_v44 = vrot.slane %v18329_v22, 1  ;;  %15201 = vmatpush3.bf16.msra.mxu0 %v15626_v13  ;;  %v15629_v22 = vld [vmem:[%s21358_s7 + $0x84] ss:$8 sps:$4 sm:$0xff]  }
 0x435   :  { %v4294_v55 = vsel %vm1099_vm4, %v4282_v20, %v4283_v42  ;;  %v4293_v62 = vsel %vm1099_vm4, %v4283_v42, %v4284_v10  ;;  %vm4264_vm7 = vcmp.eq.s32.totalorder %v3759_v19, 63  ;;  %v4286_v53 = vrot.slane %v4146_v47, 1  ;;  %v15632_v47 = vld [vmem:[%s21358_s7 + $0x94] ss:$8 sps:$4 sm:$0xff]   ;;  %6883 = vmatprep.subr.bf16.mxu0 %v15629_v22 }
 0x436   :  { %v5176_v50 = vpack.c.bf16 %v4294_v55, %v4295_v41  ;;  %v4287_v54 = vrot.slane %v4153_v36, 1  ;;  %v4344_v23 = vsel %vm4264_vm7, 0.0, %v4296_v60  ;;  %v4292_v32 = vsel %vm1099_vm4, %v4284_v10, %v4285_v44  ;;  %v15641_v36 = vld [vmem:[%s21358_s7 + $0xc4] ss:$8 sps:$4 sm:$0xff]  }
 0x437   :  { %v3815_v56 = vand.u32 63, %v21689_v33  ;;  %v4288_v28 = vrot.slane %v18209_v14, 1  ;;  %v5175_v12 = vpack.c.bf16 %v4344_v23, %v4297_v9  ;;  %v5177_v15 = vpack.c.bf16 %v4292_v32, %v4293_v62  ;;  %15187 = vmatmul.mubr.msk.bf16.gmra.mrb[40].mxu0 %vm1301_vm5, %v4358_v25  ;;  %v15636_v25 = vld [vmem:[%s21358_s7 + $0xb0] ss:$8 sps:$4 sm:$0xff]  }
 0x438   :  { %v4290_v45 = vsel %vm1099_vm4, %v4286_v53, %v4287_v54  ;;  %v4291_v48 = vsel %vm1099_vm4, %v4285_v44, %v4286_v53  ;;  %15190 = vmatprep.mubr.msk.bf16.mxu0 %vm1301_vm5, %v4359_v11  ;;  %vm16389_vm10 = vmmov 1  }
 0x439   :  { %v5178_v39 = vpack.c.bf16 %v4290_v45, %v4291_v48  ;;  %vm4272_vm8 = vcmp.eq.s32.totalorder %v3815_v56, 63  ;;  %v4289_v52 = vsel %vm1099_vm4, %v4287_v54, %v4288_v28  ;;  %v4304_v1 = vsel %vm1099_vm4, %v4288_v28, %v4273_v4  ;;  %v15639_v4 = vld [vmem:[%s21358_s7 + $0xc0] ss:$8 sps:$4 sm:$0xff]  }
 0x43a   :  { %v4352_v14 = vsel %vm4272_vm8, 0.0, %v4304_v1 }
 0x43b   :  { %v5179_v63 = vpack.c.bf16 %v4352_v14, %v4289_v52 }
 0x43f   :  { %15191 = vmatmul.mubr.msk.bf16.gmra.mrb[44].mxu0 %vm1301_vm5, %v4360_v58 }
 0x440   :  { %15202 = vmatprep.mubr.msk.bf16.mxu0 %vm1301_vm5, %v5172_v5 }
 0x447   :  { %15203 = vmatmul.mubr.msk.bf16.vlgmr.msra.gmra.mrb[32].mxu0 %vm1301_vm5, %v5173_v26 }
 0x448   :  { %15206 = vmatprep.mubr.msk.bf16.mxu0 %vm1301_vm5, %v5174_v46  ;;  %6884 = vmatpush1.bf16.msra.mxu0 %v15627_v16 }
 0x449   :  { %6885 = vmatprep.subr.bf16.mxu0 %v15632_v47 }
 0x44c   :  { %6886 = vmatpush1.bf16.msra.mxu0 %v15630_v38 }
 0x44d   :  { %6887 = vmatprep.subr.bf16.mxu0 %v15635_v31 }
 0x44f   :  { %15207 = vmatmul.mubr.msk.bf16.gmra.mrb[36].mxu0 %vm1301_vm5, %v5175_v12 }
 0x450   :  { %15210 = vmatprep.mubr.msk.bf16.mxu0 %vm1301_vm5, %v5176_v50  ;;  %6888 = vmatpush1.bf16.msra.mxu0 %v15633_v21 }
 0x451   :  { %6889 = vmatprep.subr.bf16.mxu0 %v15638_v27 }
 0x454   :  { %6890 = vmatpush1.bf16.msra.mxu0 %v15636_v25 }
 0x455   :  { %6891 = vmatprep.subr.bf16.mxu0 %v15641_v36 }
 0x457   :  { %15211 = vmatmul.mubr.msk.bf16.gmra.mrb[40].mxu0 %vm1301_vm5, %v5177_v15 }
 0x458   :  { %15214 = vmatprep.mubr.msk.bf16.mxu0 %vm1301_vm5, %v5178_v39  ;;  %6892 = vmatpush1.bf16.msra.mxu0 %v15639_v4 }
 0x459   :  { %6893 = vmatprep.subr.bf16.mxu0 %v15644_v30 }
 0x45c   :  { %6894 = vmatpush1.bf16.msra.mxu0 %v15642_v43 }
 0x45f   :  { %15215 = vmatmul.mubr.msk.bf16.gmra.mrb[44].mxu0 %vm1301_vm5, %v5179_v63  ;;  %vm5741_vm5 = vcmask 1041408  }
 0x51a   :  { %v15204_v3 = vpop.f32.mrb[32].mxu0 }
 0x51b   :  { %v5359_v6 = vadd.f32 %v15204_v3, %v18461_v40  ;;  %v5271_v11 = vpop.f32.mrb[33].mxu0 }
 0x51c   :  { %v5357_v13 = vadd.f32 %v18461_v40, %v5271_v11  ;;  %v15205_v2 = vpop.f32.mrb[34].mxu0 }
 0x51d   :  { %v5375_v37 = vmax.f32 %v5359_v6, 0.0  ;;  %v5360_v17 = vadd.f32 %v15205_v2, %v18461_v40  ;;  %v5274_v34 = vpop.f32.mrb[35].mxu0 }
 0x51e   :  { %v5373_v24 = vmax.f32 %v5357_v13, 0.0  ;;  %v18469_v5 = vadd.f32 %v18461_v40, %v5274_v34 }
 0x51f   :  { %v5439_v0 = vcombine.high %v5375_v37, %v5375_v37  ;;  %v5446_v35 = vrot.slane %v5375_v37, %v21690_v29  ;;  %v18473_v18 = vmax.f32 %v5360_v17, 0.0 }
 0x520   :  { %v5405_v51 = vcombine.high %v5373_v24, %v5373_v24  ;;  %v5412_v58 = vrot.slane %v5373_v24, %v21690_v29 }
 0x521   :  { %v5453_v26 = vrot.slane %v5439_v0, %v21690_v29  ;;  %v5454_v8 = vcombine.high %v5446_v35, %v5446_v35  ;;  %v5798_v61 = vsel %vm5741_vm5, %v5446_v35, -inf }
 0x522   :  { %v5799_v57 = vrot.slane %v5798_v61, 4  ;;  %v5419_v59 = vrot.slane %v5405_v51, %v21690_v29  ;;  %v5420_v20 = vcombine.high %v5412_v58, %v5412_v58  ;;  %v5742_v42 = vsel %vm5741_vm5, %v5412_v58, -inf  ;;  %v18477_v10 = vpop.f32.mrb[36].mxu0 }
 0x523   :  { %v5455_v46 = vcombine.high %v5453_v26, %v5453_v26  ;;  %v5805_v19 = vsel %vm5741_vm5, %v5454_v8, -inf  ;;  %v5812_v60 = vsel %vm5741_vm5, %v5453_v26, -inf  ;;  %v5743_v9 = vrot.slane %v5742_v42, 4  ;;  %v18481_v55 = vpop.f32.mrb[37].mxu0 }
 0x524   :  { %v5800_v41 = vmax.f32 %v5798_v61, %v5799_v57  ;;  %v5806_v44 = vrot.slane %v5805_v19, 4  ;;  %v5813_v62 = vrot.slane %v5812_v60, 4  ;;  %v5421_v50 = vcombine.high %v5419_v59, %v5419_v59  ;;  %v18483_v53 = vpop.f32.mrb[38].mxu0 }
 0x525   :  { %v5819_v54 = vsel %vm5741_vm5, %v5455_v46, -inf  ;;  %v5744_v23 = vmax.f32 %v5742_v42, %v5743_v9  ;;  %v5749_v32 = vsel %vm5741_vm5, %v5420_v20, -inf  ;;  %v5756_v33 = vsel %vm5741_vm5, %v5419_v59, -inf  ;;  %v18488_v56 = vpop.f32.mrb[39].mxu0 }
 0x526   :  { %v5801_v28 = vrot.slane %v5800_v41, 2  ;;  %v5807_v12 = vmax.f32 %v5805_v19, %v5806_v44  ;;  %v5814_v15 = vmax.f32 %v5812_v60, %v5813_v62  ;;  %v5820_v45 = vrot.slane %v5819_v54, 4 }
 0x527   :  { %v5745_v48 = vrot.slane %v5744_v23, 2  ;;  %v5750_v39 = vrot.slane %v5749_v32, 4  ;;  %v5757_v52 = vrot.slane %v5756_v33, 4  ;;  %v5763_v1 = vsel %vm5741_vm5, %v5421_v50, -inf }
 0x528   :  { %v5802_v14 = vmax.f32 %v5800_v41, %v5801_v28  ;;  %v5808_v63 = vrot.slane %v5807_v12, 2  ;;  %v5815_v16 = vrot.slane %v5814_v15, 2  ;;  %v5821_v22 = vmax.f32 %v5819_v54, %v5820_v45 }
 0x529   :  { %v5746_v47 = vmax.f32 %v5744_v23, %v5745_v48  ;;  %v5751_v38 = vmax.f32 %v5749_v32, %v5750_v39  ;;  %v5758_v31 = vmax.f32 %v5756_v33, %v5757_v52  ;;  %v5764_v21 = vrot.slane %v5763_v1, 4 }
 0x52a   :  { %v5803_v27 = vrot.slane %v5802_v14, 1  ;;  %v5809_v25 = vmax.f32 %v5807_v12, %v5808_v63  ;;  %v5816_v36 = vmax.f32 %v5814_v15, %v5815_v16  ;;  %v5822_v4 = vrot.slane %v5821_v22, 2  ;;  %v18491_v30 = vpop.f32.mrb[40].mxu0 }
 0x52b   :  { %v5747_v43 = vrot.slane %v5746_v47, 1  ;;  %v5752_v3 = vrot.slane %v5751_v38, 2  ;;  %v5759_v6 = vrot.slane %v5758_v31, 2  ;;  %v5765_v11 = vmax.f32 %v5763_v1, %v5764_v21  ;;  %v18493_v13 = vpop.f32.mrb[41].mxu0 }
 0x52c   :  { %v5804_v2 = vmax.f32 %v5802_v14, %v5803_v27  ;;  %v5810_v37 = vrot.slane %v5809_v25, 1  ;;  %v5817_v17 = vrot.slane %v5816_v36, 1  ;;  %v5823_v34 = vmax.f32 %v5821_v22, %v5822_v4  ;;  %v18495_v24 = vpop.f32.mrb[42].mxu0 }
 0x52d   :  { %v5748_v0 = vmax.f32 %v5746_v47, %v5747_v43  ;;  %v5753_v35 = vmax.f32 %v5751_v38, %v5752_v3  ;;  %v5760_v51 = vmax.f32 %v5758_v31, %v5759_v6  ;;  %v5766_v58 = vrot.slane %v5765_v11, 2  ;;  %v18497_v26 = vpop.f32.mrb[43].mxu0 }
 0x52e   :  { %v5811_v8 = vmax.f32 %v5809_v25, %v5810_v37  ;;  %v5818_v61 = vmax.f32 %v5816_v36, %v5817_v17  ;;  %v5824_v57 = vrot.slane %v5823_v34, 1  ;;  %v6538_v59 = vpack.c.bf16 %v5804_v2, %v5804_v2 }
 0x52f   :  { %v5754_v20 = vrot.slane %v5753_v35, 1  ;;  %v5761_v42 = vrot.slane %v5760_v51, 1  ;;  %v5767_v46 = vmax.f32 %v5765_v11, %v5766_v58  ;;  %v5456_v19 = vcombine.high %v18473_v18, %v18473_v18 }
 0x530   :  { %v5825_v60 = vmax.f32 %v5823_v34, %v5824_v57  ;;  %v6539_v9 = vpack.c.bf16 %v5811_v8, %v5811_v8  ;;  %v6540_v41 = vpack.c.bf16 %v5818_v61, %v5818_v61  ;;  %v6530_v44 = vpack.c.bf16 %v5748_v0, %v5748_v0 }
 0x531   :  { %v6365_v62 = vsel %vm4042_vm11, %v5811_v8, %v5804_v2  ;;  %v6683_v50 = vunpack.c.l.b16 %v6538_v59  ;;  %v5755_v54 = vmax.f32 %v5753_v35, %v5754_v20  ;;  %v5762_v23 = vmax.f32 %v5760_v51, %v5761_v42 }
 0x532   :  { %v6541_v32 = vpack.c.bf16 %v5825_v60, %v5825_v60  ;;  %v6684_v33 = vunpack.c.l.b16 %v6539_v9  ;;  %v6685_v28 = vunpack.c.l.b16 %v6540_v41  ;;  %v5768_v12 = vrot.slane %v5767_v46, 1  ;;  %v18502_v15 = vpop.f32.mrb[44].mxu0 }
 0x533   :  { %v6358_v45 = vsel %vm4042_vm11, %v5755_v54, %v5748_v0  ;;  %v6531_v48 = vpack.c.bf16 %v5755_v54, %v5755_v54  ;;  %v6532_v39 = vpack.c.bf16 %v5762_v23, %v5762_v23  ;;  %v5374_v52 = vmax.f32 %v18469_v5, 0.0  ;;  %v18506_v1 = vpop.f32.mrb[45].mxu0 }
 0x534   :  { %v6366_v14 = vsel %vm4044_vm12, %v5818_v61, %v6365_v62  ;;  %v6686_v63 = vunpack.c.l.b16 %v6541_v32  ;;  %v6746_v16 = vsel %vm4042_vm11, %v6684_v33, %v6683_v50  ;;  %v18510_v22 = vmax.f32 %v5767_v46, %v5768_v12  ;;  %v18512_v47 = vpop.f32.mrb[46].mxu0 }
 0x535   :  { %v6747_v38 = vsel %vm4044_vm12, %v6685_v28, %v6746_v16  ;;  %v6675_v31 = vunpack.c.l.b16 %v6530_v44  ;;  %v6676_v21 = vunpack.c.l.b16 %v6531_v48  ;;  %v5463_v27 = vrot.slane %v18473_v18, %v21690_v29  ;;  %v18517_v25 = vpop.f32.mrb[47].mxu0 }
 0x536   :  { %v18520_v5 = vsel %vm4044_vm12, %v5762_v23, %v6358_v45  ;;  %v6533_v36 = vpack.c.bf16 %v18510_v22, %v18510_v22  ;;  %v18524_v4 = vunpack.c.l.b16 %v6532_v39  ;;  %v5470_v43 = vrot.slane %v5456_v19, %v21690_v29  ;;  %v15647_v45 = vld [vmem:[%s21358_s7 + $0xe4] ss:$8 sps:$4 sm:$0xff]  }
 0x537   :  { %v5471_v3 = vcombine.high %v5463_v27, %v5463_v27  ;;  %v5826_v6 = vsel %vm5741_vm5, %v5463_v27, -inf  ;;  %v6367_v11 = vsel %vm4046_vm13, %v5825_v60, %v6366_v14  ;;  %v5422_v2 = vcombine.high %v5374_v52, %v5374_v52  ;;  %6895 = vmatprep.subr.bf16.mxu0 %v15647_v45 }
 0x538   :  { %v18530_v18 = vsel %vm4042_vm11, %v6676_v21, %v6675_v31  ;;  %v5472_v37 = vcombine.high %v5470_v43, %v5470_v43  ;;  %v5827_v17 = vrot.slane %v5826_v6, 4  ;;  %v18533_v34 = vsel %vm4046_vm13, %v6686_v63, %v6747_v38  ;;  %v15645_v63 = vld [vmem:[%s21358_s7 + $0xe0] ss:$8 sps:$4 sm:$0xff]  }
 0x539   :  { %v5833_v0 = vsel %vm5741_vm5, %v5471_v3, -inf  ;;  %v5840_v35 = vsel %vm5741_vm5, %v5470_v43, -inf  ;;  %v5429_v51 = vrot.slane %v5374_v52, %v21690_v29  ;;  %v5436_v58 = vrot.slane %v5422_v2, %v21690_v29  ;;  %6896 = vmatpush1.bf16.msra.mxu0 %v15645_v63 }
 0x53a   :  { %v5828_v8 = vmax.f32 %v5826_v6, %v5827_v17  ;;  %v5834_v61 = vrot.slane %v5833_v0, 4  ;;  %v5841_v57 = vrot.slane %v5840_v35, 4  ;;  %v5847_v59 = vsel %vm5741_vm5, %v5472_v37, -inf }
 0x53b   :  { %v5848_v20 = vrot.slane %v5847_v59, 4  ;;  %v5437_v42 = vcombine.high %v5429_v51, %v5429_v51  ;;  %v5438_v46 = vcombine.high %v5436_v58, %v5436_v58  ;;  %v5770_v19 = vsel %vm5741_vm5, %v5429_v51, -inf }
 0x53c   :  { %v5829_v60 = vrot.slane %v5828_v8, 2  ;;  %v5835_v9 = vmax.f32 %v5833_v0, %v5834_v61  ;;  %v5842_v41 = vmax.f32 %v5840_v35, %v5841_v57  ;;  %v5771_v44 = vrot.slane %v5770_v19, 4  ;;  %v15650_v35 = vld [vmem:[%s21358_s7 + $0xf4] ss:$8 sps:$4 sm:$0xff]   ;;  %v15648_v57 = vld [vmem:[%s21358_s7 + $0xf0] ss:$8 sps:$4 sm:$0xff]  }
 0x53d   :  { %v5849_v62 = vmax.f32 %v5847_v59, %v5848_v20  ;;  %v5777_v50 = vsel %vm5741_vm5, %v5437_v42, -inf  ;;  %v5784_v54 = vsel %vm5741_vm5, %v5436_v58, -inf  ;;  %v5791_v23 = vsel %vm5741_vm5, %v5438_v46, -inf  ;;  %6897 = vmatprep.subr.bf16.mxu0 %v15650_v35 }
 0x53e   :  { %v5830_v32 = vmax.f32 %v5828_v8, %v5829_v60  ;;  %v5836_v33 = vrot.slane %v5835_v9, 2  ;;  %v5843_v28 = vrot.slane %v5842_v41, 2  ;;  %v5772_v12 = vmax.f32 %v5770_v19, %v5771_v44  ;;  %6898 = vmatpush1.bf16.msra.mxu0 %v15648_v57 }
 0x53f   :  { %v5850_v48 = vrot.slane %v5849_v62, 2  ;;  %v5778_v39 = vrot.slane %v5777_v50, 4  ;;  %v5785_v52 = vrot.slane %v5784_v54, 4  ;;  %v5792_v14 = vrot.slane %v5791_v23, 4 }
 0x540   :  { %v5831_v16 = vrot.slane %v5830_v32, 1  ;;  %v5837_v38 = vmax.f32 %v5835_v9, %v5836_v33  ;;  %v5844_v31 = vmax.f32 %v5842_v41, %v5843_v28  ;;  %v5773_v21 = vrot.slane %v5772_v12, 2 }
 0x541   :  { %v5851_v27 = vmax.f32 %v5849_v62, %v5850_v48  ;;  %v5779_v43 = vmax.f32 %v5777_v50, %v5778_v39  ;;  %v5786_v3 = vmax.f32 %v5784_v54, %v5785_v52  ;;  %v5793_v6 = vmax.f32 %v5791_v23, %v5792_v14  ;;  %v15653_v54 = vld [vmem:[%s21358_s7 + $0x4] ss:$8 sps:$4 sm:$0xff]  }
 0x542   :  { %v5832_v2 = vmax.f32 %v5830_v32, %v5831_v16  ;;  %v5838_v37 = vrot.slane %v5837_v38, 1  ;;  %v5845_v17 = vrot.slane %v5844_v31, 1  ;;  %v5774_v0 = vmax.f32 %v5772_v12, %v5773_v21  ;;  %7036 = vmatprep.subr.bf16.mxu0 %v15653_v54 }
 0x543   :  { %v6678_v51 = vunpack.c.l.b16 %v6533_v36  ;;  %v5852_v58 = vrot.slane %v5851_v27, 1  ;;  %v5780_v8 = vrot.slane %v5779_v43, 2  ;;  %v5787_v61 = vrot.slane %v5786_v3, 2 }
 0x544   :  { %v5839_v59 = vmax.f32 %v5837_v38, %v5838_v37  ;;  %v5846_v20 = vmax.f32 %v5844_v31, %v5845_v17  ;;  %v6368_v42 = vsel %vm4048_vm14, %v5832_v2, %v6367_v11  ;;  %v6542_v46 = vpack.c.bf16 %v5832_v2, %v5832_v2 }
 0x545   :  { %v5853_v19 = vmax.f32 %v5851_v27, %v5852_v58  ;;  %v5775_v60 = vrot.slane %v5774_v0, 1  ;;  %v5781_v9 = vmax.f32 %v5779_v43, %v5780_v8  ;;  %v5788_v41 = vmax.f32 %v5786_v3, %v5787_v61 }
 0x546   :  { %v6369_v36 = vsel %vm4050_vm15, %v5839_v59, %v6368_v42  ;;  %v6543_v44 = vpack.c.bf16 %v5839_v59, %v5839_v59  ;;  %v6687_v62 = vunpack.c.l.b16 %v6542_v46  ;;  %v5794_v50 = vrot.slane %v5793_v6, 2 }
 0x547   :  { %v6740_v11 = vsel %vm4044_vm12, %v18524_v4, %v18530_v18  ;;  %v6370_v23 = vsel %vm4052_vm0, %v5846_v20, %v6369_v36  ;;  %v5776_v32 = vmax.f32 %v5774_v0, %v5775_v60  ;;  %v5782_v33 = vrot.slane %v5781_v9, 1 }
 0x548   :  { %v18566_v28 = vsel %vm4054_vm1, %v5853_v19, %v6370_v23  ;;  %v6544_v12 = vpack.c.bf16 %v5846_v20, %v5846_v20  ;;  %v18570_v45 = vsel %vm4048_vm14, %v6687_v62, %v18533_v34  ;;  %v6545_v48 = vpack.c.bf16 %v5853_v19, %v5853_v19 }
 0x549   :  { %21691 = vst [vmem:[#allocation28_spill] sm:$0xff] %v18566_v28  ;;  %v18572_v39 = vunpack.c.l.b16 %v6543_v44  ;;  %v5783_v52 = vmax.f32 %v5781_v9, %v5782_v33  ;;  %v5789_v14 = vrot.slane %v5788_v41, 1  ;;  %v5795_v63 = vmax.f32 %v5793_v6, %v5794_v50 }
 0x54a   :  { %v6360_v4 = vsel %vm4046_vm13, %v18510_v22, %v18520_v5  ;;  %v6534_v18 = vpack.c.bf16 %v5776_v32, %v5776_v32  ;;  %v6741_v16 = vsel %vm4046_vm13, %v6678_v51, %v6740_v11  ;;  %v5363_v34 = vadd.f32 %v18477_v10, %v18461_v40 }
 0x54b   :  { %v5790_v38 = vmax.f32 %v5788_v41, %v5789_v14  ;;  %v6361_v31 = vsel %vm4048_vm14, %v5776_v32, %v6360_v4  ;;  %v6535_v21 = vpack.c.bf16 %v5783_v52, %v5783_v52  ;;  %v5796_v27 = vrot.slane %v5795_v63, 1 }
 0x54c   :  { %v6362_v43 = vsel %vm4050_vm15, %v5783_v52, %v6361_v31  ;;  %v6679_v3 = vunpack.c.l.b16 %v6534_v18  ;;  %v5361_v6 = vadd.f32 %v18461_v40, %v18481_v55  ;;  %v18584_v2 = vunpack.c.l.b16 %v6544_v12 }
 0x54d   :  { %v6363_v22 = vsel %vm4052_vm0, %v5790_v38, %v6362_v43  ;;  %v6536_v5 = vpack.c.bf16 %v5790_v38, %v5790_v38  ;;  %v5379_v37 = vmax.f32 %v5363_v34, 0.0  ;;  %v18588_v0 = vmax.f32 %v5795_v63, %v5796_v27 }
 0x54e   :  { %v18591_v35 = vsel %vm4048_vm14, %v6679_v3, %v6741_v16  ;;  %v5377_v10 = vmax.f32 %v5361_v6, 0.0  ;;  %v18593_v51 = vunpack.c.l.b16 %v6545_v48  ;;  %v18595_v58 = vunpack.c.l.b16 %v6535_v21 }
 0x54f   :  { %v5507_v8 = vcombine.high %v5379_v37, %v5379_v37  ;;  %v5514_v55 = vrot.slane %v5379_v37, %v21690_v29  ;;  %v18600_v61 = vsel %vm4054_vm1, %v18588_v0, %v6363_v22  ;;  %v18605_v20 = vadd.f32 %v18483_v53, %v18461_v40 }
 0x550   :  { %21692 = vst [vmem:[#allocation29_spill] sm:$0xff] %v18600_v61  ;;  %v5473_v57 = vcombine.high %v5377_v10, %v5377_v10  ;;  %v5480_v59 = vrot.slane %v5377_v10, %v21690_v29  ;;  %v18607_v42 = vunpack.c.l.b16 %v6536_v5  ;;  %v18614_v44 = vadd.f32 %v18461_v40, %v18488_v56 }
 0x551   :  { %v5521_v46 = vrot.slane %v5507_v8, %v21690_v29  ;;  %v5522_v19 = vcombine.high %v5514_v55, %v5514_v55  ;;  %v5910_v60 = vsel %vm5741_vm5, %v5514_v55, -inf }
 0x552   :  { %v5911_v9 = vrot.slane %v5910_v60, 4  ;;  %v5487_v41 = vrot.slane %v5473_v57, %v21690_v29  ;;  %v5488_v36 = vcombine.high %v5480_v59, %v5480_v59  ;;  %v5854_v54 = vsel %vm5741_vm5, %v5480_v59, -inf }
 0x553   :  { %v5523_v62 = vcombine.high %v5521_v46, %v5521_v46  ;;  %v5917_v50 = vsel %vm5741_vm5, %v5522_v19, -inf  ;;  %v5924_v53 = vsel %vm5741_vm5, %v5521_v46, -inf  ;;  %v5855_v48 = vrot.slane %v5854_v54, 4 }
 0x554   :  { %v5912_v11 = vmax.f32 %v5910_v60, %v5911_v9  ;;  %v5918_v23 = vrot.slane %v5917_v50, 4  ;;  %v5925_v32 = vrot.slane %v5924_v53, 4  ;;  %v5489_v33 = vcombine.high %v5487_v41, %v5487_v41 }
 0x555   :  { %v5931_v12 = vsel %vm5741_vm5, %v5523_v62, -inf  ;;  %v5861_v52 = vsel %vm5741_vm5, %v5488_v36, -inf  ;;  %v5868_v14 = vsel %vm5741_vm5, %v5487_v41, -inf  ;;  %v5856_v16 = vmax.f32 %v5854_v54, %v5855_v48 }
 0x556   :  { %v5913_v56 = vrot.slane %v5912_v11, 2  ;;  %v5919_v63 = vmax.f32 %v5917_v50, %v5918_v23  ;;  %v5926_v4 = vmax.f32 %v5924_v53, %v5925_v32  ;;  %v5932_v18 = vrot.slane %v5931_v12, 4 }
 0x557   :  { %v5862_v38 = vrot.slane %v5861_v52, 4  ;;  %v5869_v31 = vrot.slane %v5868_v14, 4  ;;  %v5875_v21 = vsel %vm5741_vm5, %v5489_v33, -inf  ;;  %v5857_v6 = vrot.slane %v5856_v16, 2 }
 0x558   :  { %v5914_v34 = vmax.f32 %v5912_v11, %v5913_v56  ;;  %v5920_v27 = vrot.slane %v5919_v63, 2  ;;  %v5927_v43 = vrot.slane %v5926_v4, 2  ;;  %v5933_v3 = vmax.f32 %v5931_v12, %v5932_v18 }
 0x559   :  { %v5863_v22 = vmax.f32 %v5861_v52, %v5862_v38  ;;  %v5870_v5 = vmax.f32 %v5868_v14, %v5869_v31  ;;  %v5876_v37 = vrot.slane %v5875_v21, 4  ;;  %v5858_v59 = vmax.f32 %v5856_v16, %v5857_v6 }
 0x55a   :  { %v5915_v10 = vrot.slane %v5914_v34, 1  ;;  %v5921_v8 = vmax.f32 %v5919_v63, %v5920_v27  ;;  %v5928_v55 = vmax.f32 %v5926_v4, %v5927_v43  ;;  %v5934_v57 = vrot.slane %v5933_v3, 2 }
 0x55b   :  { %v5864_v46 = vrot.slane %v5863_v22, 2  ;;  %v5871_v19 = vrot.slane %v5870_v5, 2  ;;  %v5877_v60 = vmax.f32 %v5875_v21, %v5876_v37  ;;  %v5859_v50 = vrot.slane %v5858_v59, 1 }
 0x55c   :  { %v5916_v9 = vmax.f32 %v5914_v34, %v5915_v10  ;;  %v5922_v41 = vrot.slane %v5921_v8, 1  ;;  %v5929_v36 = vrot.slane %v5928_v55, 1  ;;  %v5935_v62 = vmax.f32 %v5933_v3, %v5934_v57 }
 0x55d   :  { %v5865_v53 = vmax.f32 %v5863_v22, %v5864_v46  ;;  %v5872_v54 = vmax.f32 %v5870_v5, %v5871_v19  ;;  %v5878_v11 = vrot.slane %v5877_v60, 2  ;;  %v5860_v48 = vmax.f32 %v5858_v59, %v5859_v50 }
 0x55e   :  { %v5923_v23 = vmax.f32 %v5921_v8, %v5922_v41  ;;  %v5930_v32 = vmax.f32 %v5928_v55, %v5929_v36  ;;  %v5936_v33 = vrot.slane %v5935_v62, 1  ;;  %v6554_v12 = vpack.c.bf16 %v5916_v9, %v5916_v9 }
 0x55f   :  { %v5866_v52 = vrot.slane %v5865_v53, 1  ;;  %v5873_v14 = vrot.slane %v5872_v54, 1  ;;  %v5879_v56 = vmax.f32 %v5877_v60, %v5878_v11  ;;  %v6537_v63 = vpack.c.bf16 %v18588_v0, %v18588_v0 }
 0x560   :  { %v5937_v4 = vmax.f32 %v5935_v62, %v5936_v33  ;;  %v6555_v18 = vpack.c.bf16 %v5923_v23, %v5923_v23  ;;  %v6556_v16 = vpack.c.bf16 %v5930_v32, %v5930_v32  ;;  %v6379_v31 = vsel %vm4042_vm11, %v5923_v23, %v5916_v9 }
 0x561   :  { %v5867_v21 = vmax.f32 %v5865_v53, %v5866_v52  ;;  %v5874_v34 = vmax.f32 %v5872_v54, %v5873_v14  ;;  %v6699_v43 = vunpack.c.l.b16 %v6554_v12  ;;  %v5880_v6 = vrot.slane %v5879_v56, 1 }
 0x562   :  { %v6557_v27 = vpack.c.bf16 %v5937_v4, %v5937_v4  ;;  %v6700_v3 = vunpack.c.l.b16 %v6555_v18  ;;  %v6546_v5 = vpack.c.bf16 %v5860_v48, %v5860_v48  ;;  %v18628_v8 = vunpack.c.l.b16 %v6537_v63 }
 0x563   :  { %v6372_v22 = vsel %vm4042_vm11, %v5867_v21, %v5860_v48  ;;  %v6547_v37 = vpack.c.bf16 %v5867_v21, %v5867_v21  ;;  %v6548_v10 = vpack.c.bf16 %v5874_v34, %v5874_v34  ;;  %v6380_v0 = vsel %vm4044_vm12, %v5930_v32, %v6379_v31 }
 0x564   :  { %v18631_v55 = vunpack.c.l.b16 %v6556_v16  ;;  %v18633_v57 = vmax.f32 %v5879_v56, %v5880_v6  ;;  %v18635_v59 = vunpack.c.l.b16 %v6557_v27  ;;  %v18638_v46 = vsel %vm4042_vm11, %v6700_v3, %v6699_v43 }
 0x565   :  { %v6373_v19 = vsel %vm4044_vm12, %v5874_v34, %v6372_v22  ;;  %v5380_v60 = vmax.f32 %v18605_v20, 0.0  ;;  %v18642_v9 = vunpack.c.l.b16 %v6546_v5  ;;  %v18644_v41 = vunpack.c.l.b16 %v6547_v37 }
 0x566   :  { %v18646_v36 = vunpack.c.l.b16 %v6548_v10  ;;  %v5378_v62 = vmax.f32 %v18614_v44, 0.0  ;;  %v6381_v11 = vsel %vm4046_vm13, %v5937_v4, %v6380_v0  ;;  %v6374_v20 = vsel %vm4046_vm13, %v18633_v57, %v6373_v19 }
 0x567   :  { %v5524_v53 = vcombine.high %v5380_v60, %v5380_v60  ;;  %v5531_v54 = vrot.slane %v5380_v60, %v21690_v29  ;;  %v5367_v33 = vadd.f32 %v18491_v30, %v18461_v40  ;;  %v18662_v52 = vadd.f32 %v18461_v40, %v18493_v13 }
 0x568   :  { %v5490_v23 = vcombine.high %v5378_v62, %v5378_v62  ;;  %v5497_v32 = vrot.slane %v5378_v62, %v21690_v29 }
 0x569   :  { %v5538_v12 = vrot.slane %v5524_v53, %v21690_v29  ;;  %v5539_v44 = vcombine.high %v5531_v54, %v5531_v54  ;;  %v5938_v48 = vsel %vm5741_vm5, %v5531_v54, -inf }
 0x56a   :  { %v5939_v14 = vrot.slane %v5938_v48, 4  ;;  %v5504_v56 = vrot.slane %v5490_v23, %v21690_v29  ;;  %v5505_v63 = vcombine.high %v5497_v32, %v5497_v32  ;;  %v5882_v4 = vsel %vm5741_vm5, %v5497_v32, -inf }
 0x56b   :  { %v5540_v18 = vcombine.high %v5538_v12, %v5538_v12  ;;  %v5945_v16 = vsel %vm5741_vm5, %v5539_v44, -inf  ;;  %v5952_v30 = vsel %vm5741_vm5, %v5538_v12, -inf  ;;  %v5883_v31 = vrot.slane %v5882_v4, 4 }
 0x56c   :  { %v5940_v21 = vmax.f32 %v5938_v48, %v5939_v14  ;;  %v5946_v34 = vrot.slane %v5945_v16, 4  ;;  %v5953_v27 = vrot.slane %v5952_v30, 4  ;;  %v5506_v43 = vcombine.high %v5504_v56, %v5504_v56 }
 0x56d   :  { %v5959_v3 = vsel %vm5741_vm5, %v5540_v18, -inf  ;;  %v5884_v13 = vmax.f32 %v5882_v4, %v5883_v31  ;;  %v5889_v6 = vsel %vm5741_vm5, %v5505_v63, -inf  ;;  %v5896_v22 = vsel %vm5741_vm5, %v5504_v56, -inf }
 0x56e   :  { %v5941_v5 = vrot.slane %v5940_v21, 2  ;;  %v5947_v37 = vmax.f32 %v5945_v16, %v5946_v34  ;;  %v5954_v10 = vmax.f32 %v5952_v30, %v5953_v27  ;;  %v5960_v0 = vrot.slane %v5959_v3, 4 }
 0x56f   :  { %v5885_v19 = vrot.slane %v5884_v13, 2  ;;  %v5890_v60 = vrot.slane %v5889_v6, 4  ;;  %v5897_v62 = vrot.slane %v5896_v22, 4  ;;  %v5903_v53 = vsel %vm5741_vm5, %v5506_v43, -inf }
 0x570   :  { %v5942_v54 = vmax.f32 %v5940_v21, %v5941_v5  ;;  %v5948_v23 = vrot.slane %v5947_v37, 2  ;;  %v5955_v32 = vrot.slane %v5954_v10, 2  ;;  %v5961_v12 = vmax.f32 %v5959_v3, %v5960_v0 }
 0x571   :  { %v5886_v44 = vmax.f32 %v5884_v13, %v5885_v19  ;;  %v5891_v48 = vmax.f32 %v5889_v6, %v5890_v60  ;;  %v5898_v14 = vmax.f32 %v5896_v22, %v5897_v62  ;;  %v5904_v4 = vrot.slane %v5903_v53, 4 }
 0x572   :  { %v5943_v63 = vrot.slane %v5942_v54, 1  ;;  %v5949_v18 = vmax.f32 %v5947_v37, %v5948_v23  ;;  %v5956_v56 = vmax.f32 %v5954_v10, %v5955_v32  ;;  %v5383_v31 = vmax.f32 %v5367_v33, 0.0 }
 0x573   :  { %v5887_v16 = vrot.slane %v5886_v44, 1  ;;  %v5892_v30 = vrot.slane %v5891_v48, 2  ;;  %v5899_v34 = vrot.slane %v5898_v14, 2  ;;  %v5905_v27 = vmax.f32 %v5903_v53, %v5904_v4 }
 0x574   :  { %v5944_v38 = vmax.f32 %v5942_v54, %v5943_v63  ;;  %v5950_v17 = vrot.slane %v5949_v18, 1  ;;  %v5957_v50 = vrot.slane %v5956_v56, 1  ;;  %v5962_v43 = vrot.slane %v5961_v12, 2 }
 0x575   :  { %v5888_v21 = vmax.f32 %v5886_v44, %v5887_v16  ;;  %v5893_v5 = vmax.f32 %v5891_v48, %v5892_v30  ;;  %v5900_v7 = vmax.f32 %v5898_v14, %v5899_v34  ;;  %v5906_v3 = vrot.slane %v5905_v27, 2 }
 0x576   :  { %v18675_v13 = vsel %vm4042_vm11, %v18644_v41, %v18642_v9  ;;  %v18677_v6 = vmax.f32 %v5949_v18, %v5950_v17  ;;  %v18680_v33 = vsel %vm4048_vm14, %v5944_v38, %v6381_v11  ;;  %v6558_v22 = vpack.c.bf16 %v5944_v38, %v5944_v38 }
 0x577   :  { %21693 = vst [vmem:[#allocation31_spill] sm:$0xff] %v18680_v33  ;;  %v21694_v37 = vpack.c.bf16 %v18633_v57, %v18633_v57  ;;  %v5894_v0 = vrot.slane %v5893_v5, 1  ;;  %v5901_v19 = vrot.slane %v5900_v7, 1  ;;  %v18688_v60 = vsel %vm4048_vm14, %v5888_v21, %v6374_v20 }
 0x578   :  { %21695 = vst [vmem:[#allocation41_spill] sm:$0xff] %v18688_v60  ;;  %v18690_v62 = vmax.f32 %v5956_v56, %v5957_v50  ;;  %v18692_v9 = vmax.f32 %v5961_v12, %v5962_v43  ;;  %v6550_v17 = vpack.c.bf16 %v5888_v21, %v5888_v21  ;;  %v5575_v41 = vcombine.high %v5383_v31, %v5383_v31 }
 0x579   :  { %v18685_v10 = vunpack.c.l.b16 %v21694_v37  ;;  %v18696_v38 = vmax.f32 %v5905_v27, %v5906_v3  ;;  %v5582_v57 = vrot.slane %v5383_v31, %v21690_v29  ;;  %v5381_v53 = vmax.f32 %v18662_v52, 0.0 }
 0x57a   :  { %v18700_v54 = vunpack.c.l.b16 %v6558_v22  ;;  %v18702_v23 = vmax.f32 %v5893_v5, %v5894_v0  ;;  %v18704_v20 = vmax.f32 %v5900_v7, %v5901_v19  ;;  %v5589_v50 = vrot.slane %v5575_v41, %v21690_v29 }
 0x57b   :  { %v18707_v32 = vunpack.c.l.b16 %v6550_v17  ;;  %v5590_v12 = vcombine.high %v5582_v57, %v5582_v57  ;;  %v6022_v44 = vsel %vm5741_vm5, %v5582_v57, -inf  ;;  %v5541_v48 = vcombine.high %v5381_v53, %v5381_v53 }
 0x57c   :  { %v5591_v14 = vcombine.high %v5589_v50, %v5589_v50  ;;  %v6023_v4 = vrot.slane %v6022_v44, 4  ;;  %v6036_v63 = vsel %vm5741_vm5, %v5589_v50, -inf  ;;  %v5548_v52 = vrot.slane %v5381_v53, %v21690_v29 }
 0x57d   :  { %v6029_v18 = vsel %vm5741_vm5, %v5590_v12, -inf  ;;  %v6037_v56 = vrot.slane %v6036_v63, 4  ;;  %v5555_v7 = vrot.slane %v5541_v48, %v21690_v29  ;;  %v5368_v31 = vadd.f32 %v18495_v24, %v18461_v40 }
 0x57e   :  { %v6024_v16 = vmax.f32 %v6022_v44, %v6023_v4  ;;  %v6030_v30 = vrot.slane %v6029_v18, 4  ;;  %v6043_v34 = vsel %vm5741_vm5, %v5591_v14, -inf  ;;  %v5556_v27 = vcombine.high %v5548_v52, %v5548_v52 }
 0x57f   :  { %v6038_v43 = vmax.f32 %v6036_v63, %v6037_v56  ;;  %v6044_v21 = vrot.slane %v6043_v34, 4  ;;  %v5557_v5 = vcombine.high %v5555_v7, %v5555_v7  ;;  %v5966_v3 = vsel %vm5741_vm5, %v5548_v52, -inf }
 0x580   :  { %v6025_v22 = vrot.slane %v6024_v16, 2  ;;  %v6031_v37 = vmax.f32 %v6029_v18, %v6030_v30  ;;  %v5967_v0 = vrot.slane %v5966_v3, 4  ;;  %v5973_v19 = vsel %vm5741_vm5, %v5556_v27, -inf }
 0x581   :  { %v6039_v17 = vrot.slane %v6038_v43, 2  ;;  %v6045_v41 = vmax.f32 %v6043_v34, %v6044_v21  ;;  %v5974_v57 = vrot.slane %v5973_v19, 4  ;;  %v5980_v24 = vsel %vm5741_vm5, %v5555_v7, -inf }
 0x582   :  { %v6026_v53 = vmax.f32 %v6024_v16, %v6025_v22  ;;  %v6032_v50 = vrot.slane %v6031_v37, 2  ;;  %v5968_v12 = vmax.f32 %v5966_v3, %v5967_v0  ;;  %v5981_v44 = vrot.slane %v5980_v24, 4 }
 0x583   :  { %v6040_v48 = vmax.f32 %v6038_v43, %v6039_v17  ;;  %v6046_v14 = vrot.slane %v6045_v41, 2  ;;  %v5975_v4 = vmax.f32 %v5973_v19, %v5974_v57  ;;  %v5987_v63 = vsel %vm5741_vm5, %v5557_v5, -inf }
 0x584   :  { %v6027_v52 = vrot.slane %v6026_v53, 1  ;;  %v6033_v56 = vmax.f32 %v6031_v37, %v6032_v50  ;;  %v5969_v18 = vrot.slane %v5968_v12, 2  ;;  %v5982_v30 = vmax.f32 %v5980_v24, %v5981_v44 }
 0x585   :  { %v6041_v11 = vrot.slane %v6040_v48, 1  ;;  %v6047_v27 = vmax.f32 %v6045_v41, %v6046_v14  ;;  %v5976_v33 = vrot.slane %v5975_v4, 2  ;;  %v5988_v34 = vrot.slane %v5987_v63, 4 }
 0x586   :  { %v6028_v21 = vmax.f32 %v6026_v53, %v6027_v52  ;;  %v6034_v60 = vrot.slane %v6033_v56, 1  ;;  %v5970_v7 = vmax.f32 %v5968_v12, %v5969_v18  ;;  %v5983_v16 = vrot.slane %v5982_v30, 2 }
 0x587   :  { %v6042_v22 = vmax.f32 %v6040_v48, %v6041_v11  ;;  %v6048_v3 = vrot.slane %v6047_v27, 1  ;;  %v5977_v0 = vmax.f32 %v5975_v4, %v5976_v33  ;;  %v5989_v43 = vmax.f32 %v5987_v63, %v5988_v34 }
 0x588   :  { %v6035_v17 = vmax.f32 %v6033_v56, %v6034_v60  ;;  %v5971_v19 = vrot.slane %v5970_v7, 1  ;;  %v5984_v57 = vmax.f32 %v5982_v30, %v5983_v16  ;;  %v5384_v5 = vmax.f32 %v5368_v31, 0.0 }
 0x589   :  { %v6049_v49 = vmax.f32 %v6047_v27, %v6048_v3  ;;  %v6570_v37 = vpack.c.bf16 %v6028_v21, %v6028_v21  ;;  %v5978_v50 = vrot.slane %v5977_v0, 1  ;;  %v5990_v24 = vrot.slane %v5989_v43, 2 }
 0x58a   :  { %v6393_v41 = vsel %vm4042_vm11, %v6035_v17, %v6028_v21  ;;  %v6571_v44 = vpack.c.bf16 %v6035_v17, %v6035_v17  ;;  %v6572_v14 = vpack.c.bf16 %v6042_v22, %v6042_v22  ;;  %v5972_v53 = vmax.f32 %v5970_v7, %v5971_v19 }
 0x58b   :  { %v6573_v11 = vpack.c.bf16 %v6049_v49, %v6049_v49  ;;  %v5979_v48 = vmax.f32 %v5977_v0, %v5978_v50  ;;  %v5366_v33 = vadd.f32 %v18461_v40, %v18497_v26  ;;  %v5985_v4 = vrot.slane %v5984_v57, 1 }
 0x58c   :  { %v6716_v60 = vunpack.c.l.b16 %v6571_v44  ;;  %v5991_v31 = vmax.f32 %v5989_v43, %v5990_v24  ;;  %v6562_v63 = vpack.c.bf16 %v5972_v53, %v5972_v53  ;;  %v6394_v52 = vsel %vm4044_vm12, %v6042_v22, %v6393_v41 }
 0x58d   :  { %v6715_v56 = vunpack.c.l.b16 %v6570_v37  ;;  %v6563_v18 = vpack.c.bf16 %v5979_v48, %v5979_v48  ;;  %v5592_v30 = vcombine.high %v5384_v5, %v5384_v5  ;;  %v18727_v27 = vunpack.c.l.b16 %v6572_v14 }
 0x58e   :  { %v18729_v34 = vunpack.c.l.b16 %v6573_v11  ;;  %v5986_v21 = vmax.f32 %v5984_v57, %v5985_v4  ;;  %v5992_v7 = vrot.slane %v5991_v31, 1  ;;  %v6386_v40 = vsel %vm4042_vm11, %v5979_v48, %v5972_v53 }
 0x58f   :  { %21696 = vst [vmem:[#allocation40_spill] sm:$0xff] %v18727_v27  ;;  %v18732_v16 = vsel %vm4042_vm11, %v6716_v60, %v6715_v56  ;;  %v5599_v26 = vrot.slane %v5384_v5, %v21690_v29  ;;  %v5606_v3 = vrot.slane %v5592_v30, %v21690_v29  ;;  %v6707_v0 = vunpack.c.l.b16 %v6562_v63 }
 0x590   :  { %21697 = vst [vmem:[#allocation50_spill] sm:$0xff] %v18729_v34  ;;  %21698 = vst [vmem:[#allocation51_spill] sm:$0xff] %v18732_v16  ;;  %v6708_v22 = vunpack.c.l.b16 %v6563_v18  ;;  %v6395_v43 = vsel %vm4046_vm13, %v6049_v49, %v6394_v52  ;;  %v5382_v17 = vmax.f32 %v5366_v33, 0.0  ;;  %v5993_v19 = vmax.f32 %v5991_v31, %v5992_v7 }
 0x591   :  { %v5607_v37 = vcombine.high %v5599_v26, %v5599_v26  ;;  %v5608_v50 = vcombine.high %v5606_v3, %v5606_v3  ;;  %v6050_v57 = vsel %vm5741_vm5, %v5599_v26, -inf  ;;  %v6387_v24 = vsel %vm4044_vm12, %v5986_v21, %v6386_v40 }
 0x592   :  { %v6564_v41 = vpack.c.bf16 %v5986_v21, %v5986_v21  ;;  %v6051_v44 = vrot.slane %v6050_v57, 4  ;;  %v6064_v14 = vsel %vm5741_vm5, %v5606_v3, -inf  ;;  %v5558_v48 = vcombine.high %v5382_v17, %v5382_v17 }
 0x593   :  { %v6057_v5 = vsel %vm5741_vm5, %v5607_v37, -inf  ;;  %v6065_v53 = vrot.slane %v6064_v14, 4  ;;  %v6071_v11 = vsel %vm5741_vm5, %v5608_v50, -inf  ;;  %v18744_v49 = vsel %vm4042_vm11, %v6708_v22, %v6707_v0 }
 0x594   :  { %v6052_v33 = vmax.f32 %v6050_v57, %v6051_v44  ;;  %v6058_v60 = vrot.slane %v6057_v5, 4  ;;  %v6072_v4 = vrot.slane %v6071_v11, 4  ;;  %v6565_v31 = vpack.c.bf16 %v5993_v19, %v5993_v19  ;;  %v18754_v57 = vld [vmem:[%s21357_s6] ss:$0 sm:$0xff] }
 0x595   :  { %v6066_v63 = vmax.f32 %v6064_v14, %v6065_v53  ;;  %v5565_v52 = vrot.slane %v5382_v17, %v21690_v29  ;;  %v5572_v56 = vrot.slane %v5558_v48, %v21690_v29  ;;  %v18748_v18 = vunpack.c.l.b16 %v6564_v41 }
 0x596   :  { %v6053_v30 = vrot.slane %v6052_v33, 2  ;;  %v6059_v21 = vmax.f32 %v6057_v5, %v6058_v60  ;;  %v6073_v7 = vmax.f32 %v6071_v11, %v6072_v4  ;;  %v5371_v17 = vadd.f32 %v18754_v57, %v18502_v15 }
 0x597   :  { %v6067_v40 = vrot.slane %v6066_v63, 2  ;;  %v5573_v26 = vcombine.high %v5565_v52, %v5565_v52  ;;  %v5574_v3 = vcombine.high %v5572_v56, %v5572_v56  ;;  %v5994_v0 = vsel %vm5741_vm5, %v5565_v52, -inf }
 0x598   :  { %v6054_v22 = vmax.f32 %v6052_v33, %v6053_v30  ;;  %v6060_v37 = vrot.slane %v6059_v21, 2  ;;  %v5995_v50 = vrot.slane %v5994_v0, 4  ;;  %v6008_v14 = vsel %vm5741_vm5, %v5572_v56, -inf }
 0x599   :  { %v6068_v41 = vmax.f32 %v6066_v63, %v6067_v40  ;;  %v6001_v44 = vsel %vm5741_vm5, %v5573_v26, -inf  ;;  %v6015_v5 = vsel %vm5741_vm5, %v5574_v3, -inf  ;;  %v6074_v48 = vrot.slane %v6073_v7, 2 }
 0x59a   :  { %v6055_v53 = vrot.slane %v6054_v22, 1  ;;  %v6061_v11 = vmax.f32 %v6059_v21, %v6060_v37  ;;  %v5996_v33 = vmax.f32 %v5994_v0, %v5995_v50  ;;  %v6002_v4 = vrot.slane %v6001_v44, 4 }
 0x59b   :  { %v6069_v60 = vrot.slane %v6068_v41, 1  ;;  %v6009_v52 = vrot.slane %v6008_v14, 4  ;;  %v6016_v30 = vrot.slane %v6015_v5, 4  ;;  %v5387_v34 = vmax.f32 %v5371_v17, 0.0 }
 0x59c   :  { %v6056_v12 = vmax.f32 %v6054_v22, %v6055_v53  ;;  %v6062_v61 = vrot.slane %v6061_v11, 1  ;;  %v5997_v28 = vrot.slane %v5996_v33, 2  ;;  %v18761_v15 = vunpack.c.l.b16 %v6565_v31 }
 0x59d   :  { %v6003_v63 = vmax.f32 %v6001_v44, %v6002_v4  ;;  %v6010_v40 = vmax.f32 %v6008_v14, %v6009_v52  ;;  %v6017_v26 = vmax.f32 %v6015_v5, %v6016_v30  ;;  %v6388_v27 = vsel %vm4046_vm13, %v5993_v19, %v6387_v24 }
 0x59e   :  { %21699 = vst [vmem:[#allocation38_spill] sm:$0xff] %v18761_v15  ;;  %v18763_v56 = vmax.f32 %v6061_v11, %v6062_v61  ;;  %v6396_v3 = vsel %vm4048_vm14, %v6056_v12, %v6395_v43  ;;  %v6574_v21 = vpack.c.bf16 %v6056_v12, %v6056_v12  ;;  %v5998_v37 = vmax.f32 %v5996_v33, %v5997_v28 }
 0x59f   :  { %v6004_v0 = vrot.slane %v6003_v63, 2  ;;  %v6011_v50 = vrot.slane %v6010_v40, 2  ;;  %v5643_v16 = vcombine.high %v5387_v34, %v5387_v34  ;;  %v18767_v22 = vmax.f32 %v6068_v41, %v6069_v60 }
 0x5a0   :  { %v18769_v53 = vmax.f32 %v6073_v7, %v6074_v48  ;;  %v18773_v31 = vsel %vm4050_vm15, %v18763_v56, %v6396_v3  ;;  %v5999_v17 = vrot.slane %v5998_v37, 1  ;;  %v6018_v14 = vrot.slane %v6017_v26, 2 }
 0x5a1   :  { %21700 = vst [vmem:[#allocation39_spill] sm:$0xff] %v18773_v31  ;;  %v6005_v61 = vmax.f32 %v6003_v63, %v6004_v0  ;;  %v6012_v44 = vmax.f32 %v6010_v40, %v6011_v50  ;;  %v5650_v12 = vrot.slane %v5387_v34, %v21690_v29  ;;  %v18778_v43 = vunpack.c.l.b16 %v6574_v21 }
 0x5a2   :  { %v6000_v19 = vmax.f32 %v5998_v37, %v5999_v17  ;;  %v5657_v24 = vrot.slane %v5643_v16, %v21690_v29  ;;  %v5369_v11 = vadd.f32 %v18754_v57, %v18506_v1  ;;  %v18789_v16 = vmax.f32 %v6017_v26, %v6018_v14 }
 0x5a3   :  { %21701 = vst [vmem:[#allocation52_spill] sm:$0xff] %v18778_v43  ;;  %v6006_v7 = vrot.slane %v6005_v61, 1  ;;  %v5658_v41 = vcombine.high %v5650_v12, %v5650_v12  ;;  %v6134_v5 = vsel %vm5741_vm5, %v5650_v12, -inf  ;;  %v6013_v48 = vrot.slane %v6012_v44, 1 }
 0x5a4   :  { %v6389_v33 = vsel %vm4048_vm14, %v6000_v19, %v6388_v27  ;;  %v5659_v60 = vcombine.high %v5657_v24, %v5657_v24  ;;  %v6135_v34 = vrot.slane %v6134_v5, 4  ;;  %v6566_v52 = vpack.c.bf16 %v6000_v19, %v6000_v19 }
 0x5a5   :  { %v18785_v4 = vmax.f32 %v6005_v61, %v6006_v7  ;;  %v6141_v30 = vsel %vm5741_vm5, %v5658_v41, -inf  ;;  %v6148_v63 = vsel %vm5741_vm5, %v5657_v24, -inf  ;;  %v5385_v37 = vmax.f32 %v5369_v11, 0.0 }
 0x5a6   :  { %v6136_v40 = vmax.f32 %v6134_v5, %v6135_v34  ;;  %v6142_v3 = vrot.slane %v6141_v30, 4  ;;  %v6149_v21 = vrot.slane %v6148_v63, 4  ;;  %v6155_v27 = vsel %vm5741_vm5, %v5659_v60, -inf }
 0x5a7   :  { %v18793_v1 = vsel %vm4050_vm15, %v18785_v4, %v6389_v33  ;;  %v5372_v0 = vadd.f32 %v18754_v57, %v18512_v47  ;;  %v6156_v12 = vrot.slane %v6155_v27, 4  ;;  %v18798_v19 = vmax.f32 %v6012_v44, %v6013_v48 }
 0x5a8   :  { %21702 = vst [vmem:[#allocation43_spill] sm:$0xff] %v18793_v1  ;;  %v6137_v50 = vrot.slane %v6136_v40, 2  ;;  %v6143_v17 = vmax.f32 %v6141_v30, %v6142_v3  ;;  %v6150_v61 = vmax.f32 %v6148_v63, %v6149_v21  ;;  %v18800_v26 = vunpack.c.l.b16 %v6566_v52  ;;  %v15699_v30 = vld [vmem:[#allocation5 + $0x200] ss:$16 sps:$4 sm:$0xff]   ;;  %v15701_v63 = vld [vmem:[#allocation5 + $0x204] ss:$16 sps:$4 sm:$0xff]  }
 0x5a9   :  { %v5609_v14 = vcombine.high %v5385_v37, %v5385_v37  ;;  %v5616_v24 = vrot.slane %v5385_v37, %v21690_v29  ;;  %v6157_v33 = vmax.f32 %v6155_v27, %v6156_v12  ;;  %v5388_v34 = vmax.f32 %v5372_v0, 0.0  ;;  %v15704_v21 = vld [vmem:[#allocation5 + $0x224] ss:$16 sps:$4 sm:$0xff]   ;;  %9228 = vmatprep.subr.bf16.mxu1 %v15701_v63  ;;  %v15702_v0 = vld [vmem:[#allocation5 + $0x220] ss:$16 sps:$4 sm:$0xff]  }
 0x5aa   :  { %21703 = vst [vmem:[#allocation46_spill] sm:$0xff] %v18800_v26  ;;  %v6138_v7 = vmax.f32 %v6136_v40, %v6137_v50  ;;  %v6144_v41 = vrot.slane %v6143_v17, 2  ;;  %v6151_v5 = vrot.slane %v6150_v61, 2  ;;  %9229 = vmatpush1.bf16.msra.mxu1 %v15699_v30 }
 0x5ab   :  { %v5623_v11 = vrot.slane %v5609_v14, %v21690_v29  ;;  %v5624_v60 = vcombine.high %v5616_v24, %v5616_v24  ;;  %v6078_v47 = vsel %vm5741_vm5, %v5616_v24, -inf  ;;  %v6158_v52 = vrot.slane %v6157_v33, 2  ;;  %9230 = vmatprep.subr.bf16.mxu1 %v15704_v21 }
 0x5ac   :  { %v6139_v3 = vrot.slane %v6138_v7, 1  ;;  %v6145_v44 = vmax.f32 %v6143_v17, %v6144_v41  ;;  %v6152_v48 = vmax.f32 %v6150_v61, %v6151_v5  ;;  %v6079_v31 = vrot.slane %v6078_v47, 4  ;;  %v15707_v61 = vld [vmem:[#allocation5 + $0x244] ss:$16 sps:$4 sm:$0xff]  }
 0x5ad   :  { %v5625_v28 = vcombine.high %v5623_v11, %v5623_v11  ;;  %v6085_v40 = vsel %vm5741_vm5, %v5624_v60, -inf  ;;  %v6092_v37 = vsel %vm5741_vm5, %v5623_v11, -inf  ;;  %v6159_v14 = vmax.f32 %v6157_v33, %v6158_v52 }
 0x5ae   :  { %v6140_v27 = vmax.f32 %v6138_v7, %v6139_v3  ;;  %v6146_v50 = vrot.slane %v6145_v44, 1  ;;  %v6153_v12 = vrot.slane %v6152_v48, 1  ;;  %v6080_v24 = vmax.f32 %v6078_v47, %v6079_v31  ;;  %9231 = vmatpush1.bf16.msra.mxu1 %v15702_v0  ;;  %v15705_v47 = vld [vmem:[#allocation5 + $0x240] ss:$16 sps:$4 sm:$0xff]  }
 0x5af   :  { %v6086_v1 = vrot.slane %v6085_v40, 4  ;;  %v6093_v43 = vrot.slane %v6092_v37, 4  ;;  %v6099_v17 = vsel %vm5741_vm5, %v5625_v28, -inf  ;;  %v6160_v26 = vrot.slane %v6159_v14, 1  ;;  %9232 = vmatprep.subr.bf16.mxu1 %v15707_v61 }
 0x5b0   :  { %v6147_v41 = vmax.f32 %v6145_v44, %v6146_v50  ;;  %v6154_v5 = vmax.f32 %v6152_v48, %v6153_v12  ;;  %v6586_v60 = vpack.c.bf16 %v6140_v27, %v6140_v27  ;;  %v6081_v15 = vrot.slane %v6080_v24, 2 }
 0x5b1   :  { %v6087_v11 = vmax.f32 %v6085_v40, %v6086_v1  ;;  %v6094_v63 = vmax.f32 %v6092_v37, %v6093_v43  ;;  %v6100_v7 = vrot.slane %v6099_v17, 4  ;;  %v18808_v3 = vmax.f32 %v6159_v14, %v6160_v26  ;;  %v15710_v1 = vld [vmem:[#allocation5 + $0x264] ss:$16 sps:$4 sm:$0xff]  }
 0x5b2   :  { %v6407_v33 = vsel %vm4042_vm11, %v6147_v41, %v6140_v27  ;;  %v6587_v30 = vpack.c.bf16 %v6147_v41, %v6147_v41  ;;  %v5660_v31 = vcombine.high %v5388_v34, %v5388_v34  ;;  %v6082_v52 = vmax.f32 %v6080_v24, %v6081_v15  ;;  %9233 = vmatpush1.bf16.msra.mxu1 %v15705_v47 }
 0x5b3   :  { %v6088_v44 = vrot.slane %v6087_v11, 2  ;;  %v5370_v48 = vadd.f32 %v18754_v57, %v18517_v25  ;;  %v6408_v43 = vsel %vm4044_vm12, %v6154_v5, %v6407_v33  ;;  %v6588_v26 = vpack.c.bf16 %v6154_v5, %v6154_v5  ;;  %v15708_v25 = vld [vmem:[#allocation5 + $0x260] ss:$16 sps:$4 sm:$0xff]   ;;  %9234 = vmatprep.subr.bf16.mxu1 %v15710_v1 }
 0x5b4   :  { %v6731_v21 = vunpack.c.l.b16 %v6586_v60  ;;  %v6095_v40 = vrot.slane %v6094_v63, 2  ;;  %v6083_v37 = vrot.slane %v6082_v52, 1  ;;  %v6101_v50 = vmax.f32 %v6099_v17, %v6100_v7 }
 0x5b5   :  { %v6089_v27 = vmax.f32 %v6087_v11, %v6088_v44  ;;  %v5667_v12 = vrot.slane %v5388_v34, %v21690_v29  ;;  %v6589_v14 = vpack.c.bf16 %v18808_v3, %v18808_v3  ;;  %v6732_v15 = vunpack.c.l.b16 %v6587_v30 }
 0x5b6   :  { %v6096_v0 = vmax.f32 %v6094_v63, %v6095_v40  ;;  %v5674_v24 = vrot.slane %v5660_v31, %v21690_v29  ;;  %v6084_v57 = vmax.f32 %v6082_v52, %v6083_v37  ;;  %v6102_v41 = vrot.slane %v6101_v50, 2  ;;  %9235 = vmatpush1.bf16.msra.mxu1 %v15708_v25 }
 0x5b7   :  { %v6090_v61 = vrot.slane %v6089_v27, 1  ;;  %v5675_v5 = vcombine.high %v5667_v12, %v5667_v12  ;;  %v6162_v17 = vsel %vm5741_vm5, %v5667_v12, -inf  ;;  %v18824_v40 = vunpack.c.l.b16 %v6588_v26 }
 0x5b8   :  { %v6097_v60 = vrot.slane %v6096_v0, 1  ;;  %v5676_v33 = vcombine.high %v5674_v24, %v5674_v24  ;;  %v6176_v34 = vsel %vm5741_vm5, %v5674_v24, -inf  ;;  %v6103_v7 = vmax.f32 %v6101_v50, %v6102_v41 }
 0x5b9   :  { %v6091_v11 = vmax.f32 %v6089_v27, %v6090_v61  ;;  %v6578_v44 = vpack.c.bf16 %v6084_v57, %v6084_v57  ;;  %v6163_v30 = vrot.slane %v6162_v17, 4  ;;  %v6169_v31 = vsel %vm5741_vm5, %v5675_v5, -inf  ;;  %21704 = vst [vmem:[#allocation47_spill] sm:$0xff] %v18824_v40 }
 0x5ba   :  { %v6098_v63 = vmax.f32 %v6096_v0, %v6097_v60  ;;  %v6177_v47 = vrot.slane %v6176_v34, 4  ;;  %v6183_v52 = vsel %vm5741_vm5, %v5676_v33, -inf  ;;  %v18826_v1 = vunpack.c.l.b16 %v6589_v14 }
 0x5bb   :  { %v6104_v37 = vrot.slane %v6103_v7, 1  ;;  %v6579_v28 = vpack.c.bf16 %v6091_v11, %v6091_v11  ;;  %v6400_v12 = vsel %vm4042_vm11, %v6091_v11, %v6084_v57  ;;  %v6164_v27 = vmax.f32 %v6162_v17, %v6163_v30 }
 0x5bc   :  { %21705 = vst [vmem:[#allocation56_spill] sm:$0xff] %v18826_v1  ;;  %v6580_v24 = vpack.c.bf16 %v6098_v63, %v6098_v63  ;;  %v6170_v50 = vrot.slane %v6169_v31, 4  ;;  %v6178_v0 = vmax.f32 %v6176_v34, %v6177_v47  ;;  %v6184_v60 = vrot.slane %v6183_v52, 4 }
 0x5bd   :  { %v6105_v61 = vmax.f32 %v6103_v7, %v6104_v37  ;;  %v6724_v41 = vunpack.c.l.b16 %v6579_v28  ;;  %v18830_v5 = vsel %vm4042_vm11, %v6732_v15, %v6731_v21  ;;  %v6723_v33 = vunpack.c.l.b16 %v6578_v44 }
 0x5be   :  { %v6165_v25 = vrot.slane %v6164_v27, 2  ;;  %v6171_v26 = vmax.f32 %v6169_v31, %v6170_v50  ;;  %v6401_v14 = vsel %vm4044_vm12, %v6098_v63, %v6400_v12  ;;  %v18833_v1 = vunpack.c.l.b16 %v6580_v24 }
 0x5bf   :  { %v6179_v40 = vrot.slane %v6178_v0, 2  ;;  %v6409_v57 = vsel %vm4046_vm13, %v18808_v3, %v6408_v43  ;;  %v6581_v17 = vpack.c.bf16 %v6105_v61, %v6105_v61  ;;  %v5386_v28 = vmax.f32 %v5370_v48, 0.0 }
 0x5c0   :  { %v6166_v11 = vmax.f32 %v6164_v27, %v6165_v25  ;;  %v6172_v7 = vrot.slane %v6171_v26, 2  ;;  %v18838_v34 = vsel %vm4042_vm11, %v6724_v41, %v6723_v33  ;;  %v6185_v15 = vmax.f32 %v6183_v52, %v6184_v60 }
 0x5c1   :  { %v6180_v21 = vmax.f32 %v6178_v0, %v6179_v40  ;;  %v5626_v31 = vcombine.high %v5386_v28, %v5386_v28  ;;  %v5633_v63 = vrot.slane %v5386_v28, %v21690_v29  ;;  %v16388_v47 = vmov 0  }
 0x5c2   :  { %v6167_v44 = vrot.slane %v6166_v11, 1  ;;  %v6173_v30 = vmax.f32 %v6171_v26, %v6172_v7  ;;  %6915 = vmatprep.mubr.bf16.mxu0 %v16388_v47  ;;  %v18843_v3 = vsel %vm4046_vm13, %v6105_v61, %v6401_v14  ;;  %v6743_v48 = vsel %vm4050_vm15, %v18595_v58, %v18591_v35 }
 0x5c3   :  { %v6181_v37 = vrot.slane %v6180_v21, 1  ;;  %v6750_v43 = vsel %vm4050_vm15, %v18572_v39, %v18570_v45  ;;  %v5640_v12 = vrot.slane %v5626_v31, %v21690_v29  ;;  %v5641_v24 = vcombine.high %v5633_v63, %v5633_v63 }
 0x5c4   :  { %v6168_v52 = vmax.f32 %v6166_v11, %v6167_v44  ;;  %v6174_v40 = vrot.slane %v6173_v30, 1  ;;  %v18852_v27 = vunpack.c.l.b16 %v6581_v17  ;;  %v6106_v50 = vsel %vm5741_vm5, %v5633_v63, -inf }
 0x5c5   :  { %v6744_v61 = vsel %vm4052_vm0, %v18607_v42, %v6743_v48  ;;  %v6751_v41 = vsel %vm4052_vm0, %v18584_v2, %v6750_v43  ;;  %v18861_v58 = vmax.f32 %v6180_v21, %v6181_v37  ;;  %v5642_v39 = vcombine.high %v5640_v12, %v5640_v12  ;;  %v15656_v48 = vld [vmem:[%s21358_s7 + $0x14] ss:$8 sps:$4 sm:$0xff]  }
 0x5c6   :  { %v18859_v35 = vmax.f32 %v6173_v30, %v6174_v40  ;;  %v6410_v45 = vsel %vm4048_vm14, %v6168_v52, %v6409_v57  ;;  %v6107_v0 = vrot.slane %v6106_v50, 4  ;;  %v6113_v60 = vsel %vm5741_vm5, %v5641_v24, -inf }
 0x5c7   :  { %v6120_v33 = vsel %vm5741_vm5, %v5640_v12, -inf  ;;  %v6745_v25 = vsel %vm4054_vm1, %v18628_v8, %v6744_v61  ;;  %v6186_v26 = vrot.slane %v6185_v15, 2  ;;  %v6590_v2 = vpack.c.bf16 %v6168_v52, %v6168_v52  ;;  %v15651_v8 = vld [vmem:[%s21358_s7] ss:$8 sps:$4 sm:$0xff]  }
 0x5c8   :  { %v6411_v42 = vsel %vm4050_vm15, %v18859_v35, %v6410_v45  ;;  %v6114_v14 = vrot.slane %v6113_v60, 4  ;;  %v6108_v57 = vmax.f32 %v6106_v50, %v6107_v0  ;;  %v6121_v11 = vrot.slane %v6120_v33, 4 }
 0x5c9   :  { %v18872_v17 = vsel %vm4052_vm0, %v18861_v58, %v6411_v42  ;;  %v6127_v7 = vsel %vm5741_vm5, %v5642_v39, -inf  ;;  %v6752_v44 = vsel %vm4054_vm1, %v18593_v51, %v6751_v41  ;;  %v5908_v30 = vrot.slane %v18696_v38, 1 }
 0x5ca   :  { %v6115_v28 = vmax.f32 %v6113_v60, %v6114_v14  ;;  %v6128_v21 = vrot.slane %v6127_v7, 4  ;;  %v6109_v31 = vrot.slane %v6108_v57, 2  ;;  %v6122_v63 = vmax.f32 %v6120_v33, %v6121_v11 }
 0x5cb   :  { %v6795_v37 = vpack.c.b16 %v6752_v44, %v6745_v25  ;;  %v5964_v43 = vrot.slane %v18692_v9, 1  ;;  %v18886_v12 = vmax.f32 %v18696_v38, %v5908_v30  ;;  %v6552_v24 = vpack.c.bf16 %v18704_v20, %v18704_v20  ;;  %v15654_v38 = vld [vmem:[%s21358_s7 + $0x10] ss:$8 sps:$4 sm:$0xff]   ;;  %v15657_v30 = vld [vmem:[%s21358_s7 + $0x20] ss:$8 sps:$4 sm:$0xff]  }
 0x5cc   :  { %v6116_v52 = vrot.slane %v6115_v28, 2  ;;  %v6129_v40 = vmax.f32 %v6127_v7, %v6128_v21  ;;  %v18890_v51 = vmax.f32 %v6185_v15, %v6186_v26  ;;  %v6110_v50 = vmax.f32 %v6108_v57, %v6109_v31 }
 0x5cd   :  { %v6123_v61 = vrot.slane %v6122_v63, 2  ;;  %6916 = vmatmul.mubr.bf16.vlgmr.msra.gmra.mrb[48].mxu0 %v6795_v37  ;;  %v18893_v41 = vmax.f32 %v18692_v9, %v5964_v43  ;;  %v6591_v45 = vpack.c.bf16 %v18859_v35, %v18859_v35  ;;  %v6553_v15 = vpack.c.bf16 %v18886_v12, %v18886_v12  ;;  %v15659_v9 = vld [vmem:[%s21358_s7 + $0x24] ss:$8 sps:$4 sm:$0xff]  }
 0x5ce   :  { %v6117_v39 = vmax.f32 %v6115_v28, %v6116_v52  ;;  %v6130_v0 = vrot.slane %v6129_v40, 2  ;;  %7037 = vmatpush1.bf16.msra.mxu0 %v15651_v8  ;;  %6925 = vmatprep.mubr.bf16.mxu0 %v16388_v47  ;;  %v6111_v60 = vrot.slane %v6110_v50, 1  ;;  %v6560_v25 = vpack.c.bf16 %v18690_v62, %v18690_v62 }
 0x5cf   :  { %v6124_v33 = vmax.f32 %v6122_v63, %v6123_v61  ;;  %7038 = vmatprep.subr.bf16.mxu0 %v15656_v48  ;;  %v6561_v26 = vpack.c.bf16 %v18893_v41, %v18893_v41  ;;  %v18910_v42 = vunpack.c.l.b16 %v6590_v2  ;;  %v21706_v57 = vpack.c.bf16 %v18702_v23, %v18702_v23 }
 0x5d0   :  { %v6118_v14 = vrot.slane %v6117_v39, 1  ;;  %v6697_v7 = vunpack.c.l.b16 %v6552_v24  ;;  %v18915_v28 = vmax.f32 %v6110_v50, %v6111_v60  ;;  %v6131_v8 = vmax.f32 %v6129_v40, %v6130_v0  ;;  %v15665_v60 = vld [vmem:[%s21358_s7 + $0x44] ss:$8 sps:$4 sm:$0xff]  }
 0x5d1   :  { %v6696_v11 = vunpack.c.l.b16 %v21706_v57  ;;  %v6125_v21 = vrot.slane %v6124_v33, 1  ;;  %v6698_v44 = vunpack.c.l.b16 %v6553_v15  ;;  %v21707_v2 = vpack.c.bf16 %v18677_v6, %v18677_v6 }
 0x5d2   :  { %7039 = vmatpush1.bf16.msra.mxu0 %v15654_v38  ;;  %v6754_v63 = vsel %vm4044_vm12, %v18646_v36, %v18675_v13  ;;  %v6761_v37 = vsel %vm4044_vm12, %v18631_v55, %v18638_v46  ;;  %v6020_v48 = vrot.slane %v18789_v16, 1  ;;  %v18933_v43 = vsel %vm4048_vm14, %v18915_v28, %v18843_v3  ;;  %v15662_v36 = vld [vmem:[%s21358_s7 + $0x34] ss:$8 sps:$4 sm:$0xff]  }
 0x5d3   :  { %v6704_v31 = vunpack.c.l.b16 %v21707_v2  ;;  %7040 = vmatprep.subr.bf16.mxu0 %v15659_v9  ;;  %v6705_v52 = vunpack.c.l.b16 %v6560_v25  ;;  %v6706_v40 = vunpack.c.l.b16 %v6561_v26  ;;  %v6755_v24 = vsel %vm4046_vm13, %v18685_v10, %v6754_v63  ;;  %v21709_v2 = vld [vmem:[#allocation51_spill] sm:$0xff] }
 0x5d4   :  { %v18940_v13 = vmax.f32 %v6117_v39, %v6118_v14  ;;  %v6756_v55 = vsel %vm4048_vm14, %v18707_v32, %v6755_v24  ;;  %v6762_v46 = vsel %vm4046_vm13, %v18635_v59, %v6761_v37  ;;  %v18947_v3 = vmax.f32 %v18789_v16, %v6020_v48  ;;  %v15660_v59 = vld [vmem:[%s21358_s7 + $0x30] ss:$8 sps:$4 sm:$0xff]  }
 0x5d5   :  { %v18949_v50 = vmax.f32 %v6124_v33, %v6125_v21  ;;  %v6757_v61 = vsel %vm4050_vm15, %v6696_v11, %v6756_v55  ;;  %v6763_v10 = vsel %vm4048_vm14, %v18700_v54, %v6762_v46  ;;  %v6076_v0 = vrot.slane %v18769_v53, 1  ;;  %v21712_v24 = vld [vmem:[#allocation38_spill] sm:$0xff] }
 0x5d6   :  { %v6758_v39 = vsel %vm4052_vm0, %v6697_v7, %v6757_v61  ;;  %v6764_v38 = vsel %vm4050_vm15, %v6704_v31, %v6763_v10  ;;  %7041 = vmatpush1.bf16.msra.mxu0 %v15657_v30  ;;  %v6568_v32 = vpack.c.bf16 %v18798_v19, %v18798_v19  ;;  %v6569_v16 = vpack.c.bf16 %v18947_v3, %v18947_v3  ;;  %v21710_v31 = vld [vmem:[#allocation40_spill] sm:$0xff]  ;;  %v21713_v55 = vld [vmem:[#allocation50_spill] sm:$0xff] }
 0x5d7   :  { %v6759_v15 = vsel %vm4054_vm1, %v6698_v44, %v6758_v39  ;;  %v6765_v54 = vsel %vm4052_vm0, %v6705_v52, %v6764_v38  ;;  %7042 = vmatprep.subr.bf16.mxu0 %v15662_v36  ;;  %v18970_v33 = vmax.f32 %v18769_v53, %v6076_v0  ;;  %v6576_v9 = vpack.c.bf16 %v18767_v22, %v18767_v22  ;;  %v21714_v46 = vld [vmem:[#allocation46_spill] sm:$0xff]  ;;  %v21715_v10 = vld [vmem:[#allocation52_spill] sm:$0xff] }
 0x5d8   :  { %v6582_v25 = vpack.c.bf16 %v18915_v28, %v18915_v28  ;;  %v6583_v26 = vpack.c.bf16 %v18940_v13, %v18940_v13  ;;  %v6766_v14 = vsel %vm4054_vm1, %v6706_v40, %v6765_v54  ;;  %v21708_v57 = vpack.c.bf16 %v18785_v4, %v18785_v4  ;;  %v15663_v28 = vld [vmem:[%s21358_s7 + $0x40] ss:$8 sps:$4 sm:$0xff]  }
 0x5d9   :  { %v6796_v7 = vpack.c.b16 %v6766_v14, %v6759_v15  ;;  %v6577_v53 = vpack.c.bf16 %v18970_v33, %v18970_v33  ;;  %v6713_v21 = vunpack.c.l.b16 %v6568_v32  ;;  %v6714_v44 = vunpack.c.l.b16 %v6569_v16 }
 0x5da   :  { %v6712_v11 = vunpack.c.l.b16 %v21708_v57  ;;  %7043 = vmatpush1.bf16.msra.mxu0 %v15660_v59  ;;  %v6768_v30 = vsel %vm4044_vm12, %v18748_v18, %v18744_v49  ;;  %v6775_v4 = vsel %vm4044_vm12, %v21710_v31, %v21709_v2  ;;  %v6132_v63 = vrot.slane %v6131_v8, 1  ;;  %v15668_v18 = vld [vmem:[%s21358_s7 + $0x54] ss:$8 sps:$4 sm:$0xff]   ;;  %v15671_v57 = vld [vmem:[%s21358_s7 + $0x64] ss:$8 sps:$4 sm:$0xff]  }
 0x5db   :  { %v6188_v37 = vrot.slane %v18890_v51, 1  ;;  %6926 = vmatmul.mubr.bf16.gmra.mrb[52].mxu0 %v6796_v7  ;;  %7044 = vmatprep.subr.bf16.mxu0 %v15665_v60  ;;  %v21711_v48 = vpack.c.bf16 %v18763_v56, %v18763_v56  ;;  %v6721_v40 = vunpack.c.l.b16 %v6576_v9  ;;  %v6769_v36 = vsel %vm4046_vm13, %v21712_v24, %v6768_v30  ;;  %v21716_v31 = vld [vmem:[#allocation47_spill] sm:$0xff] }
 0x5dc   :  { %v6776_v49 = vsel %vm4046_vm13, %v21713_v55, %v6775_v4  ;;  %6935 = vmatprep.mubr.bf16.mxu0 %v16388_v47  ;;  %v6770_v61 = vsel %vm4048_vm14, %v21714_v46, %v6769_v36  ;;  %v19009_v0 = vmax.f32 %v6131_v8, %v6132_v63  ;;  %v6722_v38 = vunpack.c.l.b16 %v6577_v53  ;;  %v15666_v8 = vld [vmem:[%s21358_s7 + $0x50] ss:$8 sps:$4 sm:$0xff]   ;;  %v15669_v63 = vld [vmem:[%s21358_s7 + $0x60] ss:$8 sps:$4 sm:$0xff]  }
 0x5dd   :  { %v6720_v52 = vunpack.c.l.b16 %v21711_v48  ;;  %v6777_v56 = vsel %vm4048_vm14, %v21715_v10, %v6776_v49  ;;  %v6189_v39 = vmax.f32 %v18890_v51, %v6188_v37  ;;  %v6771_v59 = vsel %vm4050_vm15, %v6712_v11, %v6770_v61  ;;  %v21720_v48 = vld [vmem:[#allocation29_spill] sm:$0xff] }
 0x5de   :  { %v6584_v16 = vpack.c.bf16 %v18949_v50, %v18949_v50  ;;  %v6772_v15 = vsel %vm4052_vm0, %v6713_v21, %v6771_v59  ;;  %7045 = vmatpush1.bf16.msra.mxu0 %v15663_v28  ;;  %v6585_v60 = vpack.c.bf16 %v19009_v0, %v19009_v0  ;;  %v6592_v7 = vpack.c.bf16 %v18861_v58, %v18861_v58 }
 0x5df   :  { %v6778_v32 = vsel %vm4050_vm15, %v6720_v52, %v6777_v56  ;;  %v19023_v51 = vsel %vm4054_vm1, %v6189_v39, %v18872_v17  ;;  %v6773_v9 = vsel %vm4054_vm1, %v6714_v44, %v6772_v15  ;;  %7046 = vmatprep.subr.bf16.mxu0 %v15668_v18  ;;  %v6727_v53 = vunpack.c.l.b16 %v6582_v25  ;;  %v21724_v56 = vld [vmem:[#allocation41_spill] sm:$0xff]  ;;  %v15672_v15 = vld [vmem:[%s21358_s7 + $0x70] ss:$8 sps:$4 sm:$0xff]  }
 0x5e0   :  { %v6779_v54 = vsel %vm4052_vm0, %v6721_v40, %v6778_v32  ;;  %v6429_v11 = vrot.slane %v19023_v51, 7  ;;  %v6593_v21 = vpack.c.bf16 %v6189_v39, %v6189_v39  ;;  %v6728_v28 = vunpack.c.l.b16 %v6583_v26  ;;  %v21717_v26 = vld [vmem:[#allocation56_spill] sm:$0xff] }
 0x5e1   :  { %v6780_v14 = vsel %vm4054_vm1, %v6722_v38, %v6779_v54  ;;  %v6729_v30 = vunpack.c.l.b16 %v6584_v16  ;;  %v6730_v2 = vunpack.c.l.b16 %v6585_v60  ;;  %v6782_v44 = vsel %vm4044_vm12, %v18833_v1, %v18838_v34  ;;  %v21718_v1 = vld [vmem:[#allocation28_spill] sm:$0xff]  ;;  %v21725_v38 = vld [vmem:[#allocation31_spill] sm:$0xff] }
 0x5e2   :  { %v6797_v17 = vpack.c.b16 %v6780_v14, %v6773_v9  ;;  %v6789_v4 = vsel %vm4044_vm12, %v21716_v31, %v18830_v5  ;;  %7047 = vmatpush1.bf16.msra.mxu0 %v15666_v8  ;;  %v6736_v58 = vunpack.c.l.b16 %v6591_v45  ;;  %v6783_v25 = vsel %vm4046_vm13, %v18852_v27, %v6782_v44  ;;  %v21722_v5 = vld [vmem:[#allocation13_spill] sm:$0xff]  ;;  %v15674_v27 = vld [vmem:[%s21358_s7 + $0x74] ss:$8 sps:$4 sm:$0xff]  }
 0x5e3   :  { %v6790_v37 = vsel %vm4046_vm13, %v21717_v26, %v6789_v4  ;;  %v21719_v34 = vrot.slane %v21718_v1, 7  ;;  %v21721_v52 = vrot.slane %v21720_v48, 7  ;;  %7048 = vmatprep.subr.bf16.mxu0 %v15671_v57  ;;  %v6737_v24 = vunpack.c.l.b16 %v6592_v7  ;;  %v7299_v31 = vld [vmem:[%s21359_s8] sm:$0x3] }
 0x5e4   :  { %6936 = vmatmul.mubr.bf16.gmra.mrb[56].mxu0 %v6797_v17  ;;  %v6784_v35 = vsel %vm4048_vm14, %v6727_v53, %v6783_v25  ;;  %v6791_v45 = vsel %vm4048_vm14, %v18910_v42, %v6790_v37  ;;  %v6738_v49 = vunpack.c.l.b16 %v6593_v21  ;;  %v6376_v39 = vsel %vm4050_vm15, %v18702_v23, %v21724_v56  ;;  %v21726_v53 = vld [vmem:[#allocation43_spill] sm:$0xff] }
 0x5e5   :  { %v19057_v40 = vsel %vm906_vm3, %v21721_v52, %v21719_v34  ;;  %v21723_v36 = vmov %v21721_v52  ;;  %6945 = vmatprep.mubr.bf16.mxu0 %v16388_v47  ;;  %v6785_v18 = vsel %vm4050_vm15, %v6728_v28, %v6784_v35  ;;  %v6792_v46 = vsel %vm4050_vm15, %v6736_v58, %v6791_v45  ;;  %v21727_v17 = vld [vmem:[#allocation39_spill] sm:$0xff] }
 0x5e6   :  { %v19071_v55 = vsel %vm906_vm3, %v6429_v11, %v21723_v36  ;;  %v6786_v61 = vsel %vm4052_vm0, %v6729_v30, %v6785_v18  ;;  %v6793_v10 = vsel %vm4052_vm0, %v6737_v24, %v6792_v46  ;;  %v6383_v59 = vsel %vm4050_vm15, %v18677_v6, %v21725_v38  ;;  %7049 = vmatpush1.bf16.msra.mxu0 %v15669_v63  ;;  %v15677_v6 = vld [vmem:[%s21358_s7 + $0x104] ss:$8 sps:$4 sm:$0xff]   ;;  %v15680_v36 = vld [vmem:[%s21358_s7 + $0x114] ss:$8 sps:$4 sm:$0xff]  }
 0x5e7   :  { %v14157_v42 = vpack.c.bf16 %v19057_v40, %v19071_v55  ;;  %v6787_v32 = vsel %vm4054_vm1, %v6730_v2, %v6786_v61  ;;  %v6794_v16 = vsel %vm4054_vm1, %v6738_v49, %v6793_v10  ;;  %v6377_v54 = vsel %vm4052_vm0, %v18704_v20, %v6376_v39  ;;  %7050 = vmatprep.subr.bf16.mxu0 %v15674_v27  ;;  %v15675_v40 = vld [vmem:[%s21358_s7 + $0x100] ss:$8 sps:$4 sm:$0xff]   ;;  %v15678_v61 = vld [vmem:[%s21358_s7 + $0x110] ss:$8 sps:$4 sm:$0xff]  }
 0x5e8   :  { %v6384_v8 = vsel %vm4052_vm0, %v18690_v62, %v6383_v59  ;;  %v6798_v23 = vpack.c.b16 %v6794_v16, %v6787_v32  ;;  %v6378_v60 = vsel %vm4054_vm1, %v18886_v12, %v6377_v54  ;;  %v6194_v14 = vand.u32 31, %v21722_v5  ;;  %v15681_v59 = vld [vmem:[%s21358_s7 + $0x120] ss:$8 sps:$4 sm:$0xff]   ;;  %v15686_v32 = vld [vmem:[%s21358_s7 + $0x134] ss:$8 sps:$4 sm:$0xff]  }
 0x5e9   :  { %v6385_v9 = vsel %vm4054_vm1, %v18893_v41, %v6384_v8  ;;  %v6424_v57 = vrot.slane %v6378_v60, 7  ;;  %v6472_v20 = vrot.slane %v6378_v60, 1  ;;  %v6391_v62 = vsel %vm4052_vm0, %v18798_v19, %v21726_v53  ;;  %v15689_v54 = vld [vmem:[%s21358_s7 + $0x144] ss:$8 sps:$4 sm:$0xff]   ;;  %v15687_v8 = vld [vmem:[%s21358_s7 + $0x140] ss:$8 sps:$4 sm:$0xff]  }
 0x5ea   :  { %v6425_v7 = vrot.slane %v6385_v9, 7  ;;  %v6398_v21 = vsel %vm4052_vm0, %v18767_v22, %v21727_v17  ;;  %v6404_v12 = vsel %vm4050_vm15, %v18940_v13, %v18933_v43  ;;  %7051 = vmatpush1.bf16.msra.mxu0 %v15672_v15  ;;  %v21728_v28 = vmov %v21719_v34  ;;  %v15684_v15 = vld [vmem:[%s21358_s7 + $0x130] ss:$8 sps:$4 sm:$0xff]   ;;  %v15695_v60 = vld [vmem:[%s21358_s7 + $0x164] ss:$8 sps:$4 sm:$0xff]  }
 0x5eb   :  { %v6435_v30 = vsel %vm906_vm3, %v21728_v28, %v6424_v57  ;;  %v6392_v19 = vsel %vm4054_vm1, %v18947_v3, %v6391_v62  ;;  %v6399_v2 = vsel %vm4054_vm1, %v18970_v33, %v6398_v21  ;;  %7210 = vmatprep.subr.bf16.mxu0 %v15677_v6  ;;  %v6473_v22 = vrot.slane %v6385_v9, 1  ;;  %v15690_v6 = vld [vmem:[%s21358_s7 + $0x150] ss:$8 sps:$4 sm:$0xff]   ;;  %v15693_v9 = vld [vmem:[%s21358_s7 + $0x160] ss:$8 sps:$4 sm:$0xff]  }
 0x5ec   :  { %v6434_v41 = vsel %vm906_vm3, %v6424_v57, %v6425_v7  ;;  %6946 = vmatmul.mubr.bf16.gmra.mrb[60].mxu0 %v6798_v23  ;;  %v6426_v43 = vrot.slane %v6392_v19, 7  ;;  %v6427_v13 = vrot.slane %v6399_v2, 7  ;;  %vm19123_vm9 = vcmp.ne.s32.totalorder %v6194_v14, 0  ;;  %v15692_v23 = vld [vmem:[%s21358_s7 + $0x154] ss:$8 sps:$4 sm:$0xff]   ;;  %v21732_v53 = vld [vmem:[#allocation37_spill] sm:$0xff] }
 0x5ed   :  { %v6511_v44 = vpack.c.bf16 %v6434_v41, %v6435_v30  ;;  %7068 = vmatprep.mubr.bf16.mxu0 %v16388_v47  ;;  %v6405_v4 = vsel %vm4052_vm0, %v18949_v50, %v6404_v12  ;;  %v6470_v3 = vrot.slane %v21720_v48, 1  ;;  %v6471_v63 = vrot.slane %v21718_v1, 1  ;;  %vm14156_vm2 = vmpackc.low %vm16389_vm10, %vm19123_vm9  ;;  %v15698_v14 = vld [vmem:[%s21358_s7 + $0x174] ss:$8 sps:$4 sm:$0xff]   ;;  %v15696_v57 = vld [vmem:[%s21358_s7 + $0x170] ss:$8 sps:$4 sm:$0xff]  }
 0x5ee   :  { %v6432_v33 = vsel %vm906_vm3, %v6426_v43, %v6427_v13  ;;  %v6433_v58 = vsel %vm906_vm3, %v6425_v7, %v6426_v43  ;;  %v6406_v25 = vsel %vm4054_vm1, %v19009_v0, %v6405_v4  ;;  %v6474_v26 = vrot.slane %v6392_v19, 1  ;;  %v15713_v17 = vld [vmem:[#allocation5 + $0x284] ss:$16 sps:$4 sm:$0xff]   ;;  %v15711_v21 = vld [vmem:[#allocation5 + $0x280] ss:$16 sps:$4 sm:$0xff]  }
 0x5ef   :  { %v14161_v37 = vpack.c.bf16 %v6432_v33, %v6433_v58  ;;  %v6428_v34 = vrot.slane %v6406_v25, 7  ;;  %v19139_v52 = vsel %vm1099_vm4, %v6471_v63, %v6472_v20  ;;  %v19143_v50 = vsel %vm1099_vm4, %v6470_v3, %v6471_v63  ;;  %9236 = vmatprep.subr.bf16.mxu1 %v15713_v17  ;;  %v15716_v12 = vld [vmem:[#allocation5 + $0x2a4] ss:$16 sps:$4 sm:$0xff]   ;;  %v15714_v41 = vld [vmem:[#allocation5 + $0x2a0] ss:$16 sps:$4 sm:$0xff]  }
 0x5f0   :  { %v7109_v1 = vpack.c.bf16 %v19139_v52, %v19143_v50  ;;  %v19149_v48 = vsel %vm1099_vm4, %v6473_v22, %v6474_v26  ;;  %v19153_v0 = vsel %vm1099_vm4, %v6472_v20, %v6473_v22  ;;  %v6475_v27 = vrot.slane %v6399_v2, 1  ;;  %9237 = vmatpush1.bf16.msra.mxu1 %v15711_v21  ;;  %v15719_v28 = vld [vmem:[#allocation5 + $0x2c4] ss:$16 sps:$4 sm:$0xff]   ;;  %v15717_v30 = vld [vmem:[#allocation5 + $0x2c0] ss:$16 sps:$4 sm:$0xff]  }
 0x5f1   :  { %v6430_v24 = vsel %vm906_vm3, %v6428_v34, %v6429_v11  ;;  %v6431_v35 = vsel %vm906_vm3, %v6427_v13, %v6428_v34  ;;  %v14197_v45 = vpack.c.bf16 %v19149_v48, %v19153_v0  ;;  %v6476_v49 = vrot.slane %v6406_v25, 1  ;;  %9238 = vmatprep.subr.bf16.mxu1 %v15716_v12  ;;  %v15722_v19 = vld [vmem:[#allocation5 + $0x2e4] ss:$16 sps:$4 sm:$0xff]   ;;  %v15720_v2 = vld [vmem:[#allocation5 + $0x2e0] ss:$16 sps:$4 sm:$0xff]  }
 0x5f2   :  { %v6513_v55 = vpack.c.bf16 %v6430_v24, %v6431_v35  ;;  %v6480_v18 = vsel %vm1099_vm4, %v6474_v26, %v6475_v27  ;;  %v6477_v46 = vrot.slane %v19023_v51, 1  ;;  %v15683_v51 = vld [vmem:[%s21358_s7 + $0x124] ss:$8 sps:$4 sm:$0xff]   ;;  %v19227_v7 = vadd.s32 24, %v21722_v5 }
 0x5f3   :  { %v6479_v11 = vsel %vm1099_vm4, %v6475_v27, %v6476_v49  ;;  %v6243_v62 = vand.u32 31, %v21732_v53  ;;  %v15723_v22 = vld [vmem:[#allocation5 + $0x300] ss:$16 sps:$4 sm:$0xff]   ;;  %v19237_v13 = vsub.s32 0, %v21722_v5  ;;  %v19243_v4 = vsub.s32 1, %v21722_v5 }
 0x5f4   :  { %14158 = vmatmul.mubr.msk.bf16.vlgmr.msra.gmra.mrb[48].mxu0 %vm14156_vm2, %v14157_v42  ;;  %v7111_v10 = vpack.c.bf16 %v6479_v11, %v6480_v18  ;;  %v6478_v56 = vsel %vm1099_vm4, %v6476_v49, %v6477_v46  ;;  %v6485_v39 = vsel %vm1099_vm4, %v6477_v46, %v6470_v3  ;;  %v430_v42 = vadd.s32 32, %v21722_v5  ;;  %21731 = vst [vmem:[#allocation55_spill] sm:$0xff] %v19227_v7  ;;  %v15726_v43 = vld [vmem:[#allocation5 + $0x320] ss:$16 sps:$4 sm:$0xff]  }
 0x5f5   :  { %7211 = vmatpush1.bf16.msra.mxu0 %v15675_v40  ;;  %7078 = vmatprep.mubr.bf16.mxu0 %v16388_v47  ;;  %v14201_v38 = vpack.c.bf16 %v6485_v39, %v6478_v56  ;;  %v6215_v20 = vand.u32 31, %v19227_v7  ;;  %vm14713_vm2 = vcmp.ne.s32.totalorder %v6243_v62, 31  ;;  %21733 = vst [vmem:[#allocation54_spill] sm:$0xff] %v19237_v13  ;;  %21734 = vst [vmem:[#allocation67_spill] sm:$0xff] %v19243_v4  ;;  %v15731_v40 = vld [vmem:[#allocation5 + $0x344] ss:$16 sps:$4 sm:$0xff]  }
 0x5f6   :  { %7212 = vmatprep.subr.bf16.mxu0 %v15680_v36  ;;  %v6222_v16 = vand.u32 31, %v430_v42  ;;  %9239 = vmatpush1.bf16.msra.mxu1 %v15714_v41  ;;  %v19246_v3 = vrot.slane %v7299_v31, %v19237_v13  ;;  %v19249_v63 = vrot.slane %v7299_v31, %v19243_v4  ;;  %v15729_v27 = vld [vmem:[#allocation5 + $0x340] ss:$16 sps:$4 sm:$0xff]  }
 0x5f7   :  { %vm14712_vm8 = vcmp.ne.s32.totalorder %v6215_v20, 31  ;;  %9240 = vmatprep.subr.bf16.mxu1 %v15719_v28 }
 0x5f8   :  { %vm14711_vm6 = vcmp.ne.s32.totalorder %v6222_v16, 0  ;;  %vm14196_vm9 = vmpackc.low %vm14712_vm8, %vm16389_vm10 }
 0x5f9   :  { %7213 = vmatpush1.bf16.msra.mxu0 %v15678_v61  ;;  %vm14160_vm7 = vmpackc.low %vm16389_vm10, %vm14711_vm6 }
 0x5fa   :  { %7214 = vmatprep.subr.bf16.mxu0 %v15683_v51  ;;  %vm14200_vm6 = vmpackc.low %vm14713_vm2, %vm16389_vm10  ;;  %9241 = vmatpush1.bf16.msra.mxu1 %v15717_v30 }
 0x5fb   :  { %9242 = vmatprep.subr.bf16.mxu1 %v15722_v19 }
 0x5fc   :  { %7079 = vmatmul.mubr.bf16.gmra.mrb[52].mxu0 %v6511_v44  ;;  %v15728_v44 = vld [vmem:[#allocation5 + $0x324] ss:$16 sps:$4 sm:$0xff]  }
 0x5fd   :  { %7215 = vmatpush1.bf16.msra.mxu0 %v15681_v59  ;;  %7088 = vmatprep.mubr.bf16.mxu0 %v16388_v47 }
 0x5fe   :  { %7216 = vmatprep.subr.bf16.mxu0 %v15686_v32  ;;  %9243 = vmatpush1.bf16.msra.mxu1 %v15720_v2 }
 0x601   :  { %7217 = vmatpush1.bf16.msra.mxu0 %v15684_v15 }
 0x602   :  { %7218 = vmatprep.subr.bf16.mxu0 %v15689_v54 }
 0x604   :  { %14162 = vmatmul.mubr.msk.bf16.gmra.mrb[56].mxu0 %vm14160_vm7, %v14161_v37 }
 0x605   :  { %7219 = vmatpush1.bf16.msra.mxu0 %v15687_v8  ;;  %7098 = vmatprep.mubr.bf16.mxu0 %v16388_v47 }
 0x606   :  { %7220 = vmatprep.subr.bf16.mxu0 %v15692_v23 }
 0x609   :  { %7221 = vmatpush1.bf16.msra.mxu0 %v15690_v6 }
 0x60a   :  { %7222 = vmatprep.subr.bf16.mxu0 %v15695_v60 }
 0x60c   :  { %7099 = vmatmul.mubr.bf16.gmra.mrb[60].mxu0 %v6513_v55 }
 0x60d   :  { %7223 = vmatpush1.bf16.msra.mxu0 %v15693_v9  ;;  %7242 = vmatprep.mubr.bf16.mxu0 %v16388_v47 }
 0x60e   :  { %7224 = vmatprep.subr.bf16.mxu0 %v15698_v14 }
 0x611   :  { %7225 = vmatpush1.bf16.msra.mxu0 %v15696_v57 }
 0x614   :  { %7243 = vmatmul.mubr.bf16.vlgmr.msra.gmra.mrb[48].mxu0 %v7109_v1 }
 0x615   :  { %7252 = vmatprep.mubr.bf16.mxu0 %v16388_v47 }
 0x61c   :  { %14198 = vmatmul.mubr.msk.bf16.gmra.mrb[52].mxu0 %vm14196_vm9, %v14197_v45 }
 0x61d   :  { %7262 = vmatprep.mubr.bf16.mxu0 %v16388_v47 }
 0x624   :  { %7263 = vmatmul.mubr.bf16.gmra.mrb[56].mxu0 %v7111_v10 }
 0x625   :  { %7272 = vmatprep.mubr.bf16.mxu0 %v16388_v47  ;;  %v15725_v47 = vld [vmem:[#allocation5 + $0x304] ss:$16 sps:$4 sm:$0xff]  }
 0x626   :  { %9244 = vmatprep.subr.bf16.mxu1 %v15725_v47 }
 0x627   :  { %9245 = vmatpush1.bf16.msra.mxu1 %v15723_v22 }
 0x628   :  { %9246 = vmatprep.subr.bf16.mxu1 %v15728_v44 }
 0x62b   :  { %9247 = vmatpush1.bf16.msra.mxu1 %v15726_v43 }
 0x62c   :  { %14202 = vmatmul.mubr.msk.bf16.gmra.mrb[60].mxu0 %vm14200_vm6, %v14201_v38  ;;  %9248 = vmatprep.subr.bf16.mxu1 %v15731_v40 }
 0x62f   :  { %9249 = vmatpush1.bf16.msra.mxu1 %v15729_v27 }
 0x6e7   :  { %v7244_v33 = vpop.f32.mrb[48].mxu0 }
 0x6e8   :  { %v7311_v58 = vadd.f32 %v19246_v3, %v7244_v33  ;;  %v7246_v25 = vpop.f32.mrb[49].mxu0 }
 0x6e9   :  { %v7312_v26 = vadd.f32 %v19249_v63, %v7246_v25  ;;  %v7248_v37 = vpop.f32.mrb[50].mxu0 }
 0x6ea   :  { %v7327_v34 = vmax.f32 %v7311_v58, 0.0  ;;  %v7313_v52 = vadd.f32 %v19246_v3, %v7248_v37  ;;  %v7250_v50 = vpop.f32.mrb[51].mxu0 }
 0x6eb   :  { %v7328_v1 = vmax.f32 %v7312_v26, 0.0  ;;  %v7314_v48 = vadd.f32 %v19249_v63, %v7250_v50 }
 0x6ec   :  { %v7329_v0 = vmax.f32 %v7313_v52, 0.0 }
 0x6ed   :  { %v7359_v24 = vcombine.low %v7327_v34, %v7328_v1  ;;  %v7360_v35 = vcombine.high %v7327_v34, %v7328_v1  ;;  %v7330_v45 = vmax.f32 %v7314_v48, 0.0 }
 0x6ef   :  { %v7367_v36 = vrot.slane %v7359_v24, %v21690_v29  ;;  %v7374_v55 = vrot.slane %v7360_v35, %v21690_v29  ;;  %v7377_v49 = vcombine.low %v7329_v0, %v7330_v45  ;;  %v7378_v18 = vcombine.high %v7329_v0, %v7330_v45  ;;  %v7254_v46 = vpop.f32.mrb[52].mxu0 }
 0x6f0   :  { %v19258_v11 = vadd.f32 %v19246_v3, %v7254_v46  ;;  %v19260_v61 = vpop.f32.mrb[53].mxu0 }
 0x6f1   :  { %v7375_v10 = vcombine.high %v7367_v36, %v7367_v36  ;;  %v7376_v56 = vcombine.high %v7374_v55, %v7374_v55  ;;  %v7509_v39 = vrot.slane %v7367_v36, %v21690_v29  ;;  %v7525_v51 = vrot.slane %v7374_v55, %v21690_v29  ;;  %v19264_v42 = vpop.f32.mrb[54].mxu0 }
 0x6f2   :  { %v19267_v38 = vrot.slane %v7377_v49, %v21690_v29  ;;  %v19269_v59 = vpop.f32.mrb[55].mxu0  ;;  %v19276_v6 = vrot.slane %v7378_v18, %v21690_v29  ;;  %v7331_v60 = vmax.f32 %v19258_v11, 0.0 }
 0x6f3   :  { %v7510_v32 = vcombine.high %v7509_v39, %v7509_v39  ;;  %v7517_v16 = vrot.slane %v7375_v10, %v21690_v29  ;;  %v7526_v15 = vcombine.high %v7525_v51, %v7525_v51  ;;  %v7533_v54 = vrot.slane %v7376_v56, %v21690_v29 }
 0x6f4   :  { %v7823_v8 = vsel %vm5741_vm5, %v7509_v39, -inf  ;;  %v7851_v23 = vsel %vm5741_vm5, %v7525_v51, -inf }
 0x6f5   :  { %v7518_v9 = vcombine.high %v7517_v16, %v7517_v16  ;;  %v7534_v14 = vcombine.high %v7533_v54, %v7533_v54  ;;  %v7824_v57 = vrot.slane %v7823_v8, 4  ;;  %v7830_v20 = vsel %vm5741_vm5, %v7510_v32, -inf }
 0x6f6   :  { %v7831_v53 = vrot.slane %v7830_v20, 4  ;;  %v7837_v62 = vsel %vm5741_vm5, %v7517_v16, -inf  ;;  %v7852_v17 = vrot.slane %v7851_v23, 4  ;;  %v7858_v21 = vsel %vm5741_vm5, %v7526_v15, -inf }
 0x6f7   :  { %v7825_v12 = vmax.f32 %v7823_v8, %v7824_v57  ;;  %v7838_v41 = vrot.slane %v7837_v62, 4  ;;  %v7844_v28 = vsel %vm5741_vm5, %v7518_v9, -inf  ;;  %v7859_v30 = vrot.slane %v7858_v21, 4  ;;  %v19283_v19 = vpop.f32.mrb[56].mxu0 }
 0x6f8   :  { %v7832_v2 = vmax.f32 %v7830_v20, %v7831_v53  ;;  %v7845_v47 = vrot.slane %v7844_v28, 4  ;;  %v7853_v22 = vmax.f32 %v7851_v23, %v7852_v17  ;;  %v7865_v44 = vsel %vm5741_vm5, %v7533_v54, -inf  ;;  %v19286_v43 = vpop.f32.mrb[57].mxu0 }
 0x6f9   :  { %v7826_v31 = vrot.slane %v7825_v12, 2  ;;  %v7839_v33 = vmax.f32 %v7837_v62, %v7838_v41  ;;  %v7860_v58 = vmax.f32 %v7858_v21, %v7859_v30  ;;  %v7866_v25 = vrot.slane %v7865_v44, 4  ;;  %v19288_v26 = vpop.f32.mrb[58].mxu0 }
 0x6fa   :  { %v7833_v37 = vrot.slane %v7832_v2, 2  ;;  %v7846_v34 = vmax.f32 %v7844_v28, %v7845_v47  ;;  %v7854_v52 = vrot.slane %v7853_v22, 2  ;;  %v7872_v50 = vsel %vm5741_vm5, %v7534_v14, -inf  ;;  %v19291_v1 = vpop.f32.mrb[59].mxu0 }
 0x6fb   :  { %v7827_v48 = vmax.f32 %v7825_v12, %v7826_v31  ;;  %v7840_v0 = vrot.slane %v7839_v33, 2  ;;  %v7861_v40 = vrot.slane %v7860_v58, 2  ;;  %v7867_v24 = vmax.f32 %v7865_v44, %v7866_v25 }
 0x6fc   :  { %v7834_v35 = vmax.f32 %v7832_v2, %v7833_v37  ;;  %v7847_v45 = vrot.slane %v7846_v34, 2  ;;  %v7855_v27 = vmax.f32 %v7853_v22, %v7854_v52  ;;  %v7873_v36 = vrot.slane %v7872_v50, 4 }
 0x6fd   :  { %v7828_v55 = vrot.slane %v7827_v48, 1  ;;  %v7841_v49 = vmax.f32 %v7839_v33, %v7840_v0  ;;  %v7862_v18 = vmax.f32 %v7860_v58, %v7861_v40  ;;  %v7868_v46 = vrot.slane %v7867_v24, 2  ;;  %v15734_v58 = vld [vmem:[#allocation5 + $0x364] ss:$16 sps:$4 sm:$0xff]  }
 0x6fe   :  { %v7835_v10 = vrot.slane %v7834_v35, 1  ;;  %v7848_v56 = vmax.f32 %v7846_v34, %v7847_v45  ;;  %v7856_v39 = vrot.slane %v7855_v27, 1  ;;  %v7874_v51 = vmax.f32 %v7872_v50, %v7873_v36  ;;  %v15732_v50 = vld [vmem:[#allocation5 + $0x360] ss:$16 sps:$4 sm:$0xff]   ;;  %9250 = vmatprep.subr.bf16.mxu1 %v15734_v58 }
 0x6ff   :  { %v7829_v32 = vmax.f32 %v7827_v48, %v7828_v55  ;;  %v7842_v16 = vrot.slane %v7841_v49, 1  ;;  %v7863_v15 = vrot.slane %v7862_v18, 1  ;;  %v7869_v54 = vmax.f32 %v7867_v24, %v7868_v46  ;;  %v19293_v8 = vpop.f32.mrb[60].mxu0  ;;  %9251 = vmatpush1.bf16.msra.mxu1 %v15732_v50 }
 0x700   :  { %v7836_v23 = vmax.f32 %v7834_v35, %v7835_v10  ;;  %v7849_v9 = vrot.slane %v7848_v56, 1  ;;  %v7857_v14 = vmax.f32 %v7855_v27, %v7856_v39  ;;  %v7875_v57 = vrot.slane %v7874_v51, 2  ;;  %v19295_v20 = vpop.f32.mrb[61].mxu0 }
 0x701   :  { %v7843_v53 = vmax.f32 %v7841_v49, %v7842_v16  ;;  %v19297_v62 = vmax.f32 %v7862_v18, %v7863_v15  ;;  %v7870_v17 = vrot.slane %v7869_v54, 1  ;;  %v7393_v21 = vcombine.high %v19267_v38, %v19267_v38  ;;  %v19301_v12 = vpop.f32.mrb[62].mxu0 }
 0x702   :  { %v7850_v41 = vmax.f32 %v7848_v56, %v7849_v9  ;;  %v7876_v28 = vmax.f32 %v7874_v51, %v7875_v57  ;;  %v8587_v30 = vpack.c.bf16 %v7829_v32, %v7829_v32  ;;  %v8588_v2 = vpack.c.bf16 %v7836_v23, %v7836_v23  ;;  %v19303_v47 = vpop.f32.mrb[63].mxu0 }
 0x703   :  { %v19305_v22 = vmax.f32 %v7869_v54, %v7870_v17  ;;  %v8387_v44 = vsel %vm4042_vm11, %v7843_v53, %v7829_v32  ;;  %v8589_v31 = vpack.c.bf16 %v7843_v53, %v7843_v53  ;;  %v8591_v33 = vpack.c.bf16 %v7857_v14, %v7857_v14  ;;  %v15735_v32 = vld [vmem:[#allocation5 + $0x380] ss:$16 sps:$4 sm:$0xff]  }
 0x704   :  { %v7877_v25 = vrot.slane %v7876_v28, 1  ;;  %v8388_v37 = vsel %vm4044_vm12, %v7857_v14, %v8387_v44  ;;  %v8394_v34 = vsel %vm4042_vm11, %v7850_v41, %v7836_v23  ;;  %v8590_v52 = vpack.c.bf16 %v7850_v41, %v7850_v41  ;;  %v15738_v44 = vld [vmem:[#allocation5 + $0x3a0] ss:$16 sps:$4 sm:$0xff]  }
 0x705   :  { %v19312_v48 = vsel %vm4046_vm13, %v19305_v22, %v8388_v37  ;;  %v19316_v0 = vsel %vm4044_vm12, %v19297_v62, %v8394_v34  ;;  %v7394_v40 = vcombine.high %v19276_v6, %v19276_v6  ;;  %v19322_v24 = vadd.f32 %v19249_v63, %v19260_v61  ;;  %v15737_v61 = vld [vmem:[#allocation5 + $0x384] ss:$16 sps:$4 sm:$0xff]  }
 0x706   :  { %v8592_v35 = vpack.c.bf16 %v19297_v62, %v19297_v62  ;;  %v8593_v45 = vpack.c.bf16 %v19305_v22, %v19305_v22  ;;  %v8780_v27 = vunpack.c.l.b16 %v8587_v30  ;;  %v8782_v36 = vunpack.c.l.b16 %v8589_v31  ;;  %9252 = vmatprep.subr.bf16.mxu1 %v15737_v61 }
 0x707   :  { %v19328_v55 = vmax.f32 %v7876_v28, %v7877_v25  ;;  %v19330_v49 = vunpack.c.l.b16 %v8588_v2  ;;  %v8784_v18 = vunpack.c.l.b16 %v8591_v33  ;;  %v7541_v46 = vrot.slane %v19267_v38, %v21690_v29  ;;  %9253 = vmatpush1.bf16.msra.mxu1 %v15735_v32  ;;  %v15741_v32 = vld [vmem:[#allocation5 + $0x3c0] ss:$16 sps:$4 sm:$0xff]  }
 0x708   :  { %v19334_v10 = vunpack.c.l.b16 %v8590_v52  ;;  %v8844_v56 = vsel %vm4042_vm11, %v8782_v36, %v8780_v27  ;;  %v7549_v39 = vrot.slane %v7393_v21, %v21690_v29  ;;  %v7557_v51 = vrot.slane %v19276_v6, %v21690_v29  ;;  %v15740_v21 = vld [vmem:[#allocation5 + $0x3a4] ss:$16 sps:$4 sm:$0xff]  }
 0x709   :  { %v19341_v16 = vsel %vm4044_vm12, %v8784_v18, %v8844_v56  ;;  %v7542_v15 = vcombine.high %v7541_v46, %v7541_v46  ;;  %v7565_v54 = vrot.slane %v7394_v40, %v21690_v29  ;;  %v7879_v23 = vsel %vm5741_vm5, %v7541_v46, -inf  ;;  %9254 = vmatprep.subr.bf16.mxu1 %v15740_v21  ;;  %v15743_v46 = vld [vmem:[#allocation5 + $0x3c4] ss:$16 sps:$4 sm:$0xff]  }
 0x70a   :  { %v7550_v38 = vcombine.high %v7549_v39, %v7549_v39  ;;  %v7558_v9 = vcombine.high %v7557_v51, %v7557_v51  ;;  %v7880_v14 = vrot.slane %v7879_v23, 4  ;;  %v7893_v57 = vsel %vm5741_vm5, %v7549_v39, -inf }
 0x70b   :  { %v7566_v53 = vcombine.high %v7565_v54, %v7565_v54  ;;  %v7886_v62 = vsel %vm5741_vm5, %v7542_v15, -inf  ;;  %v7894_v6 = vrot.slane %v7893_v57, 4  ;;  %v7907_v17 = vsel %vm5741_vm5, %v7557_v51, -inf  ;;  %9255 = vmatpush1.bf16.msra.mxu1 %v15738_v44  ;;  %v15744_v44 = vld [vmem:[#allocation5 + $0x3e0] ss:$16 sps:$4 sm:$0xff]  }
 0x70c   :  { %v7881_v41 = vmax.f32 %v7879_v23, %v7880_v14  ;;  %v7887_v28 = vrot.slane %v7886_v62, 4  ;;  %v7900_v30 = vsel %vm5741_vm5, %v7550_v38, -inf  ;;  %v7908_v2 = vrot.slane %v7907_v17, 4  ;;  %9256 = vmatprep.subr.bf16.mxu1 %v15743_v46 }
 0x70d   :  { %v7895_v31 = vmax.f32 %v7893_v57, %v7894_v6  ;;  %v7901_v33 = vrot.slane %v7900_v30, 4  ;;  %v7914_v58 = vsel %vm5741_vm5, %v7558_v9, -inf  ;;  %v7921_v25 = vsel %vm5741_vm5, %v7565_v54, -inf }
 0x70e   :  { %v7882_v37 = vrot.slane %v7881_v41, 2  ;;  %v7888_v34 = vmax.f32 %v7886_v62, %v7887_v28  ;;  %v7909_v52 = vmax.f32 %v7907_v17, %v7908_v2  ;;  %v7915_v50 = vrot.slane %v7914_v58, 4 }
 0x70f   :  { %v7896_v40 = vrot.slane %v7895_v31, 2  ;;  %v7902_v27 = vmax.f32 %v7900_v30, %v7901_v33  ;;  %v7922_v36 = vrot.slane %v7921_v25, 4  ;;  %v7928_v18 = vsel %vm5741_vm5, %v7566_v53, -inf  ;;  %9257 = vmatpush1.bf16.msra.mxu1 %v15741_v32 }
 0x710   :  { %v7883_v61 = vmax.f32 %v7881_v41, %v7882_v37  ;;  %v7889_v56 = vrot.slane %v7888_v34, 2  ;;  %v7910_v39 = vrot.slane %v7909_v52, 2  ;;  %v7916_v51 = vmax.f32 %v7914_v58, %v7915_v50  ;;  %v15746_v41 = vld [vmem:[#allocation5 + $0x3e4] ss:$16 sps:$4 sm:$0xff]  }
 0x711   :  { %v19352_v15 = vunpack.c.l.b16 %v8592_v35  ;;  %v7897_v54 = vmax.f32 %v7895_v31, %v7896_v40  ;;  %v7903_v23 = vrot.slane %v7902_v27, 2  ;;  %v7923_v38 = vmax.f32 %v7921_v25, %v7922_v36  ;;  %9258 = vmatprep.subr.bf16.mxu1 %v15746_v41 }
 0x712   :  { %v7884_v9 = vrot.slane %v7883_v61, 1  ;;  %v7890_v14 = vmax.f32 %v7888_v34, %v7889_v56  ;;  %v7911_v57 = vmax.f32 %v7909_v52, %v7910_v39  ;;  %v7917_v62 = vrot.slane %v7916_v51, 2 }
 0x713   :  { %v19357_v53 = vunpack.c.l.b16 %v8593_v45  ;;  %v7898_v6 = vrot.slane %v7897_v54, 1  ;;  %v7924_v17 = vrot.slane %v7923_v38, 2  ;;  %v7929_v21 = vrot.slane %v7928_v18, 4  ;;  %9259 = vmatpush1.bf16.msra.mxu1 %v15744_v44 }
 0x714   :  { %v7885_v35 = vmax.f32 %v7883_v61, %v7884_v9  ;;  %v7891_v28 = vrot.slane %v7890_v14, 1  ;;  %v19359_v30 = vmax.f32 %v7902_v27, %v7903_v23  ;;  %v7912_v2 = vrot.slane %v7911_v57, 1 }
 0x715   :  { %21735 = vst [vmem:[#allocation63_spill] sm:$0xff] %v19357_v53  ;;  %v7899_v31 = vmax.f32 %v7897_v54, %v7898_v6  ;;  %v19361_v33 = vmax.f32 %v7916_v51, %v7917_v62  ;;  %v7925_v58 = vmax.f32 %v7923_v38, %v7924_v17  ;;  %v7332_v25 = vmax.f32 %v19322_v24, 0.0 }
 0x716   :  { %v8396_v22 = vsel %vm4046_vm13, %v19328_v55, %v19316_v0  ;;  %v19367_v45 = vmax.f32 %v7890_v14, %v7891_v28  ;;  %v7913_v37 = vmax.f32 %v7911_v57, %v7912_v2  ;;  %v8390_v34 = vsel %vm4048_vm14, %v7885_v35, %v19312_v48 }
 0x717   :  { %v7926_v52 = vrot.slane %v7925_v58, 1  ;;  %v8391_v50 = vsel %vm4050_vm15, %v7899_v31, %v8390_v34  ;;  %v8595_v40 = vpack.c.bf16 %v7885_v35, %v7885_v35  ;;  %v8597_v27 = vpack.c.bf16 %v7899_v31, %v7899_v31 }
 0x718   :  { %v19372_v36 = vmax.f32 %v7928_v18, %v7929_v21  ;;  %v8392_v24 = vsel %vm4052_vm0, %v7913_v37, %v8391_v50  ;;  %v8599_v46 = vpack.c.bf16 %v7913_v37, %v7913_v37  ;;  %v7395_v0 = vcombine.low %v7331_v60, %v7332_v25 }
 0x719   :  { %v19381_v48 = vsel %vm4048_vm14, %v19367_v45, %v8396_v22  ;;  %v7396_v39 = vcombine.high %v7331_v60, %v7332_v25  ;;  %v19385_v51 = vmax.f32 %v7925_v58, %v7926_v52  ;;  %v19390_v32 = vadd.f32 %v19246_v3, %v19264_v42 }
 0x71a   :  { %21736 = vst [vmem:[#allocation64_spill] sm:$0xff] %v19381_v48  ;;  %v7403_v18 = vrot.slane %v7395_v0, %v21690_v29  ;;  %v19394_v54 = vadd.f32 %v19249_v63, %v19269_v59  ;;  %v19396_v23 = vunpack.c.l.b16 %v8595_v40  ;;  %v19398_v38 = vunpack.c.l.b16 %v8597_v27 }
 0x71b   :  { %v19400_v9 = vunpack.c.l.b16 %v8599_v46  ;;  %v7410_v11 = vrot.slane %v7396_v39, %v21690_v29  ;;  %v19405_v60 = vsel %vm4054_vm1, %v19385_v51, %v8392_v24  ;;  %v19410_v57 = vadd.f32 %v19246_v3, %v19283_v19 }
 0x71c   :  { %21737 = vst [vmem:[#allocation25_spill] sm:$0xff] %v19396_v23  ;;  %21738 = vst [vmem:[#allocation71_spill] sm:$0xff] %v19398_v38  ;;  %v7411_v14 = vcombine.high %v7403_v18, %v7403_v18  ;;  %v7573_v42 = vrot.slane %v7403_v18, %v21690_v29  ;;  %v19416_v17 = vadd.f32 %v19249_v63, %v19286_v43 }
 0x71d   :  { %21739 = vst [vmem:[#allocation72_spill] sm:$0xff] %v19400_v9  ;;  %21740 = vst [vmem:[#allocation26_spill] sm:$0xff] %v19405_v60  ;;  %v7412_v59 = vcombine.high %v7410_v11, %v7410_v11  ;;  %v7589_v62 = vrot.slane %v7410_v11, %v21690_v29 }
 0x71e   :  { %v7574_v21 = vcombine.high %v7573_v42, %v7573_v42  ;;  %v7581_v41 = vrot.slane %v7411_v14, %v21690_v29  ;;  %v7935_v35 = vsel %vm5741_vm5, %v7573_v42, -inf }
 0x71f   :  { %v7590_v2 = vcombine.high %v7589_v62, %v7589_v62  ;;  %v7597_v19 = vrot.slane %v7412_v59, %v21690_v29  ;;  %v7936_v44 = vrot.slane %v7935_v35, 4  ;;  %v7963_v31 = vsel %vm5741_vm5, %v7589_v62, -inf }
 0x720   :  { %v7582_v58 = vcombine.high %v7581_v41, %v7581_v41  ;;  %v7942_v25 = vsel %vm5741_vm5, %v7574_v21, -inf  ;;  %v7949_v22 = vsel %vm5741_vm5, %v7581_v41, -inf  ;;  %v7964_v43 = vrot.slane %v7963_v31, 4 }
 0x721   :  { %v7598_v37 = vcombine.high %v7597_v19, %v7597_v19  ;;  %v7937_v34 = vmax.f32 %v7935_v35, %v7936_v44  ;;  %v7943_v52 = vrot.slane %v7942_v25, 4  ;;  %v7950_v50 = vrot.slane %v7949_v22, 4 }
 0x722   :  { %v7956_v40 = vsel %vm5741_vm5, %v7582_v58, -inf  ;;  %v7965_v27 = vmax.f32 %v7963_v31, %v7964_v43  ;;  %v7970_v24 = vsel %vm5741_vm5, %v7590_v2, -inf  ;;  %v7977_v46 = vsel %vm5741_vm5, %v7597_v19, -inf }
 0x723   :  { %v7938_v0 = vrot.slane %v7937_v34, 2  ;;  %v7944_v39 = vmax.f32 %v7942_v25, %v7943_v52  ;;  %v7951_v18 = vmax.f32 %v7949_v22, %v7950_v50  ;;  %v7957_v11 = vrot.slane %v7956_v40, 4 }
 0x724   :  { %v7966_v14 = vrot.slane %v7965_v27, 2  ;;  %v7971_v42 = vrot.slane %v7970_v24, 4  ;;  %v7978_v59 = vrot.slane %v7977_v46, 4  ;;  %v7984_v62 = vsel %vm5741_vm5, %v7598_v37, -inf }
 0x725   :  { %v7939_v21 = vmax.f32 %v7937_v34, %v7938_v0  ;;  %v7945_v41 = vrot.slane %v7944_v39, 2  ;;  %v7952_v35 = vrot.slane %v7951_v18, 2  ;;  %v7958_v44 = vmax.f32 %v7956_v40, %v7957_v11  ;;  %v15749_v34 = vld [vmem:[#allocation5 + $0x20c] ss:$16 sps:$4 sm:$0xff]  }
 0x726   :  { %v7967_v56 = vmax.f32 %v7965_v27, %v7966_v14  ;;  %v7972_v58 = vmax.f32 %v7970_v24, %v7971_v42  ;;  %v7979_v31 = vmax.f32 %v7977_v46, %v7978_v59  ;;  %v7985_v43 = vrot.slane %v7984_v62, 4  ;;  %9281 = vmatprep.subr.bf16.mxu1 %v15749_v34 }
 0x727   :  { %v7940_v2 = vrot.slane %v7939_v21, 1  ;;  %v7946_v61 = vmax.f32 %v7944_v39, %v7945_v41  ;;  %v7953_v19 = vmax.f32 %v7951_v18, %v7952_v35  ;;  %v7959_v6 = vrot.slane %v7958_v44, 2 }
 0x728   :  { %v7968_v25 = vrot.slane %v7967_v56, 1  ;;  %v7973_v22 = vrot.slane %v7972_v58, 2  ;;  %v7980_v52 = vrot.slane %v7979_v31, 2  ;;  %v7986_v50 = vmax.f32 %v7984_v62, %v7985_v43 }
 0x729   :  { %v7941_v28 = vmax.f32 %v7939_v21, %v7940_v2  ;;  %v7947_v4 = vrot.slane %v7946_v61, 1  ;;  %v7954_v13 = vrot.slane %v7953_v19, 1  ;;  %v7960_v37 = vmax.f32 %v7958_v44, %v7959_v6 }
 0x72a   :  { %v7969_v0 = vmax.f32 %v7967_v56, %v7968_v25  ;;  %v7974_v7 = vmax.f32 %v7972_v58, %v7973_v22  ;;  %v7981_v40 = vmax.f32 %v7979_v31, %v7980_v52  ;;  %v7987_v27 = vrot.slane %v7986_v50, 2 }
 0x72b   :  { %v7948_v24 = vmax.f32 %v7946_v61, %v7947_v4  ;;  %v7955_v46 = vmax.f32 %v7953_v19, %v7954_v13  ;;  %v7961_v11 = vrot.slane %v7960_v37, 1  ;;  %v8603_v14 = vpack.c.bf16 %v7941_v28, %v7941_v28 }
 0x72c   :  { %v7975_v39 = vrot.slane %v7974_v7, 1  ;;  %v7982_v18 = vrot.slane %v7981_v40, 1  ;;  %v7988_v42 = vmax.f32 %v7986_v50, %v7987_v27  ;;  %v8607_v59 = vpack.c.bf16 %v7969_v0, %v7969_v0 }
 0x72d   :  { %v7962_v41 = vmax.f32 %v7960_v37, %v7961_v11  ;;  %v8401_v62 = vsel %vm4042_vm11, %v7955_v46, %v7941_v28  ;;  %v8604_v21 = vpack.c.bf16 %v7948_v24, %v7948_v24  ;;  %v8605_v35 = vpack.c.bf16 %v7955_v46, %v7955_v46 }
 0x72e   :  { %v7976_v6 = vmax.f32 %v7974_v7, %v7975_v39  ;;  %v7983_v44 = vmax.f32 %v7981_v40, %v7982_v18  ;;  %v7989_v56 = vrot.slane %v7988_v42, 1  ;;  %v8402_v58 = vsel %vm4044_vm12, %v7969_v0, %v8401_v62 }
 0x72f   :  { %v8408_v13 = vsel %vm4042_vm11, %v7962_v41, %v7948_v24  ;;  %v8606_v61 = vpack.c.bf16 %v7962_v41, %v7962_v41  ;;  %v7335_v31 = vmax.f32 %v19410_v57, 0.0  ;;  %v8796_v19 = vunpack.c.l.b16 %v8603_v14 }
 0x730   :  { %v19435_v43 = vsel %vm4046_vm13, %v7983_v44, %v8402_v58  ;;  %v8409_v2 = vsel %vm4044_vm12, %v7976_v6, %v8408_v13  ;;  %v8608_v28 = vpack.c.bf16 %v7976_v6, %v7976_v6  ;;  %v19438_v25 = vmax.f32 %v7988_v42, %v7989_v56 }
 0x731   :  { %v8609_v7 = vpack.c.bf16 %v7983_v44, %v7983_v44  ;;  %v19440_v22 = vunpack.c.l.b16 %v8604_v21  ;;  %v8798_v52 = vunpack.c.l.b16 %v8605_v35  ;;  %v19442_v50 = vunpack.c.l.b16 %v8606_v61 }
 0x732   :  { %v8800_v37 = vunpack.c.l.b16 %v8607_v59  ;;  %v21741_v34 = vmax.f32 %v19394_v54, 0.0  ;;  %v21742_v57 = vmax.f32 %v19390_v32, 0.0  ;;  %v19454_v46 = vsel %vm4046_vm13, %v19438_v25, %v8409_v2 }
 0x733   :  { %v8858_v11 = vsel %vm4042_vm11, %v8798_v52, %v8796_v19  ;;  %v7336_v14 = vmax.f32 %v19416_v17, 0.0  ;;  %v19460_v39 = vadd.f32 %v19246_v3, %v19288_v26  ;;  %v19462_v18 = vunpack.c.l.b16 %v8608_v28 }
 0x734   :  { %v7413_v0 = vcombine.low %v21742_v57, %v21741_v34  ;;  %v21743_v40 = vmov %v21741_v34  ;;  %v21744_v27 = vmov %v21742_v57  ;;  %v19465_v42 = vsel %vm4044_vm12, %v8800_v37, %v8858_v11 }
 0x735   :  { %v7414_v24 = vcombine.high %v21744_v27, %v21743_v40  ;;  %21745 = vst [vmem:[#allocation20_spill] sm:$0xff] %v19465_v42  ;;  %v7431_v59 = vcombine.low %v7335_v31, %v7336_v14  ;;  %v7432_v41 = vcombine.high %v7335_v31, %v7336_v14  ;;  %v19471_v62 = vadd.f32 %v19249_v63, %v19291_v1 }
 0x736   :  { %v7421_v32 = vrot.slane %v7413_v0, %v21690_v29  ;;  %v19475_v17 = vadd.f32 %v19246_v3, %v19293_v8  ;;  %v19479_v44 = vunpack.c.l.b16 %v8609_v7 }
 0x737   :  { %v7428_v54 = vrot.slane %v7414_v24, %v21690_v29  ;;  %v19482_v56 = vrot.slane %v7431_v59, %v21690_v29  ;;  %v19485_v58 = vrot.slane %v7432_v41, %v21690_v29 }
 0x738   :  { %v7429_v26 = vcombine.high %v7421_v32, %v7421_v32  ;;  %v7605_v35 = vrot.slane %v7421_v32, %v21690_v29  ;;  %21746 = vst [vmem:[#allocation19_spill] sm:$0xff] %v19479_v44 }
 0x739   :  { %v7430_v21 = vcombine.high %v7428_v54, %v7428_v54  ;;  %v7621_v6 = vrot.slane %v7428_v54, %v21690_v29 }
 0x73a   :  { %v7606_v13 = vcombine.high %v7605_v35, %v7605_v35  ;;  %v7613_v8 = vrot.slane %v7429_v26, %v21690_v29  ;;  %v7991_v2 = vsel %vm5741_vm5, %v7605_v35, -inf }
 0x73b   :  { %v7622_v61 = vcombine.high %v7621_v6, %v7621_v6  ;;  %v7629_v31 = vrot.slane %v7430_v21, %v21690_v29  ;;  %v8019_v28 = vsel %vm5741_vm5, %v7621_v6, -inf  ;;  %v7992_v34 = vrot.slane %v7991_v2, 4 }
 0x73c   :  { %v7614_v52 = vcombine.high %v7613_v8, %v7613_v8  ;;  %v7998_v57 = vsel %vm5741_vm5, %v7606_v13, -inf  ;;  %v8005_v40 = vsel %vm5741_vm5, %v7613_v8, -inf  ;;  %v8020_v27 = vrot.slane %v8019_v28, 4 }
 0x73d   :  { %v7630_v37 = vcombine.high %v7629_v31, %v7629_v31  ;;  %v7999_v0 = vrot.slane %v7998_v57, 4  ;;  %v8026_v24 = vsel %vm5741_vm5, %v7622_v61, -inf  ;;  %v7993_v11 = vmax.f32 %v7991_v2, %v7992_v34 }
 0x73e   :  { %v8006_v14 = vrot.slane %v8005_v40, 4  ;;  %v8012_v32 = vsel %vm5741_vm5, %v7614_v52, -inf  ;;  %v8027_v54 = vrot.slane %v8026_v24, 4  ;;  %v8021_v26 = vmax.f32 %v8019_v28, %v8020_v27 }
 0x73f   :  { %v8000_v59 = vmax.f32 %v7998_v57, %v7999_v0  ;;  %v8013_v41 = vrot.slane %v8012_v32, 4  ;;  %v8033_v21 = vsel %vm5741_vm5, %v7629_v31, -inf  ;;  %v7994_v35 = vrot.slane %v7993_v11, 2 }
 0x740   :  { %v8007_v6 = vmax.f32 %v8005_v40, %v8006_v14  ;;  %v8028_v4 = vmax.f32 %v8026_v24, %v8027_v54  ;;  %v8034_v13 = vrot.slane %v8033_v21, 4  ;;  %v8022_v8 = vrot.slane %v8021_v26, 2 }
 0x741   :  { %v8001_v7 = vrot.slane %v8000_v59, 2  ;;  %v8014_v1 = vmax.f32 %v8012_v32, %v8013_v41  ;;  %v8040_v19 = vsel %vm5741_vm5, %v7630_v37, -inf  ;;  %v7995_v61 = vmax.f32 %v7993_v11, %v7994_v35 }
 0x742   :  { %v8008_v2 = vrot.slane %v8007_v6, 2  ;;  %v8029_v34 = vrot.slane %v8028_v4, 2  ;;  %v8035_v60 = vmax.f32 %v8033_v21, %v8034_v13  ;;  %v8023_v57 = vmax.f32 %v8021_v26, %v8022_v8 }
 0x743   :  { %v8002_v52 = vmax.f32 %v8000_v59, %v8001_v7  ;;  %v8015_v5 = vrot.slane %v8014_v1, 2  ;;  %v8041_v0 = vrot.slane %v8040_v19, 4  ;;  %v7996_v28 = vrot.slane %v7995_v61, 1 }
 0x744   :  { %v8009_v27 = vmax.f32 %v8007_v6, %v8008_v2  ;;  %v8036_v31 = vrot.slane %v8035_v60, 2  ;;  %v7447_v40 = vcombine.high %v19482_v56, %v19482_v56  ;;  %v8024_v32 = vrot.slane %v8023_v57, 1 }
 0x745   :  { %v8003_v24 = vrot.slane %v8002_v52, 1  ;;  %v19502_v14 = vmax.f32 %v8014_v1, %v8015_v5  ;;  %v19504_v54 = vmax.f32 %v8028_v4, %v8029_v34  ;;  %v7997_v37 = vmax.f32 %v7995_v61, %v7996_v28 }
 0x746   :  { %v8010_v11 = vrot.slane %v8009_v27, 1  ;;  %v8037_v41 = vmax.f32 %v8035_v60, %v8036_v31  ;;  %v7448_v7 = vcombine.high %v19485_v58, %v19485_v58  ;;  %v8025_v26 = vmax.f32 %v8023_v57, %v8024_v32 }
 0x747   :  { %v19508_v59 = vmax.f32 %v8002_v52, %v8003_v24  ;;  %v19510_v21 = vmax.f32 %v8040_v19, %v8041_v0  ;;  %v7637_v35 = vrot.slane %v19482_v56, %v21690_v29  ;;  %v8404_v4 = vsel %vm4048_vm14, %v7997_v37, %v19435_v43 }
 0x748   :  { %v8011_v6 = vmax.f32 %v8009_v27, %v8010_v11  ;;  %v8038_v5 = vrot.slane %v8037_v41, 1  ;;  %v8611_v1 = vpack.c.bf16 %v7997_v37, %v7997_v37  ;;  %v8615_v8 = vpack.c.bf16 %v8025_v26, %v8025_v26 }
 0x749   :  { %v7645_v61 = vrot.slane %v7447_v40, %v21690_v29  ;;  %v19523_v19 = vsel %vm4048_vm14, %v19508_v59, %v19454_v46  ;;  %v7638_v34 = vcombine.high %v7637_v35, %v7637_v35  ;;  %v7653_v0 = vrot.slane %v19485_v58, %v21690_v29 }
 0x74a   :  { %v8405_v2 = vsel %vm4050_vm15, %v8011_v6, %v8404_v4  ;;  %21747 = vst [vmem:[#allocation18_spill] sm:$0xff] %v19523_v19  ;;  %v8613_v56 = vpack.c.bf16 %v8011_v6, %v8011_v6  ;;  %v19525_v52 = vmax.f32 %v8037_v41, %v8038_v5  ;;  %v19530_v28 = vunpack.c.l.b16 %v8611_v1 }
 0x74b   :  { %v8406_v43 = vsel %vm4052_vm0, %v8025_v26, %v8405_v2  ;;  %v7646_v57 = vcombine.high %v7645_v61, %v7645_v61  ;;  %v19532_v27 = vunpack.c.l.b16 %v8615_v8  ;;  %v7661_v31 = vrot.slane %v7448_v7, %v21690_v29 }
 0x74c   :  { %21748 = vst [vmem:[#allocation15_spill] sm:$0xff] %v19530_v28  ;;  %v8047_v40 = vsel %vm5741_vm5, %v7637_v35, -inf  ;;  %v19538_v46 = vsel %vm4054_vm1, %v19525_v52, %v8406_v43  ;;  %v19540_v24 = vunpack.c.l.b16 %v8613_v56  ;;  %v7654_v32 = vcombine.high %v7653_v0, %v7653_v0 }
 0x74d   :  { %21749 = vst [vmem:[#allocation21_spill] sm:$0xff] %v19532_v27  ;;  %21750 = vst [vmem:[#allocation17_spill] sm:$0xff] %v19538_v46  ;;  %v8048_v37 = vrot.slane %v8047_v40, 4  ;;  %v7662_v11 = vcombine.high %v7661_v31, %v7661_v31  ;;  %v8054_v41 = vsel %vm5741_vm5, %v7638_v34, -inf  ;;  %v8061_v58 = vsel %vm5741_vm5, %v7645_v61, -inf }
 0x74e   :  { %21751 = vst [vmem:[#allocation23_spill] sm:$0xff] %v19540_v24  ;;  %v8068_v26 = vsel %vm5741_vm5, %v7646_v57, -inf  ;;  %v8055_v5 = vrot.slane %v8054_v41, 4  ;;  %v8062_v7 = vrot.slane %v8061_v58, 4  ;;  %v8075_v35 = vsel %vm5741_vm5, %v7653_v0, -inf }
 0x74f   :  { %v8049_v6 = vmax.f32 %v8047_v40, %v8048_v37  ;;  %v8069_v4 = vrot.slane %v8068_v26, 4  ;;  %v8082_v1 = vsel %vm5741_vm5, %v7654_v32, -inf  ;;  %v8089_v8 = vsel %vm5741_vm5, %v7661_v31, -inf }
 0x750   :  { %v8096_v2 = vsel %vm5741_vm5, %v7662_v11, -inf  ;;  %v8056_v43 = vmax.f32 %v8054_v41, %v8055_v5  ;;  %v8063_v60 = vmax.f32 %v8061_v58, %v8062_v7  ;;  %v8076_v13 = vrot.slane %v8075_v35, 4 }
 0x751   :  { %v8050_v56 = vrot.slane %v8049_v6, 2  ;;  %v8070_v34 = vmax.f32 %v8068_v26, %v8069_v4  ;;  %v8083_v61 = vrot.slane %v8082_v1, 4  ;;  %v8090_v19 = vrot.slane %v8089_v8, 4 }
 0x752   :  { %v8097_v57 = vrot.slane %v8096_v2, 4  ;;  %v8057_v37 = vrot.slane %v8056_v43, 2  ;;  %v8064_v48 = vrot.slane %v8063_v60, 2  ;;  %v8077_v9 = vmax.f32 %v8075_v35, %v8076_v13 }
 0x753   :  { %v8051_v40 = vmax.f32 %v8049_v6, %v8050_v56  ;;  %v8071_v27 = vrot.slane %v8070_v34, 2  ;;  %v8084_v0 = vmax.f32 %v8082_v1, %v8083_v61  ;;  %v8091_v24 = vmax.f32 %v8089_v8, %v8090_v19 }
 0x754   :  { %v8098_v32 = vmax.f32 %v8096_v2, %v8097_v57  ;;  %v8058_v31 = vmax.f32 %v8056_v43, %v8057_v37  ;;  %v8065_v28 = vmax.f32 %v8063_v60, %v8064_v48  ;;  %v8078_v23 = vrot.slane %v8077_v9, 2 }
 0x755   :  { %v8052_v38 = vrot.slane %v8051_v40, 1  ;;  %v8072_v11 = vmax.f32 %v8070_v34, %v8071_v27  ;;  %v8085_v41 = vrot.slane %v8084_v0, 2  ;;  %v8092_v58 = vrot.slane %v8091_v24, 2 }
 0x756   :  { %v8099_v26 = vrot.slane %v8098_v32, 2  ;;  %v8059_v7 = vrot.slane %v8058_v31, 1  ;;  %v8066_v4 = vrot.slane %v8065_v28, 1  ;;  %v8079_v6 = vmax.f32 %v8077_v9, %v8078_v23 }
 0x757   :  { %v8053_v5 = vmax.f32 %v8051_v40, %v8052_v38  ;;  %v8073_v44 = vrot.slane %v8072_v11, 1  ;;  %v8086_v56 = vmax.f32 %v8084_v0, %v8085_v41  ;;  %v8093_v42 = vmax.f32 %v8091_v24, %v8092_v58 }
 0x758   :  { %v8100_v53 = vmax.f32 %v8098_v32, %v8099_v26  ;;  %v8060_v13 = vmax.f32 %v8058_v31, %v8059_v7  ;;  %v8067_v35 = vmax.f32 %v8065_v28, %v8066_v4  ;;  %v8080_v8 = vrot.slane %v8079_v6, 1 }
 0x759   :  { %v8074_v19 = vmax.f32 %v8072_v11, %v8073_v44  ;;  %v8619_v1 = vpack.c.bf16 %v8053_v5, %v8053_v5  ;;  %v8087_v2 = vrot.slane %v8086_v56, 1  ;;  %v8094_v48 = vrot.slane %v8093_v42, 1 }
 0x75a   :  { %v8101_v60 = vrot.slane %v8100_v53, 1  ;;  %v8415_v27 = vsel %vm4042_vm11, %v8067_v35, %v8053_v5  ;;  %v8620_v38 = vpack.c.bf16 %v8060_v13, %v8060_v13  ;;  %v8621_v34 = vpack.c.bf16 %v8067_v35, %v8067_v35 }
 0x75b   :  { %v8422_v43 = vsel %vm4042_vm11, %v8074_v19, %v8060_v13  ;;  %v8081_v23 = vmax.f32 %v8079_v6, %v8080_v8  ;;  %v8088_v9 = vmax.f32 %v8086_v56, %v8087_v2  ;;  %v19552_v24 = vmax.f32 %v8093_v42, %v8094_v48 }
 0x75c   :  { %v19554_v57 = vmax.f32 %v8100_v53, %v8101_v60  ;;  %v8622_v44 = vpack.c.bf16 %v8074_v19, %v8074_v19  ;;  %v19556_v28 = vunpack.c.l.b16 %v8619_v1  ;;  %v19558_v40 = vunpack.c.l.b16 %v8620_v38 }
 0x75d   :  { %21752 = vst [vmem:[#allocation22_spill] sm:$0xff] %v19552_v24  ;;  %v8416_v37 = vsel %vm4044_vm12, %v8081_v23, %v8415_v27  ;;  %v8423_v0 = vsel %vm4044_vm12, %v8088_v9, %v8422_v43  ;;  %v8623_v32 = vpack.c.bf16 %v8081_v23, %v8081_v23  ;;  %v8624_v31 = vpack.c.bf16 %v8088_v9, %v8088_v9 }
 0x75e   :  { %21753 = vst [vmem:[#allocation34_spill] sm:$0xff] %v19556_v28  ;;  %v19564_v11 = vsel %vm4046_vm13, %v19552_v24, %v8416_v37  ;;  %v19568_v42 = vsel %vm4046_vm13, %v19554_v57, %v8423_v0  ;;  %v19572_v41 = vunpack.c.l.b16 %v8621_v34  ;;  %v19574_v58 = vunpack.c.l.b16 %v8622_v44 }
 0x75f   :  { %v19576_v26 = vunpack.c.l.b16 %v8623_v32  ;;  %v21757_v5 = vmax.f32 %v19471_v62, 0.0  ;;  %v21758_v7 = vmax.f32 %v19460_v39, 0.0  ;;  %v19586_v35 = vunpack.c.l.b16 %v8624_v31 }
 0x760   :  { %21754 = vst [vmem:[#allocation32_spill] sm:$0xff] %v19572_v41  ;;  %21755 = vst [vmem:[#allocation33_spill] sm:$0xff] %v19574_v58  ;;  %v7324_v19 = vadd.f32 %v19249_v63, %v19295_v20  ;;  %v7325_v1 = vadd.f32 %v19246_v3, %v19301_v12  ;;  %v7326_v8 = vadd.f32 %v19249_v63, %v19303_v47  ;;  %v21762_v62 = vrot.slane %v19359_v30, 1 }
 0x761   :  { %21756 = vst [vmem:[#allocation24_spill] sm:$0xff] %v19576_v26  ;;  %v7449_v4 = vcombine.low %v21758_v7, %v21757_v5  ;;  %v21759_v6 = vmov %v21757_v5  ;;  %v21760_v56 = vmov %v21758_v7  ;;  %21761 = vst [vmem:[#allocation27_spill] sm:$0xff] %v19586_v35  ;;  %v21763_v60 = vrot.slane %v19361_v33, 1 }
 0x762   :  { %v7450_v13 = vcombine.high %v21760_v56, %v21759_v6  ;;  %v19599_v39 = vmax.f32 %v19359_v30, %v21762_v62  ;;  %v7340_v20 = vmax.f32 %v7324_v19, 0.0  ;;  %v7341_v43 = vmax.f32 %v7325_v1, 0.0 }
 0x763   :  { %v7457_v2 = vrot.slane %v7449_v4, %v21690_v29  ;;  %v19604_v27 = vmax.f32 %v19361_v33, %v21763_v60  ;;  %v7342_v3 = vmax.f32 %v7326_v8, 0.0  ;;  %v21764_v23 = vmax.f32 %v19475_v17, 0.0 }
 0x764   :  { %v7464_v48 = vrot.slane %v7450_v13, %v21690_v29 }
 0x765   :  { %v7465_v63 = vcombine.high %v7457_v2, %v7457_v2  ;;  %v7669_v38 = vrot.slane %v7457_v2, %v21690_v29  ;;  %v7467_v30 = vcombine.low %v21764_v23, %v7340_v20  ;;  %v21765_v9 = vmov %v21764_v23 }
 0x766   :  { %v7466_v47 = vcombine.high %v7464_v48, %v7464_v48  ;;  %v7685_v34 = vrot.slane %v7464_v48, %v21690_v29  ;;  %v7468_v44 = vcombine.high %v21765_v9, %v7340_v20  ;;  %v19613_v37 = vcombine.low %v7341_v43, %v7342_v3 }
 0x767   :  { %v19615_v33 = vcombine.high %v7341_v43, %v7342_v3  ;;  %v7670_v0 = vcombine.high %v7669_v38, %v7669_v38  ;;  %v7677_v32 = vrot.slane %v7465_v63, %v21690_v29  ;;  %v8103_v7 = vsel %vm5741_vm5, %v7669_v38, -inf }
 0x768   :  { %v7686_v31 = vcombine.high %v7685_v34, %v7685_v34  ;;  %v7693_v5 = vrot.slane %v7466_v47, %v21690_v29  ;;  %v8131_v4 = vsel %vm5741_vm5, %v7685_v34, -inf  ;;  %v7475_v6 = vrot.slane %v7467_v30, %v21690_v29 }
 0x769   :  { %v7482_v56 = vrot.slane %v7468_v44, %v21690_v29  ;;  %v7678_v17 = vcombine.high %v7677_v32, %v7677_v32  ;;  %v8104_v19 = vrot.slane %v8103_v7, 4  ;;  %v8110_v1 = vsel %vm5741_vm5, %v7670_v0, -inf }
 0x76a   :  { %v7694_v13 = vcombine.high %v7693_v5, %v7693_v5  ;;  %v8111_v8 = vrot.slane %v8110_v1, 4  ;;  %v8117_v2 = vsel %vm5741_vm5, %v7677_v32, -inf  ;;  %v8132_v48 = vrot.slane %v8131_v4, 4 }
 0x76b   :  { %v8138_v62 = vsel %vm5741_vm5, %v7686_v31, -inf  ;;  %v8105_v60 = vmax.f32 %v8103_v7, %v8104_v19  ;;  %v8118_v20 = vrot.slane %v8117_v2, 4  ;;  %v8124_v43 = vsel %vm5741_vm5, %v7678_v17, -inf }
 0x76c   :  { %v8139_v3 = vrot.slane %v8138_v62, 4  ;;  %v8112_v63 = vmax.f32 %v8110_v1, %v8111_v8  ;;  %v8125_v47 = vrot.slane %v8124_v43, 4  ;;  %v8133_v38 = vmax.f32 %v8131_v4, %v8132_v48 }
 0x76d   :  { %v8145_v34 = vsel %vm5741_vm5, %v7693_v5, -inf  ;;  %v8106_v23 = vrot.slane %v8105_v60, 2  ;;  %v8119_v30 = vmax.f32 %v8117_v2, %v8118_v20  ;;  %v8152_v53 = vsel %vm5741_vm5, %v7694_v13, -inf }
 0x76e   :  { %v8140_v9 = vmax.f32 %v8138_v62, %v8139_v3  ;;  %v8146_v44 = vrot.slane %v8145_v34, 4  ;;  %v8113_v0 = vrot.slane %v8112_v63, 2  ;;  %v8126_v61 = vmax.f32 %v8124_v43, %v8125_v47 }
 0x76f   :  { %v8134_v32 = vrot.slane %v8133_v38, 2  ;;  %v8107_v31 = vmax.f32 %v8105_v60, %v8106_v23  ;;  %v8120_v7 = vrot.slane %v8119_v30, 2  ;;  %v8153_v4 = vrot.slane %v8152_v53, 4 }
 0x770   :  { %v8141_v19 = vrot.slane %v8140_v9, 2  ;;  %v19629_v12 = vmax.f32 %v8145_v34, %v8146_v44  ;;  %v8114_v17 = vmax.f32 %v8112_v63, %v8113_v0  ;;  %v8127_v1 = vrot.slane %v8126_v61, 2 }
 0x771   :  { %v8135_v8 = vmax.f32 %v8133_v38, %v8134_v32  ;;  %v8108_v48 = vrot.slane %v8107_v31, 1  ;;  %v8121_v5 = vmax.f32 %v8119_v30, %v8120_v7  ;;  %v21767_v2 = vrot.slane %v19502_v14, 1 }
 0x772   :  { %21766 = vst [vmem:[#allocation30_spill] sm:$0xff] %v19629_v12  ;;  %v19631_v46 = vmax.f32 %v8140_v9, %v8141_v19  ;;  %v8115_v20 = vrot.slane %v8114_v17, 1  ;;  %v19638_v13 = vmax.f32 %v8126_v61, %v8127_v1  ;;  %v19643_v47 = vmax.f32 %v8152_v53, %v8153_v4 }
 0x773   :  { %v19636_v62 = vmax.f32 %v19502_v14, %v21767_v2  ;;  %v8136_v60 = vrot.slane %v8135_v8, 1  ;;  %v19641_v3 = vmax.f32 %v8107_v31, %v8108_v48  ;;  %v8122_v63 = vrot.slane %v8121_v5, 1 }
 0x774   :  { %v7483_v38 = vcombine.high %v7475_v6, %v7475_v6  ;;  %v19645_v34 = vmax.f32 %v8114_v17, %v8115_v20  ;;  %v7484_v14 = vcombine.high %v7482_v56, %v7482_v56  ;;  %v7701_v53 = vrot.slane %v7475_v6, %v21690_v29 }
 0x775   :  { %21768 = vst [vmem:[#allocation49_spill] sm:$0xff] %v19641_v3  ;;  %v19649_v9 = vmax.f32 %v8121_v5, %v8122_v63  ;;  %v19651_v61 = vmax.f32 %v8135_v8, %v8136_v60  ;;  %v19656_v44 = vsel %vm4048_vm14, %v19641_v3, %v19564_v11  ;;  %v7717_v31 = vrot.slane %v7482_v56, %v21690_v29 }
 0x776   :  { %21771 = vst [vmem:[#allocation42_spill] sm:$0xff] %v19656_v44  ;;  %v19662_v0 = vsel %vm4048_vm14, %v19645_v34, %v19568_v42  ;;  %v7709_v32 = vrot.slane %v7483_v38, %v21690_v29  ;;  %v7725_v7 = vrot.slane %v7484_v14, %v21690_v29  ;;  %v7702_v19 = vcombine.high %v7701_v53, %v7701_v53 }
 0x777   :  { %21769 = vst [vmem:[#allocation48_spill] sm:$0xff] %v19649_v9  ;;  %21770 = vst [vmem:[#allocation53_spill] sm:$0xff] %v19651_v61  ;;  %v8159_v17 = vsel %vm5741_vm5, %v7701_v53, -inf  ;;  %v19670_v11 = vrot.slane %v19613_v37, %v21690_v29  ;;  %v19674_v6 = vrot.slane %v19615_v33, %v21690_v29  ;;  %v7718_v42 = vcombine.high %v7717_v31, %v7717_v31 }
 0x778   :  { %21772 = vst [vmem:[#allocation44_spill] sm:$0xff] %v19662_v0  ;;  %v7710_v1 = vcombine.high %v7709_v32, %v7709_v32  ;;  %v7726_v8 = vcombine.high %v7725_v7, %v7725_v7  ;;  %v8160_v4 = vrot.slane %v8159_v17, 4  ;;  %v8166_v48 = vsel %vm5741_vm5, %v7702_v19, -inf }
 0x779   :  { %v8173_v56 = vsel %vm5741_vm5, %v7709_v32, -inf  ;;  %v8187_v5 = vsel %vm5741_vm5, %v7717_v31, -inf  ;;  %v8201_v2 = vsel %vm5741_vm5, %v7725_v7, -inf  ;;  %v8167_v60 = vrot.slane %v8166_v48, 4 }
 0x77a   :  { %v8161_v20 = vmax.f32 %v8159_v17, %v8160_v4  ;;  %v8174_v37 = vrot.slane %v8173_v56, 4  ;;  %v8180_v63 = vsel %vm5741_vm5, %v7710_v1, -inf  ;;  %v8188_v33 = vrot.slane %v8187_v5, 4 }
 0x77b   :  { %v8181_v38 = vrot.slane %v8180_v63, 4  ;;  %v8194_v14 = vsel %vm5741_vm5, %v7718_v42, -inf  ;;  %v8202_v53 = vrot.slane %v8201_v2, 4  ;;  %v8168_v30 = vmax.f32 %v8166_v48, %v8167_v60 }
 0x77c   :  { %v8162_v43 = vrot.slane %v8161_v20, 2  ;;  %v8175_v23 = vmax.f32 %v8173_v56, %v8174_v37  ;;  %v8195_v19 = vrot.slane %v8194_v14, 4  ;;  %v8189_v32 = vmax.f32 %v8187_v5, %v8188_v33 }
 0x77d   :  { %v8182_v44 = vmax.f32 %v8180_v63, %v8181_v38  ;;  %v8203_v0 = vmax.f32 %v8201_v2, %v8202_v53  ;;  %v8208_v31 = vsel %vm5741_vm5, %v7726_v8, -inf  ;;  %v8169_v17 = vrot.slane %v8168_v30, 2 }
 0x77e   :  { %v8163_v7 = vmax.f32 %v8161_v20, %v8162_v43  ;;  %v8176_v4 = vrot.slane %v8175_v23, 2  ;;  %v8196_v26 = vmax.f32 %v8194_v14, %v8195_v19  ;;  %v8190_v1 = vrot.slane %v8189_v32, 2 }
 0x77f   :  { %v8183_v41 = vrot.slane %v8182_v44, 2  ;;  %v8204_v28 = vrot.slane %v8203_v0, 2  ;;  %v8209_v24 = vrot.slane %v8208_v31, 4  ;;  %v8170_v42 = vmax.f32 %v8168_v30, %v8169_v17 }
 0x780   :  { %v8164_v61 = vrot.slane %v8163_v7, 1  ;;  %v8177_v9 = vmax.f32 %v8175_v23, %v8176_v4  ;;  %v8197_v35 = vrot.slane %v8196_v26, 2  ;;  %v8191_v56 = vmax.f32 %v8189_v32, %v8190_v1 }
 0x781   :  { %v8184_v48 = vmax.f32 %v8182_v44, %v8183_v41  ;;  %v8205_v60 = vmax.f32 %v8203_v0, %v8204_v28  ;;  %v8210_v37 = vmax.f32 %v8208_v31, %v8209_v24  ;;  %v8171_v2 = vrot.slane %v8170_v42, 1 }
 0x782   :  { %v8165_v5 = vmax.f32 %v8163_v7, %v8164_v61  ;;  %v8178_v63 = vrot.slane %v8177_v9, 1  ;;  %v8198_v8 = vmax.f32 %v8196_v26, %v8197_v35  ;;  %v8192_v20 = vrot.slane %v8191_v56, 1 }
 0x783   :  { %v8185_v43 = vrot.slane %v8184_v48, 1  ;;  %v8206_v38 = vrot.slane %v8205_v60, 1  ;;  %v8211_v33 = vrot.slane %v8210_v37, 2  ;;  %v8172_v14 = vmax.f32 %v8170_v42, %v8171_v2 }
 0x784   :  { %v8179_v53 = vmax.f32 %v8177_v9, %v8178_v63  ;;  %v8199_v19 = vrot.slane %v8198_v8, 1  ;;  %v8635_v12 = vpack.c.bf16 %v8165_v5, %v8165_v5  ;;  %v19683_v30 = vmax.f32 %v8191_v56, %v8192_v20 }
 0x785   :  { %v8186_v58 = vmax.f32 %v8184_v48, %v8185_v43  ;;  %v19685_v23 = vmax.f32 %v8205_v60, %v8206_v38  ;;  %v8212_v41 = vmax.f32 %v8210_v37, %v8211_v33  ;;  %v8636_v61 = vpack.c.bf16 %v8172_v14, %v8172_v14 }
 0x786   :  { %v8200_v28 = vmax.f32 %v8198_v8, %v8199_v19  ;;  %v8429_v24 = vsel %vm4042_vm11, %v8179_v53, %v8165_v5  ;;  %v8637_v44 = vpack.c.bf16 %v8179_v53, %v8179_v53  ;;  %v19704_v48 = vunpack.c.l.b16 %v8635_v12 }
 0x787   :  { %21773 = vst [vmem:[#allocation45_spill] sm:$0xff] %v19685_v23  ;;  %v8213_v26 = vrot.slane %v8212_v41, 1  ;;  %v8430_v35 = vsel %vm4044_vm12, %v19683_v30, %v8429_v24  ;;  %v8436_v0 = vsel %vm4042_vm11, %v8186_v58, %v8172_v14  ;;  %v8638_v9 = vpack.c.bf16 %v8186_v58, %v8186_v58 }
 0x788   :  { %v19695_v31 = vsel %vm4046_vm13, %v19685_v23, %v8430_v35  ;;  %v8437_v7 = vsel %vm4044_vm12, %v8200_v28, %v8436_v0  ;;  %v8640_v17 = vpack.c.bf16 %v8200_v28, %v8200_v28  ;;  %21774 = vst [vmem:[#allocation60_spill] sm:$0xff] %v19704_v48  ;;  %v19706_v58 = vunpack.c.l.b16 %v8636_v61 }
 0x789   :  { %v19698_v4 = vmax.f32 %v8212_v41, %v8213_v26  ;;  %v19708_v56 = vunpack.c.l.b16 %v8637_v44  ;;  %v19710_v60 = vunpack.c.l.b16 %v8638_v9  ;;  %v7501_v2 = vcombine.high %v19670_v11, %v19670_v11 }
 0x78a   :  { %v19712_v37 = vunpack.c.l.b16 %v8640_v17  ;;  %v7502_v63 = vcombine.high %v19674_v6, %v19674_v6  ;;  %v7733_v12 = vrot.slane %v19670_v11, %v21690_v29  ;;  %v7749_v8 = vrot.slane %v19674_v6, %v21690_v29 }
 0x78b   :  { %21775 = vst [vmem:[#allocation59_spill] sm:$0xff] %v19708_v56  ;;  %v19716_v5 = vsel %vm4046_vm13, %v19698_v4, %v8437_v7  ;;  %v21776_v43 = vrot.slane %v19372_v36, 2  ;;  %v21777_v38 = vrot.slane %v19504_v54, 1  ;;  %v8043_v14 = vrot.slane %v19510_v21, 2 }
 0x78c   :  { %v7734_v53 = vcombine.high %v7733_v12, %v7733_v12  ;;  %v7741_v19 = vrot.slane %v7501_v2, %v21690_v29  ;;  %v7757_v41 = vrot.slane %v7502_v63, %v21690_v29  ;;  %v8215_v11 = vsel %vm5741_vm5, %v7733_v12, -inf }
 0x78d   :  { %v7932_v20 = vmax.f32 %v19372_v36, %v21776_v43  ;;  %v19732_v33 = vmax.f32 %v19504_v54, %v21777_v38  ;;  %v7750_v28 = vcombine.high %v7749_v8, %v7749_v8  ;;  %v8216_v6 = vrot.slane %v8215_v11, 4 }
 0x78e   :  { %v8243_v24 = vsel %vm5741_vm5, %v7749_v8, -inf  ;;  %v7742_v36 = vcombine.high %v7741_v19, %v7741_v19  ;;  %v7758_v44 = vcombine.high %v7757_v41, %v7757_v41  ;;  %v8222_v26 = vsel %vm5741_vm5, %v7734_v53, -inf }
 0x78f   :  { %v7933_v61 = vrot.slane %v7932_v20, 1  ;;  %v8229_v54 = vsel %vm5741_vm5, %v7741_v19, -inf  ;;  %v8217_v35 = vmax.f32 %v8215_v11, %v8216_v6  ;;  %v8223_v0 = vrot.slane %v8222_v26, 4 }
 0x790   :  { %v8230_v9 = vrot.slane %v8229_v54, 4  ;;  %v8244_v7 = vrot.slane %v8243_v24, 4  ;;  %v8236_v17 = vsel %vm5741_vm5, %v7742_v36, -inf  ;;  %v8250_v2 = vsel %vm5741_vm5, %v7750_v28, -inf }
 0x791   :  { %v8257_v63 = vsel %vm5741_vm5, %v7757_v41, -inf  ;;  %v8264_v12 = vsel %vm5741_vm5, %v7758_v44, -inf  ;;  %v8218_v8 = vrot.slane %v8217_v35, 2  ;;  %v8224_v43 = vmax.f32 %v8222_v26, %v8223_v0 }
 0x792   :  { %v8231_v38 = vmax.f32 %v8229_v54, %v8230_v9  ;;  %v8237_v42 = vrot.slane %v8236_v17, 4  ;;  %v8245_v32 = vmax.f32 %v8243_v24, %v8244_v7  ;;  %v8251_v53 = vrot.slane %v8250_v2, 4 }
 0x793   :  { %v8258_v1 = vrot.slane %v8257_v63, 4  ;;  %v8265_v19 = vrot.slane %v8264_v12, 4  ;;  %v8219_v11 = vmax.f32 %v8217_v35, %v8218_v8  ;;  %v8225_v6 = vrot.slane %v8224_v43, 2 }
 0x794   :  { %v8232_v29 = vrot.slane %v8231_v38, 2  ;;  %v8238_v56 = vmax.f32 %v8236_v17, %v8237_v42  ;;  %v8246_v48 = vrot.slane %v8245_v32, 2  ;;  %v8252_v36 = vmax.f32 %v8250_v2, %v8251_v53 }
 0x795   :  { %v19745_v23 = vmax.f32 %v8257_v63, %v8258_v1  ;;  %v19747_v28 = vmax.f32 %v8264_v12, %v8265_v19  ;;  %v8220_v41 = vrot.slane %v8219_v11, 1  ;;  %v8226_v44 = vmax.f32 %v8224_v43, %v8225_v6 }
 0x796   :  { %v8233_v3 = vmax.f32 %v8231_v38, %v8232_v29  ;;  %v8239_v26 = vrot.slane %v8238_v56, 2  ;;  %v8247_v54 = vmax.f32 %v8245_v32, %v8246_v48  ;;  %v8253_v0 = vrot.slane %v8252_v36, 2 }
 0x797   :  { %v8260_v24 = vrot.slane %v19745_v23, 2  ;;  %v19750_v9 = vmax.f32 %v7932_v20, %v7933_v61  ;;  %v19752_v35 = vmax.f32 %v8219_v11, %v8220_v41  ;;  %v8227_v7 = vrot.slane %v8226_v44, 1 }
 0x798   :  { %v8234_v42 = vrot.slane %v8233_v3, 1  ;;  %v19754_v17 = vmax.f32 %v8238_v56, %v8239_v26  ;;  %v8248_v1 = vrot.slane %v8247_v54, 1  ;;  %v19756_v2 = vmax.f32 %v8252_v36, %v8253_v0 }
 0x799   :  { %v8044_v63 = vmax.f32 %v19510_v21, %v8043_v14  ;;  %v8594_v29 = vpack.c.bf16 %v19328_v55, %v19328_v55  ;;  %v19761_v32 = vmax.f32 %v8226_v44, %v8227_v7  ;;  %v8432_v61 = vsel %vm4048_vm14, %v19752_v35, %v19695_v31 }
 0x79a   :  { %v19763_v48 = vmax.f32 %v8233_v3, %v8234_v42  ;;  %v8241_v20 = vrot.slane %v19754_v17, 1  ;;  %v19769_v56 = vmax.f32 %v8247_v54, %v8248_v1  ;;  %v8255_v12 = vrot.slane %v19756_v2, 1 }
 0x79b   :  { %v8643_v21 = vpack.c.bf16 %v19752_v35, %v19752_v35  ;;  %v8045_v14 = vrot.slane %v8044_v63, 1  ;;  %v19779_v3 = vsel %vm4048_vm14, %v19761_v32, %v19716_v5  ;;  %v8596_v8 = vpack.c.bf16 %v19367_v45, %v19367_v45 }
 0x79c   :  { %v8433_v55 = vsel %vm4050_vm15, %v19763_v48, %v8432_v61  ;;  %v8598_v31 = vpack.c.bf16 %v19599_v39, %v19599_v39  ;;  %v8600_v53 = vpack.c.bf16 %v19604_v27, %v19604_v27  ;;  %v8602_v19 = vpack.c.bf16 %v19750_v9, %v19750_v9 }
 0x79d   :  { %v19787_v43 = vsel %vm4052_vm0, %v19769_v56, %v8433_v55  ;;  %v19789_v38 = vmax.f32 %v8044_v63, %v8045_v14  ;;  %v8610_v5 = vpack.c.bf16 %v19438_v25, %v19438_v25  ;;  %v8612_v45 = vpack.c.bf16 %v19508_v59, %v19508_v59 }
 0x79e   :  { %v8614_v11 = vpack.c.bf16 %v19636_v62, %v19636_v62  ;;  %v8616_v6 = vpack.c.bf16 %v19732_v33, %v19732_v33  ;;  %v8787_v41 = vunpack.c.l.b16 %v8594_v29  ;;  %v8789_v44 = vunpack.c.l.b16 %v8596_v8 }
 0x79f   :  { %v8618_v36 = vpack.c.bf16 %v19789_v38, %v19789_v38  ;;  %v8791_v26 = vunpack.c.l.b16 %v8598_v31  ;;  %v8793_v54 = vunpack.c.l.b16 %v8600_v53  ;;  %v8795_v0 = vunpack.c.l.b16 %v8602_v19  ;;  %v21780_v53 = vld [vmem:[#allocation19_spill] sm:$0xff] }
 0x7a0   :  { %v8803_v7 = vunpack.c.l.b16 %v8610_v5  ;;  %v8805_v42 = vunpack.c.l.b16 %v8612_v45  ;;  %v8807_v25 = vunpack.c.l.b16 %v8614_v11  ;;  %v8809_v1 = vunpack.c.l.b16 %v8616_v6  ;;  %v21781_v11 = vld [vmem:[#allocation25_spill] sm:$0xff]  ;;  %v21782_v6 = vld [vmem:[#allocation15_spill] sm:$0xff] }
 0x7a1   :  { %v8811_v63 = vunpack.c.l.b16 %v8618_v36  ;;  %v8851_v59 = vsel %vm4042_vm11, %v19334_v10, %v19330_v49  ;;  %v8865_v29 = vsel %vm4042_vm11, %v19442_v50, %v19440_v22  ;;  %v8601_v14 = vpack.c.bf16 %v19385_v51, %v19385_v51  ;;  %v21778_v49 = vld [vmem:[#allocation63_spill] sm:$0xff] }
 0x7a2   :  { %v8852_v61 = vsel %vm4044_vm12, %v19352_v15, %v8851_v59  ;;  %v8617_v55 = vpack.c.bf16 %v19525_v52, %v19525_v52  ;;  %v8866_v31 = vsel %vm4044_vm12, %v19462_v18, %v8865_v29  ;;  %v8846_v10 = vsel %vm4046_vm13, %v21778_v49, %v19341_v16  ;;  %v21779_v15 = vld [vmem:[#allocation20_spill] sm:$0xff]  ;;  %v21783_v59 = vld [vmem:[#allocation71_spill] sm:$0xff] }
 0x7a3   :  { %v8853_v8 = vsel %vm4046_vm13, %v8787_v41, %v8852_v61  ;;  %v8860_v19 = vsel %vm4046_vm13, %v21780_v53, %v21779_v15  ;;  %v8867_v51 = vsel %vm4046_vm13, %v8803_v7, %v8866_v31  ;;  %v8794_v50 = vunpack.c.l.b16 %v8601_v14  ;;  %v21784_v7 = vld [vmem:[#allocation23_spill] sm:$0xff]  ;;  %v21785_v29 = vld [vmem:[#allocation72_spill] sm:$0xff] }
 0x7a4   :  { %v8854_v22 = vsel %vm4048_vm14, %v8789_v44, %v8853_v8  ;;  %v8810_v5 = vunpack.c.l.b16 %v8617_v55  ;;  %v8868_v45 = vsel %vm4048_vm14, %v8805_v42, %v8867_v51  ;;  %v8847_v18 = vsel %vm4048_vm14, %v21781_v11, %v8846_v10  ;;  %v21786_v55 = vld [vmem:[#allocation21_spill] sm:$0xff] }
 0x7a5   :  { %v8855_v52 = vsel %vm4050_vm15, %v8791_v26, %v8854_v22  ;;  %v8861_v16 = vsel %vm4048_vm14, %v21782_v6, %v8860_v19  ;;  %v8869_v41 = vsel %vm4050_vm15, %v8807_v25, %v8868_v45  ;;  %v8848_v44 = vsel %vm4050_vm15, %v21783_v59, %v8847_v18  ;;  %v15752_v22 = vld [vmem:[#allocation5 + $0x22c] ss:$16 sps:$4 sm:$0xff]  }
 0x7a6   :  { %v8856_v36 = vsel %vm4052_vm0, %v8793_v54, %v8855_v52  ;;  %v8862_v61 = vsel %vm4050_vm15, %v21784_v7, %v8861_v16  ;;  %v8870_v42 = vsel %vm4052_vm0, %v8809_v1, %v8869_v41  ;;  %v8849_v14 = vsel %vm4052_vm0, %v21785_v29, %v8848_v44  ;;  %v15747_v1 = vld [vmem:[#allocation5 + $0x208] ss:$16 sps:$4 sm:$0xff]   ;;  %v15755_v16 = vld [vmem:[#allocation5 + $0x24c] ss:$16 sps:$4 sm:$0xff]  }
 0x7a7   :  { %v8857_v26 = vsel %vm4054_vm1, %v8795_v0, %v8856_v36  ;;  %v8863_v8 = vsel %vm4052_vm0, %v21786_v55, %v8862_v61  ;;  %v8871_v54 = vsel %vm4054_vm1, %v8811_v63, %v8870_v42  ;;  %v8850_v25 = vsel %vm4054_vm1, %v8794_v50, %v8849_v14  ;;  %v21790_v14 = vld [vmem:[#allocation30_spill] sm:$0xff] }
 0x7a8   :  { %v8864_v31 = vsel %vm4054_vm1, %v8810_v5, %v8863_v8  ;;  %v21787_v49 = vrot.slane %v19638_v13, 1  ;;  %v19854_v0 = vpack.c.b16 %v8871_v54, %v8857_v26  ;;  %v21788_v53 = vrot.slane %v19631_v46, 1  ;;  %v21789_v26 = vld [vmem:[#allocation33_spill] sm:$0xff]  ;;  %v15753_v54 = vld [vmem:[#allocation5 + $0x248] ss:$16 sps:$4 sm:$0xff]  }
 0x7a9   :  { %v19856_v15 = vpack.c.b16 %v8864_v31, %v8850_v25  ;;  %v8155_v63 = vrot.slane %v19643_v47, 2  ;;  %v19867_v51 = vmax.f32 %v19754_v17, %v8241_v20  ;;  %v8267_v50 = vrot.slane %v19747_v28, 2  ;;  %v21792_v31 = vld [vmem:[#allocation27_spill] sm:$0xff] }
 0x7aa   :  { %v19852_v10 = vmax.f32 %v19638_v13, %v21787_v49  ;;  %v19861_v19 = vmax.f32 %v19631_v46, %v21788_v53  ;;  %v19870_v13 = vmax.f32 %v19756_v2, %v8255_v12  ;;  %v8626_v5 = vpack.c.bf16 %v19554_v57, %v19554_v57  ;;  %9260 = vmatprep.mubr.bf16.mxu1 %v19854_v0 }
 0x7ab   :  { %v8156_v46 = vmax.f32 %v19643_v47, %v8155_v63  ;;  %v8628_v52 = vpack.c.bf16 %v19645_v34, %v19645_v34  ;;  %9261 = vmatmul.mubr.bf16.vlgmr.msra.gmra.mrb[32].mxu1 %v19856_v15  ;;  %v8268_v2 = vmax.f32 %v19747_v28, %v8267_v50  ;;  %v8642_v57 = vpack.c.bf16 %v19698_v4, %v19698_v4  ;;  %v15750_v34 = vld [vmem:[#allocation5 + $0x228] ss:$16 sps:$4 sm:$0xff]  }
 0x7ac   :  { %v8630_v45 = vpack.c.bf16 %v19852_v10, %v19852_v10  ;;  %v8632_v17 = vpack.c.bf16 %v19861_v19, %v19861_v19  ;;  %v8644_v20 = vpack.c.bf16 %v19761_v32, %v19761_v32  ;;  %v8646_v47 = vpack.c.bf16 %v19867_v51, %v19867_v51  ;;  %9282 = vmatpush1.bf16.msra.mxu1 %v15747_v1 }
 0x7ad   :  { %v8157_v12 = vrot.slane %v8156_v46, 1  ;;  %v8648_v11 = vpack.c.bf16 %v19870_v13, %v19870_v13  ;;  %v8819_v18 = vunpack.c.l.b16 %v8626_v5  ;;  %v8821_v6 = vunpack.c.l.b16 %v8628_v52  ;;  %9283 = vmatprep.subr.bf16.mxu1 %v15752_v22 }
 0x7ae   :  { %v8269_v28 = vrot.slane %v8268_v2, 1  ;;  %v8823_v36 = vunpack.c.l.b16 %v8630_v45  ;;  %v8825_v41 = vunpack.c.l.b16 %v8632_v17  ;;  %v8835_v4 = vunpack.c.l.b16 %v8642_v57  ;;  %v15756_v17 = vld [vmem:[#allocation5 + $0x268] ss:$16 sps:$4 sm:$0xff]  }
 0x7af   :  { %v19893_v59 = vmax.f32 %v8156_v46, %v8157_v12  ;;  %v8837_v32 = vunpack.c.l.b16 %v8644_v20  ;;  %v8839_v44 = vunpack.c.l.b16 %v8646_v47  ;;  %v8841_v7 = vunpack.c.l.b16 %v8648_v11  ;;  %v21793_v47 = vld [vmem:[#allocation48_spill] sm:$0xff] }
 0x7b0   :  { %v19895_v61 = vmax.f32 %v8268_v2, %v8269_v28  ;;  %v8879_v42 = vsel %vm4042_vm11, %v21789_v26, %v19558_v40  ;;  %v8893_v29 = vsel %vm4042_vm11, %v19710_v60, %v19706_v58  ;;  %v21791_v55 = vrot.slane %v21790_v14, 2  ;;  %9284 = vmatpush1.bf16.msra.mxu1 %v15750_v34  ;;  %v15758_v58 = vld [vmem:[#allocation5 + $0x26c] ss:$16 sps:$4 sm:$0xff]  }
 0x7b1   :  { %v8634_v25 = vpack.c.bf16 %v19893_v59, %v19893_v59  ;;  %v8880_v49 = vsel %vm4044_vm12, %v21792_v31, %v8879_v42  ;;  %v8894_v1 = vsel %vm4044_vm12, %v19712_v37, %v8893_v29  ;;  %v8261_v40 = vmax.f32 %v19745_v23, %v8260_v24  ;;  %9285 = vmatprep.subr.bf16.mxu1 %v15755_v16  ;;  %v21796_v29 = vld [vmem:[#allocation22_spill] sm:$0xff] }
 0x7b2   :  { %v8149_v8 = vmax.f32 %v21790_v14, %v21791_v55  ;;  %v8650_v60 = vpack.c.bf16 %v19895_v61, %v19895_v61  ;;  %v8881_v53 = vsel %vm4046_vm13, %v8819_v18, %v8880_v49  ;;  %v8895_v63 = vsel %vm4046_vm13, %v8835_v4, %v8894_v1  ;;  %v15761_v18 = vld [vmem:[#allocation5 + $0x28c] ss:$16 sps:$4 sm:$0xff]  }
 0x7b3   :  { %v8827_v50 = vunpack.c.l.b16 %v8634_v25  ;;  %v8882_v5 = vsel %vm4048_vm14, %v8821_v6, %v8881_v53  ;;  %v8896_v46 = vsel %vm4048_vm14, %v8837_v32, %v8895_v63  ;;  %v8262_v37 = vrot.slane %v8261_v40, 1  ;;  %v21794_v6 = vld [vmem:[#allocation53_spill] sm:$0xff]  ;;  %v15764_v53 = vld [vmem:[#allocation5 + $0x2ac] ss:$16 sps:$4 sm:$0xff]  }
 0x7b4   :  { %v8150_v22 = vrot.slane %v8149_v8, 1  ;;  %v8843_v52 = vunpack.c.l.b16 %v8650_v60  ;;  %v8883_v45 = vsel %vm4050_vm15, %v8823_v36, %v8882_v5  ;;  %v8897_v23 = vsel %vm4050_vm15, %v8839_v44, %v8896_v46  ;;  %9286 = vmatpush1.bf16.msra.mxu1 %v15753_v54  ;;  %v21804_v46 = vld [vmem:[#allocation60_spill] sm:$0xff] }
 0x7b5   :  { %v8884_v2 = vsel %vm4052_vm0, %v8825_v41, %v8883_v45  ;;  %v8898_v57 = vsel %vm4052_vm0, %v8841_v7, %v8897_v23  ;;  %v8263_v20 = vmax.f32 %v8261_v40, %v8262_v37  ;;  %v8629_v34 = vpack.c.bf16 %v21793_v47, %v21793_v47  ;;  %9287 = vmatprep.subr.bf16.mxu1 %v15758_v58  ;;  %v21805_v37 = vld [vmem:[#allocation59_spill] sm:$0xff]  ;;  %v21806_v45 = vld [vmem:[#allocation64_spill] sm:$0xff] }
 0x7b6   :  { %v19923_v24 = vmax.f32 %v8149_v8, %v8150_v22  ;;  %v8885_v12 = vsel %vm4054_vm1, %v8827_v50, %v8884_v2  ;;  %v8899_v11 = vsel %vm4054_vm1, %v8843_v52, %v8898_v57  ;;  %v8631_v16 = vpack.c.bf16 %v21794_v6, %v21794_v6  ;;  %v21798_v8 = vld [vmem:[#allocation49_spill] sm:$0xff]  ;;  %v21802_v22 = vld [vmem:[#allocation34_spill] sm:$0xff]  ;;  %v21803_v50 = vld [vmem:[#allocation32_spill] sm:$0xff] }
 0x7b7   :  { %v19935_v36 = vpack.c.b16 %v8899_v11, %v8885_v12  ;;  %v19939_v41 = vsel %vm4054_vm1, %v8263_v20, %v19787_v43  ;;  %v8645_v4 = vpack.c.bf16 %v19763_v48, %v19763_v48  ;;  %v8647_v32 = vpack.c.bf16 %v19769_v56, %v19769_v56  ;;  %v15759_v43 = vld [vmem:[#allocation5 + $0x288] ss:$16 sps:$4 sm:$0xff]  }
 0x7b8   :  { %v8633_v28 = vpack.c.bf16 %v19923_v24, %v19923_v24  ;;  %v21795_v44 = vpack.c.bf16 %v19683_v30, %v19683_v30  ;;  %v8457_v26 = vrot.slane %v19939_v41, 7  ;;  %v8649_v42 = vpack.c.bf16 %v8263_v20, %v8263_v20  ;;  %9288 = vmatpush1.bf16.msra.mxu1 %v15756_v17  ;;  %v21800_v30 = vld [vmem:[#allocation45_spill] sm:$0xff]  ;;  %v21807_v17 = vld [vmem:[#allocation24_spill] sm:$0xff]  ;;  %v21808_v57 = vld [vmem:[#allocation18_spill] sm:$0xff] }
 0x7b9   :  { %v21797_v14 = vpack.c.bf16 %v21796_v29, %v21796_v29  ;;  %9270 = vmatprep.mubr.bf16.mxu1 %v19935_v36  ;;  %v21799_v48 = vpack.c.bf16 %v21798_v8, %v21798_v8  ;;  %v8822_v56 = vunpack.c.l.b16 %v8629_v34  ;;  %v8824_v25 = vunpack.c.l.b16 %v8631_v16  ;;  %9289 = vmatprep.subr.bf16.mxu1 %v15761_v18  ;;  %v15762_v11 = vld [vmem:[#allocation5 + $0x2a8] ss:$16 sps:$4 sm:$0xff]  }
 0x7ba   :  { %v8832_v7 = vunpack.c.l.b16 %v21795_v44  ;;  %v8826_v31 = vunpack.c.l.b16 %v8633_v28  ;;  %v21801_v49 = vpack.c.bf16 %v21800_v30, %v21800_v30  ;;  %v8836_v40 = vunpack.c.l.b16 %v8643_v21  ;;  %v15767_v28 = vld [vmem:[#allocation5 + $0x2cc] ss:$16 sps:$4 sm:$0xff]  }
 0x7bb   :  { %v8818_v55 = vunpack.c.l.b16 %v21797_v14  ;;  %v8820_v54 = vunpack.c.l.b16 %v21799_v48  ;;  %v8838_v58 = vunpack.c.l.b16 %v8645_v4  ;;  %v8840_v60 = vunpack.c.l.b16 %v8647_v32  ;;  %v21809_v14 = vld [vmem:[#allocation17_spill] sm:$0xff]  ;;  %v15770_v48 = vld [vmem:[#allocation5 + $0x2ec] ss:$16 sps:$4 sm:$0xff]  }
 0x7bc   :  { %v8834_v1 = vunpack.c.l.b16 %v21801_v49  ;;  %v8842_v63 = vunpack.c.l.b16 %v8649_v42  ;;  %v8872_v5 = vsel %vm4042_vm11, %v21803_v50, %v21802_v22  ;;  %v8886_v52 = vsel %vm4042_vm11, %v21805_v37, %v21804_v46  ;;  %9290 = vmatpush1.bf16.msra.mxu1 %v15759_v43  ;;  %v15765_v43 = vld [vmem:[#allocation5 + $0x2c8] ss:$16 sps:$4 sm:$0xff]  }
 0x7bd   :  { %v8398_v23 = vsel %vm4050_vm15, %v19599_v39, %v21806_v45  ;;  %v8873_v35 = vsel %vm4044_vm12, %v21807_v17, %v8872_v5  ;;  %v8887_v21 = vsel %vm4044_vm12, %v8832_v7, %v8886_v52  ;;  %v8412_v20 = vsel %vm4050_vm15, %v19636_v62, %v21808_v57  ;;  %9291 = vmatprep.subr.bf16.mxu1 %v15764_v53  ;;  %v21816_v5 = vld [vmem:[#allocation42_spill] sm:$0xff] }
 0x7be   :  { %v8399_v2 = vsel %vm4052_vm0, %v19604_v27, %v8398_v23  ;;  %v8874_v34 = vsel %vm4046_vm13, %v8818_v55, %v8873_v35  ;;  %v8888_v12 = vsel %vm4046_vm13, %v8834_v1, %v8887_v21  ;;  %v8413_v18 = vsel %vm4052_vm0, %v19732_v33, %v8412_v20  ;;  %v15768_v37 = vld [vmem:[#allocation5 + $0x2e8] ss:$16 sps:$4 sm:$0xff]   ;;  %v15773_v17 = vld [vmem:[#allocation5 + $0x30c] ss:$16 sps:$4 sm:$0xff]  }
 0x7bf   :  { %v19983_v39 = vsel %vm4054_vm1, %v19750_v9, %v8399_v2  ;;  %v8875_v16 = vsel %vm4048_vm14, %v8820_v54, %v8874_v34  ;;  %v8889_v27 = vsel %vm4048_vm14, %v8836_v40, %v8888_v12  ;;  %v8414_v62 = vsel %vm4054_vm1, %v19789_v38, %v8413_v18  ;;  %v21810_v54 = vld [vmem:[#allocation13_spill] sm:$0xff] }
 0x7c0   :  { %v8440_v4 = vsel %vm4050_vm15, %v19867_v51, %v19779_v3  ;;  %v8876_v32 = vsel %vm4050_vm15, %v8822_v56, %v8875_v16  ;;  %v8890_v9 = vsel %vm4050_vm15, %v8838_v58, %v8889_v27  ;;  %v8452_v44 = vrot.slane %v19983_v39, 7  ;;  %9292 = vmatpush1.bf16.msra.mxu1 %v15762_v11  ;;  %v15776_v27 = vld [vmem:[#allocation5 + $0x32c] ss:$16 sps:$4 sm:$0xff]  }
 0x7c1   :  { %v8441_v33 = vsel %vm4052_vm0, %v19870_v13, %v8440_v4  ;;  %v8877_v7 = vsel %vm4052_vm0, %v8824_v25, %v8876_v32  ;;  %v8891_v42 = vsel %vm4052_vm0, %v8840_v60, %v8890_v9  ;;  %v8454_v29 = vrot.slane %v8414_v62, 7  ;;  %9293 = vmatprep.subr.bf16.mxu1 %v15767_v28  ;;  %v21815_v60 = vld [vmem:[#allocation44_spill] sm:$0xff] }
 0x7c2   :  { %v8442_v38 = vsel %vm4054_vm1, %v19895_v61, %v8441_v33  ;;  %v8489_v55 = vrot.slane %v21809_v14, 1  ;;  %v8878_v3 = vsel %vm4054_vm1, %v8826_v31, %v8877_v7  ;;  %v8892_v51 = vsel %vm4054_vm1, %v8842_v63, %v8891_v42  ;;  %v21812_v61 = vld [vmem:[#allocation26_spill] sm:$0xff] }
 0x7c3   :  { %v8458_v8 = vrot.slane %v8442_v38, 7  ;;  %v20006_v13 = vpack.c.b16 %v8892_v51, %v8878_v3  ;;  %v8464_v56 = vsel %vm906_vm3, %v8452_v44, %v8454_v29  ;;  %v21811_v25 = vrot.slane %v21809_v14, 7  ;;  %v15777_v14 = vld [vmem:[#allocation5 + $0x348] ss:$16 sps:$4 sm:$0xff]  }
 0x7c4   :  { %v21813_v30 = vrot.slane %v21812_v61, 7  ;;  %v8426_v53 = vsel %vm4050_vm15, %v19852_v10, %v21815_v60  ;;  %v8487_v63 = vrot.slane %v21812_v61, 1  ;;  %v8419_v46 = vsel %vm4050_vm15, %v21793_v47, %v21816_v5  ;;  %9294 = vmatpush1.bf16.msra.mxu1 %v15765_v43  ;;  %v15780_v3 = vld [vmem:[#allocation5 + $0x368] ss:$16 sps:$4 sm:$0xff]   ;;  %v15788_v43 = vld [vmem:[#allocation5 + $0x3ac] ss:$16 sps:$4 sm:$0xff]  }
 0x7c5   :  { %v8466_v40 = vsel %vm906_vm3, %v8458_v8, %v8452_v44  ;;  %9271 = vmatmul.mubr.bf16.gmra.mrb[36].mxu1 %v20006_v13  ;;  %v8427_v50 = vsel %vm4052_vm0, %v19861_v19, %v8426_v53  ;;  %v8420_v52 = vsel %vm4052_vm0, %v21794_v6, %v8419_v46  ;;  %v8488_v45 = vrot.slane %v19983_v39, 1  ;;  %9295 = vmatprep.subr.bf16.mxu1 %v15770_v48  ;;  %v15774_v44 = vld [vmem:[#allocation5 + $0x328] ss:$16 sps:$4 sm:$0xff]   ;;  %v15791_v48 = vld [vmem:[#allocation5 + $0x3cc] ss:$16 sps:$4 sm:$0xff]  }
 0x7c6   :  { %v8463_v49 = vsel %vm906_vm3, %v21813_v30, %v21811_v25  ;;  %v21814_v31 = vmov %v21813_v30  ;;  %v20031_v22 = vpack.c.bf16 %v8464_v56, %v8466_v40  ;;  %9313 = vmatprep.mubr.bf16.mxu1 %v19854_v0  ;;  %v8428_v10 = vsel %vm4054_vm1, %v19893_v59, %v8427_v50  ;;  %v15783_v51 = vld [vmem:[#allocation5 + $0x388] ss:$16 sps:$4 sm:$0xff]   ;;  %v15797_v30 = vld [vmem:[#allocation5 + $0x4] ss:$16 sps:$4 sm:$0xff]   ;;  %v15798_v40 = vld [vmem:[#allocation5 + $0x20] ss:$16 sps:$4 sm:$0xff]  }
 0x7c7   :  { %v8465_v1 = vsel %vm906_vm3, %v8457_v26, %v21814_v31  ;;  %v8490_v23 = vrot.slane %v8414_v62, 1  ;;  %v8456_v19 = vrot.slane %v8428_v10, 7  ;;  %v8421_v35 = vsel %vm4054_vm1, %v19923_v24, %v8420_v52  ;;  %v15771_v24 = vld [vmem:[#allocation5 + $0x308] ss:$16 sps:$4 sm:$0xff]   ;;  %v15800_v31 = vld [vmem:[#allocation5 + $0x24] ss:$16 sps:$4 sm:$0xff]  }
 0x7c8   :  { %v20024_v58 = vpack.c.bf16 %v8463_v49, %v8465_v1  ;;  %v8492_v47 = vrot.slane %v8428_v10, 1  ;;  %v8499_v0 = vsel %vm1099_vm4, %v8487_v63, %v8489_v55  ;;  %v8455_v21 = vrot.slane %v8421_v35, 7  ;;  %9296 = vmatpush1.bf16.msra.mxu1 %v15768_v37  ;;  %v15789_v56 = vld [vmem:[#allocation5 + $0x3c8] ss:$16 sps:$4 sm:$0xff]   ;;  %v15795_v49 = vld [vmem:[#allocation5] ss:$16 sps:$4 sm:$0xff]  }
 0x7c9   :  { %v8491_v2 = vrot.slane %v8421_v35, 1  ;;  %v8500_v59 = vsel %vm1099_vm4, %v8488_v45, %v8490_v23  ;;  %v8460_v6 = vsel %vm906_vm3, %v8456_v19, %v8458_v8  ;;  %v8462_v57 = vsel %vm906_vm3, %v8454_v29, %v8456_v19  ;;  %9297 = vmatprep.subr.bf16.mxu1 %v15773_v17  ;;  %v15786_v8 = vld [vmem:[#allocation5 + $0x3a8] ss:$16 sps:$4 sm:$0xff]   ;;  %v15803_v60 = vld [vmem:[#allocation5 + $0x44] ss:$16 sps:$4 sm:$0xff]  }
 0x7ca   :  { %v8498_v20 = vsel %vm1099_vm4, %v8490_v23, %v8492_v47  ;;  %v8494_v34 = vrot.slane %v8442_v38, 1  ;;  %v20056_v12 = vpack.c.bf16 %v8460_v6, %v8462_v57  ;;  %v8459_v11 = vsel %vm906_vm3, %v8455_v21, %v8457_v26  ;;  %v15779_v38 = vld [vmem:[#allocation5 + $0x34c] ss:$16 sps:$4 sm:$0xff]   ;;  %v15792_v61 = vld [vmem:[#allocation5 + $0x3e8] ss:$16 sps:$4 sm:$0xff]  }
 0x7cb   :  { %v21817_v39 = vmov %v21811_v25  ;;  %v20066_v16 = vpack.c.bf16 %v8498_v20, %v8500_v59  ;;  %v8497_v62 = vsel %vm1099_vm4, %v8489_v55, %v8491_v2  ;;  %v8493_v33 = vrot.slane %v19939_v41, 1  ;;  %v15782_v55 = vld [vmem:[#allocation5 + $0x36c] ss:$16 sps:$4 sm:$0xff]   ;;  %v15801_v53 = vld [vmem:[#allocation5 + $0x40] ss:$16 sps:$4 sm:$0xff]  }
 0x7cc   :  { %v8461_v18 = vsel %vm906_vm3, %v21817_v39, %v8455_v21  ;;  %v8496_v4 = vsel %vm1099_vm4, %v8492_v47, %v8494_v34  ;;  %v8502_v26 = vsel %vm1099_vm4, %v8494_v34, %v8488_v45  ;;  %v20076_v32 = vpack.c.bf16 %v8497_v62, %v8499_v0  ;;  %9298 = vmatpush1.bf16.msra.mxu1 %v15771_v24  ;;  %v15785_v41 = vld [vmem:[#allocation5 + $0x38c] ss:$16 sps:$4 sm:$0xff]   ;;  %v15806_v50 = vld [vmem:[#allocation5 + $0x64] ss:$16 sps:$4 sm:$0xff]   ;;  %v15807_v5 = vld [vmem:[#allocation5 + $0x80] ss:$16 sps:$4 sm:$0xff]  }
 0x7cd   :  { %v20068_v28 = vpack.c.bf16 %v8459_v11, %v8461_v18  ;;  %v20078_v9 = vpack.c.bf16 %v8502_v26, %v8496_v4  ;;  %v8495_v7 = vsel %vm1099_vm4, %v8491_v2, %v8493_v33  ;;  %v8501_v42 = vsel %vm1099_vm4, %v8493_v33, %v8487_v63  ;;  %9299 = vmatprep.subr.bf16.mxu1 %v15776_v27  ;;  %v15794_v25 = vld [vmem:[#allocation5 + $0x3ec] ss:$16 sps:$4 sm:$0xff]   ;;  %v15812_v46 = vld [vmem:[#allocation5 + $0xa4] ss:$16 sps:$4 sm:$0xff]   ;;  %v15810_v37 = vld [vmem:[#allocation5 + $0xa0] ss:$16 sps:$4 sm:$0xff]  }
 0x7ce   :  { %v20085_v29 = vpack.c.bf16 %v8501_v42, %v8495_v7  ;;  %v8275_v1 = vand.u32 15, %v21810_v54  ;;  %v15815_v10 = vld [vmem:[#allocation5 + $0xc4] ss:$16 sps:$4 sm:$0xff]   ;;  %v15813_v52 = vld [vmem:[#allocation5 + $0xc0] ss:$16 sps:$4 sm:$0xff]   ;;  %v428_v24 = vadd.s32 16, %v21810_v54 }
 0x7cf   :  { %v15816_v45 = vld [vmem:[#allocation5 + $0xe0] ss:$16 sps:$4 sm:$0xff]   ;;  %v15821_v23 = vld [vmem:[#allocation5 + $0x104] ss:$16 sps:$4 sm:$0xff]   ;;  %v15845_v62 = vld [vmem:[#allocation5 + $0xc] ss:$16 sps:$4 sm:$0xff]  }
 0x7d0   :  { %9300 = vmatpush1.bf16.msra.mxu1 %v15774_v44  ;;  %vm14714_vm7 = vcmp.ne.s32.totalorder %v8275_v1, 0  ;;  %v15819_v17 = vld [vmem:[#allocation5 + $0x100] ss:$16 sps:$4 sm:$0xff]   ;;  %v15824_v19 = vld [vmem:[#allocation5 + $0x124] ss:$16 sps:$4 sm:$0xff]   ;;  %v8289_v18 = vand.u32 15, %v428_v24 }
 0x7d1   :  { %9301 = vmatprep.subr.bf16.mxu1 %v15779_v38  ;;  %vm20091_vm8 = vmpackc.low %vm16389_vm10, %vm14714_vm7  ;;  %v15822_v35 = vld [vmem:[#allocation5 + $0x120] ss:$16 sps:$4 sm:$0xff]   ;;  %v15827_v47 = vld [vmem:[#allocation5 + $0x144] ss:$16 sps:$4 sm:$0xff]  }
 0x7d2   :  { %v15825_v0 = vld [vmem:[#allocation5 + $0x140] ss:$16 sps:$4 sm:$0xff]   ;;  %v15830_v21 = vld [vmem:[#allocation5 + $0x164] ss:$16 sps:$4 sm:$0xff]   ;;  %vm14715_vm9 = vcmp.ne.s32.totalorder %v8289_v18, 0 }
 0x7d3   :  { %v15828_v2 = vld [vmem:[#allocation5 + $0x160] ss:$16 sps:$4 sm:$0xff]   ;;  %v15833_v59 = vld [vmem:[#allocation5 + $0x184] ss:$16 sps:$4 sm:$0xff]   ;;  %v15843_v4 = vld [vmem:[#allocation5 + $0x8] ss:$16 sps:$4 sm:$0xff]  }
 0x7d4   :  { %9302 = vmatpush1.bf16.msra.mxu1 %v15777_v14  ;;  %v15831_v6 = vld [vmem:[#allocation5 + $0x180] ss:$16 sps:$4 sm:$0xff]   ;;  %v15836_v57 = vld [vmem:[#allocation5 + $0x1a4] ss:$16 sps:$4 sm:$0xff]   ;;  %vm20101_vm2 = vmpackc.low %vm16389_vm10, %vm14715_vm9 }
 0x7d5   :  { %9303 = vmatprep.subr.bf16.mxu1 %v15782_v55  ;;  %v15834_v20 = vld [vmem:[#allocation5 + $0x1a0] ss:$16 sps:$4 sm:$0xff]   ;;  %v15839_v34 = vld [vmem:[#allocation5 + $0x1c4] ss:$16 sps:$4 sm:$0xff]   ;;  %v15848_v33 = vld [vmem:[#allocation5 + $0x2c] ss:$16 sps:$4 sm:$0xff]  }
 0x7d6   :  { %v15837_v11 = vld [vmem:[#allocation5 + $0x1c0] ss:$16 sps:$4 sm:$0xff]   ;;  %v15842_v39 = vld [vmem:[#allocation5 + $0x1e4] ss:$16 sps:$4 sm:$0xff]   ;;  %v15846_v44 = vld [vmem:[#allocation5 + $0x28] ss:$16 sps:$4 sm:$0xff]  }
 0x7d7   :  { %v15840_v27 = vld [vmem:[#allocation5 + $0x1e0] ss:$16 sps:$4 sm:$0xff]   ;;  %v15851_v7 = vld [vmem:[#allocation5 + $0x4c] ss:$16 sps:$4 sm:$0xff]   ;;  %v15849_v42 = vld [vmem:[#allocation5 + $0x48] ss:$16 sps:$4 sm:$0xff]  }
 0x7d8   :  { %9304 = vmatpush1.bf16.msra.mxu1 %v15780_v3  ;;  %v15854_v38 = vld [vmem:[#allocation5 + $0x6c] ss:$16 sps:$4 sm:$0xff]   ;;  %v15852_v14 = vld [vmem:[#allocation5 + $0x68] ss:$16 sps:$4 sm:$0xff]   ;;  %v15903_v63 = vld [vmem:[#allocation5 + $0x480] ss:$16 sps:$4 sm:$0xff]  }
 0x7d9   :  { %9305 = vmatprep.subr.bf16.mxu1 %v15785_v41  ;;  %v15857_v55 = vld [vmem:[#allocation5 + $0x8c] ss:$16 sps:$4 sm:$0xff]   ;;  %v15855_v3 = vld [vmem:[#allocation5 + $0x88] ss:$16 sps:$4 sm:$0xff]   ;;  %v15920_v24 = vld [vmem:[#allocation5 + $0x524] ss:$16 sps:$4 sm:$0xff]  }
 0x7da   :  { %v15860_v41 = vld [vmem:[#allocation5 + $0xac] ss:$16 sps:$4 sm:$0xff]   ;;  %v15921_v18 = vld [vmem:[#allocation5 + $0x540] ss:$16 sps:$4 sm:$0xff]  }
 0x7db   :  { %v15878_v1 = vld [vmem:[#allocation5 + $0x16c] ss:$16 sps:$4 sm:$0xff]   ;;  %v15927_v26 = vld [vmem:[#allocation5 + $0x580] ss:$16 sps:$4 sm:$0xff]  }
 0x7dc   :  { %9306 = vmatpush1.bf16.msra.mxu1 %v15783_v51  ;;  %v15858_v51 = vld [vmem:[#allocation5 + $0xa8] ss:$16 sps:$4 sm:$0xff]  }
 0x7dd   :  { %9307 = vmatprep.subr.bf16.mxu1 %v15788_v43  ;;  %v15863_v43 = vld [vmem:[#allocation5 + $0xcc] ss:$16 sps:$4 sm:$0xff]  }
 0x7e0   :  { %9308 = vmatpush1.bf16.msra.mxu1 %v15786_v8  ;;  %v15861_v8 = vld [vmem:[#allocation5 + $0xc8] ss:$16 sps:$4 sm:$0xff]  }
 0x7e1   :  { %9309 = vmatprep.subr.bf16.mxu1 %v15791_v48  ;;  %v15866_v48 = vld [vmem:[#allocation5 + $0xec] ss:$16 sps:$4 sm:$0xff]  }
 0x7e4   :  { %9310 = vmatpush1.bf16.msra.mxu1 %v15789_v56  ;;  %v15864_v56 = vld [vmem:[#allocation5 + $0xe8] ss:$16 sps:$4 sm:$0xff]  }
 0x7e5   :  { %9311 = vmatprep.subr.bf16.mxu1 %v15794_v25  ;;  %v15869_v25 = vld [vmem:[#allocation5 + $0x10c] ss:$16 sps:$4 sm:$0xff]  }
 0x7e8   :  { %9312 = vmatpush1.bf16.msra.mxu1 %v15792_v61  ;;  %v15872_v61 = vld [vmem:[#allocation5 + $0x12c] ss:$16 sps:$4 sm:$0xff]  }
 0x7e9   :  { %9654 = vmatprep.subr.bf16.mxu1 %v15797_v30  ;;  %v15870_v30 = vld [vmem:[#allocation5 + $0x128] ss:$16 sps:$4 sm:$0xff]  }
 0x7eb   :  { %9314 = vmatmul.mubr.bf16.vlgmr.msra.gmra.mrb[40].mxu1 %v19856_v15  ;;  %v15804_v15 = vld [vmem:[#allocation5 + $0x60] ss:$16 sps:$4 sm:$0xff]  }
 0x7ec   :  { %9323 = vmatprep.mubr.bf16.mxu1 %v19935_v36  ;;  %9655 = vmatpush1.bf16.msra.mxu1 %v15795_v49  ;;  %v15809_v36 = vld [vmem:[#allocation5 + $0x84] ss:$16 sps:$4 sm:$0xff]   ;;  %v15875_v49 = vld [vmem:[#allocation5 + $0x14c] ss:$16 sps:$4 sm:$0xff]  }
 0x7ed   :  { %9656 = vmatprep.subr.bf16.mxu1 %v15800_v31  ;;  %v15873_v31 = vld [vmem:[#allocation5 + $0x148] ss:$16 sps:$4 sm:$0xff]  }
 0x7f0   :  { %9657 = vmatpush1.bf16.msra.mxu1 %v15798_v40  ;;  %v15876_v40 = vld [vmem:[#allocation5 + $0x168] ss:$16 sps:$4 sm:$0xff]  }
 0x7f1   :  { %9658 = vmatprep.subr.bf16.mxu1 %v15803_v60  ;;  %v15881_v60 = vld [vmem:[#allocation5 + $0x18c] ss:$16 sps:$4 sm:$0xff]  }
 0x7f3   :  { %9324 = vmatmul.mubr.bf16.gmra.mrb[44].mxu1 %v20006_v13  ;;  %v15818_v13 = vld [vmem:[#allocation5 + $0xe4] ss:$16 sps:$4 sm:$0xff]  }
 0x7f4   :  { %9659 = vmatpush1.bf16.msra.mxu1 %v15801_v53  ;;  %14334 = vmatprep.mubr.msk.bf16.mxu1 %vm20091_vm8, %v20031_v22  ;;  %v15879_v53 = vld [vmem:[#allocation5 + $0x188] ss:$16 sps:$4 sm:$0xff]  }
 0x7f5   :  { %9660 = vmatprep.subr.bf16.mxu1 %v15806_v50  ;;  %v15884_v50 = vld [vmem:[#allocation5 + $0x1ac] ss:$16 sps:$4 sm:$0xff]  }
 0x7f8   :  { %9661 = vmatpush1.bf16.msra.mxu1 %v15804_v15  ;;  %v15882_v15 = vld [vmem:[#allocation5 + $0x1a8] ss:$16 sps:$4 sm:$0xff]  }
 0x7f9   :  { %9662 = vmatprep.subr.bf16.mxu1 %v15809_v36  ;;  %v15887_v36 = vld [vmem:[#allocation5 + $0x1cc] ss:$16 sps:$4 sm:$0xff]  }
 0x7fc   :  { %9663 = vmatpush1.bf16.msra.mxu1 %v15807_v5  ;;  %v15885_v5 = vld [vmem:[#allocation5 + $0x1c8] ss:$16 sps:$4 sm:$0xff]  }
 0x7fd   :  { %9664 = vmatprep.subr.bf16.mxu1 %v15812_v46  ;;  %v15890_v46 = vld [vmem:[#allocation5 + $0x1ec] ss:$16 sps:$4 sm:$0xff]  }
 0x800   :  { %9665 = vmatpush1.bf16.msra.mxu1 %v15810_v37  ;;  %v15888_v37 = vld [vmem:[#allocation5 + $0x1e8] ss:$16 sps:$4 sm:$0xff]  }
 0x801   :  { %9666 = vmatprep.subr.bf16.mxu1 %v15815_v10  ;;  %v15893_v10 = vld [vmem:[#allocation5 + $0x404] ss:$16 sps:$4 sm:$0xff]  }
 0x804   :  { %9667 = vmatpush1.bf16.msra.mxu1 %v15813_v52  ;;  %v20118_v52 = vadd.s32 8, %v21810_v54 }
 0x805   :  { %9668 = vmatprep.subr.bf16.mxu1 %v15818_v13  ;;  %v15891_v13 = vld [vmem:[#allocation5 + $0x400] ss:$16 sps:$4 sm:$0xff]  }
 0x806   :  { %21822 = vst [vmem:[#allocation58_spill] sm:$0xff] %v20118_v52 }
 0x808   :  { %9669 = vmatpush1.bf16.msra.mxu1 %v15816_v45  ;;  %v15896_v45 = vld [vmem:[#allocation5 + $0x424] ss:$16 sps:$4 sm:$0xff]  }
 0x809   :  { %9670 = vmatprep.subr.bf16.mxu1 %v15821_v23  ;;  %v8282_v23 = vand.u32 15, %v20118_v52 }
 0x80b   :  { %vm14716_vm6 = vcmp.ne.s32.totalorder %v8282_v23, 15  ;;  %v15975_v23 = vld [vmem:[#allocation5 + $0x588] ss:$16 sps:$4 sm:$0xff]  }
 0x80c   :  { %9671 = vmatpush1.bf16.msra.mxu1 %v15819_v17  ;;  %v15894_v17 = vld [vmem:[#allocation5 + $0x420] ss:$16 sps:$4 sm:$0xff]   ;;  %vm20128_vm7 = vmpackc.low %vm14716_vm6, %vm16389_vm10 }
 0x80d   :  { %9672 = vmatprep.subr.bf16.mxu1 %v15824_v19  ;;  %v15899_v19 = vld [vmem:[#allocation5 + $0x444] ss:$16 sps:$4 sm:$0xff]  }
 0x810   :  { %9673 = vmatpush1.bf16.msra.mxu1 %v15822_v35  ;;  %v15897_v35 = vld [vmem:[#allocation5 + $0x440] ss:$16 sps:$4 sm:$0xff]  }
 0x811   :  { %9674 = vmatprep.subr.bf16.mxu1 %v15827_v47  ;;  %v15996_v47 = vld [vmem:[#allocation7 + $0x230] ss:$8 sps:$4 sm:$0xff]  }
 0x814   :  { %9675 = vmatpush1.bf16.msra.mxu1 %v15825_v0  ;;  %v15902_v0 = vld [vmem:[#allocation5 + $0x464] ss:$16 sps:$4 sm:$0xff]  }
 0x815   :  { %9676 = vmatprep.subr.bf16.mxu1 %v15830_v21  ;;  %v15908_v21 = vld [vmem:[#allocation5 + $0x4a4] ss:$16 sps:$4 sm:$0xff]  }
 0x818   :  { %9677 = vmatpush1.bf16.msra.mxu1 %v15828_v2  ;;  %v15906_v2 = vld [vmem:[#allocation5 + $0x4a0] ss:$16 sps:$4 sm:$0xff]  }
 0x819   :  { %9678 = vmatprep.subr.bf16.mxu1 %v15833_v59  ;;  %v15911_v59 = vld [vmem:[#allocation5 + $0x4c4] ss:$16 sps:$4 sm:$0xff]  }
 0x81c   :  { %9679 = vmatpush1.bf16.msra.mxu1 %v15831_v6  ;;  %v15909_v6 = vld [vmem:[#allocation5 + $0x4c0] ss:$16 sps:$4 sm:$0xff]  }
 0x81d   :  { %9680 = vmatprep.subr.bf16.mxu1 %v15836_v57  ;;  %v15912_v57 = vld [vmem:[#allocation5 + $0x4e0] ss:$16 sps:$4 sm:$0xff]  }
 0x820   :  { %9681 = vmatpush1.bf16.msra.mxu1 %v15834_v20  ;;  %v15917_v20 = vld [vmem:[#allocation5 + $0x504] ss:$16 sps:$4 sm:$0xff]  }
 0x821   :  { %9682 = vmatprep.subr.bf16.mxu1 %v15839_v34  ;;  %v15915_v34 = vld [vmem:[#allocation5 + $0x500] ss:$16 sps:$4 sm:$0xff]  }
 0x824   :  { %9683 = vmatpush1.bf16.msra.mxu1 %v15837_v11  ;;  %v15918_v11 = vld [vmem:[#allocation5 + $0x520] ss:$16 sps:$4 sm:$0xff]  }
 0x825   :  { %9684 = vmatprep.subr.bf16.mxu1 %v15842_v39  ;;  %v15923_v39 = vld [vmem:[#allocation5 + $0x544] ss:$16 sps:$4 sm:$0xff]  }
 0x828   :  { %9685 = vmatpush1.bf16.msra.mxu1 %v15840_v27  ;;  %v15926_v27 = vld [vmem:[#allocation5 + $0x564] ss:$16 sps:$4 sm:$0xff]  }
 0x829   :  { %9707 = vmatprep.subr.bf16.mxu1 %v15845_v62  ;;  %v15924_v62 = vld [vmem:[#allocation5 + $0x560] ss:$16 sps:$4 sm:$0xff]  }
 0x82b   :  { %14338 = vmatmul.mubr.msk.bf16.vlgmr.msra.gmra.mrb[32].mxu1 %vm20091_vm8, %v20024_v58 }
 0x82c   :  { %14342 = vmatprep.mubr.msk.bf16.mxu1 %vm20101_vm2, %v20056_v12  ;;  %9708 = vmatpush1.bf16.msra.mxu1 %v15843_v4  ;;  %v15929_v4 = vld [vmem:[#allocation5 + $0x584] ss:$16 sps:$4 sm:$0xff]  }
 0x82d   :  { %9709 = vmatprep.subr.bf16.mxu1 %v15848_v33  ;;  %v15932_v33 = vld [vmem:[#allocation5 + $0x5a4] ss:$16 sps:$4 sm:$0xff]  }
 0x830   :  { %9710 = vmatpush1.bf16.msra.mxu1 %v15846_v44  ;;  %v15930_v44 = vld [vmem:[#allocation5 + $0x5a0] ss:$16 sps:$4 sm:$0xff]  }
 0x831   :  { %9711 = vmatprep.subr.bf16.mxu1 %v15851_v7  ;;  %v15935_v7 = vld [vmem:[#allocation5 + $0x5c4] ss:$16 sps:$4 sm:$0xff]  }
 0x833   :  { %14346 = vmatmul.mubr.msk.bf16.gmra.mrb[36].mxu1 %vm20101_vm2, %v20068_v28 }
 0x834   :  { %9712 = vmatpush1.bf16.msra.mxu1 %v15849_v42  ;;  %14350 = vmatprep.mubr.msk.bf16.mxu1 %vm20091_vm8, %v20031_v22  ;;  %v15867_v22 = vld [vmem:[#allocation5 + $0x108] ss:$16 sps:$4 sm:$0xff]   ;;  %v15933_v42 = vld [vmem:[#allocation5 + $0x5c0] ss:$16 sps:$4 sm:$0xff]  }
 0x835   :  { %9713 = vmatprep.subr.bf16.mxu1 %v15854_v38  ;;  %v15938_v38 = vld [vmem:[#allocation5 + $0x5e4] ss:$16 sps:$4 sm:$0xff]  }
 0x838   :  { %9714 = vmatpush1.bf16.msra.mxu1 %v15852_v14  ;;  %v21825_v14 = vld [vmem:[#allocation55_spill] sm:$0xff] }
 0x839   :  { %9715 = vmatprep.subr.bf16.mxu1 %v15857_v55  ;;  %v8296_v55 = vand.u32 15, %v21825_v14 }
 0x83c   :  { %9716 = vmatpush1.bf16.msra.mxu1 %v15855_v3  ;;  %v15936_v3 = vld [vmem:[#allocation5 + $0x5e0] ss:$16 sps:$4 sm:$0xff]  }
 0x83d   :  { %9717 = vmatprep.subr.bf16.mxu1 %v15860_v41  ;;  %v15941_v41 = vld [vmem:[#allocation5 + $0x40c] ss:$16 sps:$4 sm:$0xff]  }
 0x840   :  { %9718 = vmatpush1.bf16.msra.mxu1 %v15858_v51  ;;  %v15939_v51 = vld [vmem:[#allocation5 + $0x408] ss:$16 sps:$4 sm:$0xff]  }
 0x841   :  { %9719 = vmatprep.subr.bf16.mxu1 %v15863_v43 }
 0x844   :  { %9720 = vmatpush1.bf16.msra.mxu1 %v15861_v8  ;;  %v15944_v8 = vld [vmem:[#allocation5 + $0x42c] ss:$16 sps:$4 sm:$0xff]  }
 0x845   :  { %9721 = vmatprep.subr.bf16.mxu1 %v15866_v48  ;;  %v15942_v48 = vld [vmem:[#allocation5 + $0x428] ss:$16 sps:$4 sm:$0xff]  }
 0x848   :  { %9722 = vmatpush1.bf16.msra.mxu1 %v15864_v56  ;;  %v15947_v56 = vld [vmem:[#allocation5 + $0x44c] ss:$16 sps:$4 sm:$0xff]  }
 0x849   :  { %9723 = vmatprep.subr.bf16.mxu1 %v15869_v25  ;;  %v15945_v25 = vld [vmem:[#allocation5 + $0x448] ss:$16 sps:$4 sm:$0xff]  }
 0x84c   :  { %9724 = vmatpush1.bf16.msra.mxu1 %v15867_v22  ;;  %v15950_v22 = vld [vmem:[#allocation5 + $0x46c] ss:$16 sps:$4 sm:$0xff]  }
 0x84d   :  { %9725 = vmatprep.subr.bf16.mxu1 %v15872_v61  ;;  %v15948_v61 = vld [vmem:[#allocation5 + $0x468] ss:$16 sps:$4 sm:$0xff]  }
 0x850   :  { %9726 = vmatpush1.bf16.msra.mxu1 %v15870_v30  ;;  %v15953_v30 = vld [vmem:[#allocation5 + $0x48c] ss:$16 sps:$4 sm:$0xff]  }
 0x851   :  { %9727 = vmatprep.subr.bf16.mxu1 %v15875_v49  ;;  %v15951_v49 = vld [vmem:[#allocation5 + $0x488] ss:$16 sps:$4 sm:$0xff]  }
 0x854   :  { %9728 = vmatpush1.bf16.msra.mxu1 %v15873_v31  ;;  %v15956_v31 = vld [vmem:[#allocation5 + $0x4ac] ss:$16 sps:$4 sm:$0xff]  }
 0x855   :  { %9729 = vmatprep.subr.bf16.mxu1 %v15878_v1  ;;  %v15954_v1 = vld [vmem:[#allocation5 + $0x4a8] ss:$16 sps:$4 sm:$0xff]  }
 0x858   :  { %9730 = vmatpush1.bf16.msra.mxu1 %v15876_v40  ;;  %v15959_v40 = vld [vmem:[#allocation5 + $0x4cc] ss:$16 sps:$4 sm:$0xff]  }
 0x859   :  { %9731 = vmatprep.subr.bf16.mxu1 %v15881_v60  ;;  %v15957_v60 = vld [vmem:[#allocation5 + $0x4c8] ss:$16 sps:$4 sm:$0xff]  }
 0x85c   :  { %9732 = vmatpush1.bf16.msra.mxu1 %v15879_v53  ;;  %v15962_v53 = vld [vmem:[#allocation5 + $0x4ec] ss:$16 sps:$4 sm:$0xff]  }
 0x85d   :  { %9733 = vmatprep.subr.bf16.mxu1 %v15884_v50  ;;  %v15960_v50 = vld [vmem:[#allocation5 + $0x4e8] ss:$16 sps:$4 sm:$0xff]  }
 0x860   :  { %9734 = vmatpush1.bf16.msra.mxu1 %v15882_v15  ;;  %v15965_v15 = vld [vmem:[#allocation5 + $0x50c] ss:$16 sps:$4 sm:$0xff]  }
 0x861   :  { %9735 = vmatprep.subr.bf16.mxu1 %v15887_v36  ;;  %v15968_v36 = vld [vmem:[#allocation5 + $0x52c] ss:$16 sps:$4 sm:$0xff]  }
 0x864   :  { %9736 = vmatpush1.bf16.msra.mxu1 %v15885_v5  ;;  %v15966_v5 = vld [vmem:[#allocation5 + $0x528] ss:$16 sps:$4 sm:$0xff]  }
 0x865   :  { %9737 = vmatprep.subr.bf16.mxu1 %v15890_v46  ;;  %v15971_v46 = vld [vmem:[#allocation5 + $0x54c] ss:$16 sps:$4 sm:$0xff]  }
 0x868   :  { %9738 = vmatpush1.bf16.msra.mxu1 %v15888_v37  ;;  %v15969_v37 = vld [vmem:[#allocation5 + $0x548] ss:$16 sps:$4 sm:$0xff]  }
 0x869   :  { %10149 = vmatprep.subr.bf16.mxu1 %v15893_v10  ;;  %v15974_v10 = vld [vmem:[#allocation5 + $0x56c] ss:$16 sps:$4 sm:$0xff]  }
 0x86b   :  { %14354 = vmatmul.mubr.msk.bf16.vlgmr.msra.gmra.mrb[40].mxu1 %vm20091_vm8, %v20024_v58  ;;  %v15900_v58 = vld [vmem:[#allocation5 + $0x460] ss:$16 sps:$4 sm:$0xff]   ;;  %vm14717_vm8 = vcmp.ne.s32.totalorder %v8296_v55, 15 }
 0x86c   :  { %14358 = vmatprep.mubr.msk.bf16.mxu1 %vm20101_vm2, %v20056_v12  ;;  %10150 = vmatpush1.bf16.msra.mxu1 %v15891_v13  ;;  %v15905_v12 = vld [vmem:[#allocation5 + $0x484] ss:$16 sps:$4 sm:$0xff]   ;;  %vm20140_vm9 = vmpackc.low %vm14717_vm8, %vm16389_vm10  ;;  %v15972_v13 = vld [vmem:[#allocation5 + $0x568] ss:$16 sps:$4 sm:$0xff]  }
 0x86d   :  { %10151 = vmatprep.subr.bf16.mxu1 %v15896_v45  ;;  %v15977_v45 = vld [vmem:[#allocation5 + $0x58c] ss:$16 sps:$4 sm:$0xff]  }
 0x870   :  { %10152 = vmatpush1.bf16.msra.mxu1 %v15894_v17  ;;  %v15980_v17 = vld [vmem:[#allocation5 + $0x5ac] ss:$16 sps:$4 sm:$0xff]  }
 0x871   :  { %10153 = vmatprep.subr.bf16.mxu1 %v15899_v19  ;;  %v15978_v19 = vld [vmem:[#allocation5 + $0x5a8] ss:$16 sps:$4 sm:$0xff]  }
 0x873   :  { %14362 = vmatmul.mubr.msk.bf16.gmra.mrb[44].mxu1 %vm20101_vm2, %v20068_v28  ;;  %v15914_v28 = vld [vmem:[#allocation5 + $0x4e4] ss:$16 sps:$4 sm:$0xff]  }
 0x874   :  { %10154 = vmatpush1.bf16.msra.mxu1 %v15897_v35  ;;  %14430 = vmatprep.mubr.msk.bf16.mxu1 %vm20128_vm7, %v20066_v16  ;;  %v15983_v35 = vld [vmem:[#allocation5 + $0x5cc] ss:$16 sps:$4 sm:$0xff]  }
 0x875   :  { %10155 = vmatprep.subr.bf16.mxu1 %v15902_v0  ;;  %v15981_v0 = vld [vmem:[#allocation5 + $0x5c8] ss:$16 sps:$4 sm:$0xff]  }
 0x878   :  { %10156 = vmatpush1.bf16.msra.mxu1 %v15900_v58  ;;  %v15986_v58 = vld [vmem:[#allocation5 + $0x5ec] ss:$16 sps:$4 sm:$0xff]  }
 0x879   :  { %10157 = vmatprep.subr.bf16.mxu1 %v15905_v12  ;;  %v15984_v12 = vld [vmem:[#allocation5 + $0x5e8] ss:$16 sps:$4 sm:$0xff]  }
 0x87c   :  { %10158 = vmatpush1.bf16.msra.mxu1 %v15903_v63  ;;  %v15987_v63 = vld [vmem:[#allocation7 + $0x200] ss:$8 sps:$4 sm:$0xff]  }
 0x87d   :  { %10159 = vmatprep.subr.bf16.mxu1 %v15908_v21  ;;  %v15989_v21 = vld [vmem:[#allocation7 + $0x204] ss:$8 sps:$4 sm:$0xff]  }
 0x87e   :  { %12190 = vmatprep.subr.bf16.mxu0 %v15989_v21  ;;  %v16014_v21 = vld [vmem:[#allocation7 + $0x290] ss:$8 sps:$4 sm:$0xff]  }
 0x87f   :  { %12191 = vmatpush1.bf16.msra.mxu0 %v15987_v63 }
 0x880   :  { %10160 = vmatpush1.bf16.msra.mxu1 %v15906_v2  ;;  %v15992_v2 = vld [vmem:[#allocation7 + $0x214] ss:$8 sps:$4 sm:$0xff]  }
 0x881   :  { %10161 = vmatprep.subr.bf16.mxu1 %v15911_v59  ;;  %v15990_v59 = vld [vmem:[#allocation7 + $0x210] ss:$8 sps:$4 sm:$0xff]   ;;  %12192 = vmatprep.subr.bf16.mxu0 %v15992_v2 }
 0x883   :  { %12193 = vmatpush1.bf16.msra.mxu0 %v15990_v59 }
 0x884   :  { %10162 = vmatpush1.bf16.msra.mxu1 %v15909_v6  ;;  %v15995_v6 = vld [vmem:[#allocation7 + $0x224] ss:$8 sps:$4 sm:$0xff]  }
 0x885   :  { %10163 = vmatprep.subr.bf16.mxu1 %v15914_v28  ;;  %v15993_v28 = vld [vmem:[#allocation7 + $0x220] ss:$8 sps:$4 sm:$0xff]   ;;  %12194 = vmatprep.subr.bf16.mxu0 %v15995_v6 }
 0x887   :  { %12195 = vmatpush1.bf16.msra.mxu0 %v15993_v28 }
 0x888   :  { %10164 = vmatpush1.bf16.msra.mxu1 %v15912_v57  ;;  %v15999_v57 = vld [vmem:[#allocation7 + $0x240] ss:$8 sps:$4 sm:$0xff]  }
 0x889   :  { %10165 = vmatprep.subr.bf16.mxu1 %v15917_v20  ;;  %v16002_v20 = vld [vmem:[#allocation7 + $0x250] ss:$8 sps:$4 sm:$0xff]  }
 0x88c   :  { %10166 = vmatpush1.bf16.msra.mxu1 %v15915_v34  ;;  %v10271_v34 = vld [vmem:[%s21361_s10] sm:$0xf] }
 0x88d   :  { %10167 = vmatprep.subr.bf16.mxu1 %v15920_v24  ;;  %v21828_v24 = vld [vmem:[#allocation54_spill] sm:$0xff] }
 0x890   :  { %10168 = vmatpush1.bf16.msra.mxu1 %v15918_v11  ;;  %v10276_v11 = vrot.slane %v10271_v34, %v21828_v24 }
 0x891   :  { %10169 = vmatprep.subr.bf16.mxu1 %v15923_v39  ;;  %v21829_v39 = vld [vmem:[#allocation67_spill] sm:$0xff] }
 0x894   :  { %10170 = vmatpush1.bf16.msra.mxu1 %v15921_v18  ;;  %v10280_v18 = vrot.slane %v10271_v34, %v21829_v39 }
 0x895   :  { %10171 = vmatprep.subr.bf16.mxu1 %v15926_v27 }
 0x898   :  { %10172 = vmatpush1.bf16.msra.mxu1 %v15924_v62 }
 0x899   :  { %10173 = vmatprep.subr.bf16.mxu1 %v15929_v4 }
 0x89c   :  { %10174 = vmatpush1.bf16.msra.mxu1 %v15927_v26 }
 0x89d   :  { %10175 = vmatprep.subr.bf16.mxu1 %v15932_v33 }
 0x8a0   :  { %10176 = vmatpush1.bf16.msra.mxu1 %v15930_v44 }
 0x8a1   :  { %10177 = vmatprep.subr.bf16.mxu1 %v15935_v7 }
 0x8a4   :  { %10178 = vmatpush1.bf16.msra.mxu1 %v15933_v42 }
 0x8a5   :  { %10179 = vmatprep.subr.bf16.mxu1 %v15938_v38 }
 0x8a8   :  { %10180 = vmatpush1.bf16.msra.mxu1 %v15936_v3 }
 0x8a9   :  { %10202 = vmatprep.subr.bf16.mxu1 %v15941_v41 }
 0x8ab   :  { %14434 = vmatmul.mubr.msk.bf16.vlgmr.msra.gmra.mrb[32].mxu1 %vm20128_vm7, %v20076_v32 }
 0x8ac   :  { %14438 = vmatprep.mubr.msk.bf16.mxu1 %vm20140_vm9, %v20078_v9  ;;  %10203 = vmatpush1.bf16.msra.mxu1 %v15939_v51 }
 0x8ad   :  { %10204 = vmatprep.subr.bf16.mxu1 %v15944_v8 }
 0x8b0   :  { %10205 = vmatpush1.bf16.msra.mxu1 %v15942_v48 }
 0x8b1   :  { %10206 = vmatprep.subr.bf16.mxu1 %v15947_v56 }
 0x8b3   :  { %14442 = vmatmul.mubr.msk.bf16.gmra.mrb[36].mxu1 %vm20140_vm9, %v20085_v29 }
 0x8b4   :  { %10207 = vmatpush1.bf16.msra.mxu1 %v15945_v25  ;;  %14446 = vmatprep.mubr.msk.bf16.mxu1 %vm20128_vm7, %v20066_v16  ;;  %v15963_v16 = vld [vmem:[#allocation5 + $0x508] ss:$16 sps:$4 sm:$0xff]  }
 0x8b5   :  { %10208 = vmatprep.subr.bf16.mxu1 %v15950_v22 }
 0x8b8   :  { %10209 = vmatpush1.bf16.msra.mxu1 %v15948_v61 }
 0x8b9   :  { %10210 = vmatprep.subr.bf16.mxu1 %v15953_v30 }
 0x8bc   :  { %10211 = vmatpush1.bf16.msra.mxu1 %v15951_v49 }
 0x8bd   :  { %10212 = vmatprep.subr.bf16.mxu1 %v15956_v31 }
 0x8c0   :  { %10213 = vmatpush1.bf16.msra.mxu1 %v15954_v1 }
 0x8c1   :  { %10214 = vmatprep.subr.bf16.mxu1 %v15959_v40 }
 0x8c4   :  { %10215 = vmatpush1.bf16.msra.mxu1 %v15957_v60 }
 0x8c5   :  { %10216 = vmatprep.subr.bf16.mxu1 %v15962_v53 }
 0x8c8   :  { %10217 = vmatpush1.bf16.msra.mxu1 %v15960_v50 }
 0x8c9   :  { %10218 = vmatprep.subr.bf16.mxu1 %v15965_v15 }
 0x8cc   :  { %10219 = vmatpush1.bf16.msra.mxu1 %v15963_v16 }
 0x8cd   :  { %10220 = vmatprep.subr.bf16.mxu1 %v15968_v36 }
 0x8d0   :  { %10221 = vmatpush1.bf16.msra.mxu1 %v15966_v5  ;;  %v16007_v5 = vld [vmem:[#allocation7 + $0x264] ss:$8 sps:$4 sm:$0xff]  }
 0x8d1   :  { %10222 = vmatprep.subr.bf16.mxu1 %v15971_v46  ;;  %v16005_v46 = vld [vmem:[#allocation7 + $0x260] ss:$8 sps:$4 sm:$0xff]  }
 0x8d4   :  { %10223 = vmatpush1.bf16.msra.mxu1 %v15969_v37  ;;  %v16010_v37 = vld [vmem:[#allocation7 + $0x274] ss:$8 sps:$4 sm:$0xff]  }
 0x8d5   :  { %10224 = vmatprep.subr.bf16.mxu1 %v15974_v10  ;;  %v10283_v10 = vsub.s32 2, %v21810_v54 }
 0x8d8   :  { %10225 = vmatpush1.bf16.msra.mxu1 %v15972_v13  ;;  %v16008_v13 = vld [vmem:[#allocation7 + $0x270] ss:$8 sps:$4 sm:$0xff]  }
 0x8d9   :  { %10226 = vmatprep.subr.bf16.mxu1 %v15977_v45  ;;  %v10287_v45 = vsub.s32 3, %v21810_v54 }
 0x8dc   :  { %10227 = vmatpush1.bf16.msra.mxu1 %v15975_v23  ;;  %v16013_v23 = vld [vmem:[#allocation7 + $0x284] ss:$8 sps:$4 sm:$0xff]  }
 0x8dd   :  { %10228 = vmatprep.subr.bf16.mxu1 %v15980_v17  ;;  %v20182_v17 = vrot.slane %v10271_v34, %v10283_v10 }
 0x8e0   :  { %10229 = vmatpush1.bf16.msra.mxu1 %v15978_v19  ;;  %v16011_v19 = vld [vmem:[#allocation7 + $0x280] ss:$8 sps:$4 sm:$0xff]  }
 0x8e1   :  { %10230 = vmatprep.subr.bf16.mxu1 %v15983_v35  ;;  %v20184_v35 = vrot.slane %v10271_v34, %v10287_v45 }
 0x8e4   :  { %10231 = vmatpush1.bf16.msra.mxu1 %v15981_v0 }
 0x8e5   :  { %10232 = vmatprep.subr.bf16.mxu1 %v15986_v58  ;;  %v16016_v58 = vld [vmem:[#allocation7 + $0x294] ss:$8 sps:$4 sm:$0xff]  }
 0x8e8   :  { %10233 = vmatpush1.bf16.msra.mxu1 %v15984_v12 }
 0x8eb   :  { %14450 = vmatmul.mubr.msk.bf16.vlgmr.msra.gmra.mrb[40].mxu1 %vm20128_vm7, %v20076_v32  ;;  %v15998_v32 = vld [vmem:[#allocation7 + $0x234] ss:$8 sps:$4 sm:$0xff]  }
 0x8ec   :  { %14454 = vmatprep.mubr.msk.bf16.mxu1 %vm20140_vm9, %v20078_v9  ;;  %12196 = vmatprep.subr.bf16.mxu0 %v15998_v32  ;;  %v16001_v9 = vld [vmem:[#allocation7 + $0x244] ss:$8 sps:$4 sm:$0xff]  }
 0x8ed   :  { %12197 = vmatpush1.bf16.msra.mxu0 %v15996_v47 }
 0x8ee   :  { %12198 = vmatprep.subr.bf16.mxu0 %v16001_v9 }
 0x8f1   :  { %12199 = vmatpush1.bf16.msra.mxu0 %v15999_v57  ;;  %v16019_v57 = vld [vmem:[#allocation7 + $0x2a4] ss:$8 sps:$4 sm:$0xff]  }
 0x8f3   :  { %14458 = vmatmul.mubr.msk.bf16.gmra.mrb[44].mxu1 %vm20140_vm9, %v20085_v29  ;;  %v16004_v29 = vld [vmem:[#allocation7 + $0x254] ss:$8 sps:$4 sm:$0xff]  }
 0x8f4   :  { %12200 = vmatprep.subr.bf16.mxu0 %v16004_v29 }
 0x8f5   :  { %12201 = vmatpush1.bf16.msra.mxu0 %v16002_v20  ;;  %v16017_v20 = vld [vmem:[#allocation7 + $0x2a0] ss:$8 sps:$4 sm:$0xff]  }
 0x8f6   :  { %12202 = vmatprep.subr.bf16.mxu0 %v16007_v5 }
 0x8f9   :  { %12203 = vmatpush1.bf16.msra.mxu0 %v16005_v46  ;;  %v16028_v46 = vld [vmem:[#allocation7 + $0x2d4] ss:$8 sps:$4 sm:$0xff]  }
 0x8fa   :  { %12204 = vmatprep.subr.bf16.mxu0 %v16010_v37 }
 0x8fd   :  { %12205 = vmatpush1.bf16.msra.mxu0 %v16008_v13 }
 0x8fe   :  { %12206 = vmatprep.subr.bf16.mxu0 %v16013_v23 }
 0x901   :  { %12207 = vmatpush1.bf16.msra.mxu0 %v16011_v19 }
 0x902   :  { %12208 = vmatprep.subr.bf16.mxu0 %v16016_v58 }
 0x905   :  { %12209 = vmatpush1.bf16.msra.mxu0 %v16014_v21 }
 0x906   :  { %12210 = vmatprep.subr.bf16.mxu0 %v16019_v57 }
 0x909   :  { %12211 = vmatpush1.bf16.msra.mxu0 %v16017_v20 }
 0x97e   :  { %v10183_v27 = vpop.f32.mrb[32].mxu1 }
 0x97f   :  { %v10293_v62 = vadd.f32 %v10276_v11, %v10183_v27  ;;  %v10185_v4 = vpop.f32.mrb[33].mxu1  ;;  %v21830_v27 = vld [vmem:[#allocation16_spill] sm:$0xff] }
 0x980   :  { %v10294_v26 = vadd.f32 %v10280_v18, %v10185_v4  ;;  %v10187_v33 = vpop.f32.mrb[34].mxu1 }
 0x981   :  { %v10309_v44 = vmax.f32 %v10293_v62, 0.0  ;;  %v10297_v7 = vadd.f32 %v10276_v11, %v10187_v33  ;;  %v10189_v42 = vpop.f32.mrb[35].mxu1 }
 0x982   :  { %v10310_v38 = vmax.f32 %v10294_v26, 0.0  ;;  %v10298_v14 = vadd.f32 %v10280_v18, %v10189_v42 }
 0x983   :  { %v10313_v55 = vmax.f32 %v10297_v7, 0.0 }
 0x984   :  { %v10341_v3 = vcombine.low %v10309_v44, %v10310_v38  ;;  %v10342_v41 = vcombine.high %v10309_v44, %v10310_v38  ;;  %v10314_v51 = vmax.f32 %v10298_v14, 0.0  ;;  %v16022_v38 = vld [vmem:[#allocation7 + $0x2b4] ss:$8 sps:$4 sm:$0xff]  }
 0x985   :  { %12212 = vmatprep.subr.bf16.mxu0 %v16022_v38 }
 0x986   :  { %v20170_v43 = vcombine.low %v10313_v55, %v10314_v51  ;;  %v20172_v8 = vcombine.high %v10313_v55, %v10314_v51  ;;  %v10193_v48 = vpop.f32.mrb[36].mxu1  ;;  %v10351_v62 = vrot.slane %v10341_v3, %v21830_v27  ;;  %v10358_v4 = vrot.slane %v10342_v41, %v21830_v27  ;;  %v16020_v51 = vld [vmem:[#allocation7 + $0x2b0] ss:$8 sps:$4 sm:$0xff]  }
 0x987   :  { %v10301_v56 = vadd.f32 %v10276_v11, %v10193_v48  ;;  %v10195_v25 = vpop.f32.mrb[37].mxu1  ;;  %12213 = vmatpush1.bf16.msra.mxu0 %v16020_v51 }
 0x988   :  { %v10302_v22 = vadd.f32 %v10280_v18, %v10195_v25  ;;  %v10197_v61 = vpop.f32.mrb[38].mxu1  ;;  %v20202_v14 = vrot.slane %v20170_v43, %v21830_v27  ;;  %v20206_v55 = vrot.slane %v20172_v8, %v21830_v27 }
 0x989   :  { %v10317_v30 = vmax.f32 %v10301_v56, 0.0  ;;  %v10305_v49 = vadd.f32 %v10276_v11, %v10197_v61  ;;  %v10199_v31 = vpop.f32.mrb[39].mxu1 }
 0x98a   :  { %v10318_v1 = vmax.f32 %v10302_v22, 0.0  ;;  %v10306_v40 = vadd.f32 %v10280_v18, %v10199_v31 }
 0x98b   :  { %v10321_v60 = vmax.f32 %v10305_v49, 0.0 }
 0x98c   :  { %v10413_v53 = vcombine.low %v10317_v30, %v10318_v1  ;;  %v20174_v50 = vcombine.high %v10317_v30, %v10318_v1  ;;  %v10322_v15 = vmax.f32 %v10306_v40, 0.0  ;;  %v16025_v30 = vld [vmem:[#allocation7 + $0x2c4] ss:$8 sps:$4 sm:$0xff]   ;;  %v16023_v40 = vld [vmem:[#allocation7 + $0x2c0] ss:$8 sps:$4 sm:$0xff]  }
 0x98d   :  { %12214 = vmatprep.subr.bf16.mxu0 %v16025_v30 }
 0x98e   :  { %v20176_v16 = vcombine.low %v10321_v60, %v10322_v15  ;;  %v20178_v36 = vcombine.high %v10321_v60, %v10322_v15  ;;  %v20209_v3 = vrot.slane %v10413_v53, %v21830_v27  ;;  %v20219_v60 = vrot.slane %v20174_v50, %v21830_v27  ;;  %12215 = vmatpush1.bf16.msra.mxu0 %v16023_v40 }
 0x98f   :  { %12216 = vmatprep.subr.bf16.mxu0 %v16028_v46 }
 0x990   :  { %v20228_v37 = vrot.slane %v20176_v16, %v21830_v27  ;;  %v20232_v10 = vrot.slane %v20178_v36, %v21830_v27 }
 0x9be   :  { %v10236_v0 = vpop.f32.mrb[40].mxu1 }
 0x9bf   :  { %v10295_v12 = vadd.f32 %v20182_v17, %v10236_v0  ;;  %v10238_v63 = vpop.f32.mrb[41].mxu1 }
 0x9c0   :  { %v10296_v2 = vadd.f32 %v20184_v35, %v10238_v63  ;;  %v10240_v59 = vpop.f32.mrb[42].mxu1  ;;  %v16026_v63 = vld [vmem:[#allocation7 + $0x2d0] ss:$8 sps:$4 sm:$0xff]  }
 0x9c1   :  { %v10311_v6 = vmax.f32 %v10295_v12, 0.0  ;;  %v10299_v28 = vadd.f32 %v20182_v17, %v10240_v59  ;;  %v10242_v32 = vpop.f32.mrb[43].mxu1  ;;  %12217 = vmatpush1.bf16.msra.mxu0 %v16026_v63 }
 0x9c2   :  { %v10312_v47 = vmax.f32 %v10296_v2, 0.0  ;;  %v10300_v9 = vadd.f32 %v20184_v35, %v10242_v32 }
 0x9c3   :  { %v10315_v29 = vmax.f32 %v10299_v28, 0.0  ;;  %v16031_v28 = vld [vmem:[#allocation7 + $0x2e4] ss:$8 sps:$4 sm:$0xff]  }
 0x9c4   :  { %v10343_v34 = vcombine.low %v10311_v6, %v10312_v47  ;;  %v10344_v11 = vcombine.high %v10311_v6, %v10312_v47  ;;  %v10316_v18 = vmax.f32 %v10300_v9, 0.0  ;;  %12218 = vmatprep.subr.bf16.mxu0 %v16031_v28 }
 0x9c6   :  { %v10365_v26 = vrot.slane %v10343_v34, %v21830_v27  ;;  %v10372_v33 = vrot.slane %v10344_v11, %v21830_v27  ;;  %v20194_v44 = vcombine.low %v10315_v29, %v10316_v18  ;;  %v20196_v7 = vcombine.high %v10315_v29, %v10316_v18  ;;  %v20198_v42 = vpop.f32.mrb[44].mxu1 }
 0x9c7   :  { %v20211_v41 = vpop.f32.mrb[45].mxu1 }
 0x9c8   :  { %v10373_v48 = vcombine.low %v10351_v62, %v10365_v26  ;;  %v10374_v56 = vcombine.high %v10351_v62, %v10365_v26  ;;  %v10375_v25 = vcombine.low %v10358_v4, %v10372_v33  ;;  %v10376_v22 = vcombine.high %v10358_v4, %v10372_v33  ;;  %v20213_v61 = vpop.f32.mrb[46].mxu1 }
 0x9c9   :  { %v14459_v43 = vcombine.low %v10365_v26, %v10365_v26  ;;  %v14460_v49 = vcombine.high %v10365_v26, %v10365_v26  ;;  %v14461_v31 = vcombine.low %v10372_v33, %v10372_v33  ;;  %v14462_v1 = vcombine.high %v10372_v33, %v10372_v33  ;;  %v20215_v8 = vpop.f32.mrb[47].mxu1  ;;  %v16029_v33 = vld [vmem:[#allocation7 + $0x2e0] ss:$8 sps:$4 sm:$0xff]  }
 0x9ca   :  { %v10492_v53 = vrot.slane %v10373_v48, %v21830_v27  ;;  %v10509_v15 = vrot.slane %v10374_v56, %v21830_v27  ;;  %v20224_v5 = vrot.slane %v10375_v25, %v21830_v27  ;;  %v20240_v0 = vrot.slane %v10376_v22, %v21830_v27  ;;  %v16034_v25 = vld [vmem:[#allocation7 + $0x2f4] ss:$8 sps:$4 sm:$0xff]   ;;  %12219 = vmatpush1.bf16.msra.mxu0 %v16029_v33 }
 0x9cb   :  { %v10499_v50 = vrot.slane %v14459_v43, %v21830_v27  ;;  %v10516_v13 = vrot.slane %v14460_v49, %v21830_v27  ;;  %v20237_v19 = vrot.slane %v14461_v31, %v21830_v27  ;;  %v20245_v36 = vrot.slane %v14462_v1, %v21830_v27  ;;  %12220 = vmatprep.subr.bf16.mxu0 %v16034_v25 }
 0x9cc   :  { %v10500_v45 = vcombine.high %v10492_v53, %v10492_v53  ;;  %v10517_v23 = vcombine.high %v10509_v15, %v10509_v15  ;;  %v10534_v16 = vcombine.high %v20224_v5, %v20224_v5  ;;  %v10821_v21 = vsel %vm5741_vm5, %v10492_v53, -inf }
 0x9cd   :  { %v10501_v58 = vcombine.high %v10499_v50, %v10499_v50  ;;  %v10518_v12 = vcombine.high %v10516_v13, %v10516_v13  ;;  %v10835_v59 = vsel %vm5741_vm5, %v10499_v50, -inf  ;;  %v10849_v6 = vsel %vm5741_vm5, %v10509_v15, -inf }
 0x9ce   :  { %v10828_v2 = vsel %vm5741_vm5, %v10500_v45, -inf  ;;  %v10822_v32 = vrot.slane %v10821_v21, 4  ;;  %v10836_v9 = vrot.slane %v10835_v59, 4  ;;  %v10850_v20 = vrot.slane %v10849_v6, 4  ;;  %v16032_v45 = vld [vmem:[#allocation7 + $0x2f0] ss:$8 sps:$4 sm:$0xff]  }
 0x9cf   :  { %v10829_v47 = vrot.slane %v10828_v2, 4  ;;  %v10842_v57 = vsel %vm5741_vm5, %v10501_v58, -inf  ;;  %v10856_v34 = vsel %vm5741_vm5, %v10517_v23, -inf  ;;  %v10863_v11 = vsel %vm5741_vm5, %v10516_v13, -inf  ;;  %12221 = vmatpush1.bf16.msra.mxu0 %v16032_v45 }
 0x9d0   :  { %v10843_v29 = vrot.slane %v10842_v57, 4  ;;  %v10823_v18 = vmax.f32 %v10821_v21, %v10822_v32  ;;  %v10837_v4 = vmax.f32 %v10835_v59, %v10836_v9  ;;  %v10857_v26 = vrot.slane %v10856_v34, 4 }
 0x9d1   :  { %v10830_v62 = vmax.f32 %v10828_v2, %v10829_v47  ;;  %v10851_v51 = vmax.f32 %v10849_v6, %v10850_v20  ;;  %v10864_v48 = vrot.slane %v10863_v11, 4  ;;  %v10870_v56 = vsel %vm5741_vm5, %v10518_v12, -inf }
 0x9d2   :  { %v10844_v38 = vmax.f32 %v10842_v57, %v10843_v29  ;;  %v10824_v22 = vrot.slane %v10823_v18, 2  ;;  %v10838_v43 = vrot.slane %v10837_v4, 2  ;;  %v10858_v49 = vmax.f32 %v10856_v34, %v10857_v26 }
 0x9d3   :  { %v10831_v30 = vrot.slane %v10830_v62, 2  ;;  %v10852_v1 = vrot.slane %v10851_v51, 2  ;;  %v10865_v40 = vmax.f32 %v10863_v11, %v10864_v48  ;;  %v10871_v53 = vrot.slane %v10870_v56, 4 }
 0x9d4   :  { %v10845_v31 = vrot.slane %v10844_v38, 2  ;;  %v10825_v15 = vmax.f32 %v10823_v18, %v10824_v22  ;;  %v10839_v50 = vmax.f32 %v10837_v4, %v10838_v43  ;;  %v10859_v13 = vrot.slane %v10858_v49, 2 }
 0x9d5   :  { %v10832_v46 = vmax.f32 %v10830_v62, %v10831_v30  ;;  %v10853_v58 = vmax.f32 %v10851_v51, %v10852_v1  ;;  %v10866_v63 = vrot.slane %v10865_v40, 2  ;;  %v10872_v12 = vmax.f32 %v10870_v56, %v10871_v53 }
 0x9d6   :  { %v10846_v23 = vmax.f32 %v10844_v38, %v10845_v31  ;;  %v10826_v21 = vrot.slane %v10825_v15, 1  ;;  %v10840_v59 = vrot.slane %v10839_v50, 1  ;;  %v10860_v6 = vmax.f32 %v10858_v49, %v10859_v13 }
 0x9d7   :  { %v10833_v2 = vrot.slane %v10832_v46, 1  ;;  %v10854_v32 = vrot.slane %v10853_v58, 1  ;;  %v10867_v47 = vmax.f32 %v10865_v40, %v10866_v63  ;;  %v20257_v9 = vadd.f32 %v20182_v17, %v20198_v42  ;;  %v16037_v40 = vld [vmem:[#allocation7 + $0x304] ss:$8 sps:$4 sm:$0xff]  }
 0x9d8   :  { %v10847_v28 = vrot.slane %v10846_v23, 1  ;;  %v10535_v57 = vcombine.high %v20237_v19, %v20237_v19  ;;  %v10551_v29 = vcombine.high %v20240_v0, %v20240_v0  ;;  %v10552_v20 = vcombine.high %v20245_v36, %v20245_v36  ;;  %12233 = vmatprep.subr.bf16.mxu0 %v16037_v40 }
 0x9d9   :  { %v10873_v34 = vrot.slane %v10872_v12, 2  ;;  %v20265_v11 = vmax.f32 %v10825_v15, %v10826_v21  ;;  %v20267_v18 = vmax.f32 %v10832_v46, %v10833_v2  ;;  %v20269_v62 = vmax.f32 %v10839_v50, %v10840_v59 }
 0x9da   :  { %v10861_v4 = vrot.slane %v10860_v6, 1  ;;  %v20271_v42 = vmax.f32 %v10846_v23, %v10847_v28  ;;  %v10877_v26 = vsel %vm5741_vm5, %v20224_v5, -inf  ;;  %v10884_v33 = vsel %vm5741_vm5, %v10534_v16, -inf }
 0x9db   :  { %v10891_v38 = vsel %vm5741_vm5, %v20237_v19, -inf  ;;  %v20281_v51 = vmax.f32 %v10853_v58, %v10854_v32  ;;  %v10868_v48 = vrot.slane %v10867_v47, 1  ;;  %v10878_v56 = vrot.slane %v10877_v26, 4 }
 0x9dc   :  { %21831 = vst [vmem:[#allocation57_spill] sm:$0xff] %v20271_v42  ;;  %v10885_v25 = vrot.slane %v10884_v33, 4  ;;  %v10892_v22 = vrot.slane %v10891_v38, 4  ;;  %v10898_v30 = vsel %vm5741_vm5, %v10535_v57, -inf  ;;  %v10905_v43 = vsel %vm5741_vm5, %v20240_v0, -inf }
 0x9dd   :  { %v10912_v49 = vsel %vm5741_vm5, %v10551_v29, -inf  ;;  %v10874_v31 = vmax.f32 %v10872_v12, %v10873_v34  ;;  %v10879_v5 = vmax.f32 %v10877_v26, %v10878_v56  ;;  %v10899_v16 = vrot.slane %v10898_v30, 4 }
 0x9de   :  { %v10886_v1 = vmax.f32 %v10884_v33, %v10885_v25  ;;  %v10893_v53 = vmax.f32 %v10891_v38, %v10892_v22  ;;  %v10906_v19 = vrot.slane %v10905_v43, 4  ;;  %v10913_v15 = vrot.slane %v10912_v49, 4 }
 0x9df   :  { %v10919_v46 = vsel %vm5741_vm5, %v20245_v36, -inf  ;;  %v10880_v50 = vrot.slane %v10879_v5, 2  ;;  %v10900_v45 = vmax.f32 %v10898_v30, %v10899_v16  ;;  %v10926_v12 = vsel %vm5741_vm5, %v10552_v20, -inf }
 0x9e0   :  { %v10887_v13 = vrot.slane %v10886_v1, 2  ;;  %v10920_v23 = vrot.slane %v10919_v46, 4  ;;  %v10894_v58 = vrot.slane %v10893_v53, 2  ;;  %v10907_v0 = vmax.f32 %v10905_v43, %v10906_v19 }
 0x9e1   :  { %v10914_v63 = vmax.f32 %v10912_v49, %v10913_v15  ;;  %v20290_v21 = vmax.f32 %v10860_v6, %v10861_v4  ;;  %v10881_v2 = vmax.f32 %v10879_v5, %v10880_v50  ;;  %v10901_v59 = vrot.slane %v10900_v45, 2 }
 0x9e2   :  { %v10921_v28 = vmax.f32 %v10919_v46, %v10920_v23  ;;  %v10869_v32 = vmax.f32 %v10867_v47, %v10868_v48  ;;  %v10895_v57 = vmax.f32 %v10893_v53, %v10894_v58  ;;  %v10908_v29 = vrot.slane %v10907_v0, 2 }
 0x9e3   :  { %v10927_v34 = vrot.slane %v10926_v12, 4  ;;  %v10875_v36 = vrot.slane %v10874_v31, 1  ;;  %v10882_v26 = vrot.slane %v10881_v2, 1  ;;  %v10888_v33 = vmax.f32 %v10886_v1, %v10887_v13 }
 0x9e4   :  { %v10922_v38 = vrot.slane %v10921_v28, 2  ;;  %v10896_v56 = vrot.slane %v10895_v57, 1  ;;  %v10909_v25 = vmax.f32 %v10907_v0, %v10908_v29  ;;  %v10915_v22 = vrot.slane %v10914_v63, 2 }
 0x9e5   :  { %v10928_v30 = vmax.f32 %v10926_v12, %v10927_v34  ;;  %v10883_v43 = vmax.f32 %v10881_v2, %v10882_v26  ;;  %v20292_v49 = vmax.f32 %v10900_v45, %v10901_v59  ;;  %v11359_v20 = vsel %vm4042_vm11, %v20281_v51, %v20265_v11 }
 0x9e6   :  { %v10923_v6 = vmax.f32 %v10921_v28, %v10922_v38  ;;  %v20297_v47 = vmax.f32 %v10895_v57, %v10896_v56  ;;  %v10910_v4 = vrot.slane %v10909_v25, 1  ;;  %v11373_v5 = vsel %vm4042_vm11, %v10869_v32, %v20269_v62 }
 0x9e7   :  { %v10929_v48 = vrot.slane %v10928_v30, 2  ;;  %v11360_v16 = vsel %vm4044_vm12, %v10883_v43, %v11359_v20  ;;  %v11549_v40 = vpack.c.bf16 %v20265_v11, %v20265_v11  ;;  %v11551_v53 = vpack.c.bf16 %v20269_v62, %v20269_v62 }
 0x9e8   :  { %21832 = vst [vmem:[#allocation66_spill] sm:$0xff] %v20297_v47  ;;  %v10924_v1 = vrot.slane %v10923_v6, 1  ;;  %v20306_v19 = vmax.f32 %v10874_v31, %v10875_v36  ;;  %v10911_v15 = vmax.f32 %v10909_v25, %v10910_v4  ;;  %v20310_v46 = vsel %vm4044_vm12, %v20297_v47, %v11373_v5 }
 0x9e9   :  { %21834 = vst [vmem:[#allocation62_spill] sm:$0xff] %v20310_v46  ;;  %v11553_v50 = vpack.c.bf16 %v20281_v51, %v20281_v51  ;;  %v10889_v13 = vrot.slane %v10888_v33, 1  ;;  %v20314_v45 = vmax.f32 %v10914_v63, %v10915_v22  ;;  %v11555_v23 = vpack.c.bf16 %v10869_v32, %v10869_v32 }
 0x9ea   :  { %21833 = vst [vmem:[#allocation65_spill] sm:$0xff] %v20306_v19  ;;  %v11557_v58 = vpack.c.bf16 %v10883_v43, %v10883_v43  ;;  %v20317_v0 = vmax.f32 %v10928_v30, %v10929_v48  ;;  %v20320_v62 = vsel %vm4046_vm13, %v10911_v15, %v11360_v16  ;;  %v11561_v31 = vpack.c.bf16 %v10911_v15, %v10911_v15 }
 0x9eb   :  { %21835 = vst [vmem:[#allocation61_spill] sm:$0xff] %v20320_v62  ;;  %v20322_v12 = vmax.f32 %v10923_v6, %v10924_v1  ;;  %v20326_v59 = vunpack.c.l.b16 %v11549_v40  ;;  %v20328_v51 = vunpack.c.l.b16 %v11551_v53  ;;  %v20330_v63 = vunpack.c.l.b16 %v11553_v50 }
 0x9ec   :  { %v20332_v28 = vunpack.c.l.b16 %v11555_v23  ;;  %v10401_v32 = vrot.slane %v20194_v44, %v21830_v27  ;;  %v10408_v57 = vrot.slane %v20196_v7, %v21830_v27  ;;  %v20338_v29 = vunpack.c.l.b16 %v11557_v58 }
 0x9ed   :  { %21836 = vst [vmem:[#allocation68_spill] sm:$0xff] %v20322_v12  ;;  %21837 = vst [vmem:[#allocation36_spill] sm:$0xff] %v20328_v51  ;;  %v20340_v34 = vunpack.c.l.b16 %v11561_v31  ;;  %v20345_v26 = vadd.f32 %v20184_v35, %v20211_v41  ;;  %v20356_v41 = vadd.f32 %v20182_v17, %v20213_v61  ;;  %v20364_v5 = vmax.f32 %v10888_v33, %v10889_v13 }
 0x9ee   :  { %21838 = vst [vmem:[#allocation35_spill] sm:$0xff] %v20332_v28  ;;  %v10409_v38 = vcombine.low %v20202_v14, %v10401_v32  ;;  %v10410_v56 = vcombine.high %v20202_v14, %v10401_v32  ;;  %v10411_v25 = vcombine.low %v20206_v55, %v10408_v57  ;;  %v10412_v44 = vcombine.high %v20206_v55, %v10408_v57 }
 0x9ef   :  { %v14463_v22 = vcombine.low %v10401_v32, %v10401_v32  ;;  %v14464_v7 = vcombine.high %v10401_v32, %v10401_v32  ;;  %v14465_v30 = vcombine.low %v10408_v57, %v10408_v57  ;;  %v14466_v43 = vcombine.high %v10408_v57, %v10408_v57 }
 0x9f0   :  { %v10560_v6 = vrot.slane %v10409_v38, %v21830_v27  ;;  %v10577_v20 = vrot.slane %v10410_v56, %v21830_v27  ;;  %v10594_v4 = vrot.slane %v10411_v25, %v21830_v27  ;;  %v20362_v55 = vadd.f32 %v20184_v35, %v20215_v8 }
 0x9f1   :  { %v10567_v14 = vrot.slane %v14463_v22, %v21830_v27  ;;  %v10584_v48 = vrot.slane %v14464_v7, %v21830_v27  ;;  %v10601_v40 = vrot.slane %v14465_v30, %v21830_v27  ;;  %v20368_v53 = vrot.slane %v10412_v44, %v21830_v27 }
 0x9f2   :  { %v10568_v1 = vcombine.high %v10560_v6, %v10560_v6  ;;  %v10585_v16 = vcombine.high %v10577_v20, %v10577_v20  ;;  %v10602_v61 = vcombine.high %v10594_v4, %v10594_v4  ;;  %v20371_v50 = vrot.slane %v14466_v43, %v21830_v27 }
 0x9f3   :  { %v10569_v15 = vcombine.high %v10567_v14, %v10567_v14  ;;  %v10586_v17 = vcombine.high %v10584_v48, %v10584_v48  ;;  %v10933_v23 = vsel %vm5741_vm5, %v10560_v6, -inf  ;;  %v10947_v8 = vsel %vm5741_vm5, %v10567_v14, -inf }
 0x9f4   :  { %21839 = vst [vmem:[#allocation70_spill] sm:$0xff] %v20371_v50  ;;  %v10940_v35 = vsel %vm5741_vm5, %v10568_v1, -inf  ;;  %v10961_v33 = vsel %vm5741_vm5, %v10577_v20, -inf  ;;  %v10934_v13 = vrot.slane %v10933_v23, 4  ;;  %v10948_v31 = vrot.slane %v10947_v8, 4 }
 0x9f5   :  { %v10941_v58 = vrot.slane %v10940_v35, 4  ;;  %v10954_v32 = vsel %vm5741_vm5, %v10569_v15, -inf  ;;  %v10962_v38 = vrot.slane %v10961_v33, 4  ;;  %v10968_v56 = vsel %vm5741_vm5, %v10585_v16, -inf }
 0x9f6   :  { %v10955_v57 = vrot.slane %v10954_v32, 4  ;;  %v10975_v25 = vsel %vm5741_vm5, %v10584_v48, -inf  ;;  %v10935_v22 = vmax.f32 %v10933_v23, %v10934_v13  ;;  %v10949_v30 = vmax.f32 %v10947_v8, %v10948_v31 }
 0x9f7   :  { %v10942_v7 = vmax.f32 %v10940_v35, %v10941_v58  ;;  %v10603_v43 = vcombine.high %v10601_v40, %v10601_v40  ;;  %v10963_v6 = vmax.f32 %v10961_v33, %v10962_v38  ;;  %v10976_v20 = vrot.slane %v10975_v25, 4 }
 0x9f8   :  { %v10982_v14 = vsel %vm5741_vm5, %v10586_v17, -inf  ;;  %v10936_v15 = vrot.slane %v10935_v22, 2  ;;  %v10950_v2 = vrot.slane %v10949_v30, 2  ;;  %v10969_v11 = vrot.slane %v10968_v56, 4 }
 0x9f9   :  { %v10943_v16 = vrot.slane %v10942_v7, 2  ;;  %v20385_v36 = vmax.f32 %v10954_v32, %v10955_v57  ;;  %v10964_v48 = vrot.slane %v10963_v6, 2  ;;  %v10977_v39 = vmax.f32 %v10975_v25, %v10976_v20 }
 0x9fa   :  { %v10937_v44 = vmax.f32 %v10935_v22, %v10936_v15  ;;  %v10951_v23 = vmax.f32 %v10949_v30, %v10950_v2  ;;  %v10983_v35 = vrot.slane %v10982_v14, 4  ;;  %v10989_v8 = vsel %vm5741_vm5, %v10594_v4, -inf }
 0x9fb   :  { %v10965_v33 = vmax.f32 %v10963_v6, %v10964_v48  ;;  %v10978_v13 = vrot.slane %v10977_v39, 2  ;;  %v10990_v58 = vrot.slane %v10989_v8, 4  ;;  %v20389_v17 = vsel %vm5741_vm5, %v10602_v61, -inf }
 0x9fc   :  { %v10938_v31 = vrot.slane %v10937_v44, 1  ;;  %v10952_v38 = vrot.slane %v10951_v23, 1  ;;  %v20391_v1 = vmax.f32 %v10968_v56, %v10969_v11  ;;  %v11003_v32 = vsel %vm5741_vm5, %v10601_v40, -inf }
 0x9fd   :  { %v10966_v25 = vrot.slane %v10965_v33, 1  ;;  %v10991_v22 = vmax.f32 %v10989_v8, %v10990_v58  ;;  %v11004_v2 = vrot.slane %v11003_v32, 4  ;;  %v20395_v30 = vmax.f32 %v10977_v39, %v10978_v13 }
 0x9fe   :  { %v20397_v4 = vmax.f32 %v10982_v14, %v10983_v35  ;;  %v11017_v61 = vsel %vm5741_vm5, %v20368_v53, -inf  ;;  %v20402_v20 = vmax.f32 %v10937_v44, %v10938_v31  ;;  %v20404_v11 = vmax.f32 %v10951_v23, %v10952_v38 }
 0x9ff   :  { %21840 = vst [vmem:[#allocation69_spill] sm:$0xff] %v20395_v30  ;;  %v10992_v56 = vrot.slane %v10991_v22, 2  ;;  %v20406_v40 = vmax.f32 %v11003_v32, %v11004_v2  ;;  %v20409_v15 = vsel %vm5741_vm5, %v10603_v43, -inf  ;;  %v11018_v48 = vrot.slane %v11017_v61, 4 }
 0xa00   :  { %21841 = vst [vmem:[#allocation14_spill] sm:$0xff] %v20404_v11  ;;  %21843 = vst [vmem:[#allocation40_spill] sm:$0xff] %v20409_v15  ;;  %v11031_v39 = vsel %vm5741_vm5, %v20371_v50, -inf  ;;  %v10320_v14 = vmax.f32 %v20345_v26, 0.0  ;;  %v20414_v35 = vmax.f32 %v10965_v33, %v10966_v25  ;;  %v10323_v44 = vmax.f32 %v20356_v41, 0.0 }
 0xa01   :  { %21842 = vst [vmem:[#allocation51_spill] sm:$0xff] %v20406_v40  ;;  %v10993_v8 = vmax.f32 %v10991_v22, %v10992_v56  ;;  %v11032_v13 = vrot.slane %v11031_v39, 4  ;;  %v11019_v23 = vmax.f32 %v11017_v61, %v11018_v48  ;;  %v21844_v58 = vmax.f32 %v20257_v9, 0.0 }
 0xa02   :  { %v10324_v32 = vmax.f32 %v20362_v55, 0.0  ;;  %v10917_v55 = vrot.slane %v20314_v45, 1  ;;  %v20435_v48 = vmax.f32 %v10942_v7, %v10943_v16 }
 0xa03   :  { %v10415_v31 = vcombine.low %v21844_v58, %v10320_v14  ;;  %v21845_v38 = vmov %v21844_v58  ;;  %v10994_v2 = vrot.slane %v10993_v8, 1  ;;  %v20426_v25 = vmax.f32 %v11031_v39, %v11032_v13 }
 0xa04   :  { %v10416_v43 = vcombine.high %v21845_v38, %v10320_v14  ;;  %v20430_v61 = vcombine.low %v10323_v44, %v10324_v32  ;;  %v11020_v9 = vrot.slane %v11019_v23, 2  ;;  %v20432_v56 = vcombine.high %v10323_v44, %v10324_v32 }
 0xa05   :  { %21846 = vst [vmem:[#allocation38_spill] sm:$0xff] %v20426_v25  ;;  %v10437_v41 = vrot.slane %v10415_v31, %v21830_v27  ;;  %v20437_v14 = vmax.f32 %v10993_v8, %v10994_v2 }
 0xa06   :  { %v10444_v22 = vrot.slane %v10416_v43, %v21830_v27  ;;  %v20454_v26 = vmax.f32 %v11019_v23, %v11020_v9 }
 0xa07   :  { %v10445_v58 = vcombine.low %v20209_v3, %v10437_v41  ;;  %v10446_v39 = vcombine.high %v20209_v3, %v10437_v41  ;;  %v14467_v38 = vcombine.low %v10437_v41, %v10437_v41  ;;  %v14468_v43 = vcombine.high %v10437_v41, %v10437_v41 }
 0xa08   :  { %v10447_v13 = vcombine.low %v20219_v60, %v10444_v22  ;;  %v10448_v31 = vcombine.high %v20219_v60, %v10444_v22  ;;  %v14469_v57 = vcombine.low %v10444_v22, %v10444_v22  ;;  %v14470_v16 = vcombine.high %v10444_v22, %v10444_v22 }
 0xa09   :  { %v10628_v44 = vrot.slane %v10445_v58, %v21830_v27  ;;  %v10645_v32 = vrot.slane %v10446_v39, %v21830_v27  ;;  %v10635_v8 = vrot.slane %v14467_v38, %v21830_v27  ;;  %v10652_v2 = vrot.slane %v14468_v43, %v21830_v27 }
 0xa0a   :  { %v20446_v7 = vrot.slane %v10447_v13, %v21830_v27  ;;  %v20451_v3 = vmax.f32 %v20314_v45, %v10917_v55  ;;  %v20457_v58 = vrot.slane %v14469_v57, %v21830_v27  ;;  %v20462_v13 = vrot.slane %v10448_v31, %v21830_v27 }
 0xa0b   :  { %v10636_v41 = vcombine.high %v10628_v44, %v10628_v44  ;;  %v10653_v33 = vcombine.high %v10645_v32, %v10645_v32  ;;  %v10637_v39 = vcombine.high %v10635_v8, %v10635_v8  ;;  %v20465_v38 = vrot.slane %v14470_v16, %v21830_v27 }
 0xa0c   :  { %21847 = vst [vmem:[#allocation50_spill] sm:$0xff] %v20451_v3  ;;  %v10670_v22 = vcombine.high %v20446_v7, %v20446_v7  ;;  %v10654_v45 = vcombine.high %v10652_v2, %v10652_v2  ;;  %v11045_v55 = vsel %vm5741_vm5, %v10628_v44, -inf  ;;  %v11059_v9 = vsel %vm5741_vm5, %v10635_v8, -inf }
 0xa0d   :  { %v11052_v23 = vsel %vm5741_vm5, %v10636_v41, -inf  ;;  %v11046_v43 = vrot.slane %v11045_v55, 4  ;;  %v11060_v6 = vrot.slane %v11059_v9, 4  ;;  %v11066_v60 = vsel %vm5741_vm5, %v10637_v39, -inf }
 0xa0e   :  { %v11053_v57 = vrot.slane %v11052_v23, 4  ;;  %v11067_v24 = vrot.slane %v11066_v60, 4  ;;  %v11073_v52 = vsel %vm5741_vm5, %v10645_v32, -inf  ;;  %v11080_v31 = vsel %vm5741_vm5, %v10653_v33, -inf }
 0xa0f   :  { %v11087_v16 = vsel %vm5741_vm5, %v10652_v2, -inf  ;;  %v11047_v54 = vmax.f32 %v11045_v55, %v11046_v43  ;;  %v11061_v46 = vmax.f32 %v11059_v9, %v11060_v6  ;;  %v11074_v44 = vrot.slane %v11073_v52, 4 }
 0xa10   :  { %v11054_v62 = vmax.f32 %v11052_v23, %v11053_v57  ;;  %v11068_v28 = vmax.f32 %v11066_v60, %v11067_v24  ;;  %v11081_v41 = vrot.slane %v11080_v31, 4  ;;  %v11088_v51 = vrot.slane %v11087_v16, 4 }
 0xa11   :  { %v11094_v8 = vsel %vm5741_vm5, %v10654_v45, -inf  ;;  %v11048_v47 = vrot.slane %v11047_v54, 2  ;;  %v11062_v12 = vrot.slane %v11061_v46, 2  ;;  %v11075_v39 = vmax.f32 %v11073_v52, %v11074_v44 }
 0xa12   :  { %v11055_v11 = vrot.slane %v11054_v62, 2  ;;  %v11069_v25 = vrot.slane %v11068_v28, 2  ;;  %v11082_v40 = vmax.f32 %v11080_v31, %v11081_v41  ;;  %v11089_v32 = vmax.f32 %v11087_v16, %v11088_v51 }
 0xa13   :  { %v11095_v30 = vrot.slane %v11094_v8, 4  ;;  %v11049_v33 = vmax.f32 %v11047_v54, %v11048_v47  ;;  %v11063_v2 = vmax.f32 %v11061_v46, %v11062_v12  ;;  %v11076_v55 = vrot.slane %v11075_v39, 2 }
 0xa14   :  { %v11056_v19 = vmax.f32 %v11054_v62, %v11055_v11  ;;  %v11070_v23 = vmax.f32 %v11068_v28, %v11069_v25  ;;  %v11083_v6 = vrot.slane %v11082_v40, 2  ;;  %v11090_v9 = vrot.slane %v11089_v32, 2 }
 0xa15   :  { %v11096_v24 = vmax.f32 %v11094_v8, %v11095_v30  ;;  %v11050_v60 = vrot.slane %v11049_v33, 1  ;;  %v11064_v57 = vrot.slane %v11063_v2, 1  ;;  %v11077_v45 = vmax.f32 %v11075_v39, %v11076_v55 }
 0xa16   :  { %v11057_v43 = vrot.slane %v11056_v19, 1  ;;  %v11071_v42 = vrot.slane %v11070_v23, 1  ;;  %v11084_v50 = vmax.f32 %v11082_v40, %v11083_v6  ;;  %v11091_v15 = vmax.f32 %v11089_v32, %v11090_v9 }
 0xa17   :  { %v11097_v52 = vrot.slane %v11096_v24, 2  ;;  %v10671_v51 = vcombine.high %v20457_v58, %v20457_v58  ;;  %v10687_v54 = vcombine.high %v20462_v13, %v20462_v13  ;;  %v10688_v47 = vcombine.high %v20465_v38, %v20465_v38 }
 0xa18   :  { %v11078_v46 = vrot.slane %v11077_v45, 1  ;;  %v20481_v62 = vmax.f32 %v11049_v33, %v11050_v60  ;;  %v20483_v12 = vmax.f32 %v11056_v19, %v11057_v43  ;;  %v20485_v28 = vmax.f32 %v11063_v2, %v11064_v57 }
 0xa19   :  { %v11098_v30 = vmax.f32 %v11096_v24, %v11097_v52  ;;  %v20487_v11 = vmax.f32 %v11070_v23, %v11071_v42  ;;  %v11101_v40 = vsel %vm5741_vm5, %v20446_v7, -inf  ;;  %v11108_v25 = vsel %vm5741_vm5, %v10670_v22, -inf }
 0xa1a   :  { %21848 = vst [vmem:[#allocation46_spill] sm:$0xff] %v20483_v12  ;;  %21849 = vst [vmem:[#allocation52_spill] sm:$0xff] %v20485_v28  ;;  %v11115_v31 = vsel %vm5741_vm5, %v20457_v58, -inf  ;;  %v20494_v16 = vmax.f32 %v11077_v45, %v11078_v46  ;;  %v11085_v44 = vrot.slane %v11084_v50, 1  ;;  %v11092_v41 = vrot.slane %v11091_v15, 1 }
 0xa1b   :  { %21850 = vst [vmem:[#allocation47_spill] sm:$0xff] %v20487_v11  ;;  %v11102_v8 = vrot.slane %v11101_v40, 4  ;;  %v11109_v19 = vrot.slane %v11108_v25, 4  ;;  %v11116_v39 = vrot.slane %v11115_v31, 4  ;;  %v11122_v32 = vsel %vm5741_vm5, %v10671_v51, -inf }
 0xa1c   :  { %v11129_v42 = vsel %vm5741_vm5, %v20462_v13, -inf  ;;  %v11099_v33 = vrot.slane %v11098_v30, 1  ;;  %v11123_v7 = vrot.slane %v11122_v32, 4  ;;  %v11136_v58 = vsel %vm5741_vm5, %v10687_v54, -inf }
 0xa1d   :  { %v11103_v2 = vmax.f32 %v11101_v40, %v11102_v8  ;;  %v11130_v55 = vrot.slane %v11129_v42, 4  ;;  %v11110_v22 = vmax.f32 %v11108_v25, %v11109_v19  ;;  %v11117_v23 = vmax.f32 %v11115_v31, %v11116_v39 }
 0xa1e   :  { %v11143_v6 = vsel %vm5741_vm5, %v20465_v38, -inf  ;;  %v11124_v24 = vmax.f32 %v11122_v32, %v11123_v7  ;;  %v11137_v43 = vrot.slane %v11136_v58, 4  ;;  %v11150_v13 = vsel %vm5741_vm5, %v10688_v47, -inf }
 0xa1f   :  { %v11104_v9 = vrot.slane %v11103_v2, 2  ;;  %v11131_v60 = vmax.f32 %v11129_v42, %v11130_v55  ;;  %v11111_v57 = vrot.slane %v11110_v22, 2  ;;  %v11118_v45 = vrot.slane %v11117_v23, 2 }
 0xa20   :  { %v11144_v52 = vrot.slane %v11143_v6, 4  ;;  %v11125_v46 = vrot.slane %v11124_v24, 2  ;;  %v11138_v8 = vmax.f32 %v11136_v58, %v11137_v43  ;;  %v20503_v25 = vmax.f32 %v11084_v50, %v11085_v44 }
 0xa21   :  { %v11105_v51 = vmax.f32 %v11103_v2, %v11104_v9  ;;  %v11132_v40 = vrot.slane %v11131_v60, 2  ;;  %v11119_v31 = vmax.f32 %v11117_v23, %v11118_v45  ;;  %v11151_v19 = vrot.slane %v11150_v13, 4 }
 0xa22   :  { %21851 = vst [vmem:[#allocation56_spill] sm:$0xff] %v20503_v25  ;;  %v11145_v54 = vmax.f32 %v11143_v6, %v11144_v52  ;;  %v20505_v39 = vmax.f32 %v11091_v15, %v11092_v41  ;;  %v20507_v32 = vmax.f32 %v11110_v22, %v11111_v57  ;;  %v20509_v55 = vmax.f32 %v11124_v24, %v11125_v46 }
 0xa23   :  { %v11106_v38 = vrot.slane %v11105_v51, 1  ;;  %v11133_v42 = vmax.f32 %v11131_v60, %v11132_v40  ;;  %v11120_v7 = vrot.slane %v11119_v31, 1  ;;  %v11152_v47 = vmax.f32 %v11150_v13, %v11151_v19 }
 0xa24   :  { %21852 = vst [vmem:[#allocation28_spill] sm:$0xff] %v20505_v39  ;;  %21853 = vst [vmem:[#allocation29_spill] sm:$0xff] %v20509_v55  ;;  %v11146_v11 = vrot.slane %v11145_v54, 2  ;;  %v20511_v2 = vmax.f32 %v11098_v30, %v11099_v33  ;;  %v11139_v50 = vrot.slane %v11138_v8, 2  ;;  %v11387_v15 = vsel %vm4042_vm11, %v20494_v16, %v20481_v62 }
 0xa25   :  { %v11107_v9 = vmax.f32 %v11105_v51, %v11106_v38  ;;  %v11134_v58 = vrot.slane %v11133_v42, 1  ;;  %v20513_v44 = vmax.f32 %v11119_v31, %v11120_v7  ;;  %v11153_v6 = vrot.slane %v11152_v47, 2 }
 0xa26   :  { %21854 = vst [vmem:[#allocation41_spill] sm:$0xff] %v20511_v2  ;;  %v11147_v23 = vmax.f32 %v11145_v54, %v11146_v11  ;;  %v11401_v24 = vsel %vm4042_vm11, %v20505_v39, %v20485_v28  ;;  %v11581_v30 = vpack.c.bf16 %v20481_v62, %v20481_v62  ;;  %v20530_v57 = vmax.f32 %v11138_v8, %v11139_v50 }
 0xa27   :  { %21855 = vst [vmem:[#allocation31_spill] sm:$0xff] %v20513_v44  ;;  %v11135_v41 = vmax.f32 %v11133_v42, %v11134_v58  ;;  %v11388_v22 = vsel %vm4044_vm12, %v11107_v9, %v11387_v15  ;;  %v20528_v43 = vsel %vm4044_vm12, %v20513_v44, %v11401_v24  ;;  %v11585_v52 = vpack.c.bf16 %v20494_v16, %v20494_v16 }
 0xa28   :  { %v11148_v11 = vrot.slane %v11147_v23, 1  ;;  %21856 = vst [vmem:[#allocation43_spill] sm:$0xff] %v20528_v43  ;;  %v11589_v13 = vpack.c.bf16 %v11107_v9, %v11107_v9  ;;  %v20537_v51 = vmax.f32 %v11152_v47, %v11153_v6  ;;  %v20547_v54 = vunpack.c.l.b16 %v11581_v30 }
 0xa29   :  { %v20533_v45 = vsel %vm4046_vm13, %v11135_v41, %v11388_v22  ;;  %v11593_v40 = vpack.c.bf16 %v11135_v41, %v11135_v41  ;;  %v20549_v19 = vunpack.c.l.b16 %v11585_v52  ;;  %v10473_v42 = vrot.slane %v20430_v61, %v21830_v27 }
 0xa2a   :  { %21857 = vst [vmem:[#allocation39_spill] sm:$0xff] %v20533_v45  ;;  %21858 = vst [vmem:[#allocation37_spill] sm:$0xff] %v20537_v51  ;;  %v20543_v31 = vmax.f32 %v11147_v23, %v11148_v11  ;;  %v20551_v16 = vunpack.c.l.b16 %v11589_v13  ;;  %v10480_v7 = vrot.slane %v20432_v56, %v21830_v27  ;;  %v21860_v47 = vrot.slane %v20435_v48, 1 }
 0xa2b   :  { %v20553_v38 = vunpack.c.l.b16 %v11593_v40  ;;  %v21862_v50 = vrot.slane %v20389_v17, 4  ;;  %v21863_v6 = vcombine.high %v20368_v53, %v20368_v53  ;;  %v10481_v56 = vcombine.low %v20228_v37, %v10473_v42 }
 0xa2c   :  { %21859 = vst [vmem:[#allocation63_spill] sm:$0xff] %v20543_v31  ;;  %v20562_v9 = vmax.f32 %v20435_v48, %v21860_v47  ;;  %v10482_v15 = vcombine.high %v20228_v37, %v10473_v42  ;;  %v10483_v48 = vcombine.low %v20232_v10, %v10480_v7  ;;  %v10484_v41 = vcombine.high %v20232_v10, %v10480_v7 }
 0xa2d   :  { %v20568_v23 = vmax.f32 %v20389_v17, %v21862_v50  ;;  %v20574_v61 = vsel %vm5741_vm5, %v21863_v6, -inf  ;;  %v14471_v22 = vcombine.low %v10473_v42, %v10473_v42  ;;  %v14472_v24 = vcombine.high %v10473_v42, %v10473_v42 }
 0xa2e   :  { %21861 = vst [vmem:[#allocation20_spill] sm:$0xff] %v20562_v9  ;;  %v14473_v30 = vcombine.low %v10480_v7, %v10480_v7  ;;  %v14474_v11 = vcombine.high %v10480_v7, %v10480_v7  ;;  %v10696_v17 = vrot.slane %v10481_v56, %v21830_v27  ;;  %v10713_v52 = vrot.slane %v10482_v15, %v21830_v27 }
 0xa2f   :  { %v10730_v53 = vrot.slane %v10483_v48, %v21830_v27  ;;  %v20584_v13 = vrot.slane %v10484_v41, %v21830_v27  ;;  %v10703_v40 = vrot.slane %v14471_v22, %v21830_v27  ;;  %v10720_v37 = vrot.slane %v14472_v24, %v21830_v27 }
 0xa30   :  { %v10737_v47 = vrot.slane %v14473_v30, %v21830_v27  ;;  %v20590_v10 = vrot.slane %v14474_v11, %v21830_v27  ;;  %v10704_v42 = vcombine.high %v10696_v17, %v10696_v17  ;;  %v10721_v7 = vcombine.high %v10713_v52, %v10713_v52 }
 0xa31   :  { %v10738_v50 = vcombine.high %v10730_v53, %v10730_v53  ;;  %v10705_v56 = vcombine.high %v10703_v40, %v10703_v40  ;;  %v10722_v15 = vcombine.high %v10720_v37, %v10720_v37  ;;  %v11157_v22 = vsel %vm5741_vm5, %v10696_v17, -inf }
 0xa32   :  { %v10739_v48 = vcombine.high %v10737_v47, %v10737_v47  ;;  %v11164_v24 = vsel %vm5741_vm5, %v10704_v42, -inf  ;;  %v11171_v30 = vsel %vm5741_vm5, %v10703_v40, -inf  ;;  %v11185_v11 = vsel %vm5741_vm5, %v10713_v52, -inf }
 0xa33   :  { %v11158_v8 = vrot.slane %v11157_v22, 4  ;;  %v11165_v46 = vrot.slane %v11164_v24, 4  ;;  %v11172_v62 = vrot.slane %v11171_v30, 4  ;;  %v11178_v60 = vsel %vm5741_vm5, %v10705_v56, -inf }
 0xa34   :  { %v11179_v6 = vrot.slane %v11178_v60, 4  ;;  %v11186_v33 = vrot.slane %v11185_v11, 4  ;;  %v11192_v58 = vsel %vm5741_vm5, %v10721_v7, -inf  ;;  %v11199_v27 = vsel %vm5741_vm5, %v10720_v37, -inf }
 0xa35   :  { %v11159_v41 = vmax.f32 %v11157_v22, %v11158_v8  ;;  %v11166_v45 = vmax.f32 %v11164_v24, %v11165_v46  ;;  %v11173_v17 = vmax.f32 %v11171_v30, %v11172_v62  ;;  %v11193_v43 = vrot.slane %v11192_v58, 4 }
 0xa36   :  { %v20603_v42 = vmax.f32 %v11178_v60, %v11179_v6  ;;  %v11187_v40 = vmax.f32 %v11185_v11, %v11186_v33  ;;  %v11200_v44 = vrot.slane %v11199_v27, 4  ;;  %v11206_v52 = vsel %vm5741_vm5, %v10722_v15, -inf }
 0xa37   :  { %v11160_v39 = vrot.slane %v11159_v41, 2  ;;  %v11167_v31 = vrot.slane %v11166_v45, 2  ;;  %v11174_v28 = vrot.slane %v11173_v17, 2  ;;  %v11194_v56 = vmax.f32 %v11192_v58, %v11193_v43 }
 0xa38   :  { %v11188_v51 = vrot.slane %v11187_v40, 2  ;;  %v11201_v7 = vmax.f32 %v11199_v27, %v11200_v44  ;;  %v11207_v55 = vrot.slane %v11206_v52, 4  ;;  %v11213_v62 = vsel %vm5741_vm5, %v10730_v53, -inf }
 0xa39   :  { %v11161_v37 = vmax.f32 %v11159_v41, %v11160_v39  ;;  %v11175_v8 = vmax.f32 %v11173_v17, %v11174_v28  ;;  %v11220_v60 = vsel %vm5741_vm5, %v10738_v50, -inf  ;;  %v11214_v15 = vrot.slane %v11213_v62, 4 }
 0xa3a   :  { %v11189_v46 = vmax.f32 %v11187_v40, %v11188_v51  ;;  %v11202_v33 = vrot.slane %v11201_v7, 2  ;;  %v20609_v6 = vmax.f32 %v11206_v52, %v11207_v55  ;;  %v11221_v30 = vrot.slane %v11220_v60, 4 }
 0xa3b   :  { %v11162_v22 = vrot.slane %v11161_v37, 1  ;;  %v11176_v24 = vrot.slane %v11175_v8, 1  ;;  %v11227_v43 = vsel %vm5741_vm5, %v10737_v47, -inf  ;;  %v11215_v27 = vmax.f32 %v11213_v62, %v11214_v15 }
 0xa3c   :  { %v11190_v58 = vrot.slane %v11189_v46, 1  ;;  %v20612_v11 = vmax.f32 %v11201_v7, %v11202_v33  ;;  %v11228_v39 = vrot.slane %v11227_v43, 4  ;;  %v20619_v51 = vsel %vm5741_vm5, %v10739_v48, -inf }
 0xa3d   :  { %v20614_v28 = vmax.f32 %v11161_v37, %v11162_v22  ;;  %v20616_v44 = vmax.f32 %v11175_v8, %v11176_v24  ;;  %v11241_v55 = vsel %vm5741_vm5, %v20584_v13, -inf  ;;  %v11216_v50 = vrot.slane %v11215_v27, 2 }
 0xa3e   :  { %v20623_v53 = vmax.f32 %v11189_v46, %v11190_v58  ;;  %v20625_v41 = vmax.f32 %v11227_v43, %v11228_v39  ;;  %v11242_v17 = vrot.slane %v11241_v55, 4  ;;  %v11255_v40 = vsel %vm5741_vm5, %v20590_v10, -inf }
 0xa3f   :  { %v21864_v48 = vrot.slane %v20391_v1, 2  ;;  %v11217_v37 = vmax.f32 %v11215_v27, %v11216_v50  ;;  %v11256_v62 = vrot.slane %v11255_v40, 4  ;;  %v10999_v46 = vrot.slane %v20568_v23, 2 }
 0xa40   :  { %v11243_v33 = vmax.f32 %v11241_v55, %v11242_v17  ;;  %v11025_v22 = vrot.slane %v20574_v61, 4  ;;  %v21865_v24 = vrot.slane %v20507_v32, 1  ;;  %v11141_v27 = vrot.slane %v20530_v57, 1 }
 0xa41   :  { %v10972_v7 = vmax.f32 %v20391_v1, %v21864_v48  ;;  %v11218_v58 = vrot.slane %v11217_v37, 1  ;;  %v20643_v39 = vmax.f32 %v11255_v40, %v11256_v62  ;;  %v11000_v1 = vmax.f32 %v20568_v23, %v10999_v46 }
 0xa42   :  { %v20641_v43 = vmax.f32 %v20507_v32, %v21865_v24  ;;  %v11244_v50 = vrot.slane %v11243_v33, 2  ;;  %v11026_v55 = vmax.f32 %v20574_v61, %v11025_v22  ;;  %v11168_v17 = vmax.f32 %v11166_v45, %v11167_v31 }
 0xa43   :  { %v10973_v15 = vrot.slane %v10972_v7, 1  ;;  %v20650_v8 = vmax.f32 %v11217_v37, %v11218_v58  ;;  %v11001_v47 = vrot.slane %v11000_v1, 1  ;;  %v20653_v2 = vmax.f32 %v20530_v57, %v11141_v27 }
 0xa44   :  { %21866 = vst [vmem:[#allocation19_spill] sm:$0xff] %v20641_v43  ;;  %v11195_v32 = vrot.slane %v11194_v56, 2  ;;  %v20655_v24 = vmax.f32 %v11243_v33, %v11244_v50  ;;  %v11027_v40 = vrot.slane %v11026_v55, 2  ;;  %v11169_v62 = vrot.slane %v11168_v17, 1 }
 0xa45   :  { %v20647_v48 = vmax.f32 %v10972_v7, %v10973_v15  ;;  %21868 = vst [vmem:[#allocation15_spill] sm:$0xff] %v20653_v2  ;;  %v11222_v23 = vmax.f32 %v11220_v60, %v11221_v30  ;;  %v20657_v46 = vmax.f32 %v11000_v1, %v11001_v47  ;;  %v21870_v7 = vcombine.high %v20584_v13, %v20584_v13 }
 0xa46   :  { %v11196_v52 = vmax.f32 %v11194_v56, %v11195_v32  ;;  %v11550_v31 = vpack.c.bf16 %v20267_v18, %v20267_v18  ;;  %v11028_v61 = vmax.f32 %v11026_v55, %v11027_v40  ;;  %v20665_v57 = vmax.f32 %v11168_v17, %v11169_v62 }
 0xa47   :  { %21867 = vst [vmem:[#allocation25_spill] sm:$0xff] %v20647_v48  ;;  %21869 = vst [vmem:[#allocation71_spill] sm:$0xff] %v20657_v46  ;;  %v11248_v45 = vsel %vm5741_vm5, %v21870_v7, -inf  ;;  %v11223_v37 = vrot.slane %v11222_v23, 2  ;;  %v11554_v60 = vpack.c.bf16 %v20290_v21, %v20290_v21  ;;  %v11558_v56 = vpack.c.bf16 %v20364_v5, %v20364_v5 }
 0xa48   :  { %21871 = vst [vmem:[#allocation23_spill] sm:$0xff] %v20665_v57  ;;  %v11249_v33 = vrot.slane %v11248_v45, 4  ;;  %v11197_v15 = vrot.slane %v11196_v52, 1  ;;  %v11562_v13 = vpack.c.bf16 %v20451_v3, %v20451_v3  ;;  %v11029_v30 = vrot.slane %v11028_v61, 1 }
 0xa49   :  { %v11224_v47 = vmax.f32 %v11222_v23, %v11223_v37  ;;  %v11566_v58 = vpack.c.bf16 %v20562_v9, %v20562_v9  ;;  %v11570_v27 = vpack.c.bf16 %v20647_v48, %v20647_v48  ;;  %v11574_v50 = vpack.c.bf16 %v20657_v46, %v20657_v46 }
 0xa4a   :  { %v11250_v22 = vmax.f32 %v11248_v45, %v11249_v33  ;;  %v20675_v1 = vmax.f32 %v11196_v52, %v11197_v15  ;;  %v11582_v55 = vpack.c.bf16 %v20483_v12, %v20483_v12  ;;  %v20683_v17 = vmax.f32 %v11028_v61, %v11029_v30 }
 0xa4b   :  { %v11225_v32 = vrot.slane %v11224_v47, 1  ;;  %v11586_v62 = vpack.c.bf16 %v20503_v25, %v20503_v25  ;;  %v11590_v52 = vpack.c.bf16 %v20641_v43, %v20641_v43  ;;  %v11594_v23 = vpack.c.bf16 %v20653_v2, %v20653_v2 }
 0xa4c   :  { %21872 = vst [vmem:[#allocation72_spill] sm:$0xff] %v20675_v1  ;;  %21873 = vst [vmem:[#allocation21_spill] sm:$0xff] %v20683_v17  ;;  %v11251_v40 = vrot.slane %v11250_v22, 2  ;;  %v11598_v7 = vpack.c.bf16 %v20665_v57, %v20665_v57  ;;  %v11602_v45 = vpack.c.bf16 %v20675_v1, %v20675_v1  ;;  %v11578_v33 = vpack.c.bf16 %v20683_v17, %v20683_v17 }
 0xa4d   :  { %v20695_v37 = vmax.f32 %v11224_v47, %v11225_v32  ;;  %v11743_v15 = vunpack.c.l.b16 %v11550_v31  ;;  %v11747_v30 = vunpack.c.l.b16 %v11554_v60  ;;  %v11751_v46 = vunpack.c.l.b16 %v11558_v56 }
 0xa4e   :  { %v11252_v61 = vmax.f32 %v11250_v22, %v11251_v40  ;;  %v11755_v48 = vunpack.c.l.b16 %v11562_v13  ;;  %v11759_v43 = vunpack.c.l.b16 %v11566_v58  ;;  %v11763_v3 = vunpack.c.l.b16 %v11570_v27 }
 0xa4f   :  { %v11606_v2 = vpack.c.bf16 %v20695_v37, %v20695_v37  ;;  %v11767_v57 = vunpack.c.l.b16 %v11574_v50  ;;  %v11771_v25 = vunpack.c.l.b16 %v11578_v33  ;;  %v11775_v12 = vunpack.c.l.b16 %v11582_v55 }
 0xa50   :  { %v11253_v9 = vrot.slane %v11252_v61, 1  ;;  %v11779_v1 = vunpack.c.l.b16 %v11586_v62  ;;  %v11783_v47 = vunpack.c.l.b16 %v11590_v52  ;;  %v11787_v22 = vunpack.c.l.b16 %v11594_v23 }
 0xa51   :  { %v11791_v40 = vunpack.c.l.b16 %v11598_v7  ;;  %v11795_v17 = vunpack.c.l.b16 %v11602_v45  ;;  %v11799_v31 = vunpack.c.l.b16 %v11606_v2  ;;  %v11813_v60 = vsel %vm4042_vm11, %v11747_v30, %v11743_v15 }
 0xa52   :  { %v20701_v32 = vmax.f32 %v11252_v61, %v11253_v9  ;;  %v11841_v56 = vsel %vm4042_vm11, %v11779_v1, %v11775_v12  ;;  %v11022_v13 = vrot.slane %v20454_v26, 1  ;;  %v11814_v27 = vsel %vm4044_vm12, %v11751_v46, %v11813_v60 }
 0xa53   :  { %v11842_v50 = vsel %vm4044_vm12, %v11783_v47, %v11841_v56  ;;  %v11246_v9 = vrot.slane %v20655_v24, 1  ;;  %v11815_v55 = vsel %vm4046_vm13, %v11755_v48, %v11814_v27  ;;  %v11569_v12 = vpack.c.bf16 %v20414_v35, %v20414_v35 }
 0xa54   :  { %v11610_v58 = vpack.c.bf16 %v20701_v32, %v20701_v32  ;;  %v11843_v62 = vsel %vm4046_vm13, %v11787_v22, %v11842_v50  ;;  %v20714_v2 = vmax.f32 %v20454_v26, %v11022_v13  ;;  %v11816_v52 = vsel %vm4048_vm14, %v11759_v43, %v11815_v55 }
 0xa55   :  { %v11844_v23 = vsel %vm4048_vm14, %v11791_v40, %v11843_v62  ;;  %v20721_v46 = vmax.f32 %v20655_v24, %v11246_v9  ;;  %v11817_v7 = vsel %vm4050_vm15, %v11763_v3, %v11816_v52  ;;  %v11573_v45 = vpack.c.bf16 %v20437_v14, %v20437_v14 }
 0xa56   :  { %v11803_v1 = vunpack.c.l.b16 %v11610_v58  ;;  %v11845_v48 = vsel %vm4050_vm15, %v11795_v17, %v11844_v23  ;;  %v11577_v26 = vpack.c.bf16 %v20714_v2, %v20714_v2  ;;  %v11818_v61 = vsel %vm4052_vm0, %v11767_v57, %v11817_v7  ;;  %v21878_v23 = vld [vmem:[#allocation40_spill] sm:$0xff] }
 0xa57   :  { %v11846_v33 = vsel %vm4052_vm0, %v11799_v31, %v11845_v48  ;;  %v11601_v43 = vpack.c.bf16 %v20623_v53, %v20623_v53  ;;  %v11605_v24 = vpack.c.bf16 %v20650_v8, %v20650_v8  ;;  %v11819_v3 = vsel %vm4054_vm1, %v11771_v25, %v11818_v61 }
 0xa58   :  { %v11847_v17 = vsel %vm4054_vm1, %v11803_v1, %v11846_v33  ;;  %v11609_v15 = vpack.c.bf16 %v20721_v46, %v20721_v46  ;;  %v21874_v30 = vpack.c.bf16 %v20402_v20, %v20402_v20  ;;  %v11762_v22 = vunpack.c.l.b16 %v11569_v12 }
 0xa59   :  { %v11863_v57 = vpack.c.b16 %v11847_v17, %v11819_v3  ;;  %v11766_v40 = vunpack.c.l.b16 %v11573_v45  ;;  %v11770_v31 = vunpack.c.l.b16 %v11577_v26  ;;  %v21875_v60 = vpack.c.bf16 %v20614_v28, %v20614_v28 }
 0xa5a   :  { %v11758_v47 = vunpack.c.l.b16 %v21874_v30  ;;  %v11794_v13 = vunpack.c.l.b16 %v11601_v43  ;;  %v11798_v58 = vunpack.c.l.b16 %v11605_v24  ;;  %v11802_v25 = vunpack.c.l.b16 %v11609_v15  ;;  %v16035_v15 = vld [vmem:[#allocation7 + $0x300] ss:$8 sps:$4 sm:$0xff]  }
 0xa5b   :  { %v11790_v56 = vunpack.c.l.b16 %v21875_v60  ;;  %12222 = vmatprep.mubr.bf16.mxu0 %v11863_v57  ;;  %v11806_v27 = vsel %vm4042_vm11, %v20330_v63, %v20326_v59  ;;  %v11834_v50 = vsel %vm4042_vm11, %v20549_v19, %v20547_v54  ;;  %v21876_v9 = vrot.slane %v20292_v49, 1 }
 0xa5c   :  { %v10931_v62 = vrot.slane %v20317_v0, 1  ;;  %v11807_v12 = vsel %vm4044_vm12, %v20338_v29, %v11806_v27  ;;  %v11835_v1 = vsel %vm4044_vm12, %v20551_v16, %v11834_v50  ;;  %v21877_v52 = vrot.slane %v20385_v36, 2  ;;  %v16040_v50 = vld [vmem:[#allocation7 + $0x314] ss:$8 sps:$4 sm:$0xff]  }
 0xa5d   :  { %v20754_v55 = vmax.f32 %v20292_v49, %v21876_v9  ;;  %v10985_v63 = vrot.slane %v20397_v4, 2  ;;  %v11808_v54 = vsel %vm4046_vm13, %v20340_v34, %v11807_v12  ;;  %v11836_v49 = vsel %vm4046_vm13, %v20553_v38, %v11835_v1  ;;  %v21880_v38 = vld [vmem:[#allocation70_spill] sm:$0xff] }
 0xa5e   :  { %v10958_v59 = vmax.f32 %v20385_v36, %v21877_v52  ;;  %v20770_v19 = vmax.f32 %v20317_v0, %v10931_v62  ;;  %v21879_v29 = vrot.slane %v21878_v23, 4  ;;  %v11809_v16 = vsel %vm4048_vm14, %v11758_v47, %v11808_v54 }
 0xa5f   :  { %v11837_v48 = vsel %vm4048_vm14, %v11790_v56, %v11836_v49  ;;  %v10986_v45 = vmax.f32 %v20397_v4, %v10985_v63  ;;  %v11810_v26 = vsel %vm4050_vm15, %v11762_v22, %v11809_v16  ;;  %v21881_v0 = vcombine.high %v21880_v38, %v21880_v38  ;;  %v21882_v56 = vld [vmem:[#allocation29_spill] sm:$0xff] }
 0xa60   :  { %v11012_v7 = vmax.f32 %v21878_v23, %v21879_v29  ;;  %v10959_v36 = vrot.slane %v10958_v59, 1  ;;  %v11838_v34 = vsel %vm4050_vm15, %v11794_v13, %v11837_v48  ;;  %v11811_v43 = vsel %vm4052_vm0, %v11766_v40, %v11810_v26  ;;  %v21884_v40 = vld [vmem:[#allocation37_spill] sm:$0xff]  ;;  %v16038_v48 = vld [vmem:[#allocation7 + $0x310] ss:$8 sps:$4 sm:$0xff]  }
 0xa61   :  { %v11038_v33 = vsel %vm5741_vm5, %v21881_v0, -inf  ;;  %v11839_v24 = vsel %vm4052_vm0, %v11798_v58, %v11838_v34  ;;  %v10987_v17 = vrot.slane %v10986_v45, 1  ;;  %v11812_v4 = vsel %vm4054_vm1, %v11770_v31, %v11811_v43  ;;  %v21888_v49 = vld [vmem:[#allocation57_spill] sm:$0xff] }
 0xa62   :  { %v11013_v61 = vrot.slane %v11012_v7, 2  ;;  %v20786_v3 = vmax.f32 %v10958_v59, %v10959_v36  ;;  %v11840_v30 = vsel %vm4054_vm1, %v11802_v25, %v11839_v24  ;;  %v11039_v57 = vrot.slane %v11038_v33, 4  ;;  %v21889_v26 = vld [vmem:[#allocation65_spill] sm:$0xff] }
 0xa63   :  { %v11862_v22 = vpack.c.b16 %v11840_v30, %v11812_v4  ;;  %v20790_v60 = vmax.f32 %v10986_v45, %v10987_v17  ;;  %v21883_v13 = vrot.slane %v21882_v56, 1  ;;  %v11155_v58 = vrot.slane %v21884_v40, 1  ;;  %v16043_v34 = vld [vmem:[#allocation7 + $0x324] ss:$8 sps:$4 sm:$0xff]  }
 0xa64   :  { %v11014_v47 = vmax.f32 %v11012_v7, %v11013_v61  ;;  %v11040_v62 = vmax.f32 %v11038_v33, %v11039_v57  ;;  %v21885_v12 = vrot.slane %v20603_v42, 2  ;;  %v11209_v25 = vrot.slane %v20609_v6, 2 }
 0xa65   :  { %v20795_v27 = vmax.f32 %v21882_v56, %v21883_v13  ;;  %12223 = vmatmul.mubr.bf16.vlgmr.msra.gmra.mrb[64].mxu0 %v11862_v22  ;;  %v20803_v1 = vmax.f32 %v21884_v40, %v11155_v58  ;;  %v21886_v52 = vrot.slane %v20619_v51, 4  ;;  %v21887_v63 = vcombine.high %v20590_v10, %v20590_v10  ;;  %v16041_v22 = vld [vmem:[#allocation7 + $0x320] ss:$8 sps:$4 sm:$0xff]  }
 0xa66   :  { %v11015_v9 = vrot.slane %v11014_v47, 1  ;;  %v11182_v31 = vmax.f32 %v20603_v42, %v21885_v12  ;;  %v11552_v23 = vpack.c.bf16 %v21888_v49, %v21888_v49  ;;  %12234 = vmatpush1.bf16.msra.mxu0 %v16035_v15  ;;  %v11041_v29 = vrot.slane %v11040_v62, 2  ;;  %v21892_v40 = vld [vmem:[#allocation41_spill] sm:$0xff] }
 0xa67   :  { %v11236_v59 = vmax.f32 %v20619_v51, %v21886_v52  ;;  %v11262_v54 = vsel %vm5741_vm5, %v21887_v63, -inf  ;;  %v11210_v16 = vmax.f32 %v20609_v6, %v11209_v25  ;;  %v11556_v51 = vpack.c.bf16 %v21889_v26, %v21889_v26  ;;  %12235 = vmatprep.subr.bf16.mxu0 %v16040_v50 }
 0xa68   :  { %v20814_v42 = vmax.f32 %v11014_v47, %v11015_v9  ;;  %v11183_v7 = vrot.slane %v11182_v31, 1  ;;  %v11263_v45 = vrot.slane %v11262_v54, 4  ;;  %v11560_v10 = vpack.c.bf16 %v20754_v55, %v20754_v55  ;;  %v21891_v47 = vld [vmem:[#allocation47_spill] sm:$0xff] }
 0xa69   :  { %v11237_v36 = vrot.slane %v11236_v59, 2  ;;  %v11042_v61 = vmax.f32 %v11040_v62, %v11041_v29  ;;  %v11211_v0 = vrot.slane %v11210_v16, 1  ;;  %v11564_v33 = vpack.c.bf16 %v20770_v19, %v20770_v19  ;;  %v16046_v9 = vld [vmem:[#allocation7 + $0x334] ss:$8 sps:$4 sm:$0xff]  }
 0xa6a   :  { %v20821_v38 = vmax.f32 %v11182_v31, %v11183_v7  ;;  %v11264_v6 = vmax.f32 %v11262_v54, %v11263_v45  ;;  %v11568_v24 = vpack.c.bf16 %v20786_v3, %v20786_v3  ;;  %v11572_v17 = vpack.c.bf16 %v20790_v60, %v20790_v60  ;;  %12236 = vmatpush1.bf16.msra.mxu0 %v16038_v48 }
 0xa6b   :  { %v11238_v43 = vmax.f32 %v11236_v59, %v11237_v36  ;;  %v11043_v15 = vrot.slane %v11042_v61, 1  ;;  %v20829_v4 = vmax.f32 %v11210_v16, %v11211_v0  ;;  %v11576_v30 = vpack.c.bf16 %v20814_v42, %v20814_v42  ;;  %12237 = vmatprep.subr.bf16.mxu0 %v16043_v34  ;;  %v16044_v36 = vld [vmem:[#allocation7 + $0x330] ss:$8 sps:$4 sm:$0xff]  }
 0xa6c   :  { %v11584_v57 = vpack.c.bf16 %v21891_v47, %v21891_v47  ;;  %v11265_v13 = vrot.slane %v11264_v6, 2  ;;  %v11588_v58 = vpack.c.bf16 %v21892_v40, %v21892_v40  ;;  %v11592_v50 = vpack.c.bf16 %v20795_v27, %v20795_v27 }
 0xa6d   :  { %21890 = vst [vmem:[#allocation33_spill] sm:$0xff] %v20829_v4  ;;  %v11239_v56 = vrot.slane %v11238_v43, 1  ;;  %v20839_v62 = vmax.f32 %v11042_v61, %v11043_v15  ;;  %v11596_v12 = vpack.c.bf16 %v20803_v1, %v20803_v1  ;;  %v11600_v31 = vpack.c.bf16 %v20821_v38, %v20821_v38 }
 0xa6e   :  { %v11604_v25 = vpack.c.bf16 %v20829_v4, %v20829_v4  ;;  %v11266_v59 = vmax.f32 %v11264_v6, %v11265_v13  ;;  %v11745_v63 = vunpack.c.l.b16 %v11552_v23  ;;  %v11749_v54 = vunpack.c.l.b16 %v11556_v51  ;;  %12238 = vmatpush1.bf16.msra.mxu0 %v16041_v22 }
 0xa6f   :  { %v20847_v52 = vmax.f32 %v11238_v43, %v11239_v56  ;;  %v11580_v29 = vpack.c.bf16 %v20839_v62, %v20839_v62  ;;  %v11753_v7 = vunpack.c.l.b16 %v11560_v10  ;;  %v11757_v16 = vunpack.c.l.b16 %v11564_v33  ;;  %12239 = vmatprep.subr.bf16.mxu0 %v16046_v9  ;;  %v16049_v43 = vld [vmem:[#allocation7 + $0x344] ss:$8 sps:$4 sm:$0xff]  }
 0xa70   :  { %v11761_v48 = vunpack.c.l.b16 %v11568_v24  ;;  %v11267_v45 = vrot.slane %v11266_v59, 1  ;;  %v11765_v61 = vunpack.c.l.b16 %v11572_v17  ;;  %v11769_v0 = vunpack.c.l.b16 %v11576_v30  ;;  %v21895_v17 = vld [vmem:[#allocation69_spill] sm:$0xff] }
 0xa71   :  { %21893 = vst [vmem:[#allocation30_spill] sm:$0xff] %v20847_v52  ;;  %v11608_v34 = vpack.c.bf16 %v20847_v52, %v20847_v52  ;;  %v11773_v15 = vunpack.c.l.b16 %v11580_v29  ;;  %v11777_v6 = vunpack.c.l.b16 %v11584_v57  ;;  %v11781_v23 = vunpack.c.l.b16 %v11588_v58  ;;  %v16047_v52 = vld [vmem:[#allocation7 + $0x340] ss:$8 sps:$4 sm:$0xff]  }
 0xa72   :  { %v11785_v51 = vunpack.c.l.b16 %v11592_v50  ;;  %v20853_v56 = vmax.f32 %v11266_v59, %v11267_v45  ;;  %v11789_v13 = vunpack.c.l.b16 %v11596_v12  ;;  %v11793_v10 = vunpack.c.l.b16 %v11600_v31  ;;  %12240 = vmatpush1.bf16.msra.mxu0 %v16044_v36  ;;  %v16052_v50 = vld [vmem:[#allocation7 + $0x354] ss:$8 sps:$4 sm:$0xff]   ;;  %v21898_v29 = vld [vmem:[#allocation38_spill] sm:$0xff] }
 0xa73   :  { %v11797_v33 = vunpack.c.l.b16 %v11604_v25  ;;  %v11801_v24 = vunpack.c.l.b16 %v11608_v34  ;;  %v11827_v22 = vsel %vm4042_vm11, %v11749_v54, %v11745_v63  ;;  %v11855_v4 = vsel %vm4042_vm11, %v11781_v23, %v11777_v6  ;;  %12241 = vmatprep.subr.bf16.mxu0 %v16049_v43  ;;  %v21896_v12 = vld [vmem:[#allocation51_spill] sm:$0xff] }
 0xa74   :  { %21894 = vst [vmem:[#allocation27_spill] sm:$0xff] %v20853_v56  ;;  %v10980_v30 = vrot.slane %v21895_v17, 1  ;;  %v11612_v9 = vpack.c.bf16 %v20853_v56, %v20853_v56  ;;  %v11828_v57 = vsel %vm4044_vm12, %v11753_v7, %v11827_v22  ;;  %v11856_v58 = vsel %vm4044_vm12, %v11785_v51, %v11855_v4  ;;  %v16050_v23 = vld [vmem:[#allocation7 + $0x350] ss:$8 sps:$4 sm:$0xff]  }
 0xa75   :  { %v21897_v31 = vrot.slane %v21896_v12, 2  ;;  %v11829_v59 = vsel %vm4046_vm13, %v11757_v16, %v11828_v57  ;;  %v11857_v63 = vsel %vm4046_vm13, %v11789_v13, %v11856_v58  ;;  %v11034_v36 = vrot.slane %v21898_v29, 2  ;;  %v21901_v58 = vld [vmem:[#allocation68_spill] sm:$0xff] }
 0xa76   :  { %v20868_v54 = vmax.f32 %v21895_v17, %v10980_v30  ;;  %v11805_v45 = vunpack.c.l.b16 %v11612_v9  ;;  %v11830_v7 = vsel %vm4048_vm14, %v11761_v48, %v11829_v59  ;;  %v11858_v4 = vsel %vm4048_vm14, %v11793_v10, %v11857_v63  ;;  %12242 = vmatpush1.bf16.msra.mxu0 %v16047_v52  ;;  %v16055_v17 = vld [vmem:[#allocation7 + $0x364] ss:$8 sps:$4 sm:$0xff]   ;;  %v21904_v59 = vld [vmem:[#allocation52_spill] sm:$0xff] }
 0xa77   :  { %v11007_v25 = vmax.f32 %v21896_v12, %v21897_v31  ;;  %v11831_v43 = vsel %vm4050_vm15, %v11765_v61, %v11830_v7  ;;  %v11859_v6 = vsel %vm4050_vm15, %v11797_v33, %v11858_v4  ;;  %v11035_v16 = vmax.f32 %v21898_v29, %v11034_v36  ;;  %12243 = vmatprep.subr.bf16.mxu0 %v16052_v50  ;;  %v16053_v12 = vld [vmem:[#allocation7 + $0x360] ss:$8 sps:$4 sm:$0xff]   ;;  %v16058_v36 = vld [vmem:[#allocation7 + $0x374] ss:$8 sps:$4 sm:$0xff]  }
 0xa78   :  { %v11204_v51 = vrot.slane %v20612_v11, 1  ;;  %v11832_v13 = vsel %vm4052_vm0, %v11769_v0, %v11831_v43  ;;  %v11860_v22 = vsel %vm4052_vm0, %v11801_v24, %v11859_v6  ;;  %v21899_v10 = vrot.slane %v20625_v41, 2  ;;  %v21907_v4 = vld [vmem:[#allocation63_spill] sm:$0xff]  ;;  %v21908_v43 = vld [vmem:[#allocation28_spill] sm:$0xff] }
 0xa79   :  { %v11008_v34 = vrot.slane %v11007_v25, 1  ;;  %v11833_v33 = vsel %vm4054_vm1, %v11773_v15, %v11832_v13  ;;  %v11861_v52 = vsel %vm4054_vm1, %v11805_v45, %v11860_v22  ;;  %v11036_v30 = vrot.slane %v11035_v16, 1 }
 0xa7a   :  { %v11231_v61 = vmax.f32 %v20625_v41, %v21899_v10  ;;  %v20887_v9 = vmax.f32 %v20612_v11, %v11204_v51  ;;  %v11865_v57 = vpack.c.b16 %v11861_v52, %v11833_v33  ;;  %v11258_v24 = vrot.slane %v20643_v39, 2  ;;  %12244 = vmatpush1.bf16.msra.mxu0 %v16050_v23  ;;  %v21903_v41 = vld [vmem:[#allocation14_spill] sm:$0xff]  ;;  %v16056_v52 = vld [vmem:[#allocation7 + $0x370] ss:$8 sps:$4 sm:$0xff]  }
 0xa7b   :  { %v20879_v48 = vmax.f32 %v11007_v25, %v11008_v34  ;;  %v11563_v50 = vpack.c.bf16 %v21901_v58, %v21901_v58  ;;  %v20892_v31 = vmax.f32 %v11035_v16, %v11036_v30  ;;  %v11567_v15 = vpack.c.bf16 %v21903_v41, %v21903_v41  ;;  %12245 = vmatprep.subr.bf16.mxu0 %v16055_v17  ;;  %v21910_v17 = vld [vmem:[#allocation66_spill] sm:$0xff] }
 0xa7c   :  { %21900 = vst [vmem:[#allocation48_spill] sm:$0xff] %v20887_v9  ;;  %v11232_v0 = vrot.slane %v11231_v61, 1  ;;  %v11571_v25 = vpack.c.bf16 %v20868_v54, %v20868_v54  ;;  %v21905_v63 = vpack.c.bf16 %v21904_v59, %v21904_v59  ;;  %12265 = vmatprep.mubr.bf16.mxu0 %v11865_v57  ;;  %v11259_v7 = vmax.f32 %v20643_v39, %v11258_v24  ;;  %v21912_v24 = vld [vmem:[#allocation31_spill] sm:$0xff] }
 0xa7d   :  { %21902 = vst [vmem:[#allocation53_spill] sm:$0xff] %v20892_v31  ;;  %v11575_v11 = vpack.c.bf16 %v20879_v48, %v20879_v48  ;;  %v11595_v34 = vpack.c.bf16 %v21907_v4, %v21907_v4  ;;  %v21909_v6 = vpack.c.bf16 %v21908_v43, %v21908_v43  ;;  %v11579_v16 = vpack.c.bf16 %v20892_v31, %v20892_v31  ;;  %v16061_v43 = vld [vmem:[#allocation7 + $0x384] ss:$8 sps:$4 sm:$0xff]  }
 0xa7e   :  { %v11776_v29 = vunpack.c.l.b16 %v21905_v63  ;;  %v20903_v45 = vmax.f32 %v11231_v61, %v11232_v0  ;;  %v11599_v51 = vpack.c.bf16 %v20616_v44, %v20616_v44  ;;  %v11603_v13 = vpack.c.bf16 %v20887_v9, %v20887_v9  ;;  %12246 = vmatpush1.bf16.msra.mxu0 %v16053_v12 }
 0xa7f   :  { %v11780_v23 = vunpack.c.l.b16 %v21909_v6  ;;  %v11260_v22 = vrot.slane %v11259_v7, 1  ;;  %v21911_v10 = vpack.c.bf16 %v21910_v17, %v21910_v17  ;;  %v11756_v33 = vunpack.c.l.b16 %v11563_v50  ;;  %12247 = vmatprep.subr.bf16.mxu0 %v16058_v36  ;;  %v21915_v50 = vld [vmem:[#allocation35_spill] sm:$0xff] }
 0xa80   :  { %21906 = vst [vmem:[#allocation22_spill] sm:$0xff] %v20903_v45  ;;  %v11607_v39 = vpack.c.bf16 %v20903_v45, %v20903_v45  ;;  %v11760_v30 = vunpack.c.l.b16 %v11567_v15  ;;  %v11764_v57 = vunpack.c.l.b16 %v11571_v25  ;;  %v11768_v0 = vunpack.c.l.b16 %v11575_v11 }
 0xa81   :  { %v11752_v61 = vunpack.c.l.b16 %v21911_v10  ;;  %v21913_v59 = vpack.c.bf16 %v21912_v24, %v21912_v24  ;;  %v20925_v6 = vmax.f32 %v11259_v7, %v11260_v22  ;;  %v11772_v31 = vunpack.c.l.b16 %v11579_v16  ;;  %v21914_v10 = vld [vmem:[#allocation36_spill] sm:$0xff] }
 0xa82   :  { %v11788_v45 = vunpack.c.l.b16 %v11595_v34  ;;  %v11792_v56 = vunpack.c.l.b16 %v11599_v51  ;;  %v11796_v9 = vunpack.c.l.b16 %v11603_v13  ;;  %v11800_v17 = vunpack.c.l.b16 %v11607_v39  ;;  %12248 = vmatpush1.bf16.msra.mxu0 %v16056_v52  ;;  %v16059_v34 = vld [vmem:[#allocation7 + $0x380] ss:$8 sps:$4 sm:$0xff]   ;;  %v21917_v13 = vld [vmem:[#allocation56_spill] sm:$0xff] }
 0xa83   :  { %v11784_v63 = vunpack.c.l.b16 %v21913_v59  ;;  %v11820_v12 = vsel %vm4042_vm11, %v21915_v50, %v21914_v10  ;;  %v11848_v15 = vsel %vm4042_vm11, %v11780_v23, %v11776_v29  ;;  %v11611_v25 = vpack.c.bf16 %v20925_v6, %v20925_v6  ;;  %v21916_v23 = vld [vmem:[#allocation46_spill] sm:$0xff]  ;;  %12249 = vmatprep.subr.bf16.mxu0 %v16061_v43  ;;  %v16064_v39 = vld [vmem:[#allocation7 + $0x394] ss:$8 sps:$4 sm:$0xff]  }
 0xa84   :  { %v11821_v11 = vsel %vm4044_vm12, %v11752_v61, %v11820_v12  ;;  %v11366_v7 = vsel %vm4042_vm11, %v20290_v21, %v20267_v18  ;;  %v11394_v22 = vsel %vm4042_vm11, %v21917_v13, %v21916_v23  ;;  %v21918_v21 = vld [vmem:[#allocation50_spill] sm:$0xff]  ;;  %v21919_v59 = vld [vmem:[#allocation20_spill] sm:$0xff]  ;;  %v21922_v12 = vld [vmem:[#allocation15_spill] sm:$0xff] }
 0xa85   :  { %v11849_v36 = vsel %vm4044_vm12, %v11784_v63, %v11848_v15  ;;  %v11822_v16 = vsel %vm4046_vm13, %v11756_v33, %v11821_v11  ;;  %v11367_v29 = vsel %vm4044_vm12, %v20364_v5, %v11366_v7  ;;  %v11804_v61 = vunpack.c.l.b16 %v11611_v25  ;;  %v21920_v63 = vld [vmem:[#allocation19_spill] sm:$0xff]  ;;  %v21925_v7 = vld [vmem:[#allocation62_spill] sm:$0xff]  ;;  %v21927_v23 = vld [vmem:[#allocation72_spill] sm:$0xff] }
 0xa86   :  { %v11850_v51 = vsel %vm4046_vm13, %v11788_v45, %v11849_v36  ;;  %v11823_v24 = vsel %vm4048_vm14, %v11760_v30, %v11822_v16  ;;  %v11368_v52 = vsel %vm4046_vm13, %v21918_v21, %v11367_v29  ;;  %v11395_v10 = vsel %vm4044_vm12, %v21920_v63, %v11394_v22  ;;  %v21921_v30 = vld [vmem:[#allocation25_spill] sm:$0xff]  ;;  %12250 = vmatpush1.bf16.msra.mxu0 %v16059_v34  ;;  %v21923_v11 = vld [vmem:[#allocation71_spill] sm:$0xff] }
 0xa87   :  { %v11851_v18 = vsel %vm4048_vm14, %v11792_v56, %v11850_v51  ;;  %v11824_v33 = vsel %vm4050_vm15, %v11764_v57, %v11823_v24  ;;  %v11369_v5 = vsel %vm4048_vm14, %v21919_v59, %v11368_v52  ;;  %v11396_v15 = vsel %vm4046_vm13, %v21922_v12, %v11395_v10  ;;  %v16062_v57 = vld [vmem:[#allocation7 + $0x390] ss:$8 sps:$4 sm:$0xff]   ;;  %12251 = vmatprep.subr.bf16.mxu0 %v16064_v39  ;;  %v16067_v51 = vld [vmem:[#allocation7 + $0x3a4] ss:$8 sps:$4 sm:$0xff]  }
 0xa88   :  { %v11852_v45 = vsel %vm4050_vm15, %v11796_v9, %v11851_v18  ;;  %v11825_v43 = vsel %vm4052_vm0, %v11768_v0, %v11824_v33  ;;  %v11370_v56 = vsel %vm4050_vm15, %v21921_v30, %v11369_v5  ;;  %v21924_v0 = vld [vmem:[#allocation23_spill] sm:$0xff]  ;;  %v11375_v16 = vsel %vm4046_vm13, %v21901_v58, %v21925_v7  ;;  %v21929_v39 = vld [vmem:[#allocation61_spill] sm:$0xff] }
 0xa89   :  { %v11853_v50 = vsel %vm4052_vm0, %v11800_v17, %v11852_v45  ;;  %v20962_v9 = vsel %vm4054_vm1, %v11772_v31, %v11825_v43  ;;  %v11371_v36 = vsel %vm4052_vm0, %v21923_v11, %v11370_v56  ;;  %v11397_v17 = vsel %vm4048_vm14, %v21924_v0, %v11396_v15  ;;  %v21926_v31 = vld [vmem:[#allocation21_spill] sm:$0xff]  ;;  %v21928_v22 = vld [vmem:[#allocation43_spill] sm:$0xff] }
 0xa8a   :  { %v20965_v25 = vsel %vm4054_vm1, %v11804_v61, %v11853_v50  ;;  %v20978_v29 = vsel %vm4054_vm1, %v21926_v31, %v11371_v36  ;;  %v11398_v13 = vsel %vm4050_vm15, %v21927_v23, %v11397_v17  ;;  %v11403_v61 = vsel %vm4046_vm13, %v21907_v4, %v21928_v22  ;;  %v21930_v33 = vld [vmem:[#allocation39_spill] sm:$0xff]  ;;  %12252 = vmatpush1.bf16.msra.mxu0 %v16062_v57  ;;  %v16065_v45 = vld [vmem:[#allocation7 + $0x3a0] ss:$8 sps:$4 sm:$0xff]   ;;  %v16073_v12 = vld [vmem:[#allocation7 + $0x3c4] ss:$8 sps:$4 sm:$0xff]  }
 0xa8b   :  { %v11864_v34 = vpack.c.b16 %v20965_v25, %v20962_v9  ;;  %v11399_v24 = vsel %vm4052_vm0, %v20695_v37, %v11398_v13  ;;  %v11424_v58 = vrot.slane %v20978_v29, 7  ;;  %v11362_v18 = vsel %vm4048_vm14, %v20402_v20, %v21929_v39  ;;  %12253 = vmatprep.subr.bf16.mxu0 %v16067_v51  ;;  %v16070_v5 = vld [vmem:[#allocation7 + $0x3b4] ss:$8 sps:$4 sm:$0xff]   ;;  %v16068_v43 = vld [vmem:[#allocation7 + $0x3b0] ss:$8 sps:$4 sm:$0xff]   ;;  %v21932_v15 = vld [vmem:[#allocation33_spill] sm:$0xff] }
 0xa8c   :  { %v20993_v21 = vsel %vm4054_vm1, %v20701_v32, %v11399_v24  ;;  %v11363_v52 = vsel %vm4050_vm15, %v20414_v35, %v11362_v18  ;;  %v11390_v4 = vsel %vm4048_vm14, %v20614_v28, %v21930_v33  ;;  %v11380_v37 = vsel %vm4042_vm11, %v21889_v26, %v21888_v49  ;;  %v21933_v36 = vld [vmem:[#allocation30_spill] sm:$0xff]  ;;  %v21935_v51 = vld [vmem:[#allocation27_spill] sm:$0xff]  ;;  %v21936_v31 = vld [vmem:[#allocation53_spill] sm:$0xff] }
 0xa8d   :  { %v11428_v59 = vrot.slane %v20993_v21, 7  ;;  %v11364_v20 = vsel %vm4052_vm0, %v20437_v14, %v11363_v52  ;;  %v11391_v32 = vsel %vm4050_vm15, %v20623_v53, %v11390_v4  ;;  %v11381_v35 = vsel %vm4044_vm12, %v20754_v55, %v11380_v37  ;;  %v21931_v53 = vld [vmem:[#allocation13_spill] sm:$0xff]  ;;  %v21937_v13 = vld [vmem:[#allocation22_spill] sm:$0xff]  ;;  %v16094_v9 = vld [vmem:[#allocation7 + $0x34] ss:$8 sps:$4 sm:$0xff]  }
 0xa8e   :  { %v21012_v28 = vsel %vm4054_vm1, %v20714_v2, %v11364_v20  ;;  %v11392_v49 = vsel %vm4052_vm0, %v20650_v8, %v11391_v32  ;;  %v11382_v26 = vsel %vm4046_vm13, %v20770_v19, %v11381_v35  ;;  %v11408_v14 = vsel %vm4042_vm11, %v21892_v40, %v21891_v47  ;;  %12254 = vmatpush1.bf16.msra.mxu0 %v16065_v45  ;;  %v16092_v25 = vld [vmem:[#allocation7 + $0x30] ss:$8 sps:$4 sm:$0xff]  }
 0xa8f   :  { %v21023_v63 = vsel %vm906_vm3, %v11424_v58, %v11428_v59  ;;  %v21027_v55 = vsel %vm906_vm3, %v11428_v59, %v11424_v58  ;;  %v11393_v2 = vsel %vm4054_vm1, %v20721_v46, %v11392_v49  ;;  %v11423_v8 = vrot.slane %v21012_v28, 7  ;;  %12255 = vmatprep.subr.bf16.mxu0 %v16070_v5  ;;  %v16079_v5 = vld [vmem:[#allocation7 + $0x3e4] ss:$8 sps:$4 sm:$0xff]  }
 0xa90   :  { %v14606_v19 = vpack.c.bf16 %v21023_v63, %v21027_v55  ;;  %v11427_v10 = vrot.slane %v11393_v2, 7  ;;  %v11383_v47 = vsel %vm4048_vm14, %v20786_v3, %v11382_v26  ;;  %v11409_v40 = vsel %vm4044_vm12, %v20795_v27, %v11408_v14  ;;  %v16095_v63 = vld [vmem:[#allocation7 + $0x40] ss:$8 sps:$4 sm:$0xff]   ;;  %v16100_v55 = vld [vmem:[#allocation7 + $0x54] ss:$8 sps:$4 sm:$0xff]  }
 0xa91   :  { %v11384_v50 = vsel %vm4050_vm15, %v20790_v60, %v11383_v47  ;;  %v11410_v46 = vsel %vm4046_vm13, %v20803_v1, %v11409_v40  ;;  %v11376_v30 = vsel %vm4048_vm14, %v21903_v41, %v11375_v16  ;;  %v11404_v56 = vsel %vm4048_vm14, %v20616_v44, %v11403_v61  ;;  %v16071_v16 = vld [vmem:[#allocation7 + $0x3c0] ss:$8 sps:$4 sm:$0xff]   ;;  %v16076_v61 = vld [vmem:[#allocation7 + $0x3d4] ss:$8 sps:$4 sm:$0xff]  }
 0xa92   :  { %v21048_v3 = vsel %vm906_vm3, %v11423_v8, %v11427_v10  ;;  %v21052_v27 = vsel %vm906_vm3, %v11427_v10, %v11423_v8  ;;  %v11385_v60 = vsel %vm4052_vm0, %v20814_v42, %v11384_v50  ;;  %v11411_v1 = vsel %vm4048_vm14, %v20821_v38, %v11410_v46  ;;  %v21934_v38 = vld [vmem:[#allocation48_spill] sm:$0xff]  ;;  %12256 = vmatpush1.bf16.msra.mxu0 %v16068_v43  ;;  %v16077_v43 = vld [vmem:[#allocation7 + $0x3e0] ss:$8 sps:$4 sm:$0xff]  }
 0xa93   :  { %v14611_v41 = vpack.c.bf16 %v21048_v3, %v21052_v27  ;;  %v11386_v44 = vsel %vm4054_vm1, %v20839_v62, %v11385_v60  ;;  %v11412_v57 = vsel %vm4050_vm15, %v21932_v15, %v11411_v1  ;;  %v11377_v11 = vsel %vm4050_vm15, %v20868_v54, %v11376_v30  ;;  %12257 = vmatprep.subr.bf16.mxu0 %v16073_v12  ;;  %v21938_v1 = vld [vmem:[#allocation58_spill] sm:$0xff]  ;;  %v16080_v15 = vld [vmem:[#allocation7 + $0x3f0] ss:$8 sps:$4 sm:$0xff]  }
 0xa94   :  { %v11413_v0 = vsel %vm4052_vm0, %v21933_v36, %v11412_v57  ;;  %v11426_v17 = vrot.slane %v11386_v44, 7  ;;  %v11378_v42 = vsel %vm4052_vm0, %v20879_v48, %v11377_v11  ;;  %v11405_v7 = vsel %vm4050_vm15, %v21934_v38, %v11404_v56  ;;  %v16082_v56 = vld [vmem:[#allocation7 + $0x3f4] ss:$8 sps:$4 sm:$0xff]   ;;  %v16085_v57 = vld [vmem:[#allocation7 + $0x4] ss:$8 sps:$4 sm:$0xff]  }
 0xa95   :  { %v11414_v62 = vsel %vm4054_vm1, %v21935_v51, %v11413_v0  ;;  %v11379_v23 = vsel %vm4054_vm1, %v21936_v31, %v11378_v42  ;;  %v11406_v54 = vsel %vm4052_vm0, %v21937_v13, %v11405_v7  ;;  %v11454_v22 = vrot.slane %v20978_v29, 1  ;;  %v16083_v11 = vld [vmem:[#allocation7] ss:$8 sps:$4 sm:$0xff]   ;;  %v16088_v0 = vld [vmem:[#allocation7 + $0x14] ss:$8 sps:$4 sm:$0xff]  }
 0xa96   :  { %v11430_v24 = vrot.slane %v11414_v62, 7  ;;  %v11407_v48 = vsel %vm4054_vm1, %v20925_v6, %v11406_v54  ;;  %v11425_v58 = vrot.slane %v11379_v23, 7  ;;  %v11458_v39 = vrot.slane %v20993_v21, 1  ;;  %12258 = vmatpush1.bf16.msra.mxu0 %v16071_v16  ;;  %v16074_v21 = vld [vmem:[#allocation7 + $0x3d0] ss:$8 sps:$4 sm:$0xff]  }
 0xa97   :  { %v11429_v18 = vrot.slane %v11407_v48, 7  ;;  %v11453_v52 = vrot.slane %v21012_v28, 1  ;;  %v11457_v33 = vrot.slane %v11393_v2, 1  ;;  %v11456_v4 = vrot.slane %v11386_v44, 1  ;;  %12259 = vmatprep.subr.bf16.mxu0 %v16076_v61  ;;  %v16089_v38 = vld [vmem:[#allocation7 + $0x20] ss:$8 sps:$4 sm:$0xff]  }
 0xa98   :  { %v21085_v37 = vsel %vm906_vm3, %v11426_v17, %v11430_v24  ;;  %v21089_v29 = vsel %vm906_vm3, %v11430_v24, %v11426_v17  ;;  %v21093_v45 = vsel %vm1099_vm4, %v11454_v22, %v11458_v39  ;;  %v21097_v6 = vsel %vm1099_vm4, %v11458_v39, %v11454_v22  ;;  %v16091_v17 = vld [vmem:[#allocation7 + $0x24] ss:$8 sps:$4 sm:$0xff]   ;;  %v16101_v16 = vld [vmem:[#allocation7 + $0x60] ss:$8 sps:$4 sm:$0xff]   ;;  %v16106_v51 = vld [vmem:[#allocation7 + $0x74] ss:$8 sps:$4 sm:$0xff]  }
 0xa99   :  { %v14616_v59 = vpack.c.bf16 %v21085_v37, %v21089_v29  ;;  %v21103_v20 = vsel %vm906_vm3, %v11425_v58, %v11429_v18  ;;  %v21107_v32 = vsel %vm906_vm3, %v11429_v18, %v11425_v58  ;;  %v14690_v35 = vpack.c.bf16 %v21097_v6, %v21093_v45  ;;  %v16103_v7 = vld [vmem:[#allocation7 + $0x64] ss:$8 sps:$4 sm:$0xff]   ;;  %v16112_v13 = vld [vmem:[#allocation7 + $0x94] ss:$8 sps:$4 sm:$0xff]   ;;  %v16110_v54 = vld [vmem:[#allocation7 + $0x90] ss:$8 sps:$4 sm:$0xff]  }
 0xa9a   :  { %v14621_v28 = vpack.c.bf16 %v21103_v20, %v21107_v32  ;;  %v21115_v49 = vsel %vm1099_vm4, %v11453_v52, %v11457_v33  ;;  %v21119_v26 = vsel %vm1099_vm4, %v11457_v33, %v11453_v52  ;;  %v11460_v14 = vrot.slane %v11414_v62, 1  ;;  %12260 = vmatpush1.bf16.msra.mxu0 %v16074_v21  ;;  %v16104_v62 = vld [vmem:[#allocation7 + $0x70] ss:$8 sps:$4 sm:$0xff]   ;;  %v16109_v31 = vld [vmem:[#allocation7 + $0x84] ss:$8 sps:$4 sm:$0xff]  }
 0xa9b   :  { %v14695_v2 = vpack.c.bf16 %v21119_v26, %v21115_v49  ;;  %v11455_v8 = vrot.slane %v11379_v23, 1  ;;  %v11459_v10 = vrot.slane %v11407_v48, 1  ;;  %12261 = vmatprep.subr.bf16.mxu0 %v16079_v5  ;;  %v11273_v60 = vand.u32 7, %v21931_v53  ;;  %v16086_v53 = vld [vmem:[#allocation7 + $0x10] ss:$8 sps:$4 sm:$0xff]  }
 0xa9c   :  { %v21125_v47 = vsel %vm1099_vm4, %v11456_v4, %v11460_v14  ;;  %v21129_v40 = vsel %vm1099_vm4, %v11460_v14, %v11456_v4  ;;  %v11280_v44 = vand.u32 7, %v21938_v1  ;;  %v16107_v23 = vld [vmem:[#allocation7 + $0x80] ss:$8 sps:$4 sm:$0xff]   ;;  %v16115_v22 = vld [vmem:[#allocation7 + $0xa4] ss:$8 sps:$4 sm:$0xff]   ;;  %v13416_v42 = vld [vmem:[#allocation8 + $0x18] sm:$0xff] }
 0xa9d   :  { %v14700_v50 = vpack.c.bf16 %v21129_v40, %v21125_v47  ;;  %v21135_v46 = vsel %vm1099_vm4, %v11455_v8, %v11459_v10  ;;  %v21139_v30 = vsel %vm1099_vm4, %v11459_v10, %v11455_v8  ;;  %vm14719_vm12 = vcmp.ne.s32.totalorder %v11273_v60, 0  ;;  %v16113_v61 = vld [vmem:[#allocation7 + $0xa0] ss:$8 sps:$4 sm:$0xff]   ;;  %v16118_v24 = vld [vmem:[#allocation7 + $0xb4] ss:$8 sps:$4 sm:$0xff]  }
 0xa9e   :  { %v14705_v12 = vpack.c.bf16 %v21139_v30, %v21135_v46  ;;  %12262 = vmatpush1.bf16.msra.mxu0 %v16077_v43  ;;  %vm14718_vm3 = vcmp.ne.s32.totalorder %v11280_v44, 0  ;;  %vm14720_vm13 = vcmp.ne.s32.totalorder %v11280_v44, 7  ;;  %vm14721_vm14 = vcmp.ne.s32.totalorder %v11273_v60, 7  ;;  %v16116_v48 = vld [vmem:[#allocation7 + $0xb0] ss:$8 sps:$4 sm:$0xff]  }
 0xa9f   :  { %12263 = vmatprep.subr.bf16.mxu0 %v16082_v56  ;;  %vm21145_vm4 = vmpackc.low %vm14718_vm3, %vm14719_vm12  ;;  %v16121_v58 = vld [vmem:[#allocation7 + $0xc4] ss:$8 sps:$4 sm:$0xff]   ;;  %v16119_v39 = vld [vmem:[#allocation7 + $0xc0] ss:$8 sps:$4 sm:$0xff]   ;;  %vm13966_vm0 = vcmask 1024  }
 0xaa0   :  { %vm21157_vm15 = vmpackc.low %vm14720_vm13, %vm14721_vm14  ;;  %v16124_v18 = vld [vmem:[#allocation7 + $0xd4] ss:$8 sps:$4 sm:$0xff]   ;;  %v16122_v52 = vld [vmem:[#allocation7 + $0xd0] ss:$8 sps:$4 sm:$0xff]  }
 0xaa1   :  { %v16127_v33 = vld [vmem:[#allocation7 + $0xe4] ss:$8 sps:$4 sm:$0xff]   ;;  %v16125_v4 = vld [vmem:[#allocation7 + $0xe0] ss:$8 sps:$4 sm:$0xff]   ;;  %v16130_v21 = vld [vmem:[#allocation7 + $0xf4] ss:$8 sps:$4 sm:$0xff]  }
 0xaa2   :  { %12264 = vmatpush1.bf16.msra.mxu0 %v16080_v15  ;;  %v16128_v5 = vld [vmem:[#allocation7 + $0xf0] ss:$8 sps:$4 sm:$0xff]   ;;  %v16133_v14 = vld [vmem:[#allocation7 + $0x104] ss:$8 sps:$4 sm:$0xff]   ;;  %v16131_v8 = vld [vmem:[#allocation7 + $0x100] ss:$8 sps:$4 sm:$0xff]  }
 0xaa3   :  { %12596 = vmatprep.subr.bf16.mxu0 %v16085_v57  ;;  %v16136_v10 = vld [vmem:[#allocation7 + $0x114] ss:$8 sps:$4 sm:$0xff]   ;;  %v16134_v43 = vld [vmem:[#allocation7 + $0x110] ss:$8 sps:$4 sm:$0xff]   ;;  %v16139_v56 = vld [vmem:[#allocation7 + $0x124] ss:$8 sps:$4 sm:$0xff]  }
 0xaa4   :  { %v16137_v60 = vld [vmem:[#allocation7 + $0x120] ss:$8 sps:$4 sm:$0xff]   ;;  %v16142_v1 = vld [vmem:[#allocation7 + $0x134] ss:$8 sps:$4 sm:$0xff]   ;;  %v16140_v44 = vld [vmem:[#allocation7 + $0x130] ss:$8 sps:$4 sm:$0xff]  }
 0xaa5   :  { %12266 = vmatmul.mubr.bf16.vlgmr.msra.gmra.mrb[64].mxu0 %v11864_v34  ;;  %v16097_v34 = vld [vmem:[#allocation7 + $0x44] ss:$8 sps:$4 sm:$0xff]   ;;  %v16143_v27 = vld [vmem:[#allocation7 + $0x140] ss:$8 sps:$4 sm:$0xff]   ;;  %v16146_v37 = vld [vmem:[#allocation7 + $0x150] ss:$8 sps:$4 sm:$0xff]  }
 0xaa6   :  { %12597 = vmatpush1.bf16.msra.mxu0 %v16083_v11  ;;  %14607 = vmatprep.mubr.msk.bf16.mxu0 %vm21145_vm4, %v14606_v19  ;;  %v16098_v19 = vld [vmem:[#allocation7 + $0x50] ss:$8 sps:$4 sm:$0xff]   ;;  %v16145_v3 = vld [vmem:[#allocation7 + $0x144] ss:$8 sps:$4 sm:$0xff]   ;;  %v16154_v15 = vld [vmem:[#allocation7 + $0x174] ss:$8 sps:$4 sm:$0xff]  }
 0xaa7   :  { %12598 = vmatprep.subr.bf16.mxu0 %v16088_v0  ;;  %v16151_v29 = vld [vmem:[#allocation7 + $0x164] ss:$8 sps:$4 sm:$0xff]   ;;  %v16152_v57 = vld [vmem:[#allocation7 + $0x170] ss:$8 sps:$4 sm:$0xff]   ;;  %v16155_v0 = vld [vmem:[#allocation7 + $0x180] ss:$8 sps:$4 sm:$0xff]  }
 0xaa8   :  { %v16157_v11 = vld [vmem:[#allocation7 + $0x184] ss:$8 sps:$4 sm:$0xff]   ;;  %v16191_v32 = vld [vmem:[#allocation7 + $0x440] ss:$8 sps:$4 sm:$0xff]   ;;  %v16194_v45 = vld [vmem:[#allocation7 + $0x450] ss:$8 sps:$4 sm:$0xff]  }
 0xaa9   :  { %v16193_v20 = vld [vmem:[#allocation7 + $0x444] ss:$8 sps:$4 sm:$0xff]   ;;  %v16202_v36 = vld [vmem:[#allocation7 + $0x474] ss:$8 sps:$4 sm:$0xff]   ;;  %v16239_v26 = vld [vmem:[#allocation7 + $0x540] ss:$8 sps:$4 sm:$0xff]  }
 0xaaa   :  { %12599 = vmatpush1.bf16.msra.mxu0 %v16086_v53  ;;  %v16160_v53 = vld [vmem:[#allocation7 + $0x194] ss:$8 sps:$4 sm:$0xff]   ;;  %v16199_v6 = vld [vmem:[#allocation7 + $0x464] ss:$8 sps:$4 sm:$0xff]   ;;  %v16242_v47 = vld [vmem:[#allocation7 + $0x550] ss:$8 sps:$4 sm:$0xff]  }
 0xaab   :  { %12600 = vmatprep.subr.bf16.mxu0 %v16091_v17  ;;  %v16158_v17 = vld [vmem:[#allocation7 + $0x190] ss:$8 sps:$4 sm:$0xff]   ;;  %v16241_v49 = vld [vmem:[#allocation7 + $0x544] ss:$8 sps:$4 sm:$0xff]  }
 0xaac   :  { %v16247_v40 = vld [vmem:[#allocation7 + $0x564] ss:$8 sps:$4 sm:$0xff]   ;;  %v13465_v46 = vld [vmem:[#allocation8 + $0x198] sm:$0xff]  ;;  %v13415_v30 = vld [vmem:[#allocation8 + $0x10] sm:$0xff] }
 0xaae   :  { %12601 = vmatpush1.bf16.msra.mxu0 %v16089_v38  ;;  %v16163_v38 = vld [vmem:[#allocation7 + $0x1a4] ss:$8 sps:$4 sm:$0xff]  }
 0xaaf   :  { %12602 = vmatprep.subr.bf16.mxu0 %v16094_v9  ;;  %v16161_v9 = vld [vmem:[#allocation7 + $0x1a0] ss:$8 sps:$4 sm:$0xff]  }
 0xab2   :  { %12603 = vmatpush1.bf16.msra.mxu0 %v16092_v25  ;;  %v16166_v25 = vld [vmem:[#allocation7 + $0x1b4] ss:$8 sps:$4 sm:$0xff]  }
 0xab3   :  { %12604 = vmatprep.subr.bf16.mxu0 %v16097_v34  ;;  %v16164_v34 = vld [vmem:[#allocation7 + $0x1b0] ss:$8 sps:$4 sm:$0xff]  }
 0xab6   :  { %12605 = vmatpush1.bf16.msra.mxu0 %v16095_v63  ;;  %v16169_v63 = vld [vmem:[#allocation7 + $0x1c4] ss:$8 sps:$4 sm:$0xff]  }
 0xab7   :  { %12606 = vmatprep.subr.bf16.mxu0 %v16100_v55  ;;  %v16167_v55 = vld [vmem:[#allocation7 + $0x1c0] ss:$8 sps:$4 sm:$0xff]  }
 0xaba   :  { %12607 = vmatpush1.bf16.msra.mxu0 %v16098_v19  ;;  %v16172_v19 = vld [vmem:[#allocation7 + $0x1d4] ss:$8 sps:$4 sm:$0xff]  }
 0xabb   :  { %12608 = vmatprep.subr.bf16.mxu0 %v16103_v7  ;;  %v16170_v7 = vld [vmem:[#allocation7 + $0x1d0] ss:$8 sps:$4 sm:$0xff]  }
 0xabe   :  { %12609 = vmatpush1.bf16.msra.mxu0 %v16101_v16  ;;  %v16175_v16 = vld [vmem:[#allocation7 + $0x1e4] ss:$8 sps:$4 sm:$0xff]  }
 0xabf   :  { %12610 = vmatprep.subr.bf16.mxu0 %v16106_v51  ;;  %v16173_v51 = vld [vmem:[#allocation7 + $0x1e0] ss:$8 sps:$4 sm:$0xff]  }
 0xac2   :  { %12611 = vmatpush1.bf16.msra.mxu0 %v16104_v62  ;;  %v16178_v62 = vld [vmem:[#allocation7 + $0x1f4] ss:$8 sps:$4 sm:$0xff]  }
 0xac3   :  { %12612 = vmatprep.subr.bf16.mxu0 %v16109_v31  ;;  %v16176_v31 = vld [vmem:[#allocation7 + $0x1f0] ss:$8 sps:$4 sm:$0xff]  }
 0xac6   :  { %12613 = vmatpush1.bf16.msra.mxu0 %v16107_v23  ;;  %v16181_v23 = vld [vmem:[#allocation7 + $0x404] ss:$8 sps:$4 sm:$0xff]  }
 0xac7   :  { %12614 = vmatprep.subr.bf16.mxu0 %v16112_v13  ;;  %v16179_v13 = vld [vmem:[#allocation7 + $0x400] ss:$8 sps:$4 sm:$0xff]  }
 0xaca   :  { %12615 = vmatpush1.bf16.msra.mxu0 %v16110_v54  ;;  %v16184_v54 = vld [vmem:[#allocation7 + $0x414] ss:$8 sps:$4 sm:$0xff]  }
 0xacb   :  { %12616 = vmatprep.subr.bf16.mxu0 %v16115_v22  ;;  %v16182_v22 = vld [vmem:[#allocation7 + $0x410] ss:$8 sps:$4 sm:$0xff]  }
 0xace   :  { %12617 = vmatpush1.bf16.msra.mxu0 %v16113_v61  ;;  %v16187_v61 = vld [vmem:[#allocation7 + $0x424] ss:$8 sps:$4 sm:$0xff]  }
 0xacf   :  { %12618 = vmatprep.subr.bf16.mxu0 %v16118_v24  ;;  %v16185_v24 = vld [vmem:[#allocation7 + $0x420] ss:$8 sps:$4 sm:$0xff]  }
 0xad2   :  { %12619 = vmatpush1.bf16.msra.mxu0 %v16116_v48  ;;  %v16190_v48 = vld [vmem:[#allocation7 + $0x434] ss:$8 sps:$4 sm:$0xff]  }
 0xad3   :  { %12620 = vmatprep.subr.bf16.mxu0 %v16121_v58  ;;  %v16188_v58 = vld [vmem:[#allocation7 + $0x430] ss:$8 sps:$4 sm:$0xff]  }
 0xad6   :  { %12621 = vmatpush1.bf16.msra.mxu0 %v16119_v39  ;;  %v16200_v39 = vld [vmem:[#allocation7 + $0x470] ss:$8 sps:$4 sm:$0xff]  }
 0xad7   :  { %12622 = vmatprep.subr.bf16.mxu0 %v16124_v18  ;;  %v16205_v18 = vld [vmem:[#allocation7 + $0x484] ss:$8 sps:$4 sm:$0xff]  }
 0xada   :  { %12623 = vmatpush1.bf16.msra.mxu0 %v16122_v52  ;;  %v16203_v52 = vld [vmem:[#allocation7 + $0x480] ss:$8 sps:$4 sm:$0xff]  }
 0xadb   :  { %12624 = vmatprep.subr.bf16.mxu0 %v16127_v33  ;;  %v16208_v33 = vld [vmem:[#allocation7 + $0x494] ss:$8 sps:$4 sm:$0xff]  }
 0xade   :  { %12625 = vmatpush1.bf16.msra.mxu0 %v16125_v4  ;;  %v16206_v4 = vld [vmem:[#allocation7 + $0x490] ss:$8 sps:$4 sm:$0xff]  }
 0xadf   :  { %12626 = vmatprep.subr.bf16.mxu0 %v16130_v21  ;;  %v16211_v21 = vld [vmem:[#allocation7 + $0x4a4] ss:$8 sps:$4 sm:$0xff]  }
 0xae2   :  { %12627 = vmatpush1.bf16.msra.mxu0 %v16128_v5  ;;  %v16209_v5 = vld [vmem:[#allocation7 + $0x4a0] ss:$8 sps:$4 sm:$0xff]  }
 0xae3   :  { %12639 = vmatprep.subr.bf16.mxu0 %v16133_v14  ;;  %v16214_v14 = vld [vmem:[#allocation7 + $0x4b4] ss:$8 sps:$4 sm:$0xff]  }
 0xae5   :  { %14612 = vmatmul.mubr.msk.bf16.vlgmr.msra.gmra.mrb[64].mxu0 %vm21145_vm4, %v14611_v41  ;;  %v16148_v41 = vld [vmem:[#allocation7 + $0x154] ss:$8 sps:$4 sm:$0xff]  }
 0xae6   :  { %12640 = vmatpush1.bf16.msra.mxu0 %v16131_v8  ;;  %14617 = vmatprep.mubr.msk.bf16.mxu0 %vm21145_vm4, %v14616_v59  ;;  %v16149_v59 = vld [vmem:[#allocation7 + $0x160] ss:$8 sps:$4 sm:$0xff]   ;;  %v16212_v8 = vld [vmem:[#allocation7 + $0x4b0] ss:$8 sps:$4 sm:$0xff]  }
 0xae7   :  { %12641 = vmatprep.subr.bf16.mxu0 %v16136_v10  ;;  %v16217_v10 = vld [vmem:[#allocation7 + $0x4c4] ss:$8 sps:$4 sm:$0xff]  }
 0xaea   :  { %12642 = vmatpush1.bf16.msra.mxu0 %v16134_v43  ;;  %v16215_v43 = vld [vmem:[#allocation7 + $0x4c0] ss:$8 sps:$4 sm:$0xff]  }
 0xaeb   :  { %12643 = vmatprep.subr.bf16.mxu0 %v16139_v56  ;;  %v16220_v56 = vld [vmem:[#allocation7 + $0x4d4] ss:$8 sps:$4 sm:$0xff]  }
 0xaee   :  { %12644 = vmatpush1.bf16.msra.mxu0 %v16137_v60  ;;  %v16218_v60 = vld [vmem:[#allocation7 + $0x4d0] ss:$8 sps:$4 sm:$0xff]  }
 0xaef   :  { %12645 = vmatprep.subr.bf16.mxu0 %v16142_v1  ;;  %v16223_v1 = vld [vmem:[#allocation7 + $0x4e4] ss:$8 sps:$4 sm:$0xff]  }
 0xaf2   :  { %12646 = vmatpush1.bf16.msra.mxu0 %v16140_v44  ;;  %v16221_v44 = vld [vmem:[#allocation7 + $0x4e0] ss:$8 sps:$4 sm:$0xff]  }
 0xaf3   :  { %12647 = vmatprep.subr.bf16.mxu0 %v16145_v3  ;;  %v16226_v3 = vld [vmem:[#allocation7 + $0x4f4] ss:$8 sps:$4 sm:$0xff]  }
 0xaf6   :  { %12648 = vmatpush1.bf16.msra.mxu0 %v16143_v27  ;;  %v16224_v27 = vld [vmem:[#allocation7 + $0x4f0] ss:$8 sps:$4 sm:$0xff]  }
 0xaf7   :  { %12649 = vmatprep.subr.bf16.mxu0 %v16148_v41  ;;  %v16229_v41 = vld [vmem:[#allocation7 + $0x504] ss:$8 sps:$4 sm:$0xff]  }
 0xafa   :  { %12650 = vmatpush1.bf16.msra.mxu0 %v16146_v37  ;;  %v16227_v37 = vld [vmem:[#allocation7 + $0x500] ss:$8 sps:$4 sm:$0xff]  }
 0xafb   :  { %12651 = vmatprep.subr.bf16.mxu0 %v16151_v29  ;;  %v16232_v29 = vld [vmem:[#allocation7 + $0x514] ss:$8 sps:$4 sm:$0xff]  }
 0xafe   :  { %12652 = vmatpush1.bf16.msra.mxu0 %v16149_v59  ;;  %v16230_v59 = vld [vmem:[#allocation7 + $0x510] ss:$8 sps:$4 sm:$0xff]  }
 0xaff   :  { %12653 = vmatprep.subr.bf16.mxu0 %v16154_v15  ;;  %v16235_v15 = vld [vmem:[#allocation7 + $0x524] ss:$8 sps:$4 sm:$0xff]  }
 0xb02   :  { %12654 = vmatpush1.bf16.msra.mxu0 %v16152_v57  ;;  %v16233_v57 = vld [vmem:[#allocation7 + $0x520] ss:$8 sps:$4 sm:$0xff]  }
 0xb03   :  { %12655 = vmatprep.subr.bf16.mxu0 %v16157_v11  ;;  %v16238_v11 = vld [vmem:[#allocation7 + $0x534] ss:$8 sps:$4 sm:$0xff]  }
 0xb06   :  { %12656 = vmatpush1.bf16.msra.mxu0 %v16155_v0  ;;  %v16236_v0 = vld [vmem:[#allocation7 + $0x530] ss:$8 sps:$4 sm:$0xff]  }
 0xb07   :  { %12657 = vmatprep.subr.bf16.mxu0 %v16160_v53  ;;  %v16250_v53 = vld [vmem:[#allocation7 + $0x574] ss:$8 sps:$4 sm:$0xff]  }
 0xb0a   :  { %12658 = vmatpush1.bf16.msra.mxu0 %v16158_v17  ;;  %v16248_v17 = vld [vmem:[#allocation7 + $0x570] ss:$8 sps:$4 sm:$0xff]  }
 0xb0b   :  { %12659 = vmatprep.subr.bf16.mxu0 %v16163_v38  ;;  %v16253_v38 = vld [vmem:[#allocation7 + $0x584] ss:$8 sps:$4 sm:$0xff]  }
 0xb0e   :  { %12660 = vmatpush1.bf16.msra.mxu0 %v16161_v9  ;;  %v16251_v9 = vld [vmem:[#allocation7 + $0x580] ss:$8 sps:$4 sm:$0xff]  }
 0xb0f   :  { %12661 = vmatprep.subr.bf16.mxu0 %v16166_v25  ;;  %v16256_v25 = vld [vmem:[#allocation7 + $0x594] ss:$8 sps:$4 sm:$0xff]  }
 0xb12   :  { %12662 = vmatpush1.bf16.msra.mxu0 %v16164_v34  ;;  %v16254_v34 = vld [vmem:[#allocation7 + $0x590] ss:$8 sps:$4 sm:$0xff]  }
 0xb13   :  { %12663 = vmatprep.subr.bf16.mxu0 %v16169_v63  ;;  %v16259_v63 = vld [vmem:[#allocation7 + $0x5a4] ss:$8 sps:$4 sm:$0xff]  }
 0xb16   :  { %12664 = vmatpush1.bf16.msra.mxu0 %v16167_v55  ;;  %v16257_v55 = vld [vmem:[#allocation7 + $0x5a0] ss:$8 sps:$4 sm:$0xff]  }
 0xb17   :  { %12665 = vmatprep.subr.bf16.mxu0 %v16172_v19  ;;  %v16262_v19 = vld [vmem:[#allocation7 + $0x5b4] ss:$8 sps:$4 sm:$0xff]  }
 0xb1a   :  { %12666 = vmatpush1.bf16.msra.mxu0 %v16170_v7  ;;  %v16260_v7 = vld [vmem:[#allocation7 + $0x5b0] ss:$8 sps:$4 sm:$0xff]  }
 0xb1b   :  { %12667 = vmatprep.subr.bf16.mxu0 %v16175_v16  ;;  %v16265_v16 = vld [vmem:[#allocation7 + $0x5c4] ss:$8 sps:$4 sm:$0xff]  }
 0xb1e   :  { %12668 = vmatpush1.bf16.msra.mxu0 %v16173_v51  ;;  %v16263_v51 = vld [vmem:[#allocation7 + $0x5c0] ss:$8 sps:$4 sm:$0xff]  }
 0xb1f   :  { %12669 = vmatprep.subr.bf16.mxu0 %v16178_v62  ;;  %v16268_v62 = vld [vmem:[#allocation7 + $0x5d4] ss:$8 sps:$4 sm:$0xff]  }
 0xb22   :  { %12670 = vmatpush1.bf16.msra.mxu0 %v16176_v31  ;;  %v16266_v31 = vld [vmem:[#allocation7 + $0x5d0] ss:$8 sps:$4 sm:$0xff]  }
 0xb23   :  { %13071 = vmatprep.subr.bf16.mxu0 %v16181_v23  ;;  %v16271_v23 = vld [vmem:[#allocation7 + $0x5e4] ss:$8 sps:$4 sm:$0xff]  }
 0xb25   :  { %14622 = vmatmul.mubr.msk.bf16.vlgmr.msra.gmra.mrb[64].mxu0 %vm21145_vm4, %v14621_v28  ;;  %v16196_v28 = vld [vmem:[#allocation7 + $0x454] ss:$8 sps:$4 sm:$0xff]  }
 0xb26   :  { %13072 = vmatpush1.bf16.msra.mxu0 %v16179_v13  ;;  %14691 = vmatprep.mubr.msk.bf16.mxu0 %vm21157_vm15, %v14690_v35  ;;  %v16197_v35 = vld [vmem:[#allocation7 + $0x460] ss:$8 sps:$4 sm:$0xff]  }
 0xb27   :  { %13073 = vmatprep.subr.bf16.mxu0 %v16184_v54  ;;  %v16269_v13 = vld [vmem:[#allocation7 + $0x5e0] ss:$8 sps:$4 sm:$0xff]   ;;  %v16274_v54 = vld [vmem:[#allocation7 + $0x5f4] ss:$8 sps:$4 sm:$0xff]  }
 0xb2a   :  { %13074 = vmatpush1.bf16.msra.mxu0 %v16182_v22  ;;  %v13429_v22 = vld [vmem:[#allocation8 + $0x80] sm:$0xff] }
 0xb2b   :  { %13075 = vmatprep.subr.bf16.mxu0 %v16187_v61  ;;  %v13430_v61 = vld [vmem:[#allocation8 + $0x88] sm:$0xff] }
 0xb2e   :  { %13076 = vmatpush1.bf16.msra.mxu0 %v16185_v24  ;;  %v16272_v24 = vld [vmem:[#allocation7 + $0x5f0] ss:$8 sps:$4 sm:$0xff]  }
 0xb2f   :  { %13077 = vmatprep.subr.bf16.mxu0 %v16190_v48  ;;  %v15349_v48 = vpack.c.bf16 %v13430_v61, %v13429_v22 }
 0xb32   :  { %13078 = vmatpush1.bf16.msra.mxu0 %v16188_v58  ;;  %v13462_v58 = vld [vmem:[#allocation8 + $0x180] sm:$0xff] }
 0xb33   :  { %13079 = vmatprep.subr.bf16.mxu0 %v16193_v20  ;;  %v13463_v20 = vld [vmem:[#allocation8 + $0x188] sm:$0xff] }
 0xb36   :  { %13080 = vmatpush1.bf16.msra.mxu0 %v16191_v32  ;;  %v13413_v32 = vld [vmem:[#allocation8] sm:$0xff] }
 0xb37   :  { %13081 = vmatprep.subr.bf16.mxu0 %v16196_v28  ;;  %v15253_v28 = vpack.c.bf16 %v13463_v20, %v13462_v58  ;;  %v13456_v58 = vld [vmem:[#allocation8 + $0x150] sm:$0xff] }
 0xb39   :  { %15254 = vmatprep.subr.bf16.mxu1 %v15253_v28  ;;  %v13441_v28 = vld [vmem:[#allocation8 + $0xe0] sm:$0xff] }
 0xb3a   :  { %13082 = vmatpush1.bf16.msra.mxu0 %v16194_v45  ;;  %v13414_v45 = vld [vmem:[#allocation8 + $0x8] sm:$0xff] }
 0xb3b   :  { %13083 = vmatprep.subr.bf16.mxu0 %v16199_v6  ;;  %v15351_v6 = vpack.c.bf16 %v13414_v45, %v13413_v32  ;;  %v13457_v32 = vld [vmem:[#allocation8 + $0x158] sm:$0xff]  ;;  %v13442_v45 = vld [vmem:[#allocation8 + $0xe8] sm:$0xff] }
 0xb3e   :  { %13084 = vmatpush1.bf16.msra.mxu0 %v16197_v35  ;;  %v13446_v35 = vld [vmem:[#allocation8 + $0x100] sm:$0xff] }
 0xb3f   :  { %13085 = vmatprep.subr.bf16.mxu0 %v16202_v36  ;;  %v13447_v36 = vld [vmem:[#allocation8 + $0x108] sm:$0xff] }
 0xb42   :  { %13086 = vmatpush1.bf16.msra.mxu0 %v16200_v39  ;;  %v15255_v39 = vpack.c.bf16 %v13447_v36, %v13446_v35  ;;  %v13475_v35 = vld [vmem:[#allocation8 + $0x1e8] sm:$0xff] }
 0xb43   :  { %13087 = vmatprep.subr.bf16.mxu0 %v16205_v18  ;;  %v13431_v18 = vld [vmem:[#allocation8 + $0x90] sm:$0xff] }
 0xb44   :  { %15256 = vmatpush3.bf16.msra.mxu1 %v15255_v39  ;;  %v15275_v39 = vpack.c.bf16 %v13457_v32, %v13456_v58 }
 0xb46   :  { %13088 = vmatpush1.bf16.msra.mxu0 %v16203_v52  ;;  %v13432_v52 = vld [vmem:[#allocation8 + $0x98] sm:$0xff] }
 0xb47   :  { %13089 = vmatprep.subr.bf16.mxu0 %v16208_v33  ;;  %v13464_v33 = vld [vmem:[#allocation8 + $0x190] sm:$0xff] }
 0xb4a   :  { %13090 = vmatpush1.bf16.msra.mxu0 %v16206_v4  ;;  %v15353_v4 = vpack.c.bf16 %v13432_v52, %v13431_v18  ;;  %v15373_v18 = vpack.c.bf16 %v13442_v45, %v13441_v28  ;;  %v13425_v52 = vld [vmem:[#allocation8 + $0x60] sm:$0xff] }
 0xb4b   :  { %13091 = vmatprep.subr.bf16.mxu0 %v16211_v21  ;;  %v15355_v21 = vpack.c.bf16 %v13416_v42, %v13415_v30  ;;  %v13459_v30 = vld [vmem:[#allocation8 + $0x168] sm:$0xff]  ;;  %v13443_v42 = vld [vmem:[#allocation8 + $0xf0] sm:$0xff] }
 0xb4e   :  { %13092 = vmatpush1.bf16.msra.mxu0 %v16209_v5  ;;  %v13448_v5 = vld [vmem:[#allocation8 + $0x110] sm:$0xff] }
 0xb4f   :  { %13093 = vmatprep.subr.bf16.mxu0 %v16214_v14  ;;  %v13449_v14 = vld [vmem:[#allocation8 + $0x118] sm:$0xff] }
 0xb52   :  { %13094 = vmatpush1.bf16.msra.mxu0 %v16212_v8  ;;  %v13433_v8 = vld [vmem:[#allocation8 + $0xa0] sm:$0xff] }
 0xb53   :  { %13095 = vmatprep.subr.bf16.mxu0 %v16217_v10  ;;  %v15259_v10 = vpack.c.bf16 %v13449_v14, %v13448_v5  ;;  %v13477_v5 = vld [vmem:[#allocation8 + $0x1f8] sm:$0xff] }
 0xb56   :  { %13096 = vmatpush1.bf16.msra.mxu0 %v16215_v43  ;;  %v13434_v43 = vld [vmem:[#allocation8 + $0xa8] sm:$0xff] }
 0xb57   :  { %13097 = vmatprep.subr.bf16.mxu0 %v16220_v56  ;;  %v13466_v56 = vld [vmem:[#allocation8 + $0x1a0] sm:$0xff] }
 0xb5a   :  { %13098 = vmatpush1.bf16.msra.mxu0 %v16218_v60  ;;  %v13467_v60 = vld [vmem:[#allocation8 + $0x1a8] sm:$0xff] }
 0xb5b   :  { %13099 = vmatprep.subr.bf16.mxu0 %v16223_v1  ;;  %v15357_v1 = vpack.c.bf16 %v13434_v43, %v13433_v8  ;;  %v13427_v43 = vld [vmem:[#allocation8 + $0x70] sm:$0xff] }
 0xb5e   :  { %13100 = vmatpush1.bf16.msra.mxu0 %v16221_v44  ;;  %v15261_v44 = vpack.c.bf16 %v13467_v60, %v13466_v56  ;;  %v13428_v56 = vld [vmem:[#allocation8 + $0x78] sm:$0xff] }
 0xb5f   :  { %13101 = vmatprep.subr.bf16.mxu0 %v16226_v3  ;;  %v13417_v3 = vld [vmem:[#allocation8 + $0x20] sm:$0xff] }
 0xb62   :  { %13102 = vmatpush1.bf16.msra.mxu0 %v16224_v27  ;;  %v13418_v27 = vld [vmem:[#allocation8 + $0x28] sm:$0xff] }
 0xb63   :  { %13114 = vmatprep.subr.bf16.mxu0 %v16229_v41  ;;  %v13450_v41 = vld [vmem:[#allocation8 + $0x120] sm:$0xff] }
 0xb65   :  { %14696 = vmatmul.mubr.msk.bf16.vlgmr.msra.gmra.mrb[64].mxu0 %vm21157_vm15, %v14695_v2  ;;  %v16244_v2 = vld [vmem:[#allocation7 + $0x554] ss:$8 sps:$4 sm:$0xff]  }
 0xb66   :  { %13115 = vmatpush1.bf16.msra.mxu0 %v16227_v37  ;;  %14701 = vmatprep.mubr.msk.bf16.mxu0 %vm21157_vm15, %v14700_v50  ;;  %v16245_v50 = vld [vmem:[#allocation7 + $0x560] ss:$8 sps:$4 sm:$0xff]   ;;  %v15359_v37 = vpack.c.bf16 %v13418_v27, %v13417_v3 }
 0xb67   :  { %13116 = vmatprep.subr.bf16.mxu0 %v16232_v29  ;;  %v13451_v29 = vld [vmem:[#allocation8 + $0x128] sm:$0xff]  ;;  %v13573_v3 = vld [vmem:[#allocation8 + $0x280] sm:$0xff] }
 0xb68   :  { %v13574_v27 = vld [vmem:[#allocation8 + $0x288] sm:$0xff] }
 0xb6a   :  { %13117 = vmatpush1.bf16.msra.mxu0 %v16230_v59  ;;  %v13435_v59 = vld [vmem:[#allocation8 + $0xb0] sm:$0xff] }
 0xb6b   :  { %13118 = vmatprep.subr.bf16.mxu0 %v16235_v15  ;;  %v13436_v15 = vld [vmem:[#allocation8 + $0xb8] sm:$0xff] }
 0xb6e   :  { %13119 = vmatpush1.bf16.msra.mxu0 %v16233_v57  ;;  %v15263_v57 = vpack.c.bf16 %v13451_v29, %v13450_v41  ;;  %v15379_v41 = vpack.c.bf16 %v13428_v56, %v13427_v43  ;;  %v15285_v29 = vpack.c.bf16 %v13574_v27, %v13573_v3 }
 0xb6f   :  { %13120 = vmatprep.subr.bf16.mxu0 %v16238_v11  ;;  %v15361_v11 = vpack.c.bf16 %v13436_v15, %v13435_v59  ;;  %v13161_v59 = vld [vmem:[%s21363_s12] sm:$0x3]  ;;  %v21943_v15 = vld [vmem:[#allocation54_spill] sm:$0xff] }
 0xb72   :  { %13121 = vmatpush1.bf16.msra.mxu0 %v16236_v0  ;;  %v13468_v0 = vld [vmem:[#allocation8 + $0x1b0] sm:$0xff] }
 0xb73   :  { %13122 = vmatprep.subr.bf16.mxu0 %v16241_v49  ;;  %v13469_v49 = vld [vmem:[#allocation8 + $0x1b8] sm:$0xff] }
 0xb76   :  { %13123 = vmatpush1.bf16.msra.mxu0 %v16239_v26  ;;  %v13419_v26 = vld [vmem:[#allocation8 + $0x30] sm:$0xff] }
 0xb77   :  { %13124 = vmatprep.subr.bf16.mxu0 %v16244_v2  ;;  %v15265_v2 = vpack.c.bf16 %v13469_v49, %v13468_v0 }
 0xb7a   :  { %13125 = vmatpush1.bf16.msra.mxu0 %v16242_v47  ;;  %v13420_v47 = vld [vmem:[#allocation8 + $0x38] sm:$0xff] }
 0xb7b   :  { %13126 = vmatprep.subr.bf16.mxu0 %v16247_v40  ;;  %v13452_v40 = vld [vmem:[#allocation8 + $0x130] sm:$0xff] }
 0xb7e   :  { %13127 = vmatpush1.bf16.msra.mxu0 %v16245_v50  ;;  %v13453_v50 = vld [vmem:[#allocation8 + $0x138] sm:$0xff] }
 0xb7f   :  { %13128 = vmatprep.subr.bf16.mxu0 %v16250_v53  ;;  %v15363_v53 = vpack.c.bf16 %v13420_v47, %v13419_v26 }
 0xb82   :  { %13129 = vmatpush1.bf16.msra.mxu0 %v16248_v17  ;;  %v13437_v17 = vld [vmem:[#allocation8 + $0xc0] sm:$0xff] }
 0xb83   :  { %13130 = vmatprep.subr.bf16.mxu0 %v16253_v38  ;;  %v13438_v38 = vld [vmem:[#allocation8 + $0xc8] sm:$0xff] }
 0xb86   :  { %13131 = vmatpush1.bf16.msra.mxu0 %v16251_v9  ;;  %v13470_v9 = vld [vmem:[#allocation8 + $0x1c0] sm:$0xff] }
 0xb87   :  { %13132 = vmatprep.subr.bf16.mxu0 %v16256_v25  ;;  %v15267_v25 = vpack.c.bf16 %v13453_v50, %v13452_v40 }
 0xb8a   :  { %13133 = vmatpush1.bf16.msra.mxu0 %v16254_v34  ;;  %v15365_v34 = vpack.c.bf16 %v13438_v38, %v13437_v17 }
 0xb8b   :  { %13134 = vmatprep.subr.bf16.mxu0 %v16259_v63  ;;  %v13471_v63 = vld [vmem:[#allocation8 + $0x1c8] sm:$0xff] }
 0xb8e   :  { %13135 = vmatpush1.bf16.msra.mxu0 %v16257_v55  ;;  %v13421_v55 = vld [vmem:[#allocation8 + $0x40] sm:$0xff] }
 0xb8f   :  { %13136 = vmatprep.subr.bf16.mxu0 %v16262_v19  ;;  %v13422_v19 = vld [vmem:[#allocation8 + $0x48] sm:$0xff] }
 0xb92   :  { %13137 = vmatpush1.bf16.msra.mxu0 %v16260_v7  ;;  %v15269_v7 = vpack.c.bf16 %v13471_v63, %v13470_v9 }
 0xb93   :  { %13138 = vmatprep.subr.bf16.mxu0 %v16265_v16  ;;  %v13454_v16 = vld [vmem:[#allocation8 + $0x140] sm:$0xff] }
 0xb96   :  { %13139 = vmatpush1.bf16.msra.mxu0 %v16263_v51  ;;  %v13455_v51 = vld [vmem:[#allocation8 + $0x148] sm:$0xff] }
 0xb97   :  { %13140 = vmatprep.subr.bf16.mxu0 %v16268_v62  ;;  %v13439_v62 = vld [vmem:[#allocation8 + $0xd0] sm:$0xff]  ;;  %v15271_v22 = vpack.c.bf16 %v13455_v51, %v13454_v16 }
 0xb9a   :  { %13141 = vmatpush1.bf16.msra.mxu0 %v16266_v31  ;;  %v13440_v31 = vld [vmem:[#allocation8 + $0xd8] sm:$0xff] }
 0xb9b   :  { %13142 = vmatprep.subr.bf16.mxu0 %v16271_v23  ;;  %v13472_v23 = vld [vmem:[#allocation8 + $0x1d0] sm:$0xff]  ;;  %v15369_v61 = vpack.c.bf16 %v13440_v31, %v13439_v62 }
 0xb9e   :  { %13143 = vmatpush1.bf16.msra.mxu0 %v16269_v13  ;;  %v13473_v13 = vld [vmem:[#allocation8 + $0x1d8] sm:$0xff] }
 0xb9f   :  { %13144 = vmatprep.subr.bf16.mxu0 %v16274_v54  ;;  %v15367_v54 = vpack.c.bf16 %v13422_v19, %v13421_v55  ;;  %v15273_v20 = vpack.c.bf16 %v13473_v13, %v13472_v23  ;;  %v21201_v19 = vld [vmem:[#allocation8 + $0x200] sm:$0xff]  ;;  %v21205_v23 = vld [vmem:[#allocation8 + $0x208] sm:$0xff]  ;;  %v21207_v13 = vld [vmem:[#allocation8 + $0x290] sm:$0xff] }
 0xba0   :  { %v15287_v32 = vpack.c.bf16 %v21205_v23, %v21201_v19  ;;  %v13580_v19 = vld [vmem:[#allocation8 + $0x2b8] sm:$0xff] }
 0xba2   :  { %13145 = vmatpush1.bf16.msra.mxu0 %v16272_v24  ;;  %v13423_v24 = vld [vmem:[#allocation8 + $0x50] sm:$0xff] }
 0xba3   :  { %15350 = vmatprep.subr.bf16.mxu0 %v15349_v48  ;;  %v13424_v48 = vld [vmem:[#allocation8 + $0x58] sm:$0xff] }
 0xba4   :  { %v15371_v36 = vpack.c.bf16 %v13424_v48, %v13423_v24 }
 0xba5   :  { %14706 = vmatmul.mubr.msk.bf16.vlgmr.msra.gmra.mrb[64].mxu0 %vm21157_vm15, %v14705_v12  ;;  %v15257_v12 = vpack.c.bf16 %v13465_v46, %v13464_v33  ;;  %v13426_v33 = vld [vmem:[#allocation8 + $0x68] sm:$0xff] }
 0xba6   :  { %15352 = vmatpush3.bf16.msra.mxu0 %v15351_v6  ;;  %v13474_v6 = vld [vmem:[#allocation8 + $0x1e0] sm:$0xff]  ;;  %v15375_v14 = vpack.c.bf16 %v13426_v33, %v13425_v52 }
 0xba7   :  { %15354 = vmatprep.subr.bf16.mxu0 %v15353_v4  ;;  %15258 = vmatprep.subr.bf16.mxu1 %v15257_v12  ;;  %v13458_v4 = vld [vmem:[#allocation8 + $0x160] sm:$0xff]  ;;  %v15277_v46 = vpack.c.bf16 %v13475_v35, %v13474_v6  ;;  %v13444_v12 = vld [vmem:[#allocation8 + $0xf8] sm:$0xff] }
 0xba8   :  { %15260 = vmatpush3.bf16.msra.mxu1 %v15259_v10  ;;  %v15279_v8 = vpack.c.bf16 %v13459_v30, %v13458_v4  ;;  %v15377_v10 = vpack.c.bf16 %v13444_v12, %v13443_v42 }
 0xba9   :  { %15262 = vmatprep.subr.bf16.mxu1 %v15261_v44  ;;  %v13461_v44 = vld [vmem:[#allocation8 + $0x178] sm:$0xff] }
 0xbaa   :  { %15356 = vmatpush3.bf16.msra.mxu0 %v15355_v21  ;;  %v13476_v21 = vld [vmem:[#allocation8 + $0x1f0] sm:$0xff] }
 0xbab   :  { %15358 = vmatprep.subr.bf16.mxu0 %v15357_v1  ;;  %v15281_v60 = vpack.c.bf16 %v13477_v5, %v13476_v21  ;;  %v13460_v1 = vld [vmem:[#allocation8 + $0x170] sm:$0xff] }
 0xbac   :  { %15264 = vmatpush3.bf16.msra.mxu1 %v15263_v57  ;;  %v13166_v57 = vrot.slane %v13161_v59, %v21943_v15 }
 0xbad   :  { %15266 = vmatprep.subr.bf16.mxu1 %v15265_v2 }
 0xbae   :  { %15360 = vmatpush3.bf16.msra.mxu0 %v15359_v37  ;;  %v15283_v37 = vpack.c.bf16 %v13461_v44, %v13460_v1 }
 0xbaf   :  { %15362 = vmatprep.subr.bf16.mxu0 %v15361_v11  ;;  %v21944_v11 = vld [vmem:[#allocation67_spill] sm:$0xff] }
 0xbb0   :  { %15268 = vmatpush3.bf16.msra.mxu1 %v15267_v25  ;;  %v13170_v0 = vrot.slane %v13161_v59, %v21944_v11 }
 0xbb1   :  { %15270 = vmatprep.subr.bf16.mxu1 %v15269_v7  ;;  %v21945_v7 = vld [vmem:[#allocation16_spill] sm:$0xff] }
 0xbb2   :  { %15364 = vmatpush3.bf16.msra.mxu0 %v15363_v53 }
 0xbb3   :  { %15366 = vmatprep.subr.bf16.mxu0 %v15365_v34 }
 0xbb4   :  { %15272 = vmatpush3.bf16.msra.mxu1 %v15271_v22 }
 0xbb5   :  { %15274 = vmatprep.subr.bf16.mxu1 %v15273_v20 }
 0xbb6   :  { %15368 = vmatpush3.bf16.msra.mxu0 %v15367_v54  ;;  %v21209_v54 = vld [vmem:[#allocation8 + $0x298] sm:$0xff] }
 0xbb7   :  { %15370 = vmatprep.subr.bf16.mxu0 %v15369_v61  ;;  %v15289_v28 = vpack.c.bf16 %v21209_v54, %v21207_v13  ;;  %v13581_v54 = vld [vmem:[#allocation8 + $0x2c0] sm:$0xff] }
 0xbb8   :  { %15276 = vmatpush3.bf16.msra.mxu1 %v15275_v39 }
 0xbb9   :  { %15278 = vmatprep.subr.bf16.mxu1 %v15277_v46 }
 0xbba   :  { %15372 = vmatpush3.bf16.msra.mxu0 %v15371_v36 }
 0xbbb   :  { %15374 = vmatprep.subr.bf16.mxu0 %v15373_v18 }
 0xbbc   :  { %15280 = vmatpush3.bf16.msra.mxu1 %v15279_v8 }
 0xbbd   :  { %15282 = vmatprep.subr.bf16.mxu1 %v15281_v60 }
 0xbbe   :  { %15376 = vmatpush3.bf16.msra.mxu0 %v15375_v14 }
 0xbbf   :  { %15378 = vmatprep.subr.bf16.mxu0 %v15377_v10 }
 0xbc0   :  { %15284 = vmatpush3.bf16.msra.mxu1 %v15283_v37 }
 0xbc1   :  { %15286 = vmatprep.subr.bf16.mxu1 %v15285_v29 }
 0xbc2   :  { %15380 = vmatpush3.bf16.msra.mxu0 %v15379_v41 }
 0xc78   :  { %v13148_v49 = vpop.f32.mrb[64].mxu0 }
 0xc79   :  { %v13173_v26 = vadd.f32 %v13166_v57, %v13148_v49  ;;  %v13150_v2 = vpop.f32.mrb[65].mxu0 }
 0xc7a   :  { %v13174_v47 = vadd.f32 %v13170_v0, %v13150_v2  ;;  %v13152_v40 = vpop.f32.mrb[66].mxu0 }
 0xc7b   :  { %v13177_v50 = vmax.f32 %v13173_v26, 0.0  ;;  %v13175_v53 = vadd.f32 %v13166_v57, %v13152_v40  ;;  %v13154_v17 = vpop.f32.mrb[67].mxu0 }
 0xc7c   :  { %v13178_v38 = vmax.f32 %v13174_v47, 0.0  ;;  %v13176_v9 = vadd.f32 %v13170_v0, %v13154_v17 }
 0xc7d   :  { %v13179_v25 = vmax.f32 %v13175_v53, 0.0 }
 0xc7e   :  { %v13185_v34 = vcombine.low %v13177_v50, %v13178_v38  ;;  %v13186_v63 = vcombine.high %v13177_v50, %v13178_v38  ;;  %v13180_v55 = vmax.f32 %v13176_v9, 0.0 }
 0xc80   :  { %v13193_v16 = vrot.slane %v13185_v34, %v21945_v7  ;;  %v13200_v51 = vrot.slane %v13186_v63, %v21945_v7  ;;  %v13203_v62 = vcombine.low %v13179_v25, %v13180_v55  ;;  %v13204_v31 = vcombine.high %v13179_v25, %v13180_v55 }
 0xc82   :  { %v13201_v22 = vcombine.high %v13193_v16, %v13193_v16  ;;  %v13202_v61 = vcombine.high %v13200_v51, %v13200_v51  ;;  %v13227_v24 = vrot.slane %v13193_v16, %v21945_v7  ;;  %v13243_v48 = vrot.slane %v13200_v51, %v21945_v7 }
 0xc83   :  { %v13211_v58 = vrot.slane %v13203_v62, %v21945_v7  ;;  %v13218_v20 = vrot.slane %v13204_v31, %v21945_v7 }
 0xc84   :  { %v13228_v45 = vcombine.high %v13227_v24, %v13227_v24  ;;  %v13235_v6 = vrot.slane %v13201_v22, %v21945_v7  ;;  %v13244_v35 = vcombine.high %v13243_v48, %v13243_v48  ;;  %v21221_v36 = vrot.slane %v13202_v61, %v21945_v7 }
 0xc85   :  { %v13301_v39 = vsel %vm5741_vm5, %v13227_v24, -inf  ;;  %v13329_v18 = vsel %vm5741_vm5, %v13243_v48, -inf  ;;  %v13219_v52 = vcombine.high %v13211_v58, %v13211_v58  ;;  %v13220_v33 = vcombine.high %v13218_v20, %v13218_v20 }
 0xc86   :  { %v13236_v4 = vcombine.high %v13235_v6, %v13235_v6  ;;  %v13252_v46 = vcombine.high %v21221_v36, %v21221_v36  ;;  %v13302_v30 = vrot.slane %v13301_v39, 4  ;;  %v13308_v42 = vsel %vm5741_vm5, %v13228_v45, -inf }
 0xc87   :  { %v13309_v12 = vrot.slane %v13308_v42, 4  ;;  %v13315_v21 = vsel %vm5741_vm5, %v13235_v6, -inf  ;;  %v13330_v5 = vrot.slane %v13329_v18, 4  ;;  %v21230_v14 = vsel %vm5741_vm5, %v13244_v35, -inf }
 0xc88   :  { %v13303_v8 = vmax.f32 %v13301_v39, %v13302_v30  ;;  %v13316_v10 = vrot.slane %v13315_v21, 4  ;;  %v13337_v43 = vrot.slane %v21230_v14, 4  ;;  %v21235_v56 = vsel %vm5741_vm5, %v21221_v36, -inf }
 0xc89   :  { %v21237_v60 = vmax.f32 %v13329_v18, %v13330_v5  ;;  %v13344_v1 = vrot.slane %v21235_v56, 4  ;;  %v13259_v44 = vrot.slane %v13211_v58, %v21945_v7  ;;  %v13267_v3 = vrot.slane %v13219_v52, %v21945_v7 }
 0xc8a   :  { %v13317_v27 = vmax.f32 %v13315_v21, %v13316_v10  ;;  %v13275_v41 = vrot.slane %v13218_v20, %v21945_v7  ;;  %v21244_v37 = vrot.slane %v13220_v33, %v21945_v7  ;;  %v13310_v29 = vmax.f32 %v13308_v42, %v13309_v12 }
 0xc8b   :  { %v13260_v59 = vcombine.high %v13259_v44, %v13259_v44  ;;  %v13268_v15 = vcombine.high %v13267_v3, %v13267_v3  ;;  %v13357_v57 = vsel %vm5741_vm5, %v13259_v44, -inf  ;;  %v13371_v11 = vsel %vm5741_vm5, %v13267_v3, -inf }
 0xc8c   :  { %v13318_v0 = vrot.slane %v13317_v27, 2  ;;  %v13276_v49 = vcombine.high %v13275_v41, %v13275_v41  ;;  %v13284_v26 = vcombine.high %v21244_v37, %v21244_v37  ;;  %v13358_v2 = vrot.slane %v13357_v57, 4 }
 0xc8d   :  { %v13364_v47 = vsel %vm5741_vm5, %v13260_v59, -inf  ;;  %v13372_v40 = vrot.slane %v13371_v11, 4  ;;  %v13385_v50 = vsel %vm5741_vm5, %v13275_v41, -inf  ;;  %v21254_v53 = vsel %vm5741_vm5, %v21244_v37, -inf  ;;  %v13578_v37 = vld [vmem:[#allocation8 + $0x2a8] sm:$0xff] }
 0xc8e   :  { %v13359_v17 = vmax.f32 %v13357_v57, %v13358_v2  ;;  %v13365_v38 = vrot.slane %v13364_v47, 4  ;;  %v13386_v9 = vrot.slane %v13385_v50, 4  ;;  %v13392_v25 = vsel %vm5741_vm5, %v13276_v49, -inf }
 0xc8f   :  { %v13373_v34 = vmax.f32 %v13371_v11, %v13372_v40  ;;  %v13393_v63 = vrot.slane %v13392_v25, 4  ;;  %v13400_v55 = vrot.slane %v21254_v53, 4  ;;  %v13311_v7 = vrot.slane %v13310_v29, 2 }
 0xc90   :  { %v13387_v16 = vmax.f32 %v13385_v50, %v13386_v9  ;;  %v13366_v51 = vmax.f32 %v13364_v47, %v13365_v38  ;;  %v13304_v62 = vrot.slane %v13303_v8, 2  ;;  %v13360_v31 = vrot.slane %v13359_v17, 2 }
 0xc91   :  { %v13374_v22 = vrot.slane %v13373_v34, 2  ;;  %v13312_v61 = vmax.f32 %v13310_v29, %v13311_v7  ;;  %v13322_v24 = vsel %vm5741_vm5, %v13236_v4, -inf  ;;  %v13378_v48 = vsel %vm5741_vm5, %v13268_v15, -inf }
 0xc92   :  { %v13367_v58 = vrot.slane %v13366_v51, 2  ;;  %v13305_v20 = vmax.f32 %v13303_v8, %v13304_v62  ;;  %v13361_v45 = vmax.f32 %v13359_v17, %v13360_v31  ;;  %v13323_v6 = vrot.slane %v13322_v24, 4 }
 0xc93   :  { %v13313_v35 = vrot.slane %v13312_v61, 1  ;;  %v13379_v39 = vrot.slane %v13378_v48, 4  ;;  %v13319_v18 = vmax.f32 %v13317_v27, %v13318_v0  ;;  %v13375_v52 = vmax.f32 %v13373_v34, %v13374_v22 }
 0xc94   :  { %v13368_v33 = vmax.f32 %v13366_v51, %v13367_v58  ;;  %v13306_v30 = vrot.slane %v13305_v20, 1  ;;  %v13362_v42 = vrot.slane %v13361_v45, 1  ;;  %v13324_v12 = vmax.f32 %v13322_v24, %v13323_v6 }
 0xc95   :  { %v13314_v21 = vmax.f32 %v13312_v61, %v13313_v35  ;;  %v13380_v5 = vmax.f32 %v13378_v48, %v13379_v39  ;;  %v13320_v10 = vrot.slane %v13319_v18, 1  ;;  %v13376_v44 = vrot.slane %v13375_v52, 1 }
 0xc96   :  { %v13369_v3 = vrot.slane %v13368_v33, 1  ;;  %v13307_v4 = vmax.f32 %v13305_v20, %v13306_v30  ;;  %v13363_v41 = vmax.f32 %v13361_v45, %v13362_v42  ;;  %v13325_v29 = vrot.slane %v13324_v12, 2  ;;  %v13560_v20 = vld [vmem:[#allocation8 + $0x218] sm:$0xff] }
 0xc97   :  { %v13381_v59 = vrot.slane %v13380_v5, 2  ;;  %v13321_v8 = vmax.f32 %v13319_v18, %v13320_v10  ;;  %v13377_v15 = vmax.f32 %v13375_v52, %v13376_v44  ;;  %v13338_v57 = vmax.f32 %v21230_v14, %v13337_v43  ;;  %v13577_v52 = vld [vmem:[#allocation8 + $0x2a0] sm:$0xff] }
 0xc98   :  { %v13370_v11 = vmax.f32 %v13368_v33, %v13369_v3  ;;  %v13782_v27 = vsel %vm4042_vm11, %v13363_v41, %v13307_v4  ;;  %v13326_v0 = vmax.f32 %v13324_v12, %v13325_v29  ;;  %v13394_v49 = vmax.f32 %v13392_v25, %v13393_v63  ;;  %v13561_v3 = vld [vmem:[#allocation8 + $0x220] sm:$0xff]  ;;  %v13562_v4 = vld [vmem:[#allocation8 + $0x228] sm:$0xff]  ;;  %v13579_v41 = vld [vmem:[#allocation8 + $0x2b0] sm:$0xff] }
 0xc99   :  { %v13382_v2 = vmax.f32 %v13380_v5, %v13381_v59  ;;  %v13482_v47 = vsel %vm4042_vm11, %v13377_v15, %v13321_v8  ;;  %v13339_v40 = vrot.slane %v13338_v57, 2  ;;  %v13332_v50 = vrot.slane %v21237_v60, 2 }
 0xc9a   :  { %v13783_v17 = vsel %vm4042_vm11, %v13370_v11, %v13314_v21  ;;  %v13327_v38 = vrot.slane %v13326_v0, 1  ;;  %v13395_v9 = vrot.slane %v13394_v49, 2  ;;  %v13388_v34 = vrot.slane %v13387_v16, 2  ;;  %v13563_v11 = vld [vmem:[#allocation8 + $0x230] sm:$0xff] }
 0xc9b   :  { %13850 = vmatprep.mubr.f32.mxu0 %v13783_v17  ;;  %v13383_v7 = vrot.slane %v13382_v2, 1  ;;  %v13340_v51 = vmax.f32 %v13338_v57, %v13339_v40  ;;  %v13333_v14 = vmax.f32 %v21237_v60, %v13332_v50  ;;  %v13350_v43 = vsel %vm5741_vm5, %v13252_v46, -inf  ;;  %v13559_v60 = vld [vmem:[#allocation8 + $0x210] sm:$0xff] }
 0xc9c   :  { %13851 = vmatmul.mubr.f32.vlgmr.msra.gmra.mrb[68].mxu0 %v13782_v27  ;;  %v13328_v25 = vmax.f32 %v13326_v0, %v13327_v38  ;;  %v13396_v63 = vmax.f32 %v13394_v49, %v13395_v9  ;;  %v13389_v62 = vmax.f32 %v13387_v16, %v13388_v34  ;;  %v13351_v31 = vrot.slane %v13350_v43, 4  ;;  %v13564_v27 = vld [vmem:[#allocation8 + $0x238] sm:$0xff]  ;;  %v13565_v38 = vld [vmem:[#allocation8 + $0x240] sm:$0xff]  ;;  %v13566_v9 = vld [vmem:[#allocation8 + $0x248] sm:$0xff] }
 0xc9d   :  { %v13384_v22 = vmax.f32 %v13382_v2, %v13383_v7  ;;  %v13341_v61 = vrot.slane %v13340_v51, 1  ;;  %v13334_v24 = vrot.slane %v13333_v14, 1  ;;  %v13406_v48 = vsel %vm5741_vm5, %v13284_v26, -inf  ;;  %v13583_v7 = vld [vmem:[#allocation8 + $0x2d0] sm:$0xff] }
 0xc9e   :  { %v13397_v58 = vrot.slane %v13396_v63, 1  ;;  %v13390_v45 = vrot.slane %v13389_v62, 1  ;;  %v13352_v36 = vmax.f32 %v13350_v43, %v13351_v31  ;;  %v13407_v6 = vrot.slane %v13406_v48, 4  ;;  %v13586_v31 = vld [vmem:[#allocation8 + $0x2e8] sm:$0xff] }
 0xc9f   :  { %v13483_v46 = vsel %vm4042_vm11, %v13384_v22, %v13328_v25  ;;  %v13342_v35 = vmax.f32 %v13340_v51, %v13341_v61  ;;  %v13335_v39 = vmax.f32 %v13333_v14, %v13334_v24  ;;  %v13345_v16 = vmax.f32 %v21235_v56, %v13344_v1  ;;  %v13584_v51 = vld [vmem:[#allocation8 + $0x2d8] sm:$0xff]  ;;  %v13567_v25 = vld [vmem:[#allocation8 + $0x250] sm:$0xff]  ;;  %v13569_v24 = vld [vmem:[#allocation8 + $0x260] sm:$0xff] }
 0xca0   :  { %13550 = vmatprep.mubr.f32.mxu1 %v13483_v46  ;;  %v13398_v18 = vmax.f32 %v13396_v63, %v13397_v58  ;;  %v13391_v33 = vmax.f32 %v13389_v62, %v13390_v45  ;;  %v13353_v26 = vrot.slane %v13352_v36, 2  ;;  %v13408_v30 = vmax.f32 %v13406_v48, %v13407_v6  ;;  %v13568_v63 = vld [vmem:[#allocation8 + $0x258] sm:$0xff]  ;;  %v13585_v62 = vld [vmem:[#allocation8 + $0x2e0] sm:$0xff]  ;;  %v13570_v48 = vld [vmem:[#allocation8 + $0x268] sm:$0xff] }
 0xca1   :  { %13551 = vmatmul.mubr.f32.vlgmr.msra.gmra.mrb[48].mxu1 %v13482_v47  ;;  %v15291_v42 = vpack.c.bf16 %v13560_v20, %v13559_v60  ;;  %v13346_v12 = vrot.slane %v13345_v16, 2  ;;  %v13401_v21 = vmax.f32 %v21254_v53, %v13400_v55  ;;  %v15293_v44 = vpack.c.bf16 %v13578_v37, %v13577_v52  ;;  %v13587_v58 = vld [vmem:[#allocation8 + $0x2f0] sm:$0xff]  ;;  %v13588_v60 = vld [vmem:[#allocation8 + $0x2f8] sm:$0xff]  ;;  %v13684_v46 = vld [vmem:[#allocation8 + $0x380] sm:$0xff] }
 0xca2   :  { %15288 = vmatpush3.bf16.msra.mxu1 %v15287_v32  ;;  %v13594_v56 = vsel %vm4042_vm11, %v13398_v18, %v13342_v35  ;;  %v21286_v1 = vsel %vm4042_vm11, %v13391_v33, %v13335_v39  ;;  %v13354_v5 = vmax.f32 %v13352_v36, %v13353_v26  ;;  %v13409_v10 = vrot.slane %v13408_v30, 2  ;;  %v13571_v36 = vld [vmem:[#allocation8 + $0x270] sm:$0xff]  ;;  %v13572_v6 = vld [vmem:[#allocation8 + $0x278] sm:$0xff]  ;;  %v13685_v35 = vld [vmem:[#allocation8 + $0x388] sm:$0xff] }
 0xca3   :  { %13661 = vmatprep.mubr.f32.mxu1 %v13594_v56  ;;  %15290 = vmatprep.subr.bf16.mxu1 %v15289_v28  ;;  %v13347_v53 = vmax.f32 %v13345_v16, %v13346_v12  ;;  %v13402_v55 = vrot.slane %v13401_v21, 2  ;;  %v15295_v8 = vpack.c.bf16 %v13562_v4, %v13561_v3  ;;  %v15297_v57 = vpack.c.bf16 %v13580_v19, %v13579_v41  ;;  %v13582_v28 = vld [vmem:[#allocation8 + $0x2c8] sm:$0xff]  ;;  %v13668_v18 = vld [vmem:[#allocation8 + $0x300] sm:$0xff]  ;;  %v13686_v37 = vld [vmem:[#allocation8 + $0x390] sm:$0xff] }
 0xca4   :  { %v13355_v23 = vrot.slane %v13354_v5, 1  ;;  %v13410_v32 = vmax.f32 %v13408_v30, %v13409_v10  ;;  %v15299_v40 = vpack.c.bf16 %v13564_v27, %v13563_v11  ;;  %v15301_v17 = vpack.c.bf16 %v13582_v28, %v13581_v54  ;;  %v13669_v52 = vld [vmem:[#allocation8 + $0x308] sm:$0xff]  ;;  %v13687_v33 = vld [vmem:[#allocation8 + $0x398] sm:$0xff]  ;;  %v13690_v4 = vld [vmem:[#allocation8 + $0x3b0] sm:$0xff] }
 0xca5   :  { %v13348_v29 = vrot.slane %v13347_v53, 1  ;;  %v13403_v59 = vmax.f32 %v13401_v21, %v13402_v55  ;;  %v15303_v14 = vpack.c.bf16 %v13566_v9, %v13565_v38  ;;  %v15305_v43 = vpack.c.bf16 %v13584_v51, %v13583_v7  ;;  %v13671_v12 = vld [vmem:[#allocation8 + $0x318] sm:$0xff]  ;;  %v13688_v21 = vld [vmem:[#allocation8 + $0x3a0] sm:$0xff]  ;;  %v13689_v56 = vld [vmem:[#allocation8 + $0x3a8] sm:$0xff] }
 0xca6   :  { %15292 = vmatpush3.bf16.msra.mxu1 %v15291_v42  ;;  %v13411_v15 = vrot.slane %v13410_v32, 1  ;;  %v13356_v0 = vmax.f32 %v13354_v5, %v13355_v23  ;;  %v15307_v22 = vpack.c.bf16 %v13568_v63, %v13567_v25  ;;  %v15309_v61 = vpack.c.bf16 %v13586_v31, %v13585_v62  ;;  %v13670_v42 = vld [vmem:[#allocation8 + $0x310] sm:$0xff]  ;;  %v13673_v3 = vld [vmem:[#allocation8 + $0x328] sm:$0xff]  ;;  %v13675_v23 = vld [vmem:[#allocation8 + $0x338] sm:$0xff] }
 0xca7   :  { %15294 = vmatprep.subr.bf16.mxu1 %v15293_v44  ;;  %v13404_v13 = vrot.slane %v13403_v59, 1  ;;  %v13349_v2 = vmax.f32 %v13347_v53, %v13348_v29  ;;  %v15311_v20 = vpack.c.bf16 %v13570_v48, %v13569_v24  ;;  %v15313_v45 = vpack.c.bf16 %v13588_v60, %v13587_v58  ;;  %v13672_v44 = vld [vmem:[#allocation8 + $0x320] sm:$0xff]  ;;  %v13691_v53 = vld [vmem:[#allocation8 + $0x3b8] sm:$0xff]  ;;  %v13674_v19 = vld [vmem:[#allocation8 + $0x330] sm:$0xff] }
 0xca8   :  { %v13412_v49 = vmax.f32 %v13410_v32, %v13411_v15  ;;  %v15315_v39 = vpack.c.bf16 %v13572_v6, %v13571_v36  ;;  %v15317_v16 = vpack.c.bf16 %v13685_v35, %v13684_v46  ;;  %v15319_v26 = vpack.c.bf16 %v13669_v52, %v13668_v18  ;;  %v13692_v32 = vld [vmem:[#allocation8 + $0x3c0] sm:$0xff]  ;;  %v13693_v29 = vld [vmem:[#allocation8 + $0x3c8] sm:$0xff]  ;;  %v13695_v11 = vld [vmem:[#allocation8 + $0x3d8] sm:$0xff] }
 0xca9   :  { %v13405_v47 = vmax.f32 %v13403_v59, %v13404_v13  ;;  %v15321_v30 = vpack.c.bf16 %v13687_v33, %v13686_v37  ;;  %v15323_v5 = vpack.c.bf16 %v13671_v12, %v13670_v42  ;;  %v15325_v10 = vpack.c.bf16 %v13689_v56, %v13688_v21  ;;  %v13677_v15 = vld [vmem:[#allocation8 + $0x348] sm:$0xff]  ;;  %v13678_v54 = vld [vmem:[#allocation8 + $0x350] sm:$0xff]  ;;  %v13679_v28 = vld [vmem:[#allocation8 + $0x358] sm:$0xff] }
 0xcaa   :  { %15296 = vmatpush3.bf16.msra.mxu1 %v15295_v8  ;;  %v13705_v50 = vsel %vm4042_vm11, %v13412_v49, %v13356_v0  ;;  %v15327_v55 = vpack.c.bf16 %v13673_v3, %v13672_v44  ;;  %v15329_v41 = vpack.c.bf16 %v13691_v53, %v13690_v4  ;;  %v15331_v59 = vpack.c.bf16 %v13675_v23, %v13674_v19  ;;  %v13676_v8 = vld [vmem:[#allocation8 + $0x340] sm:$0xff]  ;;  %v13697_v49 = vld [vmem:[#allocation8 + $0x3e8] sm:$0xff]  ;;  %v13699_v38 = vld [vmem:[#allocation8 + $0x3f8] sm:$0xff] }
 0xcab   :  { %15298 = vmatprep.subr.bf16.mxu1 %v15297_v57  ;;  %v21293_v34 = vsel %vm4042_vm11, %v13405_v47, %v13349_v2  ;;  %v13694_v57 = vld [vmem:[#allocation8 + $0x3d0] sm:$0xff]  ;;  %v15335_v27 = vpack.c.bf16 %v13677_v15, %v13676_v8  ;;  %v13696_v0 = vld [vmem:[#allocation8 + $0x3e0] sm:$0xff]  ;;  %v15339_v2 = vpack.c.bf16 %v13679_v28, %v13678_v54  ;;  %v16390_v31 = vmov 0.0|0.0   ;;  %v14708_v15 = vld [vmem:[#allocation2] ss:$0 sm:$0xff] }
 0xcac   :  { %v15337_v13 = vpack.c.bf16 %v13695_v11, %v13694_v57  ;;  %v15341_v47 = vpack.c.bf16 %v13697_v49, %v13696_v0  ;;  %v13682_v51 = vld [vmem:[#allocation8 + $0x370] sm:$0xff]  ;;  %v13867_v25 = vld [vmem:[%s21366_s15] sm:$0xff]  ;;  %v13868_v63 = vld [vmem:[%s21366_s15 + $0x8] sm:$0xff]  ;;  %vm16391_vm11 = vmmov 0  }
 0xcad   :  { %v13869_v62 = vld [vmem:[%s21366_s15 + $0x10] sm:$0xff]  ;;  %v13871_v24 = vld [vmem:[%s21366_s15 + $0x20] sm:$0xff]  ;;  %v13872_v48 = vld [vmem:[%s21366_s15 + $0x28] sm:$0xff] }
 0xcae   :  { %15300 = vmatpush3.bf16.msra.mxu1 %v15299_v40  ;;  %v13680_v40 = vld [vmem:[#allocation8 + $0x360] sm:$0xff]  ;;  %v15388_v58 = vpack.c.bf16 %v13872_v48, %v13871_v24  ;;  %v13873_v60 = vld [vmem:[%s21366_s15 + $0x30] sm:$0xff] }
 0xcaf   :  { %15302 = vmatprep.subr.bf16.mxu1 %v15301_v17  ;;  %v13698_v17 = vld [vmem:[#allocation8 + $0x3f0] sm:$0xff]  ;;  %v13875_v36 = vld [vmem:[%s21366_s15 + $0x40] sm:$0xff]  ;;  %v13876_v6 = vld [vmem:[%s21366_s15 + $0x48] sm:$0xff] }
 0xcb0   :  { %v15345_v7 = vpack.c.bf16 %v13699_v38, %v13698_v17  ;;  %v15394_v46 = vpack.c.bf16 %v13876_v6, %v13875_v36  ;;  %v13877_v35 = vld [vmem:[%s21366_s15 + $0x50] sm:$0xff]  ;;  %v13879_v18 = vld [vmem:[%s21366_s15 + $0x60] sm:$0xff]  ;;  %v13880_v52 = vld [vmem:[%s21366_s15 + $0x68] sm:$0xff] }
 0xcb1   :  { %v13881_v37 = vld [vmem:[%s21366_s15 + $0x70] sm:$0xff]  ;;  %v15400_v33 = vpack.c.bf16 %v13880_v52, %v13879_v18 }
 0xcb2   :  { %15304 = vmatpush3.bf16.msra.mxu1 %v15303_v14  ;;  %v13683_v14 = vld [vmem:[#allocation8 + $0x378] sm:$0xff] }
 0xcb3   :  { %15306 = vmatprep.subr.bf16.mxu1 %v15305_v43  ;;  %v15347_v43 = vpack.c.bf16 %v13683_v14, %v13682_v51 }
 0xcb6   :  { %15308 = vmatpush3.bf16.msra.mxu1 %v15307_v22  ;;  %v15382_v22 = vpack.c.bf16 %v13868_v63, %v13867_v25 }
 0xcb7   :  { %15310 = vmatprep.subr.bf16.mxu1 %v15309_v61  ;;  %v13870_v61 = vld [vmem:[%s21366_s15 + $0x18] sm:$0xff] }
 0xcba   :  { %15312 = vmatpush3.bf16.msra.mxu1 %v15311_v20  ;;  %v13874_v20 = vld [vmem:[%s21366_s15 + $0x38] sm:$0xff] }
 0xcbb   :  { %15314 = vmatprep.subr.bf16.mxu1 %v15313_v45  ;;  %v15391_v45 = vpack.c.bf16 %v13874_v20, %v13873_v60 }
 0xcbe   :  { %15316 = vmatpush3.bf16.msra.mxu1 %v15315_v39  ;;  %v13878_v39 = vld [vmem:[%s21366_s15 + $0x58] sm:$0xff] }
 0xcbf   :  { %15318 = vmatprep.subr.bf16.mxu1 %v15317_v16  ;;  %v15397_v16 = vpack.c.bf16 %v13878_v39, %v13877_v35 }
 0xcc1   :  { %13662 = vmatmul.mubr.f32.vlgmr.msra.gmra.mrb[50].mxu1 %v21286_v1  ;;  %v15333_v1 = vpack.c.bf16 %v13693_v29, %v13692_v32  ;;  %v14707_v29 = vld [vmem:[%s21365_s14] ss:$0 sm:$0xff] }
 0xcc2   :  { %15320 = vmatpush3.bf16.msra.mxu1 %v15319_v26  ;;  %13772 = vmatprep.mubr.f32.mxu1 %v13705_v50  ;;  %v13681_v50 = vld [vmem:[#allocation8 + $0x368] sm:$0xff]  ;;  %v13882_v26 = vld [vmem:[%s21366_s15 + $0x78] sm:$0xff] }
 0xcc3   :  { %15322 = vmatprep.subr.bf16.mxu1 %v15321_v30  ;;  %v15343_v9 = vpack.c.bf16 %v13681_v50, %v13680_v40  ;;  %v16392_v30 = vmov 0.0   ;;  %v15403_v42 = vpack.c.bf16 %v13882_v26, %v13881_v37 }
 0xcc6   :  { %15324 = vmatpush3.bf16.msra.mxu1 %v15323_v5 }
 0xcc7   :  { %15326 = vmatprep.subr.bf16.mxu1 %v15325_v10 }
 0xcca   :  { %15328 = vmatpush3.bf16.msra.mxu1 %v15327_v55 }
 0xccb   :  { %15330 = vmatprep.subr.bf16.mxu1 %v15329_v41 }
 0xcce   :  { %15332 = vmatpush3.bf16.msra.mxu1 %v15331_v59 }
 0xccf   :  { %15334 = vmatprep.subr.bf16.mxu1 %v15333_v1 }
 0xcd2   :  { %15336 = vmatpush3.bf16.msra.mxu1 %v15335_v27 }
 0xcd3   :  { %15338 = vmatprep.subr.bf16.mxu1 %v15337_v13 }
 0xcd6   :  { %15340 = vmatpush3.bf16.msra.mxu1 %v15339_v2 }
 0xcd7   :  { %15342 = vmatprep.subr.bf16.mxu1 %v15341_v47 }
 0xcda   :  { %15344 = vmatpush3.bf16.msra.mxu1 %v15343_v9 }
 0xcdb   :  { %15346 = vmatprep.subr.bf16.mxu1 %v15345_v7 }
 0xcde   :  { %15348 = vmatpush3.bf16.msra.mxu1 %v15347_v43 }
 0xcdf   :  { %15381 = vmatprep.subr.bf16.mxu1 %v16390_v31 }
 0xce1   :  { %13773 = vmatmul.mubr.f32.vlgmr.msra.gmra.mrb[52].mxu1 %v21293_v34  ;;  %v15385_v34 = vpack.c.bf16 %v13870_v61, %v13869_v62 }
 0xce2   :  { %15383 = vmatpush3.bf16.msra.mxu1 %v15382_v22  ;;  %15250 = vmatprep.mubr.msk.f32.mxu1 %vm16391_vm11, %v16392_v30 }
 0xce3   :  { %15384 = vmatprep.subr.bf16.mxu1 %v16390_v31 }
 0xce6   :  { %15386 = vmatpush3.bf16.msra.mxu1 %v15385_v34 }
 0xce7   :  { %15387 = vmatprep.subr.bf16.mxu1 %v16390_v31 }
 0xcea   :  { %15389 = vmatpush3.bf16.msra.mxu1 %v15388_v58 }
 0xceb   :  { %15390 = vmatprep.subr.bf16.mxu1 %v16390_v31 }
 0xcee   :  { %15392 = vmatpush3.bf16.msra.mxu1 %v15391_v45 }
 0xcef   :  { %15393 = vmatprep.subr.bf16.mxu1 %v16390_v31 }
 0xcf2   :  { %15395 = vmatpush3.bf16.msra.mxu1 %v15394_v46 }
 0xcf3   :  { %15396 = vmatprep.subr.bf16.mxu1 %v16390_v31 }
 0xcf6   :  { %15398 = vmatpush3.bf16.msra.mxu1 %v15397_v16 }
 0xcf7   :  { %15399 = vmatprep.subr.bf16.mxu1 %v16390_v31 }
 0xcfa   :  { %15401 = vmatpush3.bf16.msra.mxu1 %v15400_v33 }
 0xcfb   :  { %15402 = vmatprep.subr.bf16.mxu1 %v16390_v31 }
 0xcfe   :  { %15404 = vmatpush3.bf16.msra.mxu1 %v15403_v42 }
 0xd6f   :  { %v14972_v12 = vpop.f32.mrb[68].mxu0 }
 0xd70   :  { %v14973_v21 = vpop.f32.mrb[69].mxu0 }
 0xd71   :  { %v14974_v56 = vadd.f32 %v14973_v21, %v14972_v12 }
 0xd74   :  { %v14867_v5 = vpop.f32.mrb[48].mxu1 }
 0xd75   :  { %v14868_v10 = vpop.f32.mrb[49].mxu1 }
 0xd76   :  { %v14869_v44 = vadd.f32 %v14868_v10, %v14867_v5 }
 0xd78   :  { %v13853_v3 = vadd.f32 %v14974_v56, %v14869_v44 }
 0xd94   :  { %v14902_v4 = vpop.f32.mrb[50].mxu1 }
 0xd95   :  { %v14903_v53 = vpop.f32.mrb[51].mxu1 }
 0xd96   :  { %v14904_v55 = vadd.f32 %v14903_v53, %v14902_v4 }
 0xd98   :  { %v13856_v41 = vadd.f32 %v14904_v55, %v13853_v3 }
 0xdb4   :  { %v14937_v19 = vpop.f32.mrb[52].mxu1 }
 0xdb5   :  { %v14938_v23 = vpop.f32.mrb[53].mxu1 }
 0xdb6   :  { %v14939_v32 = vadd.f32 %v14938_v23, %v14937_v19 }
 0xdb8   :  { %v13857_v59 = vadd.f32 %v14939_v32, %v13856_v41 }
 0xdba   :  { %v13865_v1 = vadd.f32 %v14707_v29, %v13857_v59 }
 0xdbc   :  { %v13866_v8 = vmax.f32 %v13865_v1, 0.0 }
 0xdbe   :  { %15251 = vmatmul.mubr.f32.vlgmr.msra.gmra.mrb[54].mxu1 %v13866_v8 }
 0xe91   :  { %v13956_v57 = vpop.f32.mrb[54].mxu1 }
 0xe92   :  { %v13957_v11 = vadd.f32 %v14708_v15, %v13956_v57  ;;  %v15252_v27 = vpop.f32.mrb[55].mxu1 }
 0xe94   :  { %v14709_v13 = vmul.f32 -1.442695, %v13957_v11 }
 0xe96   :  { %16275 = vpow2.f32 %v14709_v13 }
 0xea0   :  { %v16276_v54 = vpop.eup %16275 }
 0xea1   :  { %v13963_v28 = vadd.f32 1.0, %v16276_v54 }
 0xea3   :  { %16277 = vrcp.f32 %v13963_v28 }
 0xead   :  { %v16278_v0 = vpop.eup %16277 }
 0xeae   :  { %13967 = vst.msk [vmem:[%s21368_s17] sm:$0x3] %vm13966_vm0, %v16278_v0 }
 0xeaf   :  { %13972 = vsyncpa [#allocation4], 1 }
 0xeb0   :  { %13973 = vsyncpa [#allocation6], 1 }
 0xeb1   :  { %13974 = vsyncpa [#allocation9], 1 }

</bundles_post_ra>
